<compile_context>
chip_gen: v7x
topology: tpu7x:2x2x1
jax: 0.10.0
libtpu: 0.0.40
codegen_flags: <defaults>
</compile_context>

<pallas_src>
import jax
import jax.numpy as jnp
from jax.experimental import pallas as pl
from jax.experimental.pallas import tpu as pltpu

# Logical dims (from the PyTorch module) and their 128-aligned padded versions.
D_IN, D_H1, D_H2, D_OUT = 3000, 1000, 100, 1
D_IN_P, D_H1_P, D_H2_P = 3072, 1024, 128


def binarynet_kernel(x_ref, w1_ref, b1_ref, w2_ref, b2_ref, w5_ref, b5_ref, o_ref):
    # Layer 1: (Bt, 3072)bf16 @ (3072, 1024)bf16 -> (Bt, 1024)f32, + bias, ReLU.
    h1 = jnp.dot(x_ref[...], w1_ref[...], preferred_element_type=jnp.float32)
    h1 = jnp.maximum(h1 + b1_ref[...], 0.0)

    # Layer 2: bf16 operands on the MXU, f32 accumulation, + bias, ReLU.
    h2 = jnp.dot(h1.astype(jnp.bfloat16), w2_ref[...],
                 preferred_element_type=jnp.float32)
    h2 = jnp.maximum(h2 + b2_ref[...], 0.0)

    # Layer 5 (100 -> 1) as a VPU multiply + lane reduction (no N=1 MXU matmul).
    out = jnp.sum(h2 * w5_ref[...], axis=-1, keepdims=True) + b5_ref[...]
    o_ref[...] = out.astype(o_ref.dtype)


def _pad_to(a, shape):
    return jnp.pad(a, [(0, s - d) for d, s in zip(a.shape, shape)])


def binarynet_forward(x, w1, b1, w2, b2, w5, b5):
    """x: (B, 3000); w*: (in, out); b*: (1, out).  Returns (B, 1) float32."""
    B = x.shape[0]
    # Batch tile: bf16-aligned (multiple of 16).  Small batches -> a single tile;
    # large batches -> 256-row tiles on a "parallel" grid axis (megacore on v7x).
    if B <= 256:
        bt = max(16, ((B + 15) // 16) * 16)
        B_P = bt
    else:
        bt = 256
        B_P = ((B + bt - 1) // bt) * bt
    n_btiles = B_P // bt

    # Pad to 128-aligned shapes; stream the big operands (x, W1, W2) as bf16.
    x_p = _pad_to(x, (B_P, D_IN_P)).astype(jnp.bfloat16)
    w1_p = _pad_to(w1, (D_IN_P, D_H1_P)).astype(jnp.bfloat16)
    b1_p = _pad_to(b1.reshape(1, D_H1), (1, D_H1_P)).astype(jnp.float32)
    w2_p = _pad_to(w2, (D_H1_P, D_H2_P)).astype(jnp.bfloat16)
    b2_p = _pad_to(b2.reshape(1, D_H2), (1, D_H2_P)).astype(jnp.float32)
    w5_p = _pad_to(w5.reshape(1, D_H2), (1, D_H2_P)).astype(jnp.float32)  # (100,1) -> row
    b5_p = b5.reshape(1, 1).astype(jnp.float32)

    flops = 2 * B_P * (D_IN_P * D_H1_P + D_H1_P * D_H2_P + D_H2_P)
    bytes_accessed = (x_p.size * 2 + w1_p.size * 2 + w2_p.size * 2
                      + b1_p.size * 4 + b2_p.size * 4 + w5_p.size * 4 + 4
                      + B_P * 4)

    out_p = pl.pallas_call(
        binarynet_kernel,
        out_shape=jax.ShapeDtypeStruct((B_P, D_OUT), jnp.float32),
        grid_spec=pltpu.PrefetchScalarGridSpec(
            num_scalar_prefetch=0,
            grid=(n_btiles,),
            in_specs=[
                pl.BlockSpec((bt, D_IN_P), lambda i: (i, 0)),       # x batch tile
                pl.BlockSpec((D_IN_P, D_H1_P), lambda i: (0, 0)),   # W1 (resident, DMA'd once)
                pl.BlockSpec((1, D_H1_P), lambda i: (0, 0)),        # b1
                pl.BlockSpec((D_H1_P, D_H2_P), lambda i: (0, 0)),   # W2 (resident)
                pl.BlockSpec((1, D_H2_P), lambda i: (0, 0)),        # b2
                pl.BlockSpec((1, D_H2_P), lambda i: (0, 0)),        # w5 as a row vector
                pl.BlockSpec((1, 1), lambda i: (0, 0)),             # b5
            ],
            out_specs=pl.BlockSpec((bt, D_OUT), lambda i: (i, 0)),
        ),
        compiler_params=pltpu.CompilerParams(
            dimension_semantics=("parallel",),
            vmem_limit_bytes=32 << 20,
        ),
        cost_estimate=pl.CostEstimate(
            flops=flops, transcendentals=0, bytes_accessed=bytes_accessed),
    )(x_p, w1_p, b1_p, w2_p, b2_p, w5_p, b5_p)

    return out_p[:B]


def init_linear(key, fan_in, fan_out):
    # Deterministic init mimicking nn.Linear's default U(-1/sqrt(fan_in), 1/sqrt(fan_in)).
    kw, kb = jax.random.split(key)
    bound = 1.0 / jnp.sqrt(jnp.float32(fan_in))
    w = jax.random.uniform(kw, (fan_in, fan_out), jnp.float32, -bound, bound)
    b = jax.random.uniform(kb, (1, fan_out), jnp.float32, -bound, bound)
    return w, b


def reference_forward(x, w1, b1, w2, b2, w5, b5):
    # Mirror the kernel's streamed dtypes (x, W1, W2, h1 in bf16), compute in f32.
    xb = x.astype(jnp.bfloat16).astype(jnp.float32)
    w1b = w1.astype(jnp.bfloat16).astype(jnp.float32)
    y = jnp.maximum(xb @ w1b + b1, 0.0)
    yb = y.astype(jnp.bfloat16).astype(jnp.float32)
    w2b = w2.astype(jnp.bfloat16).astype(jnp.float32)
    y = jnp.maximum(yb @ w2b + b2, 0.0)
    return y @ w5 + b5


if __name__ == "__main__":
    key = jax.random.PRNGKey(0)
    kx, k1, k2, k5 = jax.random.split(key, 4)

    B = 8  # small batch
    x = jax.random.normal(kx, (B, D_IN), jnp.float32)
    w1, b1 = init_linear(k1, D_IN, D_H1)
    w2, b2 = init_linear(k2, D_H1, D_H2)
    w5, b5 = init_linear(k5, D_H2, D_OUT)

    out = binarynet_forward(x, w1, b1, w2, b2, w5, b5)
    out = jax.block_until_ready(out)

    ref = reference_forward(x, w1, b1, w2, b2, w5, b5)
    assert out.shape == (B, D_OUT)
    assert jnp.allclose(out, ref, atol=1e-2, rtol=1e-2), "mismatch vs JAX reference"

    print("KERNEL_OK")
</pallas_src>

<mosaic_0001>
module attributes {stable_mosaic.version = 11 : i64} {
  func.func @binarynet_kernel(%arg0: i32, %arg1: memref<16x3072xbf16, #tpu.memory_space<vmem>>, %arg2: memref<3072x1024xbf16, #tpu.memory_space<vmem>>, %arg3: memref<1x1024xf32, #tpu.memory_space<vmem>>, %arg4: memref<1024x128xbf16, #tpu.memory_space<vmem>>, %arg5: memref<1x128xf32, #tpu.memory_space<vmem>>, %arg6: memref<1x128xf32, #tpu.memory_space<vmem>>, %arg7: memref<1x1xf32, #tpu.memory_space<vmem>>, %arg8: memref<16x1xf32, #tpu.memory_space<vmem>>) attributes {dimension_semantics = [#tpu.dimension_semantics<parallel>], iteration_bounds = array<i64: 1>, scalar_prefetch = 0 : i64, scratch_operands = 0 : i64, tpu.core_type = #tpu.core_type<tc>, window_params = [{transform_indices = @transform_0, window_bounds = array<i64: 16, 3072>}, {pipeline_mode = #tpu.pipeline_mode<synchronous>, transform_indices = @transform_1, window_bounds = array<i64: 3072, 1024>}, {pipeline_mode = #tpu.pipeline_mode<synchronous>, transform_indices = @transform_2, window_bounds = array<i64: 1, 1024>}, {pipeline_mode = #tpu.pipeline_mode<synchronous>, transform_indices = @transform_3, window_bounds = array<i64: 1024, 128>}, {pipeline_mode = #tpu.pipeline_mode<synchronous>, transform_indices = @transform_4, window_bounds = array<i64: 1, 128>}, {pipeline_mode = #tpu.pipeline_mode<synchronous>, transform_indices = @transform_5, window_bounds = array<i64: 1, 128>}, {pipeline_mode = #tpu.pipeline_mode<synchronous>, transform_indices = @transform_6, window_bounds = array<i64: 1, 1>}, {transform_indices = @transform_7, window_bounds = array<i64: 16, 1>}]} {
    %c0 = arith.constant 0 : index
    %c0_0 = arith.constant 0 : index
    %0 = vector.load %arg1[%c0, %c0_0] : memref<16x3072xbf16, #tpu.memory_space<vmem>>, vector<16x3072xbf16>
    %c0_1 = arith.constant 0 : index
    %c0_2 = arith.constant 0 : index
    %1 = vector.load %arg2[%c0_1, %c0_2] : memref<3072x1024xbf16, #tpu.memory_space<vmem>>, vector<3072x1024xbf16>
    %cst = arith.constant dense<0.000000e+00> : vector<16x1024xf32>
    %2 = tpu.matmul %0, %1, %cst {dimension_numbers = #tpu.dot_dimension_numbers<[1], [0], [0], [1], [0, 0, 1, 1], [], []>} : vector<16x3072xbf16>, vector<3072x1024xbf16>, vector<16x1024xf32> -> vector<16x1024xf32>
    %c0_3 = arith.constant 0 : index
    %c0_4 = arith.constant 0 : index
    %3 = vector.load %arg3[%c0_3, %c0_4] : memref<1x1024xf32, #tpu.memory_space<vmem>>, vector<1x1024xf32>
    %4 = vector.broadcast %3 : vector<1x1024xf32> to vector<16x1024xf32>
    %5 = arith.addf %2, %4 : vector<16x1024xf32>
    %cst_5 = arith.constant 0.000000e+00 : f32
    %6 = vector.broadcast %cst_5 : f32 to vector<16x1024xf32>
    %7 = arith.maximumf %5, %6 : vector<16x1024xf32>
    %8 = arith.truncf %7 : vector<16x1024xf32> to vector<16x1024xbf16>
    %c0_6 = arith.constant 0 : index
    %c0_7 = arith.constant 0 : index
    %9 = vector.load %arg4[%c0_6, %c0_7] : memref<1024x128xbf16, #tpu.memory_space<vmem>>, vector<1024x128xbf16>
    %cst_8 = arith.constant dense<0.000000e+00> : vector<16x128xf32>
    %10 = tpu.matmul %8, %9, %cst_8 {dimension_numbers = #tpu.dot_dimension_numbers<[1], [0], [0], [1], [0, 0, 1, 1], [], []>} : vector<16x1024xbf16>, vector<1024x128xbf16>, vector<16x128xf32> -> vector<16x128xf32>
    %c0_9 = arith.constant 0 : index
    %c0_10 = arith.constant 0 : index
    %11 = vector.load %arg5[%c0_9, %c0_10] : memref<1x128xf32, #tpu.memory_space<vmem>>, vector<1x128xf32>
    %12 = vector.broadcast %11 : vector<1x128xf32> to vector<16x128xf32>
    %13 = arith.addf %10, %12 : vector<16x128xf32>
    %cst_11 = arith.constant 0.000000e+00 : f32
    %14 = vector.broadcast %cst_11 : f32 to vector<16x128xf32>
    %15 = arith.maximumf %13, %14 : vector<16x128xf32>
    %c0_12 = arith.constant 0 : index
    %c0_13 = arith.constant 0 : index
    %16 = vector.load %arg6[%c0_12, %c0_13] : memref<1x128xf32, #tpu.memory_space<vmem>>, vector<1x128xf32>
    %17 = vector.broadcast %16 : vector<1x128xf32> to vector<16x128xf32>
    %18 = arith.mulf %15, %17 : vector<16x128xf32>
    %cst_14 = arith.constant dense<0.000000e+00> : vector<16xf32>
    %19 = vector.multi_reduction <add>, %18, %cst_14 [1] : vector<16x128xf32> to vector<16xf32>
    %20 = vector.shape_cast %19 : vector<16xf32> to vector<16x1xf32>
    %c0_15 = arith.constant 0 : index
    %c0_16 = arith.constant 0 : index
    %21 = vector.load %arg7[%c0_15, %c0_16] : memref<1x1xf32, #tpu.memory_space<vmem>>, vector<1x1xf32>
    %22 = vector.broadcast %21 : vector<1x1xf32> to vector<16x1xf32>
    %23 = arith.addf %20, %22 : vector<16x1xf32>
    %c0_17 = arith.constant 0 : index
    %c0_18 = arith.constant 0 : index
    %24 = vector.load %arg8[%c0_17, %c0_18] : memref<16x1xf32, #tpu.memory_space<vmem>>, vector<16x1xf32>
    tpu.vector_store %arg8[%c0_17, %c0_18], %23 {strides = array<i32>} : memref<16x1xf32, #tpu.memory_space<vmem>>, vector<16x1xf32>,
    return
  }
  func.func @transform_0(%arg0: i32) -> (i32, i32) {
    %c0_i32 = arith.constant 0 : i32
    %c0_i32_0 = arith.constant 0 : i32
    return %arg0, %c0_i32 : i32, i32
  }
  func.func @transform_1(%arg0: i32) -> (i32, i32) {
    %c0_i32 = arith.constant 0 : i32
    %c0_i32_0 = arith.constant 0 : i32
    %c0_i32_1 = arith.constant 0 : i32
    return %c0_i32, %c0_i32_0 : i32, i32
  }
  func.func @transform_2(%arg0: i32) -> (i32, i32) {
    %c0_i32 = arith.constant 0 : i32
    %c0_i32_0 = arith.constant 0 : i32
    %c0_i32_1 = arith.constant 0 : i32
    return %c0_i32, %c0_i32_0 : i32, i32
  }
  func.func @transform_3(%arg0: i32) -> (i32, i32) {
    %c0_i32 = arith.constant 0 : i32
    %c0_i32_0 = arith.constant 0 : i32
    %c0_i32_1 = arith.constant 0 : i32
    return %c0_i32, %c0_i32_0 : i32, i32
  }
  func.func @transform_4(%arg0: i32) -> (i32, i32) {
    %c0_i32 = arith.constant 0 : i32
    %c0_i32_0 = arith.constant 0 : i32
    %c0_i32_1 = arith.constant 0 : i32
    return %c0_i32, %c0_i32_0 : i32, i32
  }
  func.func @transform_5(%arg0: i32) -> (i32, i32) {
    %c0_i32 = arith.constant 0 : i32
    %c0_i32_0 = arith.constant 0 : i32
    %c0_i32_1 = arith.constant 0 : i32
    return %c0_i32, %c0_i32_0 : i32, i32
  }
  func.func @transform_6(%arg0: i32) -> (i32, i32) {
    %c0_i32 = arith.constant 0 : i32
    %c0_i32_0 = arith.constant 0 : i32
    %c0_i32_1 = arith.constant 0 : i32
    return %c0_i32, %c0_i32_0 : i32, i32
  }
  func.func @transform_7(%arg0: i32) -> (i32, i32) {
    %c0_i32 = arith.constant 0 : i32
    %c0_i32_0 = arith.constant 0 : i32
    return %arg0, %c0_i32 : i32, i32
  }
}

</mosaic_0001>

<bundles_post_ra>
// kernel: tpu_custom_call.1
= control target key start
LH: loop header
LB: loop body
LE: loop exit
PB: predicated region body
PF: predicated region fallthrough
CT: control target
= control target key end

     0   :  { %s14832_s0 = inlined_call_operand.hbm [shape: bf16[16,3072], index: 0, kind: input, shape index: {}]   ;;  %s14833_s1 = inlined_call_operand.hbm [shape: bf16[3072,1024], index: 1, kind: input, shape index: {}]   ;;  %s14834_s2 = inlined_call_operand.hbm [shape: f32[1,1024], index: 2, kind: input, shape index: {}]   ;;  %s14835_s3 = inlined_call_operand.hbm [shape: bf16[1024,128], index: 3, kind: input, shape index: {}]   ;;  %s14836_s4 = inlined_call_operand.hbm [shape: f32[1,128], index: 4, kind: input, shape index: {}]   ;;  %s14837_s5 = inlined_call_operand.hbm [shape: f32[1,128], index: 5, kind: input, shape index: {}]   ;;  %s14838_s6 = inlined_call_operand.<no memory space> [shape: f32[1,1], index: 6, kind: input, shape index: {}]   ;;  %s14839_s7 = inlined_call_operand.vmem [shape: f32[16,1], index: 7, kind: output, shape index: {}]  }
   0x1   :  { %v12_v0 = vstv %s14838_s6 }
   0x2   :  { %13 = vst [vmem:[#allocation2] sm:$0x1] %v12_v0 }
   0x3   :  { %14 = vsyncpa [#allocation4], 0 }
   0x4   :  { %15 = vsyncpa [#allocation6], 0 }
   0x5   :  { %16 = vsyncpa [#allocation9], 0 }
   0x6   :  { %17 = vsyncpa [#allocation12], 0  ;;  %s14437_s26 = smov [#allocation5]   ;;  %s14297_s30 = scalar_lea.hbm %s14833_s1, 196608 }
   0x7   :  { %s35_s27 = sshll.u32 %s14437_s26, 4  ;;  %p14298_p0 = scmp.ne.s32.totalorder %s14833_s1, %s14297_s30  ;;  %s36_s27 = int_to_ptr.vmem [resolvable:$true] %s35_s27 }
   0x8   :  { %p14301_p1 = scmp.lt.u32.totalorder %s14297_s30, %s14833_s1 }
   0xa   :  { %p14303_p2 = pnand %p14301_p1, %p14298_p0 }
   0xc   :  { %14306 = shalt.err (!%p14303_p2)
}
   0xd   :  { %s14307_s6 = scalar_lea.vmem %s36_s27, 196608  ;;  %p14312_p4 = scmp.lt.s32.totalorder %s36_s27, %s36_s27 }
   0xe   :  { %p14308_p3 = scmp.ne.s32.totalorder %s36_s27, %s14307_s6  ;;  %p14313_p5 = scmp.lt.s32.totalorder %s14307_s6, %s14307_s6 }
  0x10   :  { %p14314_p6 = por %p14313_p5, %p14312_p4 }
  0x12   :  { %p14315_p7 = pnand %p14314_p6, %p14308_p3 }
  0x14   :  { %14318 = shalt.err (!%p14315_p7)
}
  0x15   :  { %s14438_s12 = smov 512   ;;  %s14439_s13 = smov 32  }
  0x16   :  { %41 = dma.hbm_to_vmem [thread:$0]  %s14833_s1, 196608, %s36_s27, [#allocation6], %s14438_s12, %s14438_s12, %s14439_s13  }
  0x17   :  { %s14440_s16 = smov [#allocation8]   ;;  %s14319_s20 = scalar_lea.hbm %s14835_s3, 8192 }
  0x18   :  { %s57_s17 = sshll.u32 %s14440_s16, 4  ;;  %p14320_p8 = scmp.ne.s32.totalorder %s14835_s3, %s14319_s20  ;;  %s58_s17 = int_to_ptr.vmem [resolvable:$true] %s57_s17 }
  0x19   :  { %p14323_p9 = scmp.lt.u32.totalorder %s14319_s20, %s14835_s3 }
  0x1b   :  { %p14325_p10 = pnand %p14323_p9, %p14320_p8 }
  0x1d   :  { %14328 = shalt.err (!%p14325_p10)
}
  0x1e   :  { %s14329_s25 = scalar_lea.vmem %s58_s17, 8192  ;;  %p14334_p12 = scmp.lt.s32.totalorder %s58_s17, %s58_s17 }
  0x1f   :  { %p14330_p11 = scmp.ne.s32.totalorder %s58_s17, %s14329_s25  ;;  %p14335_p13 = scmp.lt.s32.totalorder %s14329_s25, %s14329_s25 }
  0x21   :  { %p14336_p0 = por %p14335_p13, %p14334_p12 }
  0x23   :  { %p14337_p1 = pnand %p14336_p0, %p14330_p11 }
  0x25   :  { %14340 = shalt.err (!%p14337_p1)
}
  0x26   :  { %s14441_s1 = smov 64   ;;  %s14442_s26 = smov 4  }
  0x27   :  { %63 = dma.hbm_to_vmem [thread:$0]  %s14835_s3, 8192, %s58_s17, [#allocation9], %s14441_s1, %s14441_s1, %s14442_s26  }
  0x28   :  { %s14443_s29 = smov [#allocation3]   ;;  %s14341_s10 = scalar_lea.hbm %s14832_s0, 3072 }
  0x29   :  { %s23_s30 = sshll.u32 %s14443_s29, 4  ;;  %p14342_p2 = scmp.ne.s32.totalorder %s14832_s0, %s14341_s10  ;;  %s24_s30 = int_to_ptr.vmem [resolvable:$true] %s23_s30 }
  0x2a   :  { %p14345_p3 = scmp.lt.u32.totalorder %s14341_s10, %s14832_s0 }
  0x2c   :  { %p14347_p4 = pnand %p14345_p3, %p14342_p2 }
  0x2e   :  { %14350 = shalt.err (!%p14347_p4)
}
  0x2f   :  { %s14351_s14 = scalar_lea.vmem %s24_s30, 3072  ;;  %p14356_p6 = scmp.lt.s32.totalorder %s24_s30, %s24_s30 }
  0x30   :  { %p14352_p5 = scmp.ne.s32.totalorder %s24_s30, %s14351_s14  ;;  %p14357_p7 = scmp.lt.s32.totalorder %s14351_s14, %s14351_s14 }
  0x32   :  { %p14358_p8 = por %p14357_p7, %p14356_p6 }
  0x34   :  { %p14359_p9 = pnand %p14358_p8, %p14352_p5 }
  0x36   :  { %14362 = shalt.err (!%p14359_p9)
}
  0x37   :  { %s14444_s3 = smov 1536   ;;  %s14445_s15 = smov 96  }
  0x38   :  { %29 = dma.hbm_to_vmem [thread:$0]  %s14832_s0, 3072, %s24_s30, [#allocation4], %s14444_s3, %s14444_s3, %s14445_s15  }
  0x39   :  { %s14446_s18 = smov [#allocation7]   ;;  %s14447_s20 = smov [#allocation10]  }
  0x3a   :  { %s48_s19 = sshll.u32 %s14446_s18, 4  ;;  %s70_s21 = sshll.u32 %s14447_s20, 4  ;;  %s49_s19 = int_to_ptr.vmem [resolvable:$true] %s48_s19  ;;  %s71_s21 = int_to_ptr.vmem [resolvable:$true] %s70_s21 }
  0x3b   :  { %s14363_s24 = scalar_lea.hbm %s14834_s2, 128 }
  0x3c   :  { %p14364_p10 = scmp.ne.s32.totalorder %s14834_s2, %s14363_s24  ;;  %p14367_p11 = scmp.lt.u32.totalorder %s14363_s24, %s14834_s2 }
  0x3e   :  { %p14369_p12 = pnand %p14367_p11, %p14364_p10 }
  0x40   :  { %14372 = shalt.err (!%p14369_p12)
}
  0x41   :  { %s14373_s0 = scalar_lea.vmem %s49_s19, 128  ;;  %p14378_p0 = scmp.lt.s32.totalorder %s49_s19, %s49_s19 }
  0x42   :  { %p14374_p13 = scmp.ne.s32.totalorder %s49_s19, %s14373_s0  ;;  %p14379_p1 = scmp.lt.s32.totalorder %s14373_s0, %s14373_s0 }
  0x44   :  { %p14380_p2 = por %p14379_p1, %p14378_p0 }
  0x46   :  { %p14381_p3 = pnand %p14380_p2, %p14374_p13 }
  0x48   :  { %14384 = shalt.err (!%p14381_p3)
}
  0x49   :  { %51 = dma.hbm_to_vmem [thread:$0]  %s14834_s2, 128, %s49_s19, [#allocation6]  }
  0x4a   :  { %s14385_s9 = scalar_lea.hbm %s14836_s4, 16 }
  0x4b   :  { %p14386_p4 = scmp.ne.s32.totalorder %s14836_s4, %s14385_s9  ;;  %p14389_p5 = scmp.lt.u32.totalorder %s14385_s9, %s14836_s4 }
  0x4d   :  { %p14391_p6 = pnand %p14389_p5, %p14386_p4 }
  0x4f   :  { %14394 = shalt.err (!%p14391_p6)
}
  0x50   :  { %s14395_s13 = scalar_lea.vmem %s71_s21, 16  ;;  %s14399_s14 = scalar_lea.vmem %s71_s21, 32 }
  0x51   :  { %p14396_p7 = scmp.ne.s32.totalorder %s71_s21, %s14395_s13  ;;  %p14400_p8 = scmp.lt.s32.totalorder %s71_s21, %s71_s21 }
  0x52   :  { %p14401_p9 = scmp.lt.s32.totalorder %s14399_s14, %s14395_s13 }
  0x54   :  { %p14402_p10 = por %p14401_p9, %p14400_p8 }
  0x56   :  { %p14403_p11 = pnand %p14402_p10, %p14396_p7 }
  0x58   :  { %14406 = shalt.err (!%p14403_p11)
}
  0x59   :  { %73 = dma.hbm_to_vmem [thread:$0]  %s14836_s4, 16, %s71_s21, [#allocation9]  }
  0x5a   :  { %s14448_s15 = smov [#allocation11]   ;;  %s14407_s19 = scalar_lea.hbm %s14837_s5, 16 }
  0x5b   :  { %s80_s16 = sshll.u32 %s14448_s15, 4  ;;  %p14408_p12 = scmp.ne.s32.totalorder %s14837_s5, %s14407_s19  ;;  %s81_s16 = int_to_ptr.vmem [resolvable:$true] %s80_s16 }
  0x5c   :  { %p14411_p13 = scmp.lt.u32.totalorder %s14407_s19, %s14837_s5 }
  0x5e   :  { %p14413_p0 = pnand %p14411_p13, %p14408_p12 }
  0x60   :  { %14416 = shalt.err (!%p14413_p0)
}
  0x61   :  { %s14417_s25 = scalar_lea.vmem %s81_s16, 16  ;;  %s14421_s4 = scalar_lea.vmem %s81_s16, 32 }
  0x62   :  { %p14418_p1 = scmp.ne.s32.totalorder %s81_s16, %s14417_s25  ;;  %p14422_p2 = scmp.lt.s32.totalorder %s81_s16, %s81_s16 }
  0x63   :  { %p14423_p3 = scmp.lt.s32.totalorder %s14421_s4, %s14417_s25 }
  0x65   :  { %p14424_p4 = por %p14423_p3, %p14422_p2 }
  0x67   :  { %p14425_p5 = pnand %p14424_p4, %p14418_p1 }
  0x69   :  { %14428 = shalt.err (!%p14425_p5)
}
  0x6a   :  { %83 = dma.hbm_to_vmem [thread:$0]  %s14837_s5, 16, %s81_s16, [#allocation12]  }
  0x6b   :  { %14429 = dma.done.wait [#allocation4], 3072  }
  0x6c   :  { %14430 = vsyncadd [#allocation4], 4294964224 }
  0x6d   :  { %14431 = dma.done.wait [#allocation6], 196736  }
  0x6e   :  { %14432 = vsyncadd [#allocation6], 4294770560 }
  0x6f   :  { %14433 = dma.done.wait [#allocation9], 8208  }
  0x70   :  { %14434 = vsyncadd [#allocation9], 4294959088 }
  0x71   :  { %14435 = dma.done.wait [#allocation12], 16  }
  0x72   :  { %14436 = vsyncadd [#allocation12], 4294967280  ;;  %v129_v1 = vld [vmem:[#allocation5] sm:$0xff]  ;;  %v130_v3 = vld [vmem:[#allocation5 + $0x8] sm:$0xff]  ;;  %vm12302_vm0 = vcmask 7168  }
  0x73   :  { %v133_v2 = vld [vmem:[#allocation5 + $0x20] sm:$0xff]  ;;  %v134_v5 = vld [vmem:[#allocation5 + $0x28] sm:$0xff] }
  0x74   :  { %v12338_v4 = vcombine.high %v129_v1, %v133_v2  ;;  %v12337_v6 = vcombine.low %v129_v1, %v133_v2  ;;  %v137_v7 = vld [vmem:[#allocation5 + $0x40] sm:$0xff]  ;;  %v12340_v9 = vcombine.high %v130_v3, %v134_v5  ;;  %v12339_v10 = vcombine.low %v130_v3, %v134_v5  ;;  %v138_v12 = vld [vmem:[#allocation5 + $0x48] sm:$0xff] }
  0x75   :  { %v141_v8 = vld [vmem:[#allocation5 + $0x60] sm:$0xff]  ;;  %v142_v13 = vld [vmem:[#allocation5 + $0x68] sm:$0xff] }
  0x76   :  { %v12346_v11 = vcombine.high %v137_v7, %v141_v8  ;;  %v145_v14 = vld [vmem:[#allocation5 + $0x80] sm:$0xff]  ;;  %9507 = vmatprep.subr.bf16.mxu0 %v12338_v4  ;;  %v12348_v15 = vcombine.high %v138_v12, %v142_v13  ;;  %v146_v17 = vld [vmem:[#allocation5 + $0x88] sm:$0xff]  ;;  %10023 = vmatprep.subr.bf16.mxu1 %v12340_v9  ;;  %v12345_v19 = vcombine.low %v137_v7, %v141_v8 }
  0x77   :  { %v149_v16 = vld [vmem:[#allocation5 + $0xa0] sm:$0xff]  ;;  %v150_v18 = vld [vmem:[#allocation5 + $0xa8] sm:$0xff]  ;;  %9508 = vmatpush1.bf16.msra.mxu0 %v12337_v6  ;;  %10024 = vmatpush1.bf16.msra.mxu1 %v12339_v10  ;;  %v12347_v20 = vcombine.low %v138_v12, %v142_v13 }
  0x78   :  { %9509 = vmatprep.subr.bf16.mxu0 %v12346_v11  ;;  %v12354_v21 = vcombine.high %v145_v14, %v149_v16  ;;  %10025 = vmatprep.subr.bf16.mxu1 %v12348_v15  ;;  %v12356_v22 = vcombine.high %v146_v17, %v150_v18  ;;  %v153_v23 = vld [vmem:[#allocation5 + $0xc0] sm:$0xff]  ;;  %v154_v25 = vld [vmem:[#allocation5 + $0xc8] sm:$0xff]  ;;  %v12353_v27 = vcombine.low %v145_v14, %v149_v16 }
  0x79   :  { %v157_v24 = vld [vmem:[#allocation5 + $0xe0] sm:$0xff]  ;;  %v158_v26 = vld [vmem:[#allocation5 + $0xe8] sm:$0xff]  ;;  %v12355_v28 = vcombine.low %v146_v17, %v150_v18 }
  0x7a   :  { %v12362_v29 = vcombine.high %v153_v23, %v157_v24  ;;  %v12364_v30 = vcombine.high %v154_v25, %v158_v26  ;;  %v161_v31 = vld [vmem:[#allocation5 + $0x100] sm:$0xff]  ;;  %v162_v33 = vld [vmem:[#allocation5 + $0x108] sm:$0xff]  ;;  %v12361_v35 = vcombine.low %v153_v23, %v157_v24  ;;  %v12363_v36 = vcombine.low %v154_v25, %v158_v26 }
  0x7b   :  { %9510 = vmatpush1.bf16.msra.mxu0 %v12345_v19  ;;  %10026 = vmatpush1.bf16.msra.mxu1 %v12347_v20  ;;  %v165_v32 = vld [vmem:[#allocation5 + $0x120] sm:$0xff]  ;;  %v166_v34 = vld [vmem:[#allocation5 + $0x128] sm:$0xff] }
  0x7c   :  { %9511 = vmatprep.subr.bf16.mxu0 %v12354_v21  ;;  %10027 = vmatprep.subr.bf16.mxu1 %v12356_v22  ;;  %v12370_v37 = vcombine.high %v161_v31, %v165_v32  ;;  %v12372_v38 = vcombine.high %v162_v33, %v166_v34  ;;  %v169_v39 = vld [vmem:[#allocation5 + $0x140] sm:$0xff]  ;;  %v170_v41 = vld [vmem:[#allocation5 + $0x148] sm:$0xff]  ;;  %v12369_v43 = vcombine.low %v161_v31, %v165_v32 }
  0x7d   :  { %v173_v40 = vld [vmem:[#allocation5 + $0x160] sm:$0xff]  ;;  %v174_v42 = vld [vmem:[#allocation5 + $0x168] sm:$0xff]  ;;  %v12371_v44 = vcombine.low %v162_v33, %v166_v34 }
  0x7e   :  { %v12378_v45 = vcombine.high %v169_v39, %v173_v40  ;;  %v12380_v46 = vcombine.high %v170_v41, %v174_v42  ;;  %v177_v47 = vld [vmem:[#allocation5 + $0x180] sm:$0xff]  ;;  %v178_v49 = vld [vmem:[#allocation5 + $0x188] sm:$0xff]  ;;  %v12377_v51 = vcombine.low %v169_v39, %v173_v40  ;;  %v12379_v52 = vcombine.low %v170_v41, %v174_v42 }
  0x7f   :  { %9512 = vmatpush1.bf16.msra.mxu0 %v12353_v27  ;;  %10028 = vmatpush1.bf16.msra.mxu1 %v12355_v28  ;;  %v181_v48 = vld [vmem:[#allocation5 + $0x1a0] sm:$0xff]  ;;  %v182_v50 = vld [vmem:[#allocation5 + $0x1a8] sm:$0xff] }
  0x80   :  { %9513 = vmatprep.subr.bf16.mxu0 %v12362_v29  ;;  %10029 = vmatprep.subr.bf16.mxu1 %v12364_v30  ;;  %v12386_v53 = vcombine.high %v177_v47, %v181_v48  ;;  %v14564_v54 = vld [vmem:[#allocation3] sm:$0xff]  ;;  %v12388_v56 = vcombine.high %v178_v49, %v182_v50  ;;  %v186_v60 = vld [vmem:[#allocation5 + $0x1c8] sm:$0xff]  ;;  %v12385_v62 = vcombine.low %v177_v47, %v181_v48 }
  0x81   :  { %v14566_v55 = vld [vmem:[#allocation3 + $0x60] sm:$0xff]  ;;  %v190_v61 = vld [vmem:[#allocation5 + $0x1e8] sm:$0xff]  ;;  %v12387_v63 = vcombine.low %v178_v49, %v182_v50 }
  0x82   :  { %v185_v57 = vld [vmem:[#allocation5 + $0x1c0] sm:$0xff]  ;;  %v14570_v59 = vcombine.high %v14564_v54, %v14566_v55  ;;  %v12396_v1 = vcombine.high %v186_v60, %v190_v61  ;;  %v194_v4 = vld [vmem:[#allocation5 + $0x208] sm:$0xff]  ;;  %v12395_v7 = vcombine.low %v186_v60, %v190_v61 }
  0x83   :  { %9514 = vmatpush1.bf16.msra.mxu0 %v12361_v35  ;;  %10030 = vmatpush1.bf16.msra.mxu1 %v12363_v36  ;;  %v189_v58 = vld [vmem:[#allocation5 + $0x1e0] sm:$0xff]  ;;  %v198_v5 = vld [vmem:[#allocation5 + $0x228] sm:$0xff] }
  0x84   :  { %9515 = vmatprep.subr.bf16.mxu0 %v12370_v37  ;;  %10031 = vmatprep.subr.bf16.mxu1 %v12372_v38  ;;  %v12394_v0 = vcombine.high %v185_v57, %v189_v58  ;;  %v193_v2 = vld [vmem:[#allocation5 + $0x200] sm:$0xff]  ;;  %v12393_v6 = vcombine.low %v185_v57, %v189_v58  ;;  %v12404_v9 = vcombine.high %v194_v4, %v198_v5  ;;  %v202_v12 = vld [vmem:[#allocation5 + $0x248] sm:$0xff] }
  0x85   :  { %9539 = vmatprep.mubr.bf16.mxu0 %v14570_v59  ;;  %v197_v3 = vld [vmem:[#allocation5 + $0x220] sm:$0xff]  ;;  %10055 = vmatprep.mubr.bf16.mxu1 %v14570_v59  ;;  %v206_v13 = vld [vmem:[#allocation5 + $0x268] sm:$0xff]  ;;  %v12403_v15 = vcombine.low %v194_v4, %v198_v5 }
  0x86   :  { %v12402_v8 = vcombine.high %v193_v2, %v197_v3  ;;  %v201_v10 = vld [vmem:[#allocation5 + $0x240] sm:$0xff]  ;;  %v12401_v14 = vcombine.low %v193_v2, %v197_v3  ;;  %v12412_v17 = vcombine.high %v202_v12, %v206_v13  ;;  %v210_v20 = vld [vmem:[#allocation5 + $0x288] sm:$0xff]  ;;  %v12411_v23 = vcombine.low %v202_v12, %v206_v13 }
  0x87   :  { %9516 = vmatpush1.bf16.msra.mxu0 %v12369_v43  ;;  %10032 = vmatpush1.bf16.msra.mxu1 %v12371_v44  ;;  %v205_v11 = vld [vmem:[#allocation5 + $0x260] sm:$0xff]  ;;  %v214_v21 = vld [vmem:[#allocation5 + $0x2a8] sm:$0xff] }
  0x88   :  { %9517 = vmatprep.subr.bf16.mxu0 %v12378_v45  ;;  %10033 = vmatprep.subr.bf16.mxu1 %v12380_v46  ;;  %v12410_v16 = vcombine.high %v201_v10, %v205_v11  ;;  %v209_v18 = vld [vmem:[#allocation5 + $0x280] sm:$0xff]  ;;  %v12409_v22 = vcombine.low %v201_v10, %v205_v11  ;;  %v12420_v25 = vcombine.high %v210_v20, %v214_v21  ;;  %v218_v28 = vld [vmem:[#allocation5 + $0x2c8] sm:$0xff] }
  0x89   :  { %v213_v19 = vld [vmem:[#allocation5 + $0x2a0] sm:$0xff]  ;;  %v222_v29 = vld [vmem:[#allocation5 + $0x2e8] sm:$0xff]  ;;  %v12419_v31 = vcombine.low %v210_v20, %v214_v21 }
  0x8a   :  { %v12418_v24 = vcombine.high %v209_v18, %v213_v19  ;;  %v217_v26 = vld [vmem:[#allocation5 + $0x2c0] sm:$0xff]  ;;  %v12417_v30 = vcombine.low %v209_v18, %v213_v19  ;;  %v12428_v33 = vcombine.high %v218_v28, %v222_v29  ;;  %v226_v36 = vld [vmem:[#allocation5 + $0x308] sm:$0xff]  ;;  %v12427_v39 = vcombine.low %v218_v28, %v222_v29 }
  0x8b   :  { %9518 = vmatpush1.bf16.msra.mxu0 %v12377_v51  ;;  %10034 = vmatpush1.bf16.msra.mxu1 %v12379_v52  ;;  %v221_v27 = vld [vmem:[#allocation5 + $0x2e0] sm:$0xff]  ;;  %v230_v37 = vld [vmem:[#allocation5 + $0x328] sm:$0xff] }
  0x8c   :  { %9519 = vmatprep.subr.bf16.mxu0 %v12386_v53  ;;  %10035 = vmatprep.subr.bf16.mxu1 %v12388_v56  ;;  %v12426_v32 = vcombine.high %v217_v26, %v221_v27  ;;  %v225_v34 = vld [vmem:[#allocation5 + $0x300] sm:$0xff]  ;;  %v12425_v38 = vcombine.low %v217_v26, %v221_v27  ;;  %v12436_v41 = vcombine.high %v226_v36, %v230_v37  ;;  %v234_v44 = vld [vmem:[#allocation5 + $0x348] sm:$0xff] }
  0x8d   :  { %v229_v35 = vld [vmem:[#allocation5 + $0x320] sm:$0xff]  ;;  %v238_v45 = vld [vmem:[#allocation5 + $0x368] sm:$0xff]  ;;  %v12435_v47 = vcombine.low %v226_v36, %v230_v37 }
  0x8e   :  { %v12434_v40 = vcombine.high %v225_v34, %v229_v35  ;;  %v233_v42 = vld [vmem:[#allocation5 + $0x340] sm:$0xff]  ;;  %v12433_v46 = vcombine.low %v225_v34, %v229_v35  ;;  %v12444_v49 = vcombine.high %v234_v44, %v238_v45  ;;  %v242_v52 = vld [vmem:[#allocation5 + $0x388] sm:$0xff]  ;;  %v12443_v57 = vcombine.low %v234_v44, %v238_v45 }
  0x8f   :  { %9520 = vmatpush1.bf16.msra.mxu0 %v12385_v62  ;;  %10036 = vmatpush1.bf16.msra.mxu1 %v12387_v63  ;;  %v237_v43 = vld [vmem:[#allocation5 + $0x360] sm:$0xff]  ;;  %v246_v53 = vld [vmem:[#allocation5 + $0x3a8] sm:$0xff] }
  0x90   :  { %9521 = vmatprep.subr.bf16.mxu0 %v12394_v0  ;;  %10037 = vmatprep.subr.bf16.mxu1 %v12396_v1  ;;  %v12442_v48 = vcombine.high %v233_v42, %v237_v43  ;;  %v241_v50 = vld [vmem:[#allocation5 + $0x380] sm:$0xff]  ;;  %v12441_v56 = vcombine.low %v233_v42, %v237_v43  ;;  %v12452_v60 = vcombine.high %v242_v52, %v246_v53  ;;  %v250_v63 = vld [vmem:[#allocation5 + $0x3c8] sm:$0xff] }
  0x91   :  { %v245_v51 = vld [vmem:[#allocation5 + $0x3a0] sm:$0xff]  ;;  %v254_v0 = vld [vmem:[#allocation5 + $0x3e8] sm:$0xff]  ;;  %v12451_v2 = vcombine.low %v242_v52, %v246_v53 }
  0x92   :  { %v12450_v58 = vcombine.high %v241_v50, %v245_v51  ;;  %v249_v61 = vld [vmem:[#allocation5 + $0x3c0] sm:$0xff]  ;;  %v12449_v1 = vcombine.low %v241_v50, %v245_v51  ;;  %v12460_v4 = vcombine.high %v250_v63, %v254_v0  ;;  %v12459_v10 = vcombine.low %v250_v63, %v254_v0  ;;  %v14578_v18 = vld [vmem:[#allocation3 + $0x8] sm:$0xff] }
  0x93   :  { %9522 = vmatpush1.bf16.msra.mxu0 %v12393_v6  ;;  %10038 = vmatpush1.bf16.msra.mxu1 %v12395_v7  ;;  %v253_v62 = vld [vmem:[#allocation5 + $0x3e0] sm:$0xff]  ;;  %v258_v7 = vld [vmem:[#allocation5 + $0x408] sm:$0xff] }
  0x94   :  { %9523 = vmatprep.subr.bf16.mxu0 %v12402_v8  ;;  %10039 = vmatprep.subr.bf16.mxu1 %v12404_v9  ;;  %v12458_v3 = vcombine.high %v249_v61, %v253_v62  ;;  %v257_v5 = vld [vmem:[#allocation5 + $0x400] sm:$0xff]  ;;  %v262_v8 = vld [vmem:[#allocation5 + $0x428] sm:$0xff]  ;;  %v12457_v9 = vcombine.low %v249_v61, %v253_v62 }
  0x95   :  { %v261_v6 = vld [vmem:[#allocation5 + $0x420] sm:$0xff]  ;;  %v12468_v12 = vcombine.high %v258_v7, %v262_v8  ;;  %v14580_v19 = vld [vmem:[#allocation3 + $0x68] sm:$0xff]  ;;  %v12467_v21 = vcombine.low %v258_v7, %v262_v8 }
  0x96   :  { %v12466_v11 = vcombine.high %v257_v5, %v261_v6  ;;  %v265_v13 = vld [vmem:[#allocation5 + $0x440] sm:$0xff]  ;;  %v12465_v20 = vcombine.low %v257_v5, %v261_v6  ;;  %v274_v26 = vld [vmem:[#allocation5 + $0x488] sm:$0xff] }
  0x97   :  { %9524 = vmatpush1.bf16.msra.mxu0 %v12401_v14  ;;  %10040 = vmatpush1.bf16.msra.mxu1 %v12403_v15  ;;  %v269_v14 = vld [vmem:[#allocation5 + $0x460] sm:$0xff]  ;;  %v266_v15 = vld [vmem:[#allocation5 + $0x448] sm:$0xff] }
  0x98   :  { %9525 = vmatprep.subr.bf16.mxu0 %v12410_v16  ;;  %10041 = vmatprep.subr.bf16.mxu1 %v12412_v17  ;;  %v14576_v16 = vcombine.low %v14564_v54, %v14566_v55  ;;  %v270_v17 = vld [vmem:[#allocation5 + $0x468] sm:$0xff]  ;;  %v14584_v54 = vcombine.high %v14578_v18, %v14580_v19  ;;  %v12473_v27 = vcombine.low %v265_v13, %v269_v14 }
  0x99   :  { %v278_v55 = vld [vmem:[#allocation5 + $0x4a8] sm:$0xff]  ;;  %v12475_v28 = vcombine.low %v266_v15, %v270_v17 }
  0x9a   :  { %v286_v34 = vld [vmem:[#allocation5 + $0x4e8] sm:$0xff]  ;;  %v12483_v36 = vcombine.low %v274_v26, %v278_v55 }
  0x9b   :  { %9526 = vmatpush1.bf16.msra.mxu0 %v12409_v22  ;;  %10042 = vmatpush1.bf16.msra.mxu1 %v12411_v23  ;;  %v12474_v22 = vcombine.high %v265_v13, %v269_v14  ;;  %v12476_v23 = vcombine.high %v266_v15, %v270_v17  ;;  %v294_v42 = vld [vmem:[#allocation5 + $0x528] sm:$0xff] }
  0x9c   :  { %9527 = vmatprep.subr.bf16.mxu0 %v12418_v24  ;;  %10043 = vmatprep.subr.bf16.mxu1 %v12420_v25  ;;  %v273_v24 = vld [vmem:[#allocation5 + $0x480] sm:$0xff]  ;;  %v302_v50 = vld [vmem:[#allocation5 + $0x568] sm:$0xff] }
  0x9d   :  { %v277_v25 = vld [vmem:[#allocation5 + $0x4a0] sm:$0xff]  ;;  %v310_v61 = vld [vmem:[#allocation5 + $0x5a8] sm:$0xff] }
  0x9e   :  { %v12482_v29 = vcombine.high %v273_v24, %v277_v25  ;;  %v12481_v35 = vcombine.low %v273_v24, %v277_v25  ;;  %v318_v5 = vld [vmem:[#allocation5 + $0x5e8] sm:$0xff] }
  0x9f   :  { %9528 = vmatpush1.bf16.msra.mxu0 %v12417_v30  ;;  %10044 = vmatpush1.bf16.msra.mxu1 %v12419_v31  ;;  %v281_v30 = vld [vmem:[#allocation5 + $0x4c0] sm:$0xff]  ;;  %v326_v13 = vld [vmem:[#allocation5 + $0x628] sm:$0xff] }
  0xa0   :  { %9529 = vmatprep.subr.bf16.mxu0 %v12426_v32  ;;  %10045 = vmatprep.subr.bf16.mxu1 %v12428_v33  ;;  %v285_v31 = vld [vmem:[#allocation5 + $0x4e0] sm:$0xff]  ;;  %v282_v32 = vld [vmem:[#allocation5 + $0x4c8] sm:$0xff]  ;;  %v12484_v33 = vcombine.high %v274_v26, %v278_v55 }
  0xa1   :  { %v12490_v37 = vcombine.high %v281_v30, %v285_v31  ;;  %v12489_v43 = vcombine.low %v281_v30, %v285_v31  ;;  %v12491_v44 = vcombine.low %v282_v32, %v286_v34  ;;  %v334_v24 = vld [vmem:[#allocation5 + $0x668] sm:$0xff] }
  0xa2   :  { %v342_v31 = vld [vmem:[#allocation5 + $0x6a8] sm:$0xff] }
  0xa3   :  { %9530 = vmatpush1.bf16.msra.mxu0 %v12425_v38  ;;  %10046 = vmatpush1.bf16.msra.mxu1 %v12427_v39  ;;  %v289_v38 = vld [vmem:[#allocation5 + $0x500] sm:$0xff] }
  0xa4   :  { %9531 = vmatprep.subr.bf16.mxu0 %v12434_v40  ;;  %10047 = vmatprep.subr.bf16.mxu1 %v12436_v41  ;;  %v293_v39 = vld [vmem:[#allocation5 + $0x520] sm:$0xff]  ;;  %v290_v40 = vld [vmem:[#allocation5 + $0x508] sm:$0xff]  ;;  %v12492_v41 = vcombine.high %v282_v32, %v286_v34 }
  0xa5   :  { %v12498_v45 = vcombine.high %v289_v38, %v293_v39  ;;  %v12497_v51 = vcombine.low %v289_v38, %v293_v39  ;;  %v12499_v52 = vcombine.low %v290_v40, %v294_v42  ;;  %v350_v39 = vld [vmem:[#allocation5 + $0x6e8] sm:$0xff] }
  0xa7   :  { %9532 = vmatpush1.bf16.msra.mxu0 %v12433_v46  ;;  %10048 = vmatpush1.bf16.msra.mxu1 %v12435_v47  ;;  %v297_v46 = vld [vmem:[#allocation5 + $0x540] sm:$0xff] }
  0xa8   :  { %9533 = vmatprep.subr.bf16.mxu0 %v12442_v48  ;;  %10049 = vmatprep.subr.bf16.mxu1 %v12444_v49  ;;  %v301_v47 = vld [vmem:[#allocation5 + $0x560] sm:$0xff]  ;;  %v298_v48 = vld [vmem:[#allocation5 + $0x548] sm:$0xff]  ;;  %v12500_v49 = vcombine.high %v290_v40, %v294_v42 }
  0xa9   :  { %v12506_v53 = vcombine.high %v297_v46, %v301_v47  ;;  %v12505_v62 = vcombine.low %v297_v46, %v301_v47  ;;  %v12507_v63 = vcombine.low %v298_v48, %v302_v50  ;;  %v358_v47 = vld [vmem:[#allocation5 + $0x728] sm:$0xff] }
  0xab   :  { %9534 = vmatpush1.bf16.msra.mxu0 %v12441_v56  ;;  %10050 = vmatpush1.bf16.msra.mxu1 %v12443_v57  ;;  %v305_v56 = vld [vmem:[#allocation5 + $0x580] sm:$0xff] }
  0xac   :  { %9535 = vmatprep.subr.bf16.mxu0 %v12450_v58  ;;  %10051 = vmatprep.subr.bf16.mxu1 %v12452_v60  ;;  %v309_v57 = vld [vmem:[#allocation5 + $0x5a0] sm:$0xff]  ;;  %v306_v58 = vld [vmem:[#allocation5 + $0x588] sm:$0xff]  ;;  %v12508_v60 = vcombine.high %v298_v48, %v302_v50 }
  0xad   :  { %v12514_v0 = vcombine.high %v305_v56, %v309_v57  ;;  %v12513_v6 = vcombine.low %v305_v56, %v309_v57  ;;  %v12515_v7 = vcombine.low %v306_v58, %v310_v61  ;;  %v366_v57 = vld [vmem:[#allocation5 + $0x768] sm:$0xff] }
  0xaf   :  { %9536 = vmatpush1.bf16.msra.mxu0 %v12449_v1  ;;  %10052 = vmatpush1.bf16.msra.mxu1 %v12451_v2  ;;  %v313_v1 = vld [vmem:[#allocation5 + $0x5c0] sm:$0xff] }
  0xb0   :  { %9537 = vmatprep.subr.bf16.mxu0 %v12458_v3  ;;  %10053 = vmatprep.subr.bf16.mxu1 %v12460_v4  ;;  %v317_v2 = vld [vmem:[#allocation5 + $0x5e0] sm:$0xff]  ;;  %v314_v3 = vld [vmem:[#allocation5 + $0x5c8] sm:$0xff]  ;;  %v12516_v4 = vcombine.high %v306_v58, %v310_v61 }
  0xb1   :  { %v12522_v8 = vcombine.high %v313_v1, %v317_v2  ;;  %v12521_v14 = vcombine.low %v313_v1, %v317_v2  ;;  %v12523_v15 = vcombine.low %v314_v3, %v318_v5  ;;  %v374_v2 = vld [vmem:[#allocation5 + $0x7a8] sm:$0xff] }
  0xb3   :  { %9538 = vmatpush1.bf16.msra.mxu0 %v12457_v9  ;;  %10054 = vmatpush1.bf16.msra.mxu1 %v12459_v10  ;;  %v321_v9 = vld [vmem:[#allocation5 + $0x600] sm:$0xff] }
  0xb4   :  { %9550 = vmatprep.subr.bf16.mxu0 %v12466_v11  ;;  %10066 = vmatprep.subr.bf16.mxu1 %v12468_v12  ;;  %v325_v10 = vld [vmem:[#allocation5 + $0x620] sm:$0xff]  ;;  %v322_v11 = vld [vmem:[#allocation5 + $0x608] sm:$0xff]  ;;  %v12524_v12 = vcombine.high %v314_v3, %v318_v5 }
  0xb5   :  { %v12530_v17 = vcombine.high %v321_v9, %v325_v10  ;;  %v12529_v25 = vcombine.low %v321_v9, %v325_v10  ;;  %v12531_v26 = vcombine.low %v322_v11, %v326_v13  ;;  %v382_v10 = vld [vmem:[#allocation5 + $0x7e8] sm:$0xff] }
  0xb6   :  { %9540 = vmatmul.mubr.bf16.vlgmr.msra.gmra.mrb[0].mxu0 %v14576_v16  ;;  %10056 = vmatmul.mubr.bf16.vlgmr.msra.gmra.mrb[0].mxu1 %v14576_v16 }
  0xb7   :  { %9551 = vmatpush1.bf16.msra.mxu0 %v12465_v20  ;;  %10067 = vmatpush1.bf16.msra.mxu1 %v12467_v21  ;;  %v329_v20 = vld [vmem:[#allocation5 + $0x640] sm:$0xff] }
  0xb8   :  { %9552 = vmatprep.subr.bf16.mxu0 %v12474_v22  ;;  %10068 = vmatprep.subr.bf16.mxu1 %v12476_v23  ;;  %v333_v21 = vld [vmem:[#allocation5 + $0x660] sm:$0xff]  ;;  %v330_v22 = vld [vmem:[#allocation5 + $0x648] sm:$0xff]  ;;  %v12532_v23 = vcombine.high %v322_v11, %v326_v13 }
  0xb9   :  { %9582 = vmatprep.mubr.bf16.mxu0 %v14584_v54  ;;  %10098 = vmatprep.mubr.bf16.mxu1 %v14584_v54  ;;  %v12538_v55 = vcombine.high %v329_v20, %v333_v21  ;;  %v12540_v30 = vcombine.high %v330_v22, %v334_v24  ;;  %v12537_v32 = vcombine.low %v329_v20, %v333_v21  ;;  %v390_v21 = vld [vmem:[#allocation5 + $0x828] sm:$0xff] }
  0xbb   :  { %9553 = vmatpush1.bf16.msra.mxu0 %v12473_v27  ;;  %10069 = vmatpush1.bf16.msra.mxu1 %v12475_v28  ;;  %v337_v27 = vld [vmem:[#allocation5 + $0x680] sm:$0xff] }
  0xbc   :  { %9554 = vmatprep.subr.bf16.mxu0 %v12482_v29  ;;  %10070 = vmatprep.subr.bf16.mxu1 %v12484_v33  ;;  %v341_v28 = vld [vmem:[#allocation5 + $0x6a0] sm:$0xff]  ;;  %v338_v29 = vld [vmem:[#allocation5 + $0x688] sm:$0xff]  ;;  %v12539_v33 = vcombine.low %v330_v22, %v334_v24 }
  0xbd   :  { %v12546_v34 = vcombine.high %v337_v27, %v341_v28  ;;  %v12548_v38 = vcombine.high %v338_v29, %v342_v31  ;;  %v12545_v40 = vcombine.low %v337_v27, %v341_v28  ;;  %v397_v24 = vld [vmem:[#allocation5 + $0x860] sm:$0xff]  ;;  %v398_v27 = vld [vmem:[#allocation5 + $0x868] sm:$0xff]  ;;  %v14590_v28 = vld [vmem:[#allocation3 + $0x10] sm:$0xff] }
  0xbf   :  { %9555 = vmatpush1.bf16.msra.mxu0 %v12481_v35  ;;  %10071 = vmatpush1.bf16.msra.mxu1 %v12483_v36  ;;  %v345_v35 = vld [vmem:[#allocation5 + $0x6c0] sm:$0xff] }
  0xc0   :  { %9556 = vmatprep.subr.bf16.mxu0 %v12490_v37  ;;  %10072 = vmatprep.subr.bf16.mxu1 %v12492_v41  ;;  %v349_v36 = vld [vmem:[#allocation5 + $0x6e0] sm:$0xff]  ;;  %v346_v37 = vld [vmem:[#allocation5 + $0x6c8] sm:$0xff]  ;;  %v12547_v41 = vcombine.low %v338_v29, %v342_v31  ;;  %v14596_v31 = vcombine.low %v14578_v18, %v14580_v19 }
  0xc1   :  { %v12554_v42 = vcombine.high %v345_v35, %v349_v36  ;;  %v12556_v46 = vcombine.high %v346_v37, %v350_v39  ;;  %v12553_v48 = vcombine.low %v345_v35, %v349_v36  ;;  %v401_v35 = vld [vmem:[#allocation5 + $0x880] sm:$0xff] }
  0xc3   :  { %9557 = vmatpush1.bf16.msra.mxu0 %v12489_v43  ;;  %10073 = vmatpush1.bf16.msra.mxu1 %v12491_v44  ;;  %v353_v43 = vld [vmem:[#allocation5 + $0x700] sm:$0xff] }
  0xc4   :  { %9558 = vmatprep.subr.bf16.mxu0 %v12498_v45  ;;  %10074 = vmatprep.subr.bf16.mxu1 %v12500_v49  ;;  %v357_v44 = vld [vmem:[#allocation5 + $0x720] sm:$0xff]  ;;  %v354_v45 = vld [vmem:[#allocation5 + $0x708] sm:$0xff]  ;;  %v12555_v49 = vcombine.low %v346_v37, %v350_v39 }
  0xc5   :  { %v12562_v50 = vcombine.high %v353_v43, %v357_v44  ;;  %v12564_v56 = vcombine.high %v354_v45, %v358_v47  ;;  %v12561_v58 = vcombine.low %v353_v43, %v357_v44  ;;  %v405_v37 = vld [vmem:[#allocation5 + $0x8a0] sm:$0xff]  ;;  %v406_v39 = vld [vmem:[#allocation5 + $0x8a8] sm:$0xff] }
  0xc6   :  { %v409_v43 = vld [vmem:[#allocation5 + $0x8c0] sm:$0xff] }
  0xc7   :  { %9559 = vmatpush1.bf16.msra.mxu0 %v12497_v51  ;;  %10075 = vmatpush1.bf16.msra.mxu1 %v12499_v52  ;;  %v361_v51 = vld [vmem:[#allocation5 + $0x740] sm:$0xff] }
  0xc8   :  { %9560 = vmatprep.subr.bf16.mxu0 %v12506_v53  ;;  %10076 = vmatprep.subr.bf16.mxu1 %v12508_v60  ;;  %v365_v52 = vld [vmem:[#allocation5 + $0x760] sm:$0xff]  ;;  %v362_v53 = vld [vmem:[#allocation5 + $0x748] sm:$0xff]  ;;  %v12563_v60 = vcombine.low %v354_v45, %v358_v47  ;;  %v12609_v47 = vcombine.low %v401_v35, %v405_v37 }
  0xc9   :  { %v12570_v61 = vcombine.high %v361_v51, %v365_v52  ;;  %v12572_v1 = vcombine.high %v362_v53, %v366_v57  ;;  %v12569_v3 = vcombine.low %v361_v51, %v365_v52  ;;  %v413_v44 = vld [vmem:[#allocation5 + $0x8e0] sm:$0xff]  ;;  %v410_v45 = vld [vmem:[#allocation5 + $0x8c8] sm:$0xff] }
  0xca   :  { %v417_v51 = vld [vmem:[#allocation5 + $0x900] sm:$0xff] }
  0xcb   :  { %9561 = vmatpush1.bf16.msra.mxu0 %v12505_v62  ;;  %10077 = vmatpush1.bf16.msra.mxu1 %v12507_v63  ;;  %v369_v62 = vld [vmem:[#allocation5 + $0x780] sm:$0xff] }
  0xcc   :  { %9562 = vmatprep.subr.bf16.mxu0 %v12514_v0  ;;  %10078 = vmatprep.subr.bf16.mxu1 %v12516_v4  ;;  %v373_v63 = vld [vmem:[#allocation5 + $0x7a0] sm:$0xff]  ;;  %v370_v0 = vld [vmem:[#allocation5 + $0x788] sm:$0xff]  ;;  %v12571_v4 = vcombine.low %v362_v53, %v366_v57  ;;  %v12617_v57 = vcombine.low %v409_v43, %v413_v44 }
  0xcd   :  { %v12578_v5 = vcombine.high %v369_v62, %v373_v63  ;;  %v12580_v9 = vcombine.high %v370_v0, %v374_v2  ;;  %v12577_v11 = vcombine.low %v369_v62, %v373_v63  ;;  %v421_v52 = vld [vmem:[#allocation5 + $0x920] sm:$0xff]  ;;  %v418_v53 = vld [vmem:[#allocation5 + $0x908] sm:$0xff] }
  0xce   :  { %v425_v62 = vld [vmem:[#allocation5 + $0x940] sm:$0xff] }
  0xcf   :  { %9563 = vmatpush1.bf16.msra.mxu0 %v12513_v6  ;;  %10079 = vmatpush1.bf16.msra.mxu1 %v12515_v7  ;;  %v377_v6 = vld [vmem:[#allocation5 + $0x7c0] sm:$0xff] }
  0xd0   :  { %9564 = vmatprep.subr.bf16.mxu0 %v12522_v8  ;;  %10080 = vmatprep.subr.bf16.mxu1 %v12524_v12  ;;  %v381_v7 = vld [vmem:[#allocation5 + $0x7e0] sm:$0xff]  ;;  %v378_v8 = vld [vmem:[#allocation5 + $0x7c8] sm:$0xff]  ;;  %v12579_v12 = vcombine.low %v370_v0, %v374_v2  ;;  %v12625_v2 = vcombine.low %v417_v51, %v421_v52 }
  0xd1   :  { %v12586_v13 = vcombine.high %v377_v6, %v381_v7  ;;  %v12588_v20 = vcombine.high %v378_v8, %v382_v10  ;;  %v12585_v22 = vcombine.low %v377_v6, %v381_v7  ;;  %v429_v63 = vld [vmem:[#allocation5 + $0x960] sm:$0xff]  ;;  %v426_v0 = vld [vmem:[#allocation5 + $0x948] sm:$0xff] }
  0xd2   :  { %v433_v6 = vld [vmem:[#allocation5 + $0x980] sm:$0xff] }
  0xd3   :  { %9565 = vmatpush1.bf16.msra.mxu0 %v12521_v14  ;;  %10081 = vmatpush1.bf16.msra.mxu1 %v12523_v15  ;;  %v385_v14 = vld [vmem:[#allocation5 + $0x800] sm:$0xff] }
  0xd4   :  { %9566 = vmatprep.subr.bf16.mxu0 %v12530_v17  ;;  %10082 = vmatprep.subr.bf16.mxu1 %v12532_v23  ;;  %v389_v15 = vld [vmem:[#allocation5 + $0x820] sm:$0xff]  ;;  %v386_v17 = vld [vmem:[#allocation5 + $0x808] sm:$0xff] }
  0xd5   :  { %v393_v23 = vld [vmem:[#allocation5 + $0x840] sm:$0xff]  ;;  %v12596_v29 = vcombine.high %v386_v17, %v390_v21 }
  0xd6   :  { %v12601_v18 = vcombine.low %v393_v23, %v397_v24  ;;  %v437_v7 = vld [vmem:[#allocation5 + $0x9a0] sm:$0xff] }
  0xd7   :  { %9567 = vmatpush1.bf16.msra.mxu0 %v12529_v25  ;;  %10083 = vmatpush1.bf16.msra.mxu1 %v12531_v26  ;;  %v12587_v25 = vcombine.low %v378_v8, %v382_v10  ;;  %v12594_v26 = vcombine.high %v385_v14, %v389_v15  ;;  %v434_v8 = vld [vmem:[#allocation5 + $0x988] sm:$0xff]  ;;  %v12633_v10 = vcombine.low %v425_v62, %v429_v63 }
  0xd8   :  { %9568 = vmatprep.subr.bf16.mxu0 %v12538_v55  ;;  %10084 = vmatprep.subr.bf16.mxu1 %v12540_v30  ;;  %v394_v55 = vld [vmem:[#allocation5 + $0x848] sm:$0xff]  ;;  %v14592_v30 = vld [vmem:[#allocation3 + $0x70] sm:$0xff] }
  0xd9   :  { %v12604_v36 = vcombine.high %v394_v55, %v398_v27  ;;  %v12603_v19 = vcombine.low %v394_v55, %v398_v27  ;;  %v450_v55 = vld [vmem:[#allocation5 + $0xa08] sm:$0xff] }
  0xda   :  { %v454_v27 = vld [vmem:[#allocation5 + $0xa28] sm:$0xff] }
  0xdb   :  { %9569 = vmatpush1.bf16.msra.mxu0 %v12537_v32  ;;  %10085 = vmatpush1.bf16.msra.mxu1 %v12539_v33  ;;  %v12593_v32 = vcombine.low %v385_v14, %v389_v15  ;;  %v12595_v33 = vcombine.low %v386_v17, %v390_v21  ;;  %v441_v14 = vld [vmem:[#allocation5 + $0x9c0] sm:$0xff]  ;;  %v442_v17 = vld [vmem:[#allocation5 + $0x9c8] sm:$0xff]  ;;  %v12641_v21 = vcombine.low %v433_v6, %v437_v7 }
  0xdc   :  { %9570 = vmatprep.subr.bf16.mxu0 %v12546_v34  ;;  %10086 = vmatprep.subr.bf16.mxu1 %v12548_v38  ;;  %v12602_v34 = vcombine.high %v393_v23, %v397_v24  ;;  %v402_v38 = vld [vmem:[#allocation5 + $0x888] sm:$0xff]  ;;  %v445_v15 = vld [vmem:[#allocation5 + $0x9e0] sm:$0xff] }
  0xdd   :  { %v12650_v23 = vcombine.high %v441_v14, %v445_v15 }
  0xdf   :  { %9571 = vmatpush1.bf16.msra.mxu0 %v12545_v40  ;;  %10087 = vmatpush1.bf16.msra.mxu1 %v12547_v41  ;;  %v14600_v40 = vcombine.high %v14590_v28, %v14592_v30  ;;  %v12610_v41 = vcombine.high %v401_v35, %v405_v37  ;;  %v457_v35 = vld [vmem:[#allocation5 + $0xa40] sm:$0xff]  ;;  %v458_v37 = vld [vmem:[#allocation5 + $0xa48] sm:$0xff] }
  0xe0   :  { %9572 = vmatprep.subr.bf16.mxu0 %v12554_v42  ;;  %10088 = vmatprep.subr.bf16.mxu1 %v12556_v46  ;;  %v12612_v42 = vcombine.high %v402_v38, %v406_v39  ;;  %v414_v46 = vld [vmem:[#allocation5 + $0x8e8] sm:$0xff] }
  0xe3   :  { %9573 = vmatpush1.bf16.msra.mxu0 %v12553_v48  ;;  %10089 = vmatpush1.bf16.msra.mxu1 %v12555_v49  ;;  %v12611_v48 = vcombine.low %v402_v38, %v406_v39  ;;  %v12618_v49 = vcombine.high %v409_v43, %v413_v44  ;;  %v462_v38 = vld [vmem:[#allocation5 + $0xa68] sm:$0xff]  ;;  %v469_v43 = vld [vmem:[#allocation5 + $0xaa0] sm:$0xff] }
  0xe4   :  { %9574 = vmatprep.subr.bf16.mxu0 %v12562_v50  ;;  %10090 = vmatprep.subr.bf16.mxu1 %v12564_v56  ;;  %v12620_v50 = vcombine.high %v410_v45, %v414_v46  ;;  %v422_v56 = vld [vmem:[#allocation5 + $0x928] sm:$0xff] }
  0xe5   :  { %v466_v44 = vld [vmem:[#allocation5 + $0xa88] sm:$0xff] }
  0xe7   :  { %9575 = vmatpush1.bf16.msra.mxu0 %v12561_v58  ;;  %10091 = vmatpush1.bf16.msra.mxu1 %v12563_v60  ;;  %v12619_v58 = vcombine.low %v410_v45, %v414_v46  ;;  %v12626_v60 = vcombine.high %v417_v51, %v421_v52  ;;  %v470_v45 = vld [vmem:[#allocation5 + $0xaa8] sm:$0xff]  ;;  %v477_v51 = vld [vmem:[#allocation5 + $0xae0] sm:$0xff] }
  0xe8   :  { %9576 = vmatprep.subr.bf16.mxu0 %v12570_v61  ;;  %10092 = vmatprep.subr.bf16.mxu1 %v12572_v1  ;;  %v12628_v61 = vcombine.high %v418_v53, %v422_v56  ;;  %v430_v1 = vld [vmem:[#allocation5 + $0x968] sm:$0xff] }
  0xe9   :  { %v474_v52 = vld [vmem:[#allocation5 + $0xac8] sm:$0xff] }
  0xeb   :  { %9577 = vmatpush1.bf16.msra.mxu0 %v12569_v3  ;;  %10093 = vmatpush1.bf16.msra.mxu1 %v12571_v4  ;;  %v12627_v3 = vcombine.low %v418_v53, %v422_v56  ;;  %v12634_v4 = vcombine.high %v425_v62, %v429_v63  ;;  %v478_v53 = vld [vmem:[#allocation5 + $0xae8] sm:$0xff]  ;;  %v485_v62 = vld [vmem:[#allocation5 + $0xb20] sm:$0xff] }
  0xec   :  { %9578 = vmatprep.subr.bf16.mxu0 %v12578_v5  ;;  %10094 = vmatprep.subr.bf16.mxu1 %v12580_v9  ;;  %v12636_v5 = vcombine.high %v426_v0, %v430_v1  ;;  %v438_v9 = vld [vmem:[#allocation5 + $0x9a8] sm:$0xff] }
  0xed   :  { %v482_v63 = vld [vmem:[#allocation5 + $0xb08] sm:$0xff] }
  0xef   :  { %9579 = vmatpush1.bf16.msra.mxu0 %v12577_v11  ;;  %10095 = vmatpush1.bf16.msra.mxu1 %v12579_v12  ;;  %v12635_v11 = vcombine.low %v426_v0, %v430_v1  ;;  %v12642_v12 = vcombine.high %v433_v6, %v437_v7  ;;  %v486_v0 = vld [vmem:[#allocation5 + $0xb28] sm:$0xff]  ;;  %v493_v6 = vld [vmem:[#allocation5 + $0xb60] sm:$0xff] }
  0xf0   :  { %9580 = vmatprep.subr.bf16.mxu0 %v12586_v13  ;;  %10096 = vmatprep.subr.bf16.mxu1 %v12588_v20  ;;  %v12644_v13 = vcombine.high %v434_v8, %v438_v9  ;;  %v446_v20 = vld [vmem:[#allocation5 + $0x9e8] sm:$0xff] }
  0xf1   :  { %v12652_v24 = vcombine.high %v442_v17, %v446_v20  ;;  %v490_v7 = vld [vmem:[#allocation5 + $0xb48] sm:$0xff] }
  0xf3   :  { %9581 = vmatpush1.bf16.msra.mxu0 %v12585_v22  ;;  %10097 = vmatpush1.bf16.msra.mxu1 %v12587_v25  ;;  %v12643_v22 = vcombine.low %v434_v8, %v438_v9  ;;  %v449_v25 = vld [vmem:[#allocation5 + $0xa00] sm:$0xff]  ;;  %v494_v8 = vld [vmem:[#allocation5 + $0xb68] sm:$0xff] }
  0xf4   :  { %9593 = vmatprep.subr.bf16.mxu0 %v12594_v26  ;;  %10109 = vmatprep.subr.bf16.mxu1 %v12596_v29  ;;  %v453_v26 = vld [vmem:[#allocation5 + $0xa20] sm:$0xff]  ;;  %v12649_v29 = vcombine.low %v441_v14, %v445_v15  ;;  %v498_v15 = vld [vmem:[#allocation5 + $0xb88] sm:$0xff] }
  0xf5   :  { %v12657_v39 = vcombine.low %v449_v25, %v453_v26  ;;  %v501_v14 = vld [vmem:[#allocation5 + $0xba0] sm:$0xff] }
  0xf6   :  { %9583 = vmatmul.mubr.bf16.vlgmr.msra.gmra.mrb[0].mxu0 %v14596_v31  ;;  %10099 = vmatmul.mubr.bf16.vlgmr.msra.gmra.mrb[0].mxu1 %v14596_v31 }
  0xf7   :  { %9594 = vmatpush1.bf16.msra.mxu0 %v12593_v32  ;;  %10110 = vmatpush1.bf16.msra.mxu1 %v12595_v33  ;;  %v12651_v32 = vcombine.low %v442_v17, %v446_v20  ;;  %v12658_v33 = vcombine.high %v449_v25, %v453_v26  ;;  %v502_v17 = vld [vmem:[#allocation5 + $0xba8] sm:$0xff]  ;;  %v509_v25 = vld [vmem:[#allocation5 + $0xbe0] sm:$0xff] }
  0xf8   :  { %9595 = vmatprep.subr.bf16.mxu0 %v12602_v34  ;;  %10111 = vmatprep.subr.bf16.mxu1 %v12604_v36  ;;  %v12660_v34 = vcombine.high %v450_v55, %v454_v27  ;;  %v461_v36 = vld [vmem:[#allocation5 + $0xa60] sm:$0xff]  ;;  %v506_v26 = vld [vmem:[#allocation5 + $0xbc8] sm:$0xff] }
  0xf9   :  { %9625 = vmatprep.mubr.bf16.mxu0 %v14600_v40  ;;  %10141 = vmatprep.mubr.bf16.mxu1 %v14600_v40  ;;  %v12665_v46 = vcombine.low %v457_v35, %v461_v36 }
  0xfb   :  { %9596 = vmatpush1.bf16.msra.mxu0 %v12601_v18  ;;  %10112 = vmatpush1.bf16.msra.mxu1 %v12603_v19  ;;  %v12659_v18 = vcombine.low %v450_v55, %v454_v27  ;;  %v12666_v19 = vcombine.high %v457_v35, %v461_v36  ;;  %v510_v55 = vld [vmem:[#allocation5 + $0xbe8] sm:$0xff]  ;;  %v517_v35 = vld [vmem:[#allocation5 + $0xc20] sm:$0xff] }
  0xfc   :  { %9597 = vmatprep.subr.bf16.mxu0 %v12610_v41  ;;  %10113 = vmatprep.subr.bf16.mxu1 %v12612_v42  ;;  %v12668_v41 = vcombine.high %v458_v37, %v462_v38  ;;  %v465_v42 = vld [vmem:[#allocation5 + $0xa80] sm:$0xff]  ;;  %v514_v36 = vld [vmem:[#allocation5 + $0xc08] sm:$0xff] }
  0xfd   :  { %v12673_v56 = vcombine.low %v465_v42, %v469_v43 }
  0xff   :  { %9598 = vmatpush1.bf16.msra.mxu0 %v12609_v47  ;;  %10114 = vmatpush1.bf16.msra.mxu1 %v12611_v48  ;;  %v12667_v47 = vcombine.low %v458_v37, %v462_v38  ;;  %v12674_v48 = vcombine.high %v465_v42, %v469_v43  ;;  %v518_v37 = vld [vmem:[#allocation5 + $0xc28] sm:$0xff]  ;;  %v525_v42 = vld [vmem:[#allocation5 + $0xc60] sm:$0xff] }
 0x100   :  { %9599 = vmatprep.subr.bf16.mxu0 %v12618_v49  ;;  %10115 = vmatprep.subr.bf16.mxu1 %v12620_v50  ;;  %v12676_v49 = vcombine.high %v466_v44, %v470_v45  ;;  %v473_v50 = vld [vmem:[#allocation5 + $0xac0] sm:$0xff]  ;;  %v522_v43 = vld [vmem:[#allocation5 + $0xc48] sm:$0xff] }
 0x101   :  { %v12681_v1 = vcombine.low %v473_v50, %v477_v51 }
 0x103   :  { %9600 = vmatpush1.bf16.msra.mxu0 %v12617_v57  ;;  %10116 = vmatpush1.bf16.msra.mxu1 %v12619_v58  ;;  %v12675_v57 = vcombine.low %v466_v44, %v470_v45  ;;  %v12682_v58 = vcombine.high %v473_v50, %v477_v51  ;;  %v14608_v44 = vcombine.low %v14590_v28, %v14592_v30  ;;  %v526_v45 = vld [vmem:[#allocation5 + $0xc68] sm:$0xff] }
 0x104   :  { %9601 = vmatprep.subr.bf16.mxu0 %v12626_v60  ;;  %10117 = vmatprep.subr.bf16.mxu1 %v12628_v61  ;;  %v12684_v60 = vcombine.high %v474_v52, %v478_v53  ;;  %v481_v61 = vld [vmem:[#allocation5 + $0xb00] sm:$0xff]  ;;  %v12732_v51 = vcombine.high %v522_v43, %v526_v45  ;;  %v530_v28 = vld [vmem:[#allocation5 + $0xc88] sm:$0xff] }
 0x105   :  { %v12689_v9 = vcombine.low %v481_v61, %v485_v62  ;;  %v534_v30 = vld [vmem:[#allocation5 + $0xca8] sm:$0xff] }
 0x107   :  { %9602 = vmatpush1.bf16.msra.mxu0 %v12625_v2  ;;  %10118 = vmatpush1.bf16.msra.mxu1 %v12627_v3  ;;  %v12683_v2 = vcombine.low %v474_v52, %v478_v53  ;;  %v12690_v3 = vcombine.high %v481_v61, %v485_v62  ;;  %v529_v52 = vld [vmem:[#allocation5 + $0xc80] sm:$0xff]  ;;  %v12740_v61 = vcombine.high %v530_v28, %v534_v30 }
 0x108   :  { %9603 = vmatprep.subr.bf16.mxu0 %v12634_v4  ;;  %10119 = vmatprep.subr.bf16.mxu1 %v12636_v5  ;;  %v12692_v4 = vcombine.high %v482_v63, %v486_v0  ;;  %v489_v5 = vld [vmem:[#allocation5 + $0xb40] sm:$0xff] }
 0x109   :  { %v12697_v20 = vcombine.low %v489_v5, %v493_v6  ;;  %v533_v53 = vld [vmem:[#allocation5 + $0xca0] sm:$0xff] }
 0x10a   :  { %v537_v62 = vld [vmem:[#allocation5 + $0xcc0] sm:$0xff] }
 0x10b   :  { %9604 = vmatpush1.bf16.msra.mxu0 %v12633_v10  ;;  %10120 = vmatpush1.bf16.msra.mxu1 %v12635_v11  ;;  %v12691_v10 = vcombine.low %v482_v63, %v486_v0  ;;  %v12698_v11 = vcombine.high %v489_v5, %v493_v6  ;;  %v541_v63 = vld [vmem:[#allocation5 + $0xce0] sm:$0xff]  ;;  %v538_v0 = vld [vmem:[#allocation5 + $0xcc8] sm:$0xff] }
 0x10c   :  { %9605 = vmatprep.subr.bf16.mxu0 %v12642_v12  ;;  %10121 = vmatprep.subr.bf16.mxu1 %v12644_v13  ;;  %v12700_v12 = vcombine.high %v490_v7, %v494_v8  ;;  %v497_v13 = vld [vmem:[#allocation5 + $0xb80] sm:$0xff] }
 0x10d   :  { %v12705_v27 = vcombine.low %v497_v13, %v501_v14  ;;  %v545_v6 = vld [vmem:[#allocation5 + $0xd00] sm:$0xff] }
 0x10f   :  { %9606 = vmatpush1.bf16.msra.mxu0 %v12641_v21  ;;  %10122 = vmatpush1.bf16.msra.mxu1 %v12643_v22  ;;  %v12699_v21 = vcombine.low %v490_v7, %v494_v8  ;;  %v12706_v22 = vcombine.high %v497_v13, %v501_v14  ;;  %v549_v7 = vld [vmem:[#allocation5 + $0xd20] sm:$0xff]  ;;  %v546_v8 = vld [vmem:[#allocation5 + $0xd08] sm:$0xff] }
 0x110   :  { %9607 = vmatprep.subr.bf16.mxu0 %v12650_v23  ;;  %10123 = vmatprep.subr.bf16.mxu1 %v12652_v24  ;;  %v12708_v23 = vcombine.high %v498_v15, %v502_v17  ;;  %v505_v24 = vld [vmem:[#allocation5 + $0xbc0] sm:$0xff] }
 0x111   :  { %v12713_v38 = vcombine.low %v505_v24, %v509_v25  ;;  %v553_v14 = vld [vmem:[#allocation5 + $0xd40] sm:$0xff] }
 0x113   :  { %9608 = vmatpush1.bf16.msra.mxu0 %v12649_v29  ;;  %10124 = vmatpush1.bf16.msra.mxu1 %v12651_v32  ;;  %v12707_v29 = vcombine.low %v498_v15, %v502_v17  ;;  %v12714_v32 = vcombine.high %v505_v24, %v509_v25  ;;  %v557_v15 = vld [vmem:[#allocation5 + $0xd60] sm:$0xff]  ;;  %v554_v17 = vld [vmem:[#allocation5 + $0xd48] sm:$0xff] }
 0x114   :  { %9609 = vmatprep.subr.bf16.mxu0 %v12658_v33  ;;  %10125 = vmatprep.subr.bf16.mxu1 %v12660_v34  ;;  %v12716_v33 = vcombine.high %v506_v26, %v510_v55  ;;  %v513_v34 = vld [vmem:[#allocation5 + $0xc00] sm:$0xff] }
 0x115   :  { %v561_v25 = vld [vmem:[#allocation5 + $0xd80] sm:$0xff] }
 0x117   :  { %9610 = vmatpush1.bf16.msra.mxu0 %v12657_v39  ;;  %10126 = vmatpush1.bf16.msra.mxu1 %v12659_v18  ;;  %v12715_v39 = vcombine.low %v506_v26, %v510_v55  ;;  %v12722_v18 = vcombine.high %v513_v34, %v517_v35  ;;  %v565_v26 = vld [vmem:[#allocation5 + $0xda0] sm:$0xff]  ;;  %v562_v55 = vld [vmem:[#allocation5 + $0xd88] sm:$0xff] }
 0x118   :  { %9611 = vmatprep.subr.bf16.mxu0 %v12666_v19  ;;  %10127 = vmatprep.subr.bf16.mxu1 %v12668_v41  ;;  %v12724_v19 = vcombine.high %v514_v36, %v518_v37  ;;  %v521_v41 = vld [vmem:[#allocation5 + $0xc40] sm:$0xff] }
 0x119   :  { %v12730_v50 = vcombine.high %v521_v41, %v525_v42 }
 0x11b   :  { %9612 = vmatpush1.bf16.msra.mxu0 %v12665_v46  ;;  %10128 = vmatpush1.bf16.msra.mxu1 %v12667_v47  ;;  %v14610_v46 = vld [vmem:[#allocation3 + $0x18] sm:$0xff] }
 0x11c   :  { %9613 = vmatprep.subr.bf16.mxu0 %v12674_v48  ;;  %10129 = vmatprep.subr.bf16.mxu1 %v12676_v49  ;;  %v14612_v47 = vld [vmem:[#allocation3 + $0x78] sm:$0xff]  ;;  %v12721_v48 = vcombine.low %v513_v34, %v517_v35  ;;  %v12723_v49 = vcombine.low %v514_v36, %v518_v37  ;;  %v569_v35 = vld [vmem:[#allocation5 + $0xdc0] sm:$0xff]  ;;  %v570_v37 = vld [vmem:[#allocation5 + $0xdc8] sm:$0xff] }
 0x11d   :  { %v573_v36 = vld [vmem:[#allocation5 + $0xde0] sm:$0xff] }
 0x11f   :  { %9614 = vmatpush1.bf16.msra.mxu0 %v12673_v56  ;;  %10130 = vmatpush1.bf16.msra.mxu1 %v12675_v57  ;;  %v14616_v56 = vcombine.high %v14610_v46, %v14612_v47  ;;  %v12729_v57 = vcombine.low %v521_v41, %v525_v42  ;;  %v577_v42 = vld [vmem:[#allocation5 + $0xe00] sm:$0xff] }
 0x120   :  { %9615 = vmatprep.subr.bf16.mxu0 %v12682_v58  ;;  %10131 = vmatprep.subr.bf16.mxu1 %v12684_v60  ;;  %v12731_v58 = vcombine.low %v522_v43, %v526_v45  ;;  %v12738_v60 = vcombine.high %v529_v52, %v533_v53  ;;  %v581_v43 = vld [vmem:[#allocation5 + $0xe20] sm:$0xff]  ;;  %v578_v45 = vld [vmem:[#allocation5 + $0xe08] sm:$0xff] }
 0x123   :  { %9616 = vmatpush1.bf16.msra.mxu0 %v12681_v1  ;;  %10132 = vmatpush1.bf16.msra.mxu1 %v12683_v2  ;;  %v542_v1 = vld [vmem:[#allocation5 + $0xce8] sm:$0xff]  ;;  %v12737_v2 = vcombine.low %v529_v52, %v533_v53  ;;  %v585_v53 = vld [vmem:[#allocation5 + $0xe40] sm:$0xff] }
 0x124   :  { %9617 = vmatprep.subr.bf16.mxu0 %v12690_v3  ;;  %10133 = vmatprep.subr.bf16.mxu1 %v12692_v4  ;;  %v12739_v3 = vcombine.low %v530_v28, %v534_v30  ;;  %v12746_v4 = vcombine.high %v537_v62, %v541_v63  ;;  %v12748_v5 = vcombine.high %v538_v0, %v542_v1  ;;  %v589_v28 = vld [vmem:[#allocation5 + $0xe60] sm:$0xff]  ;;  %v586_v30 = vld [vmem:[#allocation5 + $0xe48] sm:$0xff] }
 0x127   :  { %9618 = vmatpush1.bf16.msra.mxu0 %v12689_v9  ;;  %10134 = vmatpush1.bf16.msra.mxu1 %v12691_v10  ;;  %v550_v9 = vld [vmem:[#allocation5 + $0xd28] sm:$0xff]  ;;  %v12745_v10 = vcombine.low %v537_v62, %v541_v63  ;;  %v593_v63 = vld [vmem:[#allocation5 + $0xe80] sm:$0xff] }
 0x128   :  { %9619 = vmatprep.subr.bf16.mxu0 %v12698_v11  ;;  %10135 = vmatprep.subr.bf16.mxu1 %v12700_v12  ;;  %v12747_v11 = vcombine.low %v538_v0, %v542_v1  ;;  %v12754_v12 = vcombine.high %v545_v6, %v549_v7  ;;  %v12756_v13 = vcombine.high %v546_v8, %v550_v9  ;;  %v597_v0 = vld [vmem:[#allocation5 + $0xea0] sm:$0xff]  ;;  %v594_v1 = vld [vmem:[#allocation5 + $0xe88] sm:$0xff] }
 0x12b   :  { %9620 = vmatpush1.bf16.msra.mxu0 %v12697_v20  ;;  %10136 = vmatpush1.bf16.msra.mxu1 %v12699_v21  ;;  %v558_v20 = vld [vmem:[#allocation5 + $0xd68] sm:$0xff]  ;;  %v12753_v21 = vcombine.low %v545_v6, %v549_v7  ;;  %v601_v7 = vld [vmem:[#allocation5 + $0xec0] sm:$0xff] }
 0x12c   :  { %9621 = vmatprep.subr.bf16.mxu0 %v12706_v22  ;;  %10137 = vmatprep.subr.bf16.mxu1 %v12708_v23  ;;  %v12755_v22 = vcombine.low %v546_v8, %v550_v9  ;;  %v12762_v23 = vcombine.high %v553_v14, %v557_v15  ;;  %v12764_v24 = vcombine.high %v554_v17, %v558_v20  ;;  %v605_v8 = vld [vmem:[#allocation5 + $0xee0] sm:$0xff]  ;;  %v602_v9 = vld [vmem:[#allocation5 + $0xec8] sm:$0xff] }
 0x12f   :  { %9622 = vmatpush1.bf16.msra.mxu0 %v12705_v27  ;;  %10138 = vmatpush1.bf16.msra.mxu1 %v12707_v29  ;;  %v566_v27 = vld [vmem:[#allocation5 + $0xda8] sm:$0xff]  ;;  %v12761_v29 = vcombine.low %v553_v14, %v557_v15  ;;  %v609_v15 = vld [vmem:[#allocation5 + $0xf00] sm:$0xff] }
 0x130   :  { %9623 = vmatprep.subr.bf16.mxu0 %v12714_v32  ;;  %10139 = vmatprep.subr.bf16.mxu1 %v12716_v33  ;;  %v12763_v32 = vcombine.low %v554_v17, %v558_v20  ;;  %v12770_v33 = vcombine.high %v561_v25, %v565_v26  ;;  %v12772_v34 = vcombine.high %v562_v55, %v566_v27  ;;  %v613_v17 = vld [vmem:[#allocation5 + $0xf20] sm:$0xff]  ;;  %v610_v20 = vld [vmem:[#allocation5 + $0xf08] sm:$0xff] }
 0x133   :  { %9624 = vmatpush1.bf16.msra.mxu0 %v12713_v38  ;;  %10140 = vmatpush1.bf16.msra.mxu1 %v12715_v39  ;;  %v574_v38 = vld [vmem:[#allocation5 + $0xde8] sm:$0xff]  ;;  %v12769_v39 = vcombine.low %v561_v25, %v565_v26  ;;  %v617_v26 = vld [vmem:[#allocation5 + $0xf40] sm:$0xff] }
 0x134   :  { %9636 = vmatprep.subr.bf16.mxu0 %v12722_v18  ;;  %10152 = vmatprep.subr.bf16.mxu1 %v12724_v19  ;;  %v12771_v18 = vcombine.low %v562_v55, %v566_v27  ;;  %v12778_v19 = vcombine.high %v569_v35, %v573_v36  ;;  %v12780_v41 = vcombine.high %v570_v37, %v574_v38  ;;  %v621_v55 = vld [vmem:[#allocation5 + $0xf60] sm:$0xff]  ;;  %v618_v27 = vld [vmem:[#allocation5 + $0xf48] sm:$0xff] }
 0x136   :  { %9626 = vmatmul.mubr.bf16.vlgmr.msra.gmra.mrb[0].mxu0 %v14608_v44  ;;  %10142 = vmatmul.mubr.bf16.vlgmr.msra.gmra.mrb[0].mxu1 %v14608_v44 }
 0x137   :  { %9637 = vmatpush1.bf16.msra.mxu0 %v12721_v48  ;;  %10153 = vmatpush1.bf16.msra.mxu1 %v12723_v49  ;;  %v582_v48 = vld [vmem:[#allocation5 + $0xe28] sm:$0xff]  ;;  %v12777_v49 = vcombine.low %v569_v35, %v573_v36  ;;  %v625_v36 = vld [vmem:[#allocation5 + $0xf80] sm:$0xff] }
 0x138   :  { %9638 = vmatprep.subr.bf16.mxu0 %v12730_v50  ;;  %10154 = vmatprep.subr.bf16.mxu1 %v12732_v51  ;;  %v12779_v50 = vcombine.low %v570_v37, %v574_v38  ;;  %v12786_v51 = vcombine.high %v577_v42, %v581_v43  ;;  %v12788_v52 = vcombine.high %v578_v45, %v582_v48  ;;  %v629_v37 = vld [vmem:[#allocation5 + $0xfa0] sm:$0xff]  ;;  %v626_v38 = vld [vmem:[#allocation5 + $0xf88] sm:$0xff] }
 0x139   :  { %9668 = vmatprep.mubr.bf16.mxu0 %v14616_v56  ;;  %10184 = vmatprep.mubr.bf16.mxu1 %v14616_v56 }
 0x13b   :  { %9639 = vmatpush1.bf16.msra.mxu0 %v12729_v57  ;;  %10155 = vmatpush1.bf16.msra.mxu1 %v12731_v58  ;;  %v590_v57 = vld [vmem:[#allocation5 + $0xe68] sm:$0xff]  ;;  %v12785_v58 = vcombine.low %v577_v42, %v581_v43  ;;  %v633_v43 = vld [vmem:[#allocation5 + $0xfc0] sm:$0xff] }
 0x13c   :  { %9640 = vmatprep.subr.bf16.mxu0 %v12738_v60  ;;  %10156 = vmatprep.subr.bf16.mxu1 %v12740_v61  ;;  %v12787_v60 = vcombine.low %v578_v45, %v582_v48  ;;  %v12794_v61 = vcombine.high %v585_v53, %v589_v28  ;;  %v12796_v62 = vcombine.high %v586_v30, %v590_v57  ;;  %v637_v45 = vld [vmem:[#allocation5 + $0xfe0] sm:$0xff]  ;;  %v634_v48 = vld [vmem:[#allocation5 + $0xfc8] sm:$0xff] }
 0x13f   :  { %9641 = vmatpush1.bf16.msra.mxu0 %v12737_v2  ;;  %10157 = vmatpush1.bf16.msra.mxu1 %v12739_v3  ;;  %v598_v2 = vld [vmem:[#allocation5 + $0xea8] sm:$0xff]  ;;  %v12793_v3 = vcombine.low %v585_v53, %v589_v28  ;;  %v641_v28 = vld [vmem:[#allocation5 + $0x1000] sm:$0xff] }
 0x140   :  { %9642 = vmatprep.subr.bf16.mxu0 %v12746_v4  ;;  %10158 = vmatprep.subr.bf16.mxu1 %v12748_v5  ;;  %v12795_v4 = vcombine.low %v586_v30, %v590_v57  ;;  %v12802_v5 = vcombine.high %v593_v63, %v597_v0  ;;  %v12804_v6 = vcombine.high %v594_v1, %v598_v2  ;;  %v645_v30 = vld [vmem:[#allocation5 + $0x1020] sm:$0xff]  ;;  %v642_v57 = vld [vmem:[#allocation5 + $0x1008] sm:$0xff] }
 0x143   :  { %9643 = vmatpush1.bf16.msra.mxu0 %v12745_v10  ;;  %10159 = vmatpush1.bf16.msra.mxu1 %v12747_v11  ;;  %v606_v10 = vld [vmem:[#allocation5 + $0xee8] sm:$0xff]  ;;  %v12801_v11 = vcombine.low %v593_v63, %v597_v0  ;;  %v649_v0 = vld [vmem:[#allocation5 + $0x1040] sm:$0xff] }
 0x144   :  { %9644 = vmatprep.subr.bf16.mxu0 %v12754_v12  ;;  %10160 = vmatprep.subr.bf16.mxu1 %v12756_v13  ;;  %v12803_v12 = vcombine.low %v594_v1, %v598_v2  ;;  %v12810_v13 = vcombine.high %v601_v7, %v605_v8  ;;  %v12812_v14 = vcombine.high %v602_v9, %v606_v10  ;;  %v653_v1 = vld [vmem:[#allocation5 + $0x1060] sm:$0xff]  ;;  %v650_v2 = vld [vmem:[#allocation5 + $0x1048] sm:$0xff] }
 0x147   :  { %9645 = vmatpush1.bf16.msra.mxu0 %v12753_v21  ;;  %10161 = vmatpush1.bf16.msra.mxu1 %v12755_v22  ;;  %v614_v21 = vld [vmem:[#allocation5 + $0xf28] sm:$0xff]  ;;  %v12809_v22 = vcombine.low %v601_v7, %v605_v8  ;;  %v12849_v7 = vcombine.low %v641_v28, %v645_v30 }
 0x148   :  { %9646 = vmatprep.subr.bf16.mxu0 %v12762_v23  ;;  %10162 = vmatprep.subr.bf16.mxu1 %v12764_v24  ;;  %v12811_v23 = vcombine.low %v602_v9, %v606_v10  ;;  %v12818_v24 = vcombine.high %v609_v15, %v613_v17  ;;  %v12820_v25 = vcombine.high %v610_v20, %v614_v21 }
 0x149   :  { %v12858_v9 = vcombine.high %v649_v0, %v653_v1 }
 0x14b   :  { %9647 = vmatpush1.bf16.msra.mxu0 %v12761_v29  ;;  %10163 = vmatpush1.bf16.msra.mxu1 %v12763_v32  ;;  %v622_v29 = vld [vmem:[#allocation5 + $0xf68] sm:$0xff]  ;;  %v12817_v32 = vcombine.low %v609_v15, %v613_v17 }
 0x14c   :  { %9648 = vmatprep.subr.bf16.mxu0 %v12770_v33  ;;  %10164 = vmatprep.subr.bf16.mxu1 %v12772_v34  ;;  %v12819_v33 = vcombine.low %v610_v20, %v614_v21  ;;  %v12826_v34 = vcombine.high %v617_v26, %v621_v55  ;;  %v12828_v35 = vcombine.high %v618_v27, %v622_v29  ;;  %v665_v21 = vld [vmem:[#allocation5 + $0x10c0] sm:$0xff] }
 0x14f   :  { %9649 = vmatpush1.bf16.msra.mxu0 %v12769_v39  ;;  %10165 = vmatpush1.bf16.msra.mxu1 %v12771_v18  ;;  %v630_v39 = vld [vmem:[#allocation5 + $0xfa8] sm:$0xff]  ;;  %v12825_v18 = vcombine.low %v617_v26, %v621_v55 }
 0x150   :  { %9650 = vmatprep.subr.bf16.mxu0 %v12778_v19  ;;  %10166 = vmatprep.subr.bf16.mxu1 %v12780_v41  ;;  %v12827_v19 = vcombine.low %v618_v27, %v622_v29  ;;  %v12834_v41 = vcombine.high %v625_v36, %v629_v37  ;;  %v12836_v42 = vcombine.high %v626_v38, %v630_v39  ;;  %v673_v29 = vld [vmem:[#allocation5 + $0x1100] sm:$0xff] }
 0x153   :  { %9651 = vmatpush1.bf16.msra.mxu0 %v12777_v49  ;;  %10167 = vmatpush1.bf16.msra.mxu1 %v12779_v50  ;;  %v638_v49 = vld [vmem:[#allocation5 + $0xfe8] sm:$0xff]  ;;  %v12833_v50 = vcombine.low %v625_v36, %v629_v37 }
 0x154   :  { %9652 = vmatprep.subr.bf16.mxu0 %v12786_v51  ;;  %10168 = vmatprep.subr.bf16.mxu1 %v12788_v52  ;;  %v12835_v51 = vcombine.low %v626_v38, %v630_v39  ;;  %v12842_v52 = vcombine.high %v633_v43, %v637_v45  ;;  %v12844_v53 = vcombine.high %v634_v48, %v638_v49  ;;  %v681_v39 = vld [vmem:[#allocation5 + $0x1140] sm:$0xff] }
 0x157   :  { %9653 = vmatpush1.bf16.msra.mxu0 %v12785_v58  ;;  %10169 = vmatpush1.bf16.msra.mxu1 %v12787_v60  ;;  %v646_v58 = vld [vmem:[#allocation5 + $0x1028] sm:$0xff]  ;;  %v12841_v60 = vcombine.low %v633_v43, %v637_v45 }
 0x158   :  { %9654 = vmatprep.subr.bf16.mxu0 %v12794_v61  ;;  %10170 = vmatprep.subr.bf16.mxu1 %v12796_v62  ;;  %v12843_v61 = vcombine.low %v634_v48, %v638_v49  ;;  %v12850_v62 = vcombine.high %v641_v28, %v645_v30  ;;  %v12852_v63 = vcombine.high %v642_v57, %v646_v58  ;;  %v689_v49 = vld [vmem:[#allocation5 + $0x1180] sm:$0xff] }
 0x159   :  { %v12851_v8 = vcombine.low %v642_v57, %v646_v58  ;;  %v697_v58 = vld [vmem:[#allocation5 + $0x11c0] sm:$0xff] }
 0x15b   :  { %9655 = vmatpush1.bf16.msra.mxu0 %v12793_v3  ;;  %10171 = vmatpush1.bf16.msra.mxu1 %v12795_v4  ;;  %v14624_v3 = vcombine.low %v14610_v46, %v14612_v47  ;;  %v654_v4 = vld [vmem:[#allocation5 + $0x1068] sm:$0xff] }
 0x15c   :  { %9656 = vmatprep.subr.bf16.mxu0 %v12802_v5  ;;  %10172 = vmatprep.subr.bf16.mxu1 %v12804_v6  ;;  %v14626_v5 = vld [vmem:[#allocation3 + $0x20] sm:$0xff]  ;;  %v12860_v10 = vcombine.high %v650_v2, %v654_v4  ;;  %v658_v46 = vld [vmem:[#allocation5 + $0x1088] sm:$0xff]  ;;  %v12859_v15 = vcombine.low %v650_v2, %v654_v4 }
 0x15d   :  { %v14628_v6 = vld [vmem:[#allocation3 + $0x80] sm:$0xff]  ;;  %v662_v47 = vld [vmem:[#allocation5 + $0x10a8] sm:$0xff] }
 0x15e   :  { %v12868_v20 = vcombine.high %v658_v46, %v662_v47  ;;  %v12867_v26 = vcombine.low %v658_v46, %v662_v47  ;;  %v705_v4 = vld [vmem:[#allocation5 + $0x1200] sm:$0xff] }
 0x15f   :  { %9657 = vmatpush1.bf16.msra.mxu0 %v12801_v11  ;;  %10173 = vmatpush1.bf16.msra.mxu1 %v12803_v12  ;;  %v657_v11 = vld [vmem:[#allocation5 + $0x1080] sm:$0xff] }
 0x160   :  { %9658 = vmatprep.subr.bf16.mxu0 %v12810_v13  ;;  %10174 = vmatprep.subr.bf16.mxu1 %v12812_v14  ;;  %v661_v12 = vld [vmem:[#allocation5 + $0x10a0] sm:$0xff]  ;;  %v14632_v13 = vcombine.high %v14626_v5, %v14628_v6  ;;  %v12857_v14 = vcombine.low %v649_v0, %v653_v1 }
 0x161   :  { %v12866_v17 = vcombine.high %v657_v11, %v661_v12  ;;  %v713_v47 = vld [vmem:[#allocation5 + $0x1240] sm:$0xff] }
 0x163   :  { %9659 = vmatpush1.bf16.msra.mxu0 %v12809_v22  ;;  %10175 = vmatpush1.bf16.msra.mxu1 %v12811_v23  ;;  %v669_v22 = vld [vmem:[#allocation5 + $0x10e0] sm:$0xff]  ;;  %v666_v23 = vld [vmem:[#allocation5 + $0x10c8] sm:$0xff] }
 0x164   :  { %9660 = vmatprep.subr.bf16.mxu0 %v12818_v24  ;;  %10176 = vmatprep.subr.bf16.mxu1 %v12820_v25  ;;  %v670_v24 = vld [vmem:[#allocation5 + $0x10e8] sm:$0xff]  ;;  %v12865_v25 = vcombine.low %v657_v11, %v661_v12  ;;  %v12874_v55 = vcombine.high %v665_v21, %v669_v22 }
 0x165   :  { %v12876_v27 = vcombine.high %v666_v23, %v670_v24  ;;  %v12875_v36 = vcombine.low %v666_v23, %v670_v24  ;;  %v721_v24 = vld [vmem:[#allocation5 + $0x1280] sm:$0xff] }
 0x167   :  { %9661 = vmatpush1.bf16.msra.mxu0 %v12817_v32  ;;  %10177 = vmatpush1.bf16.msra.mxu1 %v12819_v33  ;;  %v677_v32 = vld [vmem:[#allocation5 + $0x1120] sm:$0xff]  ;;  %v674_v33 = vld [vmem:[#allocation5 + $0x1108] sm:$0xff] }
 0x168   :  { %9662 = vmatprep.subr.bf16.mxu0 %v12826_v34  ;;  %10178 = vmatprep.subr.bf16.mxu1 %v12828_v35  ;;  %v678_v34 = vld [vmem:[#allocation5 + $0x1128] sm:$0xff]  ;;  %v12873_v35 = vcombine.low %v665_v21, %v669_v22  ;;  %v12882_v37 = vcombine.high %v673_v29, %v677_v32 }
 0x169   :  { %v12884_v38 = vcombine.high %v674_v33, %v678_v34  ;;  %v12883_v43 = vcombine.low %v674_v33, %v678_v34  ;;  %v729_v34 = vld [vmem:[#allocation5 + $0x12c0] sm:$0xff] }
 0x16b   :  { %9663 = vmatpush1.bf16.msra.mxu0 %v12825_v18  ;;  %10179 = vmatpush1.bf16.msra.mxu1 %v12827_v19  ;;  %v685_v18 = vld [vmem:[#allocation5 + $0x1160] sm:$0xff]  ;;  %v682_v19 = vld [vmem:[#allocation5 + $0x1148] sm:$0xff] }
 0x16c   :  { %9664 = vmatprep.subr.bf16.mxu0 %v12834_v41  ;;  %10180 = vmatprep.subr.bf16.mxu1 %v12836_v42  ;;  %v686_v41 = vld [vmem:[#allocation5 + $0x1168] sm:$0xff]  ;;  %v12881_v42 = vcombine.low %v673_v29, %v677_v32  ;;  %v12890_v45 = vcombine.high %v681_v39, %v685_v18 }
 0x16d   :  { %v12892_v48 = vcombine.high %v682_v19, %v686_v41  ;;  %v12891_v28 = vcombine.low %v682_v19, %v686_v41  ;;  %v737_v41 = vld [vmem:[#allocation5 + $0x1300] sm:$0xff] }
 0x16f   :  { %9665 = vmatpush1.bf16.msra.mxu0 %v12833_v50  ;;  %10181 = vmatpush1.bf16.msra.mxu1 %v12835_v51  ;;  %v693_v50 = vld [vmem:[#allocation5 + $0x11a0] sm:$0xff]  ;;  %v690_v51 = vld [vmem:[#allocation5 + $0x1188] sm:$0xff] }
 0x170   :  { %9666 = vmatprep.subr.bf16.mxu0 %v12842_v52  ;;  %10182 = vmatprep.subr.bf16.mxu1 %v12844_v53  ;;  %v694_v52 = vld [vmem:[#allocation5 + $0x11a8] sm:$0xff]  ;;  %v12889_v53 = vcombine.low %v681_v39, %v685_v18  ;;  %v12898_v30 = vcombine.high %v689_v49, %v693_v50 }
 0x171   :  { %v12900_v57 = vcombine.high %v690_v51, %v694_v52  ;;  %v12899_v0 = vcombine.low %v690_v51, %v694_v52  ;;  %v745_v52 = vld [vmem:[#allocation5 + $0x1340] sm:$0xff] }
 0x173   :  { %9667 = vmatpush1.bf16.msra.mxu0 %v12841_v60  ;;  %10183 = vmatpush1.bf16.msra.mxu1 %v12843_v61  ;;  %v701_v60 = vld [vmem:[#allocation5 + $0x11e0] sm:$0xff]  ;;  %v698_v61 = vld [vmem:[#allocation5 + $0x11c8] sm:$0xff] }
 0x174   :  { %9679 = vmatprep.subr.bf16.mxu0 %v12850_v62  ;;  %10195 = vmatprep.subr.bf16.mxu1 %v12852_v63  ;;  %v702_v62 = vld [vmem:[#allocation5 + $0x11e8] sm:$0xff]  ;;  %v12897_v63 = vcombine.low %v689_v49, %v693_v50  ;;  %v12906_v1 = vcombine.high %v697_v58, %v701_v60 }
 0x175   :  { %v12908_v2 = vcombine.high %v698_v61, %v702_v62  ;;  %v12907_v11 = vcombine.low %v698_v61, %v702_v62  ;;  %v753_v62 = vld [vmem:[#allocation5 + $0x1380] sm:$0xff] }
 0x176   :  { %9669 = vmatmul.mubr.bf16.vlgmr.msra.gmra.mrb[0].mxu0 %v14624_v3  ;;  %10185 = vmatmul.mubr.bf16.vlgmr.msra.gmra.mrb[0].mxu1 %v14624_v3 }
 0x177   :  { %9680 = vmatpush1.bf16.msra.mxu0 %v12849_v7  ;;  %10196 = vmatpush1.bf16.msra.mxu1 %v12851_v8  ;;  %v709_v7 = vld [vmem:[#allocation5 + $0x1220] sm:$0xff]  ;;  %v706_v8 = vld [vmem:[#allocation5 + $0x1208] sm:$0xff] }
 0x178   :  { %9681 = vmatprep.subr.bf16.mxu0 %v12858_v9  ;;  %10197 = vmatprep.subr.bf16.mxu1 %v12860_v10  ;;  %v710_v9 = vld [vmem:[#allocation5 + $0x1228] sm:$0xff]  ;;  %v12905_v10 = vcombine.low %v697_v58, %v701_v60  ;;  %v12914_v12 = vcombine.high %v705_v4, %v709_v7 }
 0x179   :  { %9711 = vmatprep.mubr.bf16.mxu0 %v14632_v13  ;;  %10227 = vmatprep.mubr.bf16.mxu1 %v14632_v13  ;;  %v12916_v46 = vcombine.high %v706_v8, %v710_v9  ;;  %v12915_v21 = vcombine.low %v706_v8, %v710_v9  ;;  %v761_v9 = vld [vmem:[#allocation5 + $0x13c0] sm:$0xff] }
 0x17b   :  { %9682 = vmatpush1.bf16.msra.mxu0 %v12857_v14  ;;  %10198 = vmatpush1.bf16.msra.mxu1 %v12859_v15  ;;  %v717_v14 = vld [vmem:[#allocation5 + $0x1260] sm:$0xff]  ;;  %v714_v15 = vld [vmem:[#allocation5 + $0x1248] sm:$0xff] }
 0x17c   :  { %9683 = vmatprep.subr.bf16.mxu0 %v12866_v17  ;;  %10199 = vmatprep.subr.bf16.mxu1 %v12868_v20  ;;  %v718_v17 = vld [vmem:[#allocation5 + $0x1268] sm:$0xff]  ;;  %v12913_v20 = vcombine.low %v705_v4, %v709_v7  ;;  %v12922_v22 = vcombine.high %v713_v47, %v717_v14 }
 0x17d   :  { %v12924_v23 = vcombine.high %v714_v15, %v718_v17  ;;  %v12923_v29 = vcombine.low %v714_v15, %v718_v17  ;;  %v769_v17 = vld [vmem:[#allocation5 + $0x1400] sm:$0xff] }
 0x17f   :  { %9684 = vmatpush1.bf16.msra.mxu0 %v12865_v25  ;;  %10200 = vmatpush1.bf16.msra.mxu1 %v12867_v26  ;;  %v725_v25 = vld [vmem:[#allocation5 + $0x12a0] sm:$0xff]  ;;  %v722_v26 = vld [vmem:[#allocation5 + $0x1288] sm:$0xff] }
 0x180   :  { %9685 = vmatprep.subr.bf16.mxu0 %v12874_v55  ;;  %10201 = vmatprep.subr.bf16.mxu1 %v12876_v27  ;;  %v726_v55 = vld [vmem:[#allocation5 + $0x12a8] sm:$0xff]  ;;  %v12921_v27 = vcombine.low %v713_v47, %v717_v14  ;;  %v12930_v32 = vcombine.high %v721_v24, %v725_v25 }
 0x181   :  { %v12932_v33 = vcombine.high %v722_v26, %v726_v55  ;;  %v12931_v39 = vcombine.low %v722_v26, %v726_v55  ;;  %v777_v55 = vld [vmem:[#allocation5 + $0x1440] sm:$0xff] }
 0x183   :  { %9686 = vmatpush1.bf16.msra.mxu0 %v12873_v35  ;;  %10202 = vmatpush1.bf16.msra.mxu1 %v12875_v36  ;;  %v733_v35 = vld [vmem:[#allocation5 + $0x12e0] sm:$0xff]  ;;  %v730_v36 = vld [vmem:[#allocation5 + $0x12c8] sm:$0xff] }
 0x184   :  { %9687 = vmatprep.subr.bf16.mxu0 %v12882_v37  ;;  %10203 = vmatprep.subr.bf16.mxu1 %v12884_v38  ;;  %v734_v37 = vld [vmem:[#allocation5 + $0x12e8] sm:$0xff]  ;;  %v12929_v38 = vcombine.low %v721_v24, %v725_v25  ;;  %v12938_v18 = vcombine.high %v729_v34, %v733_v35 }
 0x185   :  { %v12940_v19 = vcombine.high %v730_v36, %v734_v37  ;;  %v12939_v49 = vcombine.low %v730_v36, %v734_v37 }
 0x187   :  { %9688 = vmatpush1.bf16.msra.mxu0 %v12881_v42  ;;  %10204 = vmatpush1.bf16.msra.mxu1 %v12883_v43  ;;  %v741_v42 = vld [vmem:[#allocation5 + $0x1320] sm:$0xff]  ;;  %v738_v43 = vld [vmem:[#allocation5 + $0x1308] sm:$0xff] }
 0x188   :  { %9689 = vmatprep.subr.bf16.mxu0 %v12890_v45  ;;  %10205 = vmatprep.subr.bf16.mxu1 %v12892_v48  ;;  %v742_v45 = vld [vmem:[#allocation5 + $0x1328] sm:$0xff]  ;;  %v12937_v48 = vcombine.low %v729_v34, %v733_v35  ;;  %v12946_v50 = vcombine.high %v737_v41, %v741_v42 }
 0x189   :  { %v12948_v51 = vcombine.high %v738_v43, %v742_v45  ;;  %v12947_v58 = vcombine.low %v738_v43, %v742_v45  ;;  %v14642_v34 = vld [vmem:[#allocation3 + $0x28] sm:$0xff] }
 0x18a   :  { %v14644_v35 = vld [vmem:[#allocation3 + $0x88] sm:$0xff] }
 0x18b   :  { %9690 = vmatpush1.bf16.msra.mxu0 %v12889_v53  ;;  %10206 = vmatpush1.bf16.msra.mxu1 %v12891_v28  ;;  %v749_v53 = vld [vmem:[#allocation5 + $0x1360] sm:$0xff]  ;;  %v746_v28 = vld [vmem:[#allocation5 + $0x1348] sm:$0xff] }
 0x18c   :  { %9691 = vmatprep.subr.bf16.mxu0 %v12898_v30  ;;  %10207 = vmatprep.subr.bf16.mxu1 %v12900_v57  ;;  %v750_v30 = vld [vmem:[#allocation5 + $0x1368] sm:$0xff]  ;;  %v12945_v57 = vcombine.low %v737_v41, %v741_v42  ;;  %v12954_v60 = vcombine.high %v745_v52, %v749_v53  ;;  %v14648_v41 = vcombine.high %v14642_v34, %v14644_v35 }
 0x18d   :  { %v12956_v61 = vcombine.high %v746_v28, %v750_v30  ;;  %v12955_v4 = vcombine.low %v746_v28, %v750_v30 }
 0x18f   :  { %9692 = vmatpush1.bf16.msra.mxu0 %v12897_v63  ;;  %10208 = vmatpush1.bf16.msra.mxu1 %v12899_v0  ;;  %v757_v63 = vld [vmem:[#allocation5 + $0x13a0] sm:$0xff]  ;;  %v754_v0 = vld [vmem:[#allocation5 + $0x1388] sm:$0xff] }
 0x190   :  { %9693 = vmatprep.subr.bf16.mxu0 %v12906_v1  ;;  %10209 = vmatprep.subr.bf16.mxu1 %v12908_v2  ;;  %v758_v1 = vld [vmem:[#allocation5 + $0x13a8] sm:$0xff]  ;;  %v12953_v2 = vcombine.low %v745_v52, %v749_v53  ;;  %v12962_v7 = vcombine.high %v753_v62, %v757_v63 }
 0x191   :  { %v12964_v8 = vcombine.high %v754_v0, %v758_v1  ;;  %v12963_v47 = vcombine.low %v754_v0, %v758_v1  ;;  %v798_v52 = vld [vmem:[#allocation5 + $0x14e8] sm:$0xff] }
 0x193   :  { %9694 = vmatpush1.bf16.msra.mxu0 %v12905_v10  ;;  %10210 = vmatpush1.bf16.msra.mxu1 %v12907_v11  ;;  %v765_v10 = vld [vmem:[#allocation5 + $0x13e0] sm:$0xff]  ;;  %v762_v11 = vld [vmem:[#allocation5 + $0x13c8] sm:$0xff] }
 0x194   :  { %9695 = vmatprep.subr.bf16.mxu0 %v12914_v12  ;;  %10211 = vmatprep.subr.bf16.mxu1 %v12916_v46  ;;  %v766_v12 = vld [vmem:[#allocation5 + $0x13e8] sm:$0xff]  ;;  %v12961_v46 = vcombine.low %v753_v62, %v757_v63  ;;  %v12970_v14 = vcombine.high %v761_v9, %v765_v10 }
 0x195   :  { %v12972_v15 = vcombine.high %v762_v11, %v766_v12  ;;  %v12971_v24 = vcombine.low %v762_v11, %v766_v12  ;;  %v806_v62 = vld [vmem:[#allocation5 + $0x1528] sm:$0xff] }
 0x197   :  { %9696 = vmatpush1.bf16.msra.mxu0 %v12913_v20  ;;  %10212 = vmatpush1.bf16.msra.mxu1 %v12915_v21  ;;  %v773_v20 = vld [vmem:[#allocation5 + $0x1420] sm:$0xff]  ;;  %v770_v21 = vld [vmem:[#allocation5 + $0x1408] sm:$0xff] }
 0x198   :  { %9697 = vmatprep.subr.bf16.mxu0 %v12922_v22  ;;  %10213 = vmatprep.subr.bf16.mxu1 %v12924_v23  ;;  %v774_v22 = vld [vmem:[#allocation5 + $0x1428] sm:$0xff]  ;;  %v12969_v23 = vcombine.low %v761_v9, %v765_v10  ;;  %v12978_v25 = vcombine.high %v769_v17, %v773_v20  ;;  %v12977_v36 = vcombine.low %v769_v17, %v773_v20 }
 0x199   :  { %v12980_v26 = vcombine.high %v770_v21, %v774_v22  ;;  %v12979_v37 = vcombine.low %v770_v21, %v774_v22  ;;  %v814_v9 = vld [vmem:[#allocation5 + $0x1568] sm:$0xff] }
 0x19a   :  { %v822_v17 = vld [vmem:[#allocation5 + $0x15a8] sm:$0xff] }
 0x19b   :  { %9698 = vmatpush1.bf16.msra.mxu0 %v12921_v27  ;;  %10214 = vmatpush1.bf16.msra.mxu1 %v12923_v29  ;;  %v781_v27 = vld [vmem:[#allocation5 + $0x1460] sm:$0xff]  ;;  %v778_v29 = vld [vmem:[#allocation5 + $0x1448] sm:$0xff] }
 0x19c   :  { %9699 = vmatprep.subr.bf16.mxu0 %v12930_v32  ;;  %10215 = vmatprep.subr.bf16.mxu1 %v12932_v33  ;;  %v14640_v32 = vcombine.low %v14626_v5, %v14628_v6  ;;  %v782_v33 = vld [vmem:[#allocation5 + $0x1468] sm:$0xff]  ;;  %v12985_v42 = vcombine.low %v777_v55, %v781_v27 }
 0x19d   :  { %v786_v5 = vld [vmem:[#allocation5 + $0x1488] sm:$0xff]  ;;  %v12987_v43 = vcombine.low %v778_v29, %v782_v33 }
 0x19e   :  { %v790_v6 = vld [vmem:[#allocation5 + $0x14a8] sm:$0xff] }
 0x19f   :  { %9700 = vmatpush1.bf16.msra.mxu0 %v12929_v38  ;;  %10216 = vmatpush1.bf16.msra.mxu1 %v12931_v39  ;;  %v12986_v38 = vcombine.high %v777_v55, %v781_v27  ;;  %v12988_v39 = vcombine.high %v778_v29, %v782_v33  ;;  %v12995_v28 = vcombine.low %v786_v5, %v790_v6  ;;  %v830_v55 = vld [vmem:[#allocation5 + $0x15e8] sm:$0xff] }
 0x1a0   :  { %9701 = vmatprep.subr.bf16.mxu0 %v12938_v18  ;;  %10217 = vmatprep.subr.bf16.mxu1 %v12940_v19  ;;  %v785_v18 = vld [vmem:[#allocation5 + $0x1480] sm:$0xff] }
 0x1a1   :  { %v789_v19 = vld [vmem:[#allocation5 + $0x14a0] sm:$0xff] }
 0x1a2   :  { %v12994_v45 = vcombine.high %v785_v18, %v789_v19  ;;  %v12993_v53 = vcombine.low %v785_v18, %v789_v19  ;;  %v838_v18 = vld [vmem:[#allocation5 + $0x1628] sm:$0xff] }
 0x1a3   :  { %9702 = vmatpush1.bf16.msra.mxu0 %v12937_v48  ;;  %10218 = vmatpush1.bf16.msra.mxu1 %v12939_v49  ;;  %v12996_v48 = vcombine.high %v786_v5, %v790_v6  ;;  %v793_v49 = vld [vmem:[#allocation5 + $0x14c0] sm:$0xff] }
 0x1a4   :  { %9703 = vmatprep.subr.bf16.mxu0 %v12946_v50  ;;  %10219 = vmatprep.subr.bf16.mxu1 %v12948_v51  ;;  %v797_v50 = vld [vmem:[#allocation5 + $0x14e0] sm:$0xff]  ;;  %v794_v51 = vld [vmem:[#allocation5 + $0x14c8] sm:$0xff] }
 0x1a5   :  { %v13002_v30 = vcombine.high %v793_v49, %v797_v50  ;;  %v13001_v63 = vcombine.low %v793_v49, %v797_v50  ;;  %v13003_v0 = vcombine.low %v794_v51, %v798_v52  ;;  %v846_v49 = vld [vmem:[#allocation5 + $0x1668] sm:$0xff] }
 0x1a7   :  { %9704 = vmatpush1.bf16.msra.mxu0 %v12945_v57  ;;  %10220 = vmatpush1.bf16.msra.mxu1 %v12947_v58  ;;  %v13004_v57 = vcombine.high %v794_v51, %v798_v52  ;;  %v801_v58 = vld [vmem:[#allocation5 + $0x1500] sm:$0xff] }
 0x1a8   :  { %9705 = vmatprep.subr.bf16.mxu0 %v12954_v60  ;;  %10221 = vmatprep.subr.bf16.mxu1 %v12956_v61  ;;  %v805_v60 = vld [vmem:[#allocation5 + $0x1520] sm:$0xff]  ;;  %v802_v61 = vld [vmem:[#allocation5 + $0x1508] sm:$0xff] }
 0x1a9   :  { %v13010_v1 = vcombine.high %v801_v58, %v805_v60  ;;  %v13009_v10 = vcombine.low %v801_v58, %v805_v60  ;;  %v13011_v11 = vcombine.low %v802_v61, %v806_v62  ;;  %v854_v58 = vld [vmem:[#allocation5 + $0x16a8] sm:$0xff] }
 0x1ab   :  { %9706 = vmatpush1.bf16.msra.mxu0 %v12953_v2  ;;  %10222 = vmatpush1.bf16.msra.mxu1 %v12955_v4  ;;  %v13012_v2 = vcombine.high %v802_v61, %v806_v62  ;;  %v809_v4 = vld [vmem:[#allocation5 + $0x1540] sm:$0xff] }
 0x1ac   :  { %9707 = vmatprep.subr.bf16.mxu0 %v12962_v7  ;;  %10223 = vmatprep.subr.bf16.mxu1 %v12964_v8  ;;  %v813_v7 = vld [vmem:[#allocation5 + $0x1560] sm:$0xff]  ;;  %v810_v8 = vld [vmem:[#allocation5 + $0x1548] sm:$0xff] }
 0x1ad   :  { %v13018_v12 = vcombine.high %v809_v4, %v813_v7  ;;  %v13017_v20 = vcombine.low %v809_v4, %v813_v7  ;;  %v13019_v21 = vcombine.low %v810_v8, %v814_v9  ;;  %v862_v4 = vld [vmem:[#allocation5 + $0x16e8] sm:$0xff] }
 0x1af   :  { %9708 = vmatpush1.bf16.msra.mxu0 %v12961_v46  ;;  %10224 = vmatpush1.bf16.msra.mxu1 %v12963_v47  ;;  %v13020_v46 = vcombine.high %v810_v8, %v814_v9  ;;  %v817_v47 = vld [vmem:[#allocation5 + $0x1580] sm:$0xff] }
 0x1b0   :  { %9709 = vmatprep.subr.bf16.mxu0 %v12970_v14  ;;  %10225 = vmatprep.subr.bf16.mxu1 %v12972_v15  ;;  %v821_v14 = vld [vmem:[#allocation5 + $0x15a0] sm:$0xff]  ;;  %v818_v15 = vld [vmem:[#allocation5 + $0x1588] sm:$0xff] }
 0x1b1   :  { %v13026_v22 = vcombine.high %v817_v47, %v821_v14  ;;  %v13025_v27 = vcombine.low %v817_v47, %v821_v14  ;;  %v13027_v29 = vcombine.low %v818_v15, %v822_v17  ;;  %v870_v47 = vld [vmem:[#allocation5 + $0x1728] sm:$0xff] }
 0x1b3   :  { %9710 = vmatpush1.bf16.msra.mxu0 %v12969_v23  ;;  %10226 = vmatpush1.bf16.msra.mxu1 %v12971_v24  ;;  %v13028_v23 = vcombine.high %v818_v15, %v822_v17  ;;  %v825_v24 = vld [vmem:[#allocation5 + $0x15c0] sm:$0xff] }
 0x1b4   :  { %9722 = vmatprep.subr.bf16.mxu0 %v12978_v25  ;;  %10238 = vmatprep.subr.bf16.mxu1 %v12980_v26  ;;  %v829_v25 = vld [vmem:[#allocation5 + $0x15e0] sm:$0xff]  ;;  %v826_v26 = vld [vmem:[#allocation5 + $0x15c8] sm:$0xff] }
 0x1b5   :  { %v13034_v33 = vcombine.high %v825_v24, %v829_v25  ;;  %v13033_v19 = vcombine.low %v825_v24, %v829_v25  ;;  %v13035_v5 = vcombine.low %v826_v26, %v830_v55  ;;  %v878_v24 = vld [vmem:[#allocation5 + $0x1768] sm:$0xff] }
 0x1b6   :  { %9712 = vmatmul.mubr.bf16.vlgmr.msra.gmra.mrb[0].mxu0 %v14640_v32  ;;  %10228 = vmatmul.mubr.bf16.vlgmr.msra.gmra.mrb[0].mxu1 %v14640_v32 }
 0x1b7   :  { %9723 = vmatpush1.bf16.msra.mxu0 %v12977_v36  ;;  %10239 = vmatpush1.bf16.msra.mxu1 %v12979_v37  ;;  %v13036_v36 = vcombine.high %v826_v26, %v830_v55  ;;  %v833_v37 = vld [vmem:[#allocation5 + $0x1600] sm:$0xff] }
 0x1b8   :  { %9724 = vmatprep.subr.bf16.mxu0 %v12986_v38  ;;  %10240 = vmatprep.subr.bf16.mxu1 %v12988_v39  ;;  %v837_v38 = vld [vmem:[#allocation5 + $0x1620] sm:$0xff]  ;;  %v834_v39 = vld [vmem:[#allocation5 + $0x1608] sm:$0xff] }
 0x1b9   :  { %9754 = vmatprep.mubr.bf16.mxu0 %v14648_v41  ;;  %10270 = vmatprep.mubr.bf16.mxu1 %v14648_v41  ;;  %v13042_v6 = vcombine.high %v833_v37, %v837_v38  ;;  %v13041_v50 = vcombine.low %v833_v37, %v837_v38  ;;  %v13043_v51 = vcombine.low %v834_v39, %v838_v18  ;;  %v886_v37 = vld [vmem:[#allocation5 + $0x17a8] sm:$0xff] }
 0x1bb   :  { %9725 = vmatpush1.bf16.msra.mxu0 %v12985_v42  ;;  %10241 = vmatpush1.bf16.msra.mxu1 %v12987_v43  ;;  %v13044_v42 = vcombine.high %v834_v39, %v838_v18  ;;  %v841_v43 = vld [vmem:[#allocation5 + $0x1640] sm:$0xff] }
 0x1bc   :  { %9726 = vmatprep.subr.bf16.mxu0 %v12994_v45  ;;  %10242 = vmatprep.subr.bf16.mxu1 %v12996_v48  ;;  %v845_v45 = vld [vmem:[#allocation5 + $0x1660] sm:$0xff]  ;;  %v842_v48 = vld [vmem:[#allocation5 + $0x1648] sm:$0xff] }
 0x1bd   :  { %v13050_v52 = vcombine.high %v841_v43, %v845_v45  ;;  %v13049_v60 = vcombine.low %v841_v43, %v845_v45  ;;  %v13051_v61 = vcombine.low %v842_v48, %v846_v49  ;;  %v894_v43 = vld [vmem:[#allocation5 + $0x17e8] sm:$0xff] }
 0x1bf   :  { %9727 = vmatpush1.bf16.msra.mxu0 %v12993_v53  ;;  %10243 = vmatpush1.bf16.msra.mxu1 %v12995_v28  ;;  %v13052_v53 = vcombine.high %v842_v48, %v846_v49  ;;  %v849_v28 = vld [vmem:[#allocation5 + $0x1680] sm:$0xff] }
 0x1c0   :  { %9728 = vmatprep.subr.bf16.mxu0 %v13002_v30  ;;  %10244 = vmatprep.subr.bf16.mxu1 %v13004_v57  ;;  %v853_v30 = vld [vmem:[#allocation5 + $0x16a0] sm:$0xff]  ;;  %v850_v57 = vld [vmem:[#allocation5 + $0x1688] sm:$0xff] }
 0x1c1   :  { %v13058_v62 = vcombine.high %v849_v28, %v853_v30  ;;  %v13057_v7 = vcombine.low %v849_v28, %v853_v30  ;;  %v13059_v8 = vcombine.low %v850_v57, %v854_v58  ;;  %v902_v28 = vld [vmem:[#allocation5 + $0x1828] sm:$0xff] }
 0x1c3   :  { %9729 = vmatpush1.bf16.msra.mxu0 %v13001_v63  ;;  %10245 = vmatpush1.bf16.msra.mxu1 %v13003_v0  ;;  %v13060_v63 = vcombine.high %v850_v57, %v854_v58  ;;  %v857_v0 = vld [vmem:[#allocation5 + $0x16c0] sm:$0xff] }
 0x1c4   :  { %9730 = vmatprep.subr.bf16.mxu0 %v13010_v1  ;;  %10246 = vmatprep.subr.bf16.mxu1 %v13012_v2  ;;  %v861_v1 = vld [vmem:[#allocation5 + $0x16e0] sm:$0xff]  ;;  %v858_v2 = vld [vmem:[#allocation5 + $0x16c8] sm:$0xff] }
 0x1c5   :  { %v13066_v9 = vcombine.high %v857_v0, %v861_v1  ;;  %v13065_v14 = vcombine.low %v857_v0, %v861_v1  ;;  %v13067_v15 = vcombine.low %v858_v2, %v862_v4  ;;  %v14656_v0 = vcombine.low %v14642_v34, %v14644_v35  ;;  %v910_v1 = vld [vmem:[#allocation5 + $0x1868] sm:$0xff] }
 0x1c6   :  { %v914_v34 = vld [vmem:[#allocation5 + $0x1888] sm:$0xff] }
 0x1c7   :  { %9731 = vmatpush1.bf16.msra.mxu0 %v13009_v10  ;;  %10247 = vmatpush1.bf16.msra.mxu1 %v13011_v11  ;;  %v13068_v10 = vcombine.high %v858_v2, %v862_v4  ;;  %v865_v11 = vld [vmem:[#allocation5 + $0x1700] sm:$0xff]  ;;  %v14658_v2 = vld [vmem:[#allocation3 + $0x30] sm:$0xff]  ;;  %v918_v35 = vld [vmem:[#allocation5 + $0x18a8] sm:$0xff] }
 0x1c8   :  { %9732 = vmatprep.subr.bf16.mxu0 %v13018_v12  ;;  %10248 = vmatprep.subr.bf16.mxu1 %v13020_v46  ;;  %v869_v12 = vld [vmem:[#allocation5 + $0x1720] sm:$0xff]  ;;  %v866_v46 = vld [vmem:[#allocation5 + $0x1708] sm:$0xff]  ;;  %v14660_v4 = vld [vmem:[#allocation3 + $0x90] sm:$0xff] }
 0x1c9   :  { %v13074_v17 = vcombine.high %v865_v11, %v869_v12  ;;  %v13073_v25 = vcombine.low %v865_v11, %v869_v12  ;;  %v13075_v26 = vcombine.low %v866_v46, %v870_v47  ;;  %v913_v11 = vld [vmem:[#allocation5 + $0x1880] sm:$0xff] }
 0x1ca   :  { %v917_v12 = vld [vmem:[#allocation5 + $0x18a0] sm:$0xff] }
 0x1cb   :  { %9733 = vmatpush1.bf16.msra.mxu0 %v13017_v20  ;;  %10249 = vmatpush1.bf16.msra.mxu1 %v13019_v21  ;;  %v13076_v20 = vcombine.high %v866_v46, %v870_v47  ;;  %v873_v21 = vld [vmem:[#allocation5 + $0x1740] sm:$0xff]  ;;  %v14664_v46 = vcombine.high %v14658_v2, %v14660_v4 }
 0x1cc   :  { %9734 = vmatprep.subr.bf16.mxu0 %v13026_v22  ;;  %10250 = vmatprep.subr.bf16.mxu1 %v13028_v23  ;;  %v877_v22 = vld [vmem:[#allocation5 + $0x1760] sm:$0xff]  ;;  %v874_v23 = vld [vmem:[#allocation5 + $0x1748] sm:$0xff] }
 0x1cd   :  { %v13082_v55 = vcombine.high %v873_v21, %v877_v22  ;;  %v13081_v38 = vcombine.low %v873_v21, %v877_v22  ;;  %v13083_v39 = vcombine.low %v874_v23, %v878_v24  ;;  %v925_v21 = vld [vmem:[#allocation5 + $0x18e0] sm:$0xff]  ;;  %v922_v22 = vld [vmem:[#allocation5 + $0x18c8] sm:$0xff] }
 0x1cf   :  { %9735 = vmatpush1.bf16.msra.mxu0 %v13025_v27  ;;  %10251 = vmatpush1.bf16.msra.mxu1 %v13027_v29  ;;  %v13084_v27 = vcombine.high %v874_v23, %v878_v24  ;;  %v881_v29 = vld [vmem:[#allocation5 + $0x1780] sm:$0xff]  ;;  %v926_v23 = vld [vmem:[#allocation5 + $0x18e8] sm:$0xff]  ;;  %v13121_v24 = vcombine.low %v913_v11, %v917_v12 }
 0x1d0   :  { %9736 = vmatprep.subr.bf16.mxu0 %v13034_v33  ;;  %10252 = vmatprep.subr.bf16.mxu1 %v13036_v36  ;;  %v885_v33 = vld [vmem:[#allocation5 + $0x17a0] sm:$0xff]  ;;  %v882_v36 = vld [vmem:[#allocation5 + $0x1788] sm:$0xff] }
 0x1d1   :  { %v13090_v18 = vcombine.high %v881_v29, %v885_v33  ;;  %v13089_v45 = vcombine.low %v881_v29, %v885_v33  ;;  %v13091_v48 = vcombine.low %v882_v36, %v886_v37  ;;  %v933_v29 = vld [vmem:[#allocation5 + $0x1920] sm:$0xff]  ;;  %v930_v33 = vld [vmem:[#allocation5 + $0x1908] sm:$0xff] }
 0x1d3   :  { %9737 = vmatpush1.bf16.msra.mxu0 %v13033_v19  ;;  %10253 = vmatpush1.bf16.msra.mxu1 %v13035_v5  ;;  %v13092_v19 = vcombine.high %v882_v36, %v886_v37  ;;  %v889_v5 = vld [vmem:[#allocation5 + $0x17c0] sm:$0xff]  ;;  %v934_v36 = vld [vmem:[#allocation5 + $0x1928] sm:$0xff] }
 0x1d4   :  { %9738 = vmatprep.subr.bf16.mxu0 %v13042_v6  ;;  %10254 = vmatprep.subr.bf16.mxu1 %v13044_v42  ;;  %v893_v6 = vld [vmem:[#allocation5 + $0x17e0] sm:$0xff]  ;;  %v890_v42 = vld [vmem:[#allocation5 + $0x17c8] sm:$0xff] }
 0x1d5   :  { %v13098_v49 = vcombine.high %v889_v5, %v893_v6  ;;  %v13097_v30 = vcombine.low %v889_v5, %v893_v6  ;;  %v13099_v57 = vcombine.low %v890_v42, %v894_v43  ;;  %v941_v5 = vld [vmem:[#allocation5 + $0x1960] sm:$0xff]  ;;  %v938_v6 = vld [vmem:[#allocation5 + $0x1948] sm:$0xff] }
 0x1d7   :  { %9739 = vmatpush1.bf16.msra.mxu0 %v13041_v50  ;;  %10255 = vmatpush1.bf16.msra.mxu1 %v13043_v51  ;;  %v13100_v50 = vcombine.high %v890_v42, %v894_v43  ;;  %v897_v51 = vld [vmem:[#allocation5 + $0x1800] sm:$0xff]  ;;  %v942_v42 = vld [vmem:[#allocation5 + $0x1968] sm:$0xff] }
 0x1d8   :  { %9740 = vmatprep.subr.bf16.mxu0 %v13050_v52  ;;  %10256 = vmatprep.subr.bf16.mxu1 %v13052_v53  ;;  %v901_v52 = vld [vmem:[#allocation5 + $0x1820] sm:$0xff]  ;;  %v898_v53 = vld [vmem:[#allocation5 + $0x1808] sm:$0xff] }
 0x1d9   :  { %v13106_v58 = vcombine.high %v897_v51, %v901_v52 }
 0x1db   :  { %9741 = vmatpush1.bf16.msra.mxu0 %v13049_v60  ;;  %10257 = vmatpush1.bf16.msra.mxu1 %v13051_v61  ;;  %v13108_v60 = vcombine.high %v898_v53, %v902_v28  ;;  %v905_v61 = vld [vmem:[#allocation5 + $0x1840] sm:$0xff] }
 0x1dc   :  { %9742 = vmatprep.subr.bf16.mxu0 %v13058_v62  ;;  %10258 = vmatprep.subr.bf16.mxu1 %v13060_v63  ;;  %v909_v62 = vld [vmem:[#allocation5 + $0x1860] sm:$0xff]  ;;  %v906_v63 = vld [vmem:[#allocation5 + $0x1848] sm:$0xff] }
 0x1dd   :  { %v13113_v47 = vcombine.low %v905_v61, %v909_v62 }
 0x1df   :  { %9743 = vmatpush1.bf16.msra.mxu0 %v13057_v7  ;;  %10259 = vmatpush1.bf16.msra.mxu1 %v13059_v8  ;;  %v13105_v7 = vcombine.low %v897_v51, %v901_v52  ;;  %v13107_v8 = vcombine.low %v898_v53, %v902_v28  ;;  %v949_v51 = vld [vmem:[#allocation5 + $0x19a0] sm:$0xff]  ;;  %v946_v52 = vld [vmem:[#allocation5 + $0x1988] sm:$0xff] }
 0x1e0   :  { %9744 = vmatprep.subr.bf16.mxu0 %v13066_v9  ;;  %10260 = vmatprep.subr.bf16.mxu1 %v13068_v10  ;;  %v13114_v9 = vcombine.high %v905_v61, %v909_v62  ;;  %v13116_v10 = vcombine.high %v906_v63, %v910_v1  ;;  %v950_v53 = vld [vmem:[#allocation5 + $0x19a8] sm:$0xff]  ;;  %v957_v61 = vld [vmem:[#allocation5 + $0x19e0] sm:$0xff] }
 0x1e1   :  { %v954_v62 = vld [vmem:[#allocation5 + $0x19c8] sm:$0xff] }
 0x1e3   :  { %9745 = vmatpush1.bf16.msra.mxu0 %v13065_v14  ;;  %10261 = vmatpush1.bf16.msra.mxu1 %v13067_v15  ;;  %v13115_v14 = vcombine.low %v906_v63, %v910_v1  ;;  %v13122_v15 = vcombine.high %v913_v11, %v917_v12  ;;  %v958_v63 = vld [vmem:[#allocation5 + $0x19e8] sm:$0xff]  ;;  %v965_v11 = vld [vmem:[#allocation5 + $0x1a20] sm:$0xff] }
 0x1e4   :  { %9746 = vmatprep.subr.bf16.mxu0 %v13074_v17  ;;  %10262 = vmatprep.subr.bf16.mxu1 %v13076_v20  ;;  %v13124_v17 = vcombine.high %v914_v34, %v918_v35  ;;  %v921_v20 = vld [vmem:[#allocation5 + $0x18c0] sm:$0xff]  ;;  %v962_v12 = vld [vmem:[#allocation5 + $0x1a08] sm:$0xff] }
 0x1e5   :  { %v13129_v37 = vcombine.low %v921_v20, %v925_v21 }
 0x1e7   :  { %9747 = vmatpush1.bf16.msra.mxu0 %v13073_v25  ;;  %10263 = vmatpush1.bf16.msra.mxu1 %v13075_v26  ;;  %v13123_v25 = vcombine.low %v914_v34, %v918_v35  ;;  %v13130_v26 = vcombine.high %v921_v20, %v925_v21  ;;  %v966_v34 = vld [vmem:[#allocation5 + $0x1a28] sm:$0xff]  ;;  %v973_v20 = vld [vmem:[#allocation5 + $0x1a60] sm:$0xff] }
 0x1e8   :  { %9748 = vmatprep.subr.bf16.mxu0 %v13082_v55  ;;  %10264 = vmatprep.subr.bf16.mxu1 %v13084_v27  ;;  %v13132_v55 = vcombine.high %v922_v22, %v926_v23  ;;  %v929_v27 = vld [vmem:[#allocation5 + $0x1900] sm:$0xff]  ;;  %v970_v21 = vld [vmem:[#allocation5 + $0x1a48] sm:$0xff] }
 0x1e9   :  { %v13137_v43 = vcombine.low %v929_v27, %v933_v29 }
 0x1eb   :  { %9749 = vmatpush1.bf16.msra.mxu0 %v13081_v38  ;;  %10265 = vmatpush1.bf16.msra.mxu1 %v13083_v39  ;;  %v13131_v38 = vcombine.low %v922_v22, %v926_v23  ;;  %v13138_v39 = vcombine.high %v929_v27, %v933_v29  ;;  %v974_v22 = vld [vmem:[#allocation5 + $0x1a68] sm:$0xff]  ;;  %v981_v27 = vld [vmem:[#allocation5 + $0x1aa0] sm:$0xff] }
 0x1ec   :  { %9750 = vmatprep.subr.bf16.mxu0 %v13090_v18  ;;  %10266 = vmatprep.subr.bf16.mxu1 %v13092_v19  ;;  %v13140_v18 = vcombine.high %v930_v33, %v934_v36  ;;  %v937_v19 = vld [vmem:[#allocation5 + $0x1940] sm:$0xff]  ;;  %v978_v29 = vld [vmem:[#allocation5 + $0x1a88] sm:$0xff] }
 0x1ed   :  { %v13145_v28 = vcombine.low %v937_v19, %v941_v5 }
 0x1ef   :  { %9751 = vmatpush1.bf16.msra.mxu0 %v13089_v45  ;;  %10267 = vmatpush1.bf16.msra.mxu1 %v13091_v48  ;;  %v13139_v45 = vcombine.low %v930_v33, %v934_v36  ;;  %v13146_v48 = vcombine.high %v937_v19, %v941_v5  ;;  %v982_v33 = vld [vmem:[#allocation5 + $0x1aa8] sm:$0xff]  ;;  %v989_v19 = vld [vmem:[#allocation5 + $0x1ae0] sm:$0xff] }
 0x1f0   :  { %9752 = vmatprep.subr.bf16.mxu0 %v13098_v49  ;;  %10268 = vmatprep.subr.bf16.mxu1 %v13100_v50  ;;  %v13148_v49 = vcombine.high %v938_v6, %v942_v42  ;;  %v945_v50 = vld [vmem:[#allocation5 + $0x1980] sm:$0xff]  ;;  %v986_v5 = vld [vmem:[#allocation5 + $0x1ac8] sm:$0xff] }
 0x1f1   :  { %v13153_v1 = vcombine.low %v945_v50, %v949_v51 }
 0x1f3   :  { %9753 = vmatpush1.bf16.msra.mxu0 %v13097_v30  ;;  %10269 = vmatpush1.bf16.msra.mxu1 %v13099_v57  ;;  %v13147_v30 = vcombine.low %v938_v6, %v942_v42  ;;  %v13154_v57 = vcombine.high %v945_v50, %v949_v51  ;;  %v990_v6 = vld [vmem:[#allocation5 + $0x1ae8] sm:$0xff]  ;;  %v997_v50 = vld [vmem:[#allocation5 + $0x1b20] sm:$0xff] }
 0x1f4   :  { %9765 = vmatprep.subr.bf16.mxu0 %v13106_v58  ;;  %10281 = vmatprep.subr.bf16.mxu1 %v13108_v60  ;;  %v13156_v58 = vcombine.high %v946_v52, %v950_v53  ;;  %v953_v60 = vld [vmem:[#allocation5 + $0x19c0] sm:$0xff]  ;;  %v994_v51 = vld [vmem:[#allocation5 + $0x1b08] sm:$0xff] }
 0x1f5   :  { %v13161_v35 = vcombine.low %v953_v60, %v957_v61 }
 0x1f6   :  { %9755 = vmatmul.mubr.bf16.vlgmr.msra.gmra.mrb[0].mxu0 %v14656_v0  ;;  %10271 = vmatmul.mubr.bf16.vlgmr.msra.gmra.mrb[0].mxu1 %v14656_v0 }
 0x1f7   :  { %9766 = vmatpush1.bf16.msra.mxu0 %v13105_v7  ;;  %10282 = vmatpush1.bf16.msra.mxu1 %v13107_v8  ;;  %v13155_v7 = vcombine.low %v946_v52, %v950_v53  ;;  %v13162_v8 = vcombine.high %v953_v60, %v957_v61  ;;  %v998_v52 = vld [vmem:[#allocation5 + $0x1b28] sm:$0xff]  ;;  %v1005_v60 = vld [vmem:[#allocation5 + $0x1b60] sm:$0xff] }
 0x1f8   :  { %9767 = vmatprep.subr.bf16.mxu0 %v13114_v9  ;;  %10283 = vmatprep.subr.bf16.mxu1 %v13116_v10  ;;  %v13164_v9 = vcombine.high %v954_v62, %v958_v63  ;;  %v961_v10 = vld [vmem:[#allocation5 + $0x1a00] sm:$0xff]  ;;  %v1002_v61 = vld [vmem:[#allocation5 + $0x1b48] sm:$0xff] }
 0x1f9   :  { %9797 = vmatprep.mubr.bf16.mxu0 %v14664_v46  ;;  %10313 = vmatprep.mubr.bf16.mxu1 %v14664_v46  ;;  %v13169_v23 = vcombine.low %v961_v10, %v965_v11 }
 0x1fb   :  { %9768 = vmatpush1.bf16.msra.mxu0 %v13113_v47  ;;  %10284 = vmatpush1.bf16.msra.mxu1 %v13115_v14  ;;  %v13163_v47 = vcombine.low %v954_v62, %v958_v63  ;;  %v13170_v14 = vcombine.high %v961_v10, %v965_v11  ;;  %v1006_v62 = vld [vmem:[#allocation5 + $0x1b68] sm:$0xff]  ;;  %v1013_v10 = vld [vmem:[#allocation5 + $0x1ba0] sm:$0xff] }
 0x1fc   :  { %9769 = vmatprep.subr.bf16.mxu0 %v13122_v15  ;;  %10285 = vmatprep.subr.bf16.mxu1 %v13124_v17  ;;  %v13172_v15 = vcombine.high %v962_v12, %v966_v34  ;;  %v969_v17 = vld [vmem:[#allocation5 + $0x1a40] sm:$0xff]  ;;  %v1010_v11 = vld [vmem:[#allocation5 + $0x1b88] sm:$0xff] }
 0x1fd   :  { %v13177_v36 = vcombine.low %v969_v17, %v973_v20 }
 0x1ff   :  { %9770 = vmatpush1.bf16.msra.mxu0 %v13121_v24  ;;  %10286 = vmatpush1.bf16.msra.mxu1 %v13123_v25  ;;  %v13171_v24 = vcombine.low %v962_v12, %v966_v34  ;;  %v13178_v25 = vcombine.high %v969_v17, %v973_v20  ;;  %v1014_v12 = vld [vmem:[#allocation5 + $0x1ba8] sm:$0xff]  ;;  %v1021_v17 = vld [vmem:[#allocation5 + $0x1be0] sm:$0xff] }
 0x200   :  { %9771 = vmatprep.subr.bf16.mxu0 %v13130_v26  ;;  %10287 = vmatprep.subr.bf16.mxu1 %v13132_v55  ;;  %v13180_v26 = vcombine.high %v970_v21, %v974_v22  ;;  %v977_v55 = vld [vmem:[#allocation5 + $0x1a80] sm:$0xff]  ;;  %v1018_v20 = vld [vmem:[#allocation5 + $0x1bc8] sm:$0xff] }
 0x201   :  { %v13185_v42 = vcombine.low %v977_v55, %v981_v27 }
 0x203   :  { %9772 = vmatpush1.bf16.msra.mxu0 %v13129_v37  ;;  %10288 = vmatpush1.bf16.msra.mxu1 %v13131_v38  ;;  %v13179_v37 = vcombine.low %v970_v21, %v974_v22  ;;  %v13186_v38 = vcombine.high %v977_v55, %v981_v27  ;;  %v1022_v21 = vld [vmem:[#allocation5 + $0x1be8] sm:$0xff]  ;;  %v1029_v55 = vld [vmem:[#allocation5 + $0x1c20] sm:$0xff] }
 0x204   :  { %9773 = vmatprep.subr.bf16.mxu0 %v13138_v39  ;;  %10289 = vmatprep.subr.bf16.mxu1 %v13140_v18  ;;  %v13188_v39 = vcombine.high %v978_v29, %v982_v33  ;;  %v985_v18 = vld [vmem:[#allocation5 + $0x1ac0] sm:$0xff]  ;;  %v1026_v27 = vld [vmem:[#allocation5 + $0x1c08] sm:$0xff] }
 0x205   :  { %v13193_v53 = vcombine.low %v985_v18, %v989_v19 }
 0x207   :  { %9774 = vmatpush1.bf16.msra.mxu0 %v13137_v43  ;;  %10290 = vmatpush1.bf16.msra.mxu1 %v13139_v45  ;;  %v13187_v43 = vcombine.low %v978_v29, %v982_v33  ;;  %v13194_v45 = vcombine.high %v985_v18, %v989_v19  ;;  %v1030_v29 = vld [vmem:[#allocation5 + $0x1c28] sm:$0xff]  ;;  %v1037_v18 = vld [vmem:[#allocation5 + $0x1c60] sm:$0xff] }
 0x208   :  { %9775 = vmatprep.subr.bf16.mxu0 %v13146_v48  ;;  %10291 = vmatprep.subr.bf16.mxu1 %v13148_v49  ;;  %v13196_v48 = vcombine.high %v986_v5, %v990_v6  ;;  %v993_v49 = vld [vmem:[#allocation5 + $0x1b00] sm:$0xff]  ;;  %v1034_v19 = vld [vmem:[#allocation5 + $0x1c48] sm:$0xff] }
 0x209   :  { %v13201_v63 = vcombine.low %v993_v49, %v997_v50 }
 0x20b   :  { %9776 = vmatpush1.bf16.msra.mxu0 %v13145_v28  ;;  %10292 = vmatpush1.bf16.msra.mxu1 %v13147_v30  ;;  %v13195_v28 = vcombine.low %v986_v5, %v990_v6  ;;  %v13202_v30 = vcombine.high %v993_v49, %v997_v50  ;;  %v14672_v5 = vcombine.low %v14658_v2, %v14660_v4  ;;  %v1038_v6 = vld [vmem:[#allocation5 + $0x1c68] sm:$0xff] }
 0x20c   :  { %9777 = vmatprep.subr.bf16.mxu0 %v13154_v57  ;;  %10293 = vmatprep.subr.bf16.mxu1 %v13156_v58  ;;  %v13204_v57 = vcombine.high %v994_v51, %v998_v52  ;;  %v1001_v58 = vld [vmem:[#allocation5 + $0x1b40] sm:$0xff]  ;;  %v13244_v50 = vcombine.high %v1034_v19, %v1038_v6  ;;  %v1042_v2 = vld [vmem:[#allocation5 + $0x1c88] sm:$0xff] }
 0x20d   :  { %v13209_v34 = vcombine.low %v1001_v58, %v1005_v60  ;;  %v1046_v4 = vld [vmem:[#allocation5 + $0x1ca8] sm:$0xff] }
 0x20f   :  { %9778 = vmatpush1.bf16.msra.mxu0 %v13153_v1  ;;  %10294 = vmatpush1.bf16.msra.mxu1 %v13155_v7  ;;  %v13203_v1 = vcombine.low %v994_v51, %v998_v52  ;;  %v13210_v7 = vcombine.high %v1001_v58, %v1005_v60  ;;  %v1041_v51 = vld [vmem:[#allocation5 + $0x1c80] sm:$0xff]  ;;  %v13252_v58 = vcombine.high %v1042_v2, %v1046_v4 }
 0x210   :  { %9779 = vmatprep.subr.bf16.mxu0 %v13162_v8  ;;  %10295 = vmatprep.subr.bf16.mxu1 %v13164_v9  ;;  %v13212_v8 = vcombine.high %v1002_v61, %v1006_v62  ;;  %v1009_v9 = vld [vmem:[#allocation5 + $0x1b80] sm:$0xff] }
 0x211   :  { %v13217_v22 = vcombine.low %v1009_v9, %v1013_v10  ;;  %v1045_v52 = vld [vmem:[#allocation5 + $0x1ca0] sm:$0xff] }
 0x212   :  { %v1049_v60 = vld [vmem:[#allocation5 + $0x1cc0] sm:$0xff] }
 0x213   :  { %9780 = vmatpush1.bf16.msra.mxu0 %v13161_v35  ;;  %10296 = vmatpush1.bf16.msra.mxu1 %v13163_v47  ;;  %v13211_v35 = vcombine.low %v1002_v61, %v1006_v62  ;;  %v13218_v47 = vcombine.high %v1009_v9, %v1013_v10  ;;  %v1053_v61 = vld [vmem:[#allocation5 + $0x1ce0] sm:$0xff]  ;;  %v1050_v62 = vld [vmem:[#allocation5 + $0x1cc8] sm:$0xff] }
 0x214   :  { %9781 = vmatprep.subr.bf16.mxu0 %v13170_v14  ;;  %10297 = vmatprep.subr.bf16.mxu1 %v13172_v15  ;;  %v13220_v14 = vcombine.high %v1010_v11, %v1014_v12  ;;  %v1017_v15 = vld [vmem:[#allocation5 + $0x1bc0] sm:$0xff] }
 0x215   :  { %v13225_v33 = vcombine.low %v1017_v15, %v1021_v17  ;;  %v1057_v10 = vld [vmem:[#allocation5 + $0x1d00] sm:$0xff] }
 0x217   :  { %9782 = vmatpush1.bf16.msra.mxu0 %v13169_v23  ;;  %10298 = vmatpush1.bf16.msra.mxu1 %v13171_v24  ;;  %v13219_v23 = vcombine.low %v1010_v11, %v1014_v12  ;;  %v13226_v24 = vcombine.high %v1017_v15, %v1021_v17  ;;  %v1061_v11 = vld [vmem:[#allocation5 + $0x1d20] sm:$0xff]  ;;  %v1058_v12 = vld [vmem:[#allocation5 + $0x1d08] sm:$0xff] }
 0x218   :  { %9783 = vmatprep.subr.bf16.mxu0 %v13178_v25  ;;  %10299 = vmatprep.subr.bf16.mxu1 %v13180_v26  ;;  %v13228_v25 = vcombine.high %v1018_v20, %v1022_v21  ;;  %v1025_v26 = vld [vmem:[#allocation5 + $0x1c00] sm:$0xff] }
 0x219   :  { %v1065_v17 = vld [vmem:[#allocation5 + $0x1d40] sm:$0xff] }
 0x21b   :  { %9784 = vmatpush1.bf16.msra.mxu0 %v13177_v36  ;;  %10300 = vmatpush1.bf16.msra.mxu1 %v13179_v37  ;;  %v13227_v36 = vcombine.low %v1018_v20, %v1022_v21  ;;  %v13234_v37 = vcombine.high %v1025_v26, %v1029_v55  ;;  %v1069_v20 = vld [vmem:[#allocation5 + $0x1d60] sm:$0xff]  ;;  %v1066_v21 = vld [vmem:[#allocation5 + $0x1d48] sm:$0xff] }
 0x21c   :  { %9785 = vmatprep.subr.bf16.mxu0 %v13186_v38  ;;  %10301 = vmatprep.subr.bf16.mxu1 %v13188_v39  ;;  %v13236_v38 = vcombine.high %v1026_v27, %v1030_v29  ;;  %v1033_v39 = vld [vmem:[#allocation5 + $0x1c40] sm:$0xff] }
 0x21d   :  { %v13242_v49 = vcombine.high %v1033_v39, %v1037_v18 }
 0x21f   :  { %9786 = vmatpush1.bf16.msra.mxu0 %v13185_v42  ;;  %10302 = vmatpush1.bf16.msra.mxu1 %v13187_v43  ;;  %v14674_v42 = vld [vmem:[#allocation3 + $0x38] sm:$0xff] }
 0x220   :  { %9787 = vmatprep.subr.bf16.mxu0 %v13194_v45  ;;  %10303 = vmatprep.subr.bf16.mxu1 %v13196_v48  ;;  %v14676_v43 = vld [vmem:[#allocation3 + $0x98] sm:$0xff]  ;;  %v13233_v45 = vcombine.low %v1025_v26, %v1029_v55  ;;  %v13235_v48 = vcombine.low %v1026_v27, %v1030_v29  ;;  %v1073_v55 = vld [vmem:[#allocation5 + $0x1d80] sm:$0xff]  ;;  %v1074_v29 = vld [vmem:[#allocation5 + $0x1d88] sm:$0xff] }
 0x221   :  { %v1077_v27 = vld [vmem:[#allocation5 + $0x1da0] sm:$0xff] }
 0x223   :  { %9788 = vmatpush1.bf16.msra.mxu0 %v13193_v53  ;;  %10304 = vmatpush1.bf16.msra.mxu1 %v13195_v28  ;;  %v14680_v53 = vcombine.high %v14674_v42, %v14676_v43  ;;  %v13241_v28 = vcombine.low %v1033_v39, %v1037_v18  ;;  %v1081_v18 = vld [vmem:[#allocation5 + $0x1dc0] sm:$0xff] }
 0x224   :  { %9789 = vmatprep.subr.bf16.mxu0 %v13202_v30  ;;  %10305 = vmatprep.subr.bf16.mxu1 %v13204_v57  ;;  %v13243_v30 = vcombine.low %v1034_v19, %v1038_v6  ;;  %v13250_v57 = vcombine.high %v1041_v51, %v1045_v52  ;;  %v1085_v19 = vld [vmem:[#allocation5 + $0x1de0] sm:$0xff]  ;;  %v1082_v6 = vld [vmem:[#allocation5 + $0x1dc8] sm:$0xff] }
 0x227   :  { %9790 = vmatpush1.bf16.msra.mxu0 %v13201_v63  ;;  %10306 = vmatpush1.bf16.msra.mxu1 %v13203_v1  ;;  %v1054_v63 = vld [vmem:[#allocation5 + $0x1ce8] sm:$0xff]  ;;  %v13249_v1 = vcombine.low %v1041_v51, %v1045_v52  ;;  %v1089_v52 = vld [vmem:[#allocation5 + $0x1e00] sm:$0xff] }
 0x228   :  { %9791 = vmatprep.subr.bf16.mxu0 %v13210_v7  ;;  %10307 = vmatprep.subr.bf16.mxu1 %v13212_v8  ;;  %v13251_v7 = vcombine.low %v1042_v2, %v1046_v4  ;;  %v13258_v8 = vcombine.high %v1049_v60, %v1053_v61  ;;  %v13260_v9 = vcombine.high %v1050_v62, %v1054_v63  ;;  %v1093_v2 = vld [vmem:[#allocation5 + $0x1e20] sm:$0xff]  ;;  %v1090_v4 = vld [vmem:[#allocation5 + $0x1e08] sm:$0xff] }
 0x22b   :  { %9792 = vmatpush1.bf16.msra.mxu0 %v13209_v34  ;;  %10308 = vmatpush1.bf16.msra.mxu1 %v13211_v35  ;;  %v1062_v34 = vld [vmem:[#allocation5 + $0x1d28] sm:$0xff]  ;;  %v13257_v35 = vcombine.low %v1049_v60, %v1053_v61  ;;  %v1097_v61 = vld [vmem:[#allocation5 + $0x1e40] sm:$0xff] }
 0x22c   :  { %9793 = vmatprep.subr.bf16.mxu0 %v13218_v47  ;;  %10309 = vmatprep.subr.bf16.mxu1 %v13220_v14  ;;  %v13259_v47 = vcombine.low %v1050_v62, %v1054_v63  ;;  %v13266_v14 = vcombine.high %v1057_v10, %v1061_v11  ;;  %v13268_v15 = vcombine.high %v1058_v12, %v1062_v34  ;;  %v1101_v62 = vld [vmem:[#allocation5 + $0x1e60] sm:$0xff]  ;;  %v1098_v63 = vld [vmem:[#allocation5 + $0x1e48] sm:$0xff] }
 0x22f   :  { %9794 = vmatpush1.bf16.msra.mxu0 %v13217_v22  ;;  %10310 = vmatpush1.bf16.msra.mxu1 %v13219_v23  ;;  %v1070_v22 = vld [vmem:[#allocation5 + $0x1d68] sm:$0xff]  ;;  %v13265_v23 = vcombine.low %v1057_v10, %v1061_v11  ;;  %v1105_v11 = vld [vmem:[#allocation5 + $0x1e80] sm:$0xff] }
 0x230   :  { %9795 = vmatprep.subr.bf16.mxu0 %v13226_v24  ;;  %10311 = vmatprep.subr.bf16.mxu1 %v13228_v25  ;;  %v13267_v24 = vcombine.low %v1058_v12, %v1062_v34  ;;  %v13274_v25 = vcombine.high %v1065_v17, %v1069_v20  ;;  %v13276_v26 = vcombine.high %v1066_v21, %v1070_v22  ;;  %v1109_v12 = vld [vmem:[#allocation5 + $0x1ea0] sm:$0xff]  ;;  %v1106_v34 = vld [vmem:[#allocation5 + $0x1e88] sm:$0xff] }
 0x233   :  { %9796 = vmatpush1.bf16.msra.mxu0 %v13225_v33  ;;  %10312 = vmatpush1.bf16.msra.mxu1 %v13227_v36  ;;  %v1078_v33 = vld [vmem:[#allocation5 + $0x1da8] sm:$0xff]  ;;  %v13273_v36 = vcombine.low %v1065_v17, %v1069_v20  ;;  %v1113_v20 = vld [vmem:[#allocation5 + $0x1ec0] sm:$0xff] }
 0x234   :  { %9808 = vmatprep.subr.bf16.mxu0 %v13234_v37  ;;  %10324 = vmatprep.subr.bf16.mxu1 %v13236_v38  ;;  %v13275_v37 = vcombine.low %v1066_v21, %v1070_v22  ;;  %v13282_v38 = vcombine.high %v1073_v55, %v1077_v27  ;;  %v13284_v39 = vcombine.high %v1074_v29, %v1078_v33  ;;  %v1117_v21 = vld [vmem:[#allocation5 + $0x1ee0] sm:$0xff]  ;;  %v1114_v22 = vld [vmem:[#allocation5 + $0x1ec8] sm:$0xff] }
 0x236   :  { %9798 = vmatmul.mubr.bf16.vlgmr.msra.gmra.mrb[0].mxu0 %v14672_v5  ;;  %10314 = vmatmul.mubr.bf16.vlgmr.msra.gmra.mrb[0].mxu1 %v14672_v5 }
 0x237   :  { %9809 = vmatpush1.bf16.msra.mxu0 %v13233_v45  ;;  %10325 = vmatpush1.bf16.msra.mxu1 %v13235_v48  ;;  %v1086_v45 = vld [vmem:[#allocation5 + $0x1de8] sm:$0xff]  ;;  %v13281_v48 = vcombine.low %v1073_v55, %v1077_v27  ;;  %v1121_v27 = vld [vmem:[#allocation5 + $0x1f00] sm:$0xff] }
 0x238   :  { %9810 = vmatprep.subr.bf16.mxu0 %v13242_v49  ;;  %10326 = vmatprep.subr.bf16.mxu1 %v13244_v50  ;;  %v13283_v49 = vcombine.low %v1074_v29, %v1078_v33  ;;  %v13290_v50 = vcombine.high %v1081_v18, %v1085_v19  ;;  %v13292_v51 = vcombine.high %v1082_v6, %v1086_v45  ;;  %v1125_v29 = vld [vmem:[#allocation5 + $0x1f20] sm:$0xff]  ;;  %v1122_v33 = vld [vmem:[#allocation5 + $0x1f08] sm:$0xff] }
 0x239   :  { %9840 = vmatprep.mubr.bf16.mxu0 %v14680_v53  ;;  %10356 = vmatprep.mubr.bf16.mxu1 %v14680_v53 }
 0x23b   :  { %9811 = vmatpush1.bf16.msra.mxu0 %v13241_v28  ;;  %10327 = vmatpush1.bf16.msra.mxu1 %v13243_v30  ;;  %v1094_v28 = vld [vmem:[#allocation5 + $0x1e28] sm:$0xff]  ;;  %v13289_v30 = vcombine.low %v1081_v18, %v1085_v19  ;;  %v1129_v19 = vld [vmem:[#allocation5 + $0x1f40] sm:$0xff] }
 0x23c   :  { %9812 = vmatprep.subr.bf16.mxu0 %v13250_v57  ;;  %10328 = vmatprep.subr.bf16.mxu1 %v13252_v58  ;;  %v13291_v57 = vcombine.low %v1082_v6, %v1086_v45  ;;  %v13298_v58 = vcombine.high %v1089_v52, %v1093_v2  ;;  %v13300_v60 = vcombine.high %v1090_v4, %v1094_v28  ;;  %v1133_v6 = vld [vmem:[#allocation5 + $0x1f60] sm:$0xff]  ;;  %v1130_v45 = vld [vmem:[#allocation5 + $0x1f48] sm:$0xff] }
 0x23f   :  { %9813 = vmatpush1.bf16.msra.mxu0 %v13249_v1  ;;  %10329 = vmatpush1.bf16.msra.mxu1 %v13251_v7  ;;  %v1102_v1 = vld [vmem:[#allocation5 + $0x1e68] sm:$0xff]  ;;  %v13297_v7 = vcombine.low %v1089_v52, %v1093_v2  ;;  %v1137_v2 = vld [vmem:[#allocation5 + $0x1f80] sm:$0xff] }
 0x240   :  { %9814 = vmatprep.subr.bf16.mxu0 %v13258_v8  ;;  %10330 = vmatprep.subr.bf16.mxu1 %v13260_v9  ;;  %v13299_v8 = vcombine.low %v1090_v4, %v1094_v28  ;;  %v13306_v9 = vcombine.high %v1097_v61, %v1101_v62  ;;  %v13308_v10 = vcombine.high %v1098_v63, %v1102_v1  ;;  %v1141_v4 = vld [vmem:[#allocation5 + $0x1fa0] sm:$0xff]  ;;  %v1138_v28 = vld [vmem:[#allocation5 + $0x1f88] sm:$0xff] }
 0x243   :  { %9815 = vmatpush1.bf16.msra.mxu0 %v13257_v35  ;;  %10331 = vmatpush1.bf16.msra.mxu1 %v13259_v47  ;;  %v1110_v35 = vld [vmem:[#allocation5 + $0x1ea8] sm:$0xff]  ;;  %v13305_v47 = vcombine.low %v1097_v61, %v1101_v62  ;;  %v1145_v62 = vld [vmem:[#allocation5 + $0x1fc0] sm:$0xff] }
 0x244   :  { %9816 = vmatprep.subr.bf16.mxu0 %v13266_v14  ;;  %10332 = vmatprep.subr.bf16.mxu1 %v13268_v15  ;;  %v13307_v14 = vcombine.low %v1098_v63, %v1102_v1  ;;  %v13314_v15 = vcombine.high %v1105_v11, %v1109_v12  ;;  %v13316_v17 = vcombine.high %v1106_v34, %v1110_v35  ;;  %v1149_v63 = vld [vmem:[#allocation5 + $0x1fe0] sm:$0xff]  ;;  %v1146_v1 = vld [vmem:[#allocation5 + $0x1fc8] sm:$0xff] }
 0x247   :  { %9817 = vmatpush1.bf16.msra.mxu0 %v13265_v23  ;;  %10333 = vmatpush1.bf16.msra.mxu1 %v13267_v24  ;;  %v1118_v23 = vld [vmem:[#allocation5 + $0x1ee8] sm:$0xff]  ;;  %v13313_v24 = vcombine.low %v1105_v11, %v1109_v12  ;;  %v1153_v12 = vld [vmem:[#allocation5 + $0x2000] sm:$0xff] }
 0x248   :  { %9818 = vmatprep.subr.bf16.mxu0 %v13274_v25  ;;  %10334 = vmatprep.subr.bf16.mxu1 %v13276_v26  ;;  %v13315_v25 = vcombine.low %v1106_v34, %v1110_v35  ;;  %v13322_v26 = vcombine.high %v1113_v20, %v1117_v21  ;;  %v13324_v55 = vcombine.high %v1114_v22, %v1118_v23  ;;  %v1157_v34 = vld [vmem:[#allocation5 + $0x2020] sm:$0xff]  ;;  %v1154_v35 = vld [vmem:[#allocation5 + $0x2008] sm:$0xff] }
 0x24b   :  { %9819 = vmatpush1.bf16.msra.mxu0 %v13273_v36  ;;  %10335 = vmatpush1.bf16.msra.mxu1 %v13275_v37  ;;  %v1126_v36 = vld [vmem:[#allocation5 + $0x1f28] sm:$0xff]  ;;  %v13321_v37 = vcombine.low %v1113_v20, %v1117_v21  ;;  %v1161_v21 = vld [vmem:[#allocation5 + $0x2040] sm:$0xff] }
 0x24c   :  { %9820 = vmatprep.subr.bf16.mxu0 %v13282_v38  ;;  %10336 = vmatprep.subr.bf16.mxu1 %v13284_v39  ;;  %v13323_v38 = vcombine.low %v1114_v22, %v1118_v23  ;;  %v13330_v39 = vcombine.high %v1121_v27, %v1125_v29  ;;  %v13332_v18 = vcombine.high %v1122_v33, %v1126_v36  ;;  %v1165_v22 = vld [vmem:[#allocation5 + $0x2060] sm:$0xff]  ;;  %v1162_v23 = vld [vmem:[#allocation5 + $0x2048] sm:$0xff] }
 0x24f   :  { %9821 = vmatpush1.bf16.msra.mxu0 %v13281_v48  ;;  %10337 = vmatpush1.bf16.msra.mxu1 %v13283_v49  ;;  %v1134_v48 = vld [vmem:[#allocation5 + $0x1f68] sm:$0xff]  ;;  %v13329_v49 = vcombine.low %v1121_v27, %v1125_v29  ;;  %v13361_v27 = vcombine.low %v1153_v12, %v1157_v34 }
 0x250   :  { %9822 = vmatprep.subr.bf16.mxu0 %v13290_v50  ;;  %10338 = vmatprep.subr.bf16.mxu1 %v13292_v51  ;;  %v13331_v50 = vcombine.low %v1122_v33, %v1126_v36  ;;  %v13338_v51 = vcombine.high %v1129_v19, %v1133_v6  ;;  %v13340_v52 = vcombine.high %v1130_v45, %v1134_v48 }
 0x251   :  { %v13370_v33 = vcombine.high %v1161_v21, %v1165_v22 }
 0x253   :  { %9823 = vmatpush1.bf16.msra.mxu0 %v13289_v30  ;;  %10339 = vmatpush1.bf16.msra.mxu1 %v13291_v57  ;;  %v1142_v30 = vld [vmem:[#allocation5 + $0x1fa8] sm:$0xff]  ;;  %v13337_v57 = vcombine.low %v1129_v19, %v1133_v6 }
 0x254   :  { %9824 = vmatprep.subr.bf16.mxu0 %v13298_v58  ;;  %10340 = vmatprep.subr.bf16.mxu1 %v13300_v60  ;;  %v13339_v58 = vcombine.low %v1130_v45, %v1134_v48  ;;  %v13346_v60 = vcombine.high %v1137_v2, %v1141_v4  ;;  %v13348_v61 = vcombine.high %v1138_v28, %v1142_v30  ;;  %v1177_v48 = vld [vmem:[#allocation5 + $0x20c0] sm:$0xff] }
 0x257   :  { %9825 = vmatpush1.bf16.msra.mxu0 %v13297_v7  ;;  %10341 = vmatpush1.bf16.msra.mxu1 %v13299_v8  ;;  %v1150_v7 = vld [vmem:[#allocation5 + $0x1fe8] sm:$0xff]  ;;  %v13345_v8 = vcombine.low %v1137_v2, %v1141_v4 }
 0x258   :  { %9826 = vmatprep.subr.bf16.mxu0 %v13306_v9  ;;  %10342 = vmatprep.subr.bf16.mxu1 %v13308_v10  ;;  %v13347_v9 = vcombine.low %v1138_v28, %v1142_v30  ;;  %v13354_v10 = vcombine.high %v1145_v62, %v1149_v63  ;;  %v13356_v11 = vcombine.high %v1146_v1, %v1150_v7  ;;  %v1185_v30 = vld [vmem:[#allocation5 + $0x2100] sm:$0xff] }
 0x25b   :  { %9827 = vmatpush1.bf16.msra.mxu0 %v13305_v47  ;;  %10343 = vmatpush1.bf16.msra.mxu1 %v13307_v14  ;;  %v1158_v47 = vld [vmem:[#allocation5 + $0x2028] sm:$0xff]  ;;  %v13353_v14 = vcombine.low %v1145_v62, %v1149_v63 }
 0x25c   :  { %9828 = vmatprep.subr.bf16.mxu0 %v13314_v15  ;;  %10344 = vmatprep.subr.bf16.mxu1 %v13316_v17  ;;  %v13355_v15 = vcombine.low %v1146_v1, %v1150_v7  ;;  %v13362_v17 = vcombine.high %v1153_v12, %v1157_v34  ;;  %v13364_v20 = vcombine.high %v1154_v35, %v1158_v47  ;;  %v1193_v7 = vld [vmem:[#allocation5 + $0x2140] sm:$0xff] }
 0x25d   :  { %v13363_v29 = vcombine.low %v1154_v35, %v1158_v47  ;;  %v1201_v47 = vld [vmem:[#allocation5 + $0x2180] sm:$0xff] }
 0x25f   :  { %9829 = vmatpush1.bf16.msra.mxu0 %v13313_v24  ;;  %10345 = vmatpush1.bf16.msra.mxu1 %v13315_v25  ;;  %v14688_v24 = vcombine.low %v14674_v42, %v14676_v43  ;;  %v1166_v25 = vld [vmem:[#allocation5 + $0x2068] sm:$0xff] }
 0x260   :  { %9830 = vmatprep.subr.bf16.mxu0 %v13322_v26  ;;  %10346 = vmatprep.subr.bf16.mxu1 %v13324_v55  ;;  %v14690_v26 = vld [vmem:[#allocation3 + $0x40] sm:$0xff]  ;;  %v13372_v36 = vcombine.high %v1162_v23, %v1166_v25  ;;  %v1170_v42 = vld [vmem:[#allocation5 + $0x2088] sm:$0xff]  ;;  %v13371_v19 = vcombine.low %v1162_v23, %v1166_v25 }
 0x261   :  { %v14692_v55 = vld [vmem:[#allocation3 + $0xa0] sm:$0xff]  ;;  %v1174_v43 = vld [vmem:[#allocation5 + $0x20a8] sm:$0xff] }
 0x262   :  { %v13380_v45 = vcombine.high %v1170_v42, %v1174_v43  ;;  %v13379_v2 = vcombine.low %v1170_v42, %v1174_v43  ;;  %v1209_v25 = vld [vmem:[#allocation5 + $0x21c0] sm:$0xff] }
 0x263   :  { %9831 = vmatpush1.bf16.msra.mxu0 %v13321_v37  ;;  %10347 = vmatpush1.bf16.msra.mxu1 %v13323_v38  ;;  %v1169_v37 = vld [vmem:[#allocation5 + $0x2080] sm:$0xff] }
 0x264   :  { %9832 = vmatprep.subr.bf16.mxu0 %v13330_v39  ;;  %10348 = vmatprep.subr.bf16.mxu1 %v13332_v18  ;;  %v1173_v38 = vld [vmem:[#allocation5 + $0x20a0] sm:$0xff]  ;;  %v14696_v39 = vcombine.high %v14690_v26, %v14692_v55  ;;  %v13369_v18 = vcombine.low %v1161_v21, %v1165_v22 }
 0x265   :  { %v13378_v6 = vcombine.high %v1169_v37, %v1173_v38  ;;  %v1217_v43 = vld [vmem:[#allocation5 + $0x2200] sm:$0xff] }
 0x267   :  { %9833 = vmatpush1.bf16.msra.mxu0 %v13329_v49  ;;  %10349 = vmatpush1.bf16.msra.mxu1 %v13331_v50  ;;  %v1181_v49 = vld [vmem:[#allocation5 + $0x20e0] sm:$0xff]  ;;  %v1178_v50 = vld [vmem:[#allocation5 + $0x20c8] sm:$0xff] }
 0x268   :  { %9834 = vmatprep.subr.bf16.mxu0 %v13338_v51  ;;  %10350 = vmatprep.subr.bf16.mxu1 %v13340_v52  ;;  %v1182_v51 = vld [vmem:[#allocation5 + $0x20e8] sm:$0xff]  ;;  %v13377_v52 = vcombine.low %v1169_v37, %v1173_v38  ;;  %v13386_v4 = vcombine.high %v1177_v48, %v1181_v49 }
 0x269   :  { %v13388_v28 = vcombine.high %v1178_v50, %v1182_v51  ;;  %v13387_v62 = vcombine.low %v1178_v50, %v1182_v51  ;;  %v1225_v51 = vld [vmem:[#allocation5 + $0x2240] sm:$0xff] }
 0x26b   :  { %9835 = vmatpush1.bf16.msra.mxu0 %v13337_v57  ;;  %10351 = vmatpush1.bf16.msra.mxu1 %v13339_v58  ;;  %v1189_v57 = vld [vmem:[#allocation5 + $0x2120] sm:$0xff]  ;;  %v1186_v58 = vld [vmem:[#allocation5 + $0x2108] sm:$0xff] }
 0x26c   :  { %9836 = vmatprep.subr.bf16.mxu0 %v13346_v60  ;;  %10352 = vmatprep.subr.bf16.mxu1 %v13348_v61  ;;  %v1190_v60 = vld [vmem:[#allocation5 + $0x2128] sm:$0xff]  ;;  %v13385_v61 = vcombine.low %v1177_v48, %v1181_v49  ;;  %v13394_v63 = vcombine.high %v1185_v30, %v1189_v57 }
 0x26d   :  { %v13396_v1 = vcombine.high %v1186_v58, %v1190_v60  ;;  %v13395_v12 = vcombine.low %v1186_v58, %v1190_v60  ;;  %v1233_v60 = vld [vmem:[#allocation5 + $0x2280] sm:$0xff] }
 0x26f   :  { %9837 = vmatpush1.bf16.msra.mxu0 %v13345_v8  ;;  %10353 = vmatpush1.bf16.msra.mxu1 %v13347_v9  ;;  %v1197_v8 = vld [vmem:[#allocation5 + $0x2160] sm:$0xff]  ;;  %v1194_v9 = vld [vmem:[#allocation5 + $0x2148] sm:$0xff] }
 0x270   :  { %9838 = vmatprep.subr.bf16.mxu0 %v13354_v10  ;;  %10354 = vmatprep.subr.bf16.mxu1 %v13356_v11  ;;  %v1198_v10 = vld [vmem:[#allocation5 + $0x2168] sm:$0xff]  ;;  %v13393_v11 = vcombine.low %v1185_v30, %v1189_v57  ;;  %v13402_v34 = vcombine.high %v1193_v7, %v1197_v8 }
 0x271   :  { %v13404_v35 = vcombine.high %v1194_v9, %v1198_v10  ;;  %v13403_v21 = vcombine.low %v1194_v9, %v1198_v10  ;;  %v1241_v10 = vld [vmem:[#allocation5 + $0x22c0] sm:$0xff] }
 0x273   :  { %9839 = vmatpush1.bf16.msra.mxu0 %v13353_v14  ;;  %10355 = vmatpush1.bf16.msra.mxu1 %v13355_v15  ;;  %v1205_v14 = vld [vmem:[#allocation5 + $0x21a0] sm:$0xff]  ;;  %v1202_v15 = vld [vmem:[#allocation5 + $0x2188] sm:$0xff] }
 0x274   :  { %9851 = vmatprep.subr.bf16.mxu0 %v13362_v17  ;;  %10367 = vmatprep.subr.bf16.mxu1 %v13364_v20  ;;  %v1206_v17 = vld [vmem:[#allocation5 + $0x21a8] sm:$0xff]  ;;  %v13401_v20 = vcombine.low %v1193_v7, %v1197_v8  ;;  %v13410_v22 = vcombine.high %v1201_v47, %v1205_v14 }
 0x275   :  { %v13412_v23 = vcombine.high %v1202_v15, %v1206_v17  ;;  %v13411_v37 = vcombine.low %v1202_v15, %v1206_v17  ;;  %v1249_v17 = vld [vmem:[#allocation5 + $0x2300] sm:$0xff] }
 0x276   :  { %9841 = vmatmul.mubr.bf16.vlgmr.msra.gmra.mrb[0].mxu0 %v14688_v24  ;;  %10357 = vmatmul.mubr.bf16.vlgmr.msra.gmra.mrb[0].mxu1 %v14688_v24 }
 0x277   :  { %9852 = vmatpush1.bf16.msra.mxu0 %v13361_v27  ;;  %10368 = vmatpush1.bf16.msra.mxu1 %v13363_v29  ;;  %v1213_v27 = vld [vmem:[#allocation5 + $0x21e0] sm:$0xff]  ;;  %v1210_v29 = vld [vmem:[#allocation5 + $0x21c8] sm:$0xff] }
 0x278   :  { %9853 = vmatprep.subr.bf16.mxu0 %v13370_v33  ;;  %10369 = vmatprep.subr.bf16.mxu1 %v13372_v36  ;;  %v1214_v33 = vld [vmem:[#allocation5 + $0x21e8] sm:$0xff]  ;;  %v13409_v36 = vcombine.low %v1201_v47, %v1205_v14  ;;  %v13418_v38 = vcombine.high %v1209_v25, %v1213_v27 }
 0x279   :  { %9883 = vmatprep.mubr.bf16.mxu0 %v14696_v39  ;;  %10399 = vmatprep.mubr.bf16.mxu1 %v14696_v39  ;;  %v13420_v42 = vcombine.high %v1210_v29, %v1214_v33  ;;  %v13419_v48 = vcombine.low %v1210_v29, %v1214_v33  ;;  %v1257_v33 = vld [vmem:[#allocation5 + $0x2340] sm:$0xff] }
 0x27b   :  { %9854 = vmatpush1.bf16.msra.mxu0 %v13369_v18  ;;  %10370 = vmatpush1.bf16.msra.mxu1 %v13371_v19  ;;  %v1221_v18 = vld [vmem:[#allocation5 + $0x2220] sm:$0xff]  ;;  %v1218_v19 = vld [vmem:[#allocation5 + $0x2208] sm:$0xff] }
 0x27c   :  { %9855 = vmatprep.subr.bf16.mxu0 %v13378_v6  ;;  %10371 = vmatprep.subr.bf16.mxu1 %v13380_v45  ;;  %v1222_v6 = vld [vmem:[#allocation5 + $0x2228] sm:$0xff]  ;;  %v13417_v45 = vcombine.low %v1209_v25, %v1213_v27  ;;  %v13426_v49 = vcombine.high %v1217_v43, %v1221_v18 }
 0x27d   :  { %v13428_v50 = vcombine.high %v1218_v19, %v1222_v6  ;;  %v13427_v30 = vcombine.low %v1218_v19, %v1222_v6  ;;  %v1265_v6 = vld [vmem:[#allocation5 + $0x2380] sm:$0xff] }
 0x27f   :  { %9856 = vmatpush1.bf16.msra.mxu0 %v13377_v52  ;;  %10372 = vmatpush1.bf16.msra.mxu1 %v13379_v2  ;;  %v1229_v52 = vld [vmem:[#allocation5 + $0x2260] sm:$0xff]  ;;  %v1226_v2 = vld [vmem:[#allocation5 + $0x2248] sm:$0xff] }
 0x280   :  { %9857 = vmatprep.subr.bf16.mxu0 %v13386_v4  ;;  %10373 = vmatprep.subr.bf16.mxu1 %v13388_v28  ;;  %v1230_v4 = vld [vmem:[#allocation5 + $0x2268] sm:$0xff]  ;;  %v13425_v28 = vcombine.low %v1217_v43, %v1221_v18  ;;  %v13434_v57 = vcombine.high %v1225_v51, %v1229_v52 }
 0x281   :  { %v13436_v58 = vcombine.high %v1226_v2, %v1230_v4  ;;  %v13435_v7 = vcombine.low %v1226_v2, %v1230_v4  ;;  %v1273_v4 = vld [vmem:[#allocation5 + $0x23c0] sm:$0xff] }
 0x283   :  { %9858 = vmatpush1.bf16.msra.mxu0 %v13385_v61  ;;  %10374 = vmatpush1.bf16.msra.mxu1 %v13387_v62  ;;  %v1237_v61 = vld [vmem:[#allocation5 + $0x22a0] sm:$0xff]  ;;  %v1234_v62 = vld [vmem:[#allocation5 + $0x2288] sm:$0xff] }
 0x284   :  { %9859 = vmatprep.subr.bf16.mxu0 %v13394_v63  ;;  %10375 = vmatprep.subr.bf16.mxu1 %v13396_v1  ;;  %v1238_v63 = vld [vmem:[#allocation5 + $0x22a8] sm:$0xff]  ;;  %v13433_v1 = vcombine.low %v1225_v51, %v1229_v52  ;;  %v13442_v8 = vcombine.high %v1233_v60, %v1237_v61 }
 0x285   :  { %v13444_v9 = vcombine.high %v1234_v62, %v1238_v63  ;;  %v13443_v47 = vcombine.low %v1234_v62, %v1238_v63  ;;  %v1281_v63 = vld [vmem:[#allocation5 + $0x2400] sm:$0xff] }
 0x287   :  { %9860 = vmatpush1.bf16.msra.mxu0 %v13393_v11  ;;  %10376 = vmatpush1.bf16.msra.mxu1 %v13395_v12  ;;  %v1245_v11 = vld [vmem:[#allocation5 + $0x22e0] sm:$0xff]  ;;  %v1242_v12 = vld [vmem:[#allocation5 + $0x22c8] sm:$0xff] }
 0x288   :  { %9861 = vmatprep.subr.bf16.mxu0 %v13402_v34  ;;  %10377 = vmatprep.subr.bf16.mxu1 %v13404_v35  ;;  %v1246_v34 = vld [vmem:[#allocation5 + $0x22e8] sm:$0xff]  ;;  %v13441_v35 = vcombine.low %v1233_v60, %v1237_v61  ;;  %v13450_v14 = vcombine.high %v1241_v10, %v1245_v11 }
 0x289   :  { %v13452_v15 = vcombine.high %v1242_v12, %v1246_v34  ;;  %v13451_v25 = vcombine.low %v1242_v12, %v1246_v34  ;;  %v1289_v34 = vld [vmem:[#allocation5 + $0x2440] sm:$0xff] }
 0x28b   :  { %9862 = vmatpush1.bf16.msra.mxu0 %v13401_v20  ;;  %10378 = vmatpush1.bf16.msra.mxu1 %v13403_v21  ;;  %v1253_v20 = vld [vmem:[#allocation5 + $0x2320] sm:$0xff]  ;;  %v1250_v21 = vld [vmem:[#allocation5 + $0x2308] sm:$0xff] }
 0x28c   :  { %9863 = vmatprep.subr.bf16.mxu0 %v13410_v22  ;;  %10379 = vmatprep.subr.bf16.mxu1 %v13412_v23  ;;  %v1254_v22 = vld [vmem:[#allocation5 + $0x2328] sm:$0xff]  ;;  %v13449_v23 = vcombine.low %v1241_v10, %v1245_v11  ;;  %v13458_v27 = vcombine.high %v1249_v17, %v1253_v20 }
 0x28d   :  { %v13460_v29 = vcombine.high %v1250_v21, %v1254_v22  ;;  %v13459_v43 = vcombine.low %v1250_v21, %v1254_v22 }
 0x28f   :  { %9864 = vmatpush1.bf16.msra.mxu0 %v13409_v36  ;;  %10380 = vmatpush1.bf16.msra.mxu1 %v13411_v37  ;;  %v1261_v36 = vld [vmem:[#allocation5 + $0x2360] sm:$0xff]  ;;  %v1258_v37 = vld [vmem:[#allocation5 + $0x2348] sm:$0xff] }
 0x290   :  { %9865 = vmatprep.subr.bf16.mxu0 %v13418_v38  ;;  %10381 = vmatprep.subr.bf16.mxu1 %v13420_v42  ;;  %v1262_v38 = vld [vmem:[#allocation5 + $0x2368] sm:$0xff]  ;;  %v13457_v42 = vcombine.low %v1249_v17, %v1253_v20  ;;  %v13466_v18 = vcombine.high %v1257_v33, %v1261_v36 }
 0x291   :  { %v13468_v19 = vcombine.high %v1258_v37, %v1262_v38  ;;  %v13467_v51 = vcombine.low %v1258_v37, %v1262_v38  ;;  %v14706_v17 = vld [vmem:[#allocation3 + $0x48] sm:$0xff] }
 0x292   :  { %v14708_v20 = vld [vmem:[#allocation3 + $0xa8] sm:$0xff] }
 0x293   :  { %9866 = vmatpush1.bf16.msra.mxu0 %v13417_v45  ;;  %10382 = vmatpush1.bf16.msra.mxu1 %v13419_v48  ;;  %v1269_v45 = vld [vmem:[#allocation5 + $0x23a0] sm:$0xff]  ;;  %v1266_v48 = vld [vmem:[#allocation5 + $0x2388] sm:$0xff] }
 0x294   :  { %9867 = vmatprep.subr.bf16.mxu0 %v13426_v49  ;;  %10383 = vmatprep.subr.bf16.mxu1 %v13428_v50  ;;  %v1270_v49 = vld [vmem:[#allocation5 + $0x23a8] sm:$0xff]  ;;  %v13465_v50 = vcombine.low %v1257_v33, %v1261_v36  ;;  %v13474_v52 = vcombine.high %v1265_v6, %v1269_v45  ;;  %v14712_v33 = vcombine.high %v14706_v17, %v14708_v20 }
 0x295   :  { %v13476_v2 = vcombine.high %v1266_v48, %v1270_v49  ;;  %v13475_v60 = vcombine.low %v1266_v48, %v1270_v49 }
 0x297   :  { %9868 = vmatpush1.bf16.msra.mxu0 %v13425_v28  ;;  %10384 = vmatpush1.bf16.msra.mxu1 %v13427_v30  ;;  %v1277_v28 = vld [vmem:[#allocation5 + $0x23e0] sm:$0xff]  ;;  %v1274_v30 = vld [vmem:[#allocation5 + $0x23c8] sm:$0xff] }
 0x298   :  { %9869 = vmatprep.subr.bf16.mxu0 %v13434_v57  ;;  %10385 = vmatprep.subr.bf16.mxu1 %v13436_v58  ;;  %v1278_v57 = vld [vmem:[#allocation5 + $0x23e8] sm:$0xff]  ;;  %v13473_v58 = vcombine.low %v1265_v6, %v1269_v45  ;;  %v13482_v61 = vcombine.high %v1273_v4, %v1277_v28 }
 0x299   :  { %v13484_v62 = vcombine.high %v1274_v30, %v1278_v57  ;;  %v13483_v10 = vcombine.low %v1274_v30, %v1278_v57  ;;  %v1310_v6 = vld [vmem:[#allocation5 + $0x24e8] sm:$0xff] }
 0x29b   :  { %9870 = vmatpush1.bf16.msra.mxu0 %v13433_v1  ;;  %10386 = vmatpush1.bf16.msra.mxu1 %v13435_v7  ;;  %v1285_v1 = vld [vmem:[#allocation5 + $0x2420] sm:$0xff]  ;;  %v1282_v7 = vld [vmem:[#allocation5 + $0x2408] sm:$0xff] }
 0x29c   :  { %9871 = vmatprep.subr.bf16.mxu0 %v13442_v8  ;;  %10387 = vmatprep.subr.bf16.mxu1 %v13444_v9  ;;  %v1286_v8 = vld [vmem:[#allocation5 + $0x2428] sm:$0xff]  ;;  %v13481_v9 = vcombine.low %v1273_v4, %v1277_v28  ;;  %v13490_v11 = vcombine.high %v1281_v63, %v1285_v1  ;;  %v13489_v21 = vcombine.low %v1281_v63, %v1285_v1 }
 0x29d   :  { %v13492_v12 = vcombine.high %v1282_v7, %v1286_v8  ;;  %v13491_v22 = vcombine.low %v1282_v7, %v1286_v8  ;;  %v1318_v4 = vld [vmem:[#allocation5 + $0x2528] sm:$0xff] }
 0x29e   :  { %v1326_v63 = vld [vmem:[#allocation5 + $0x2568] sm:$0xff] }
 0x29f   :  { %9872 = vmatpush1.bf16.msra.mxu0 %v13441_v35  ;;  %10388 = vmatpush1.bf16.msra.mxu1 %v13443_v47  ;;  %v1293_v35 = vld [vmem:[#allocation5 + $0x2460] sm:$0xff]  ;;  %v1290_v47 = vld [vmem:[#allocation5 + $0x2448] sm:$0xff] }
 0x2a0   :  { %9873 = vmatprep.subr.bf16.mxu0 %v13450_v14  ;;  %10389 = vmatprep.subr.bf16.mxu1 %v13452_v15  ;;  %v14704_v14 = vcombine.low %v14690_v26, %v14692_v55  ;;  %v1294_v15 = vld [vmem:[#allocation5 + $0x2468] sm:$0xff]  ;;  %v13497_v36 = vcombine.low %v1289_v34, %v1293_v35 }
 0x2a1   :  { %v1298_v26 = vld [vmem:[#allocation5 + $0x2488] sm:$0xff]  ;;  %v13499_v37 = vcombine.low %v1290_v47, %v1294_v15 }
 0x2a2   :  { %v1302_v55 = vld [vmem:[#allocation5 + $0x24a8] sm:$0xff] }
 0x2a3   :  { %9874 = vmatpush1.bf16.msra.mxu0 %v13449_v23  ;;  %10390 = vmatpush1.bf16.msra.mxu1 %v13451_v25  ;;  %v13498_v23 = vcombine.high %v1289_v34, %v1293_v35  ;;  %v13500_v25 = vcombine.high %v1290_v47, %v1294_v15  ;;  %v13507_v48 = vcombine.low %v1298_v26, %v1302_v55  ;;  %v1334_v34 = vld [vmem:[#allocation5 + $0x25a8] sm:$0xff] }
 0x2a4   :  { %9875 = vmatprep.subr.bf16.mxu0 %v13458_v27  ;;  %10391 = vmatprep.subr.bf16.mxu1 %v13460_v29  ;;  %v1297_v27 = vld [vmem:[#allocation5 + $0x2480] sm:$0xff] }
 0x2a5   :  { %v1301_v29 = vld [vmem:[#allocation5 + $0x24a0] sm:$0xff] }
 0x2a6   :  { %v13506_v38 = vcombine.high %v1297_v27, %v1301_v29  ;;  %v13505_v45 = vcombine.low %v1297_v27, %v1301_v29  ;;  %v1342_v27 = vld [vmem:[#allocation5 + $0x25e8] sm:$0xff] }
 0x2a7   :  { %9876 = vmatpush1.bf16.msra.mxu0 %v13457_v42  ;;  %10392 = vmatpush1.bf16.msra.mxu1 %v13459_v43  ;;  %v13508_v42 = vcombine.high %v1298_v26, %v1302_v55  ;;  %v1305_v43 = vld [vmem:[#allocation5 + $0x24c0] sm:$0xff] }
 0x2a8   :  { %9877 = vmatprep.subr.bf16.mxu0 %v13466_v18  ;;  %10393 = vmatprep.subr.bf16.mxu1 %v13468_v19  ;;  %v1309_v18 = vld [vmem:[#allocation5 + $0x24e0] sm:$0xff]  ;;  %v1306_v19 = vld [vmem:[#allocation5 + $0x24c8] sm:$0xff] }
 0x2a9   :  { %v13514_v49 = vcombine.high %v1305_v43, %v1309_v18  ;;  %v13513_v28 = vcombine.low %v1305_v43, %v1309_v18  ;;  %v13515_v30 = vcombine.low %v1306_v19, %v1310_v6  ;;  %v1350_v43 = vld [vmem:[#allocation5 + $0x2628] sm:$0xff] }
 0x2ab   :  { %9878 = vmatpush1.bf16.msra.mxu0 %v13465_v50  ;;  %10394 = vmatpush1.bf16.msra.mxu1 %v13467_v51  ;;  %v13516_v50 = vcombine.high %v1306_v19, %v1310_v6  ;;  %v1313_v51 = vld [vmem:[#allocation5 + $0x2500] sm:$0xff] }
 0x2ac   :  { %9879 = vmatprep.subr.bf16.mxu0 %v13474_v52  ;;  %10395 = vmatprep.subr.bf16.mxu1 %v13476_v2  ;;  %v1317_v52 = vld [vmem:[#allocation5 + $0x2520] sm:$0xff]  ;;  %v1314_v2 = vld [vmem:[#allocation5 + $0x2508] sm:$0xff] }
 0x2ad   :  { %v13522_v57 = vcombine.high %v1313_v51, %v1317_v52  ;;  %v13521_v1 = vcombine.low %v1313_v51, %v1317_v52  ;;  %v13523_v7 = vcombine.low %v1314_v2, %v1318_v4  ;;  %v1358_v51 = vld [vmem:[#allocation5 + $0x2668] sm:$0xff] }
 0x2af   :  { %9880 = vmatpush1.bf16.msra.mxu0 %v13473_v58  ;;  %10396 = vmatpush1.bf16.msra.mxu1 %v13475_v60  ;;  %v13524_v58 = vcombine.high %v1314_v2, %v1318_v4  ;;  %v1321_v60 = vld [vmem:[#allocation5 + $0x2540] sm:$0xff] }
 0x2b0   :  { %9881 = vmatprep.subr.bf16.mxu0 %v13482_v61  ;;  %10397 = vmatprep.subr.bf16.mxu1 %v13484_v62  ;;  %v1325_v61 = vld [vmem:[#allocation5 + $0x2560] sm:$0xff]  ;;  %v1322_v62 = vld [vmem:[#allocation5 + $0x2548] sm:$0xff] }
 0x2b1   :  { %v13530_v8 = vcombine.high %v1321_v60, %v1325_v61  ;;  %v13529_v35 = vcombine.low %v1321_v60, %v1325_v61  ;;  %v13531_v47 = vcombine.low %v1322_v62, %v1326_v63  ;;  %v1366_v60 = vld [vmem:[#allocation5 + $0x26a8] sm:$0xff] }
 0x2b3   :  { %9882 = vmatpush1.bf16.msra.mxu0 %v13481_v9  ;;  %10398 = vmatpush1.bf16.msra.mxu1 %v13483_v10  ;;  %v13532_v9 = vcombine.high %v1322_v62, %v1326_v63  ;;  %v1329_v10 = vld [vmem:[#allocation5 + $0x2580] sm:$0xff] }
 0x2b4   :  { %9894 = vmatprep.subr.bf16.mxu0 %v13490_v11  ;;  %10410 = vmatprep.subr.bf16.mxu1 %v13492_v12  ;;  %v1333_v11 = vld [vmem:[#allocation5 + $0x25a0] sm:$0xff]  ;;  %v1330_v12 = vld [vmem:[#allocation5 + $0x2588] sm:$0xff] }
 0x2b5   :  { %v13538_v15 = vcombine.high %v1329_v10, %v1333_v11  ;;  %v13537_v29 = vcombine.low %v1329_v10, %v1333_v11  ;;  %v13539_v26 = vcombine.low %v1330_v12, %v1334_v34  ;;  %v1374_v10 = vld [vmem:[#allocation5 + $0x26e8] sm:$0xff] }
 0x2b6   :  { %9884 = vmatmul.mubr.bf16.vlgmr.msra.gmra.mrb[0].mxu0 %v14704_v14  ;;  %10400 = vmatmul.mubr.bf16.vlgmr.msra.gmra.mrb[0].mxu1 %v14704_v14 }
 0x2b7   :  { %9895 = vmatpush1.bf16.msra.mxu0 %v13489_v21  ;;  %10411 = vmatpush1.bf16.msra.mxu1 %v13491_v22  ;;  %v13540_v21 = vcombine.high %v1330_v12, %v1334_v34  ;;  %v1337_v22 = vld [vmem:[#allocation5 + $0x25c0] sm:$0xff] }
 0x2b8   :  { %9896 = vmatprep.subr.bf16.mxu0 %v13498_v23  ;;  %10412 = vmatprep.subr.bf16.mxu1 %v13500_v25  ;;  %v1341_v23 = vld [vmem:[#allocation5 + $0x25e0] sm:$0xff]  ;;  %v1338_v25 = vld [vmem:[#allocation5 + $0x25c8] sm:$0xff] }
 0x2b9   :  { %9926 = vmatprep.mubr.bf16.mxu0 %v14712_v33  ;;  %10442 = vmatprep.mubr.bf16.mxu1 %v14712_v33  ;;  %v13546_v55 = vcombine.high %v1337_v22, %v1341_v23  ;;  %v13545_v18 = vcombine.low %v1337_v22, %v1341_v23  ;;  %v13547_v19 = vcombine.low %v1338_v25, %v1342_v27  ;;  %v1382_v22 = vld [vmem:[#allocation5 + $0x2728] sm:$0xff] }
 0x2bb   :  { %9897 = vmatpush1.bf16.msra.mxu0 %v13497_v36  ;;  %10413 = vmatpush1.bf16.msra.mxu1 %v13499_v37  ;;  %v13548_v36 = vcombine.high %v1338_v25, %v1342_v27  ;;  %v1345_v37 = vld [vmem:[#allocation5 + $0x2600] sm:$0xff] }
 0x2bc   :  { %9898 = vmatprep.subr.bf16.mxu0 %v13506_v38  ;;  %10414 = vmatprep.subr.bf16.mxu1 %v13508_v42  ;;  %v1349_v38 = vld [vmem:[#allocation5 + $0x2620] sm:$0xff]  ;;  %v1346_v42 = vld [vmem:[#allocation5 + $0x2608] sm:$0xff] }
 0x2bd   :  { %v13554_v6 = vcombine.high %v1345_v37, %v1349_v38  ;;  %v13553_v52 = vcombine.low %v1345_v37, %v1349_v38  ;;  %v13555_v2 = vcombine.low %v1346_v42, %v1350_v43  ;;  %v1390_v37 = vld [vmem:[#allocation5 + $0x2768] sm:$0xff] }
 0x2bf   :  { %9899 = vmatpush1.bf16.msra.mxu0 %v13505_v45  ;;  %10415 = vmatpush1.bf16.msra.mxu1 %v13507_v48  ;;  %v13556_v45 = vcombine.high %v1346_v42, %v1350_v43  ;;  %v1353_v48 = vld [vmem:[#allocation5 + $0x2640] sm:$0xff] }
 0x2c0   :  { %9900 = vmatprep.subr.bf16.mxu0 %v13514_v49  ;;  %10416 = vmatprep.subr.bf16.mxu1 %v13516_v50  ;;  %v1357_v49 = vld [vmem:[#allocation5 + $0x2660] sm:$0xff]  ;;  %v1354_v50 = vld [vmem:[#allocation5 + $0x2648] sm:$0xff] }
 0x2c1   :  { %v13562_v4 = vcombine.high %v1353_v48, %v1357_v49  ;;  %v13561_v61 = vcombine.low %v1353_v48, %v1357_v49  ;;  %v13563_v62 = vcombine.low %v1354_v50, %v1358_v51  ;;  %v1398_v48 = vld [vmem:[#allocation5 + $0x27a8] sm:$0xff] }
 0x2c3   :  { %9901 = vmatpush1.bf16.msra.mxu0 %v13513_v28  ;;  %10417 = vmatpush1.bf16.msra.mxu1 %v13515_v30  ;;  %v13564_v28 = vcombine.high %v1354_v50, %v1358_v51  ;;  %v1361_v30 = vld [vmem:[#allocation5 + $0x2680] sm:$0xff] }
 0x2c4   :  { %9902 = vmatprep.subr.bf16.mxu0 %v13522_v57  ;;  %10418 = vmatprep.subr.bf16.mxu1 %v13524_v58  ;;  %v1365_v57 = vld [vmem:[#allocation5 + $0x26a0] sm:$0xff]  ;;  %v1362_v58 = vld [vmem:[#allocation5 + $0x2688] sm:$0xff] }
 0x2c5   :  { %v13570_v63 = vcombine.high %v1361_v30, %v1365_v57  ;;  %v13569_v11 = vcombine.low %v1361_v30, %v1365_v57  ;;  %v13571_v12 = vcombine.low %v1362_v58, %v1366_v60  ;;  %v1406_v30 = vld [vmem:[#allocation5 + $0x27e8] sm:$0xff] }
 0x2c7   :  { %9903 = vmatpush1.bf16.msra.mxu0 %v13521_v1  ;;  %10419 = vmatpush1.bf16.msra.mxu1 %v13523_v7  ;;  %v13572_v1 = vcombine.high %v1362_v58, %v1366_v60  ;;  %v1369_v7 = vld [vmem:[#allocation5 + $0x26c0] sm:$0xff] }
 0x2c8   :  { %9904 = vmatprep.subr.bf16.mxu0 %v13530_v8  ;;  %10420 = vmatprep.subr.bf16.mxu1 %v13532_v9  ;;  %v1373_v8 = vld [vmem:[#allocation5 + $0x26e0] sm:$0xff]  ;;  %v1370_v9 = vld [vmem:[#allocation5 + $0x26c8] sm:$0xff] }
 0x2c9   :  { %v13578_v34 = vcombine.high %v1369_v7, %v1373_v8  ;;  %v13577_v23 = vcombine.low %v1369_v7, %v1373_v8  ;;  %v13579_v25 = vcombine.low %v1370_v9, %v1374_v10  ;;  %v1414_v7 = vld [vmem:[#allocation5 + $0x2828] sm:$0xff] }
 0x2cb   :  { %9905 = vmatpush1.bf16.msra.mxu0 %v13529_v35  ;;  %10421 = vmatpush1.bf16.msra.mxu1 %v13531_v47  ;;  %v13580_v35 = vcombine.high %v1370_v9, %v1374_v10  ;;  %v1377_v47 = vld [vmem:[#allocation5 + $0x2700] sm:$0xff] }
 0x2cc   :  { %9906 = vmatprep.subr.bf16.mxu0 %v13538_v15  ;;  %10422 = vmatprep.subr.bf16.mxu1 %v13540_v21  ;;  %v1381_v15 = vld [vmem:[#allocation5 + $0x2720] sm:$0xff]  ;;  %v1378_v21 = vld [vmem:[#allocation5 + $0x2708] sm:$0xff] }
 0x2cd   :  { %v13586_v27 = vcombine.high %v1377_v47, %v1381_v15  ;;  %v13585_v38 = vcombine.low %v1377_v47, %v1381_v15  ;;  %v13587_v42 = vcombine.low %v1378_v21, %v1382_v22  ;;  %v14720_v47 = vcombine.low %v14706_v17, %v14708_v20  ;;  %v1422_v15 = vld [vmem:[#allocation5 + $0x2868] sm:$0xff] }
 0x2ce   :  { %v1426_v17 = vld [vmem:[#allocation5 + $0x2888] sm:$0xff] }
 0x2cf   :  { %9907 = vmatpush1.bf16.msra.mxu0 %v13537_v29  ;;  %10423 = vmatpush1.bf16.msra.mxu1 %v13539_v26  ;;  %v13588_v29 = vcombine.high %v1378_v21, %v1382_v22  ;;  %v1385_v26 = vld [vmem:[#allocation5 + $0x2740] sm:$0xff]  ;;  %v14722_v21 = vld [vmem:[#allocation3 + $0x50] sm:$0xff]  ;;  %v1430_v20 = vld [vmem:[#allocation5 + $0x28a8] sm:$0xff] }
 0x2d0   :  { %9908 = vmatprep.subr.bf16.mxu0 %v13546_v55  ;;  %10424 = vmatprep.subr.bf16.mxu1 %v13548_v36  ;;  %v1389_v55 = vld [vmem:[#allocation5 + $0x2760] sm:$0xff]  ;;  %v1386_v36 = vld [vmem:[#allocation5 + $0x2748] sm:$0xff]  ;;  %v14724_v22 = vld [vmem:[#allocation3 + $0xb0] sm:$0xff] }
 0x2d1   :  { %v13594_v43 = vcombine.high %v1385_v26, %v1389_v55  ;;  %v13593_v49 = vcombine.low %v1385_v26, %v1389_v55  ;;  %v13595_v50 = vcombine.low %v1386_v36, %v1390_v37  ;;  %v1425_v26 = vld [vmem:[#allocation5 + $0x2880] sm:$0xff] }
 0x2d2   :  { %v1429_v55 = vld [vmem:[#allocation5 + $0x28a0] sm:$0xff] }
 0x2d3   :  { %9909 = vmatpush1.bf16.msra.mxu0 %v13545_v18  ;;  %10425 = vmatpush1.bf16.msra.mxu1 %v13547_v19  ;;  %v13596_v18 = vcombine.high %v1386_v36, %v1390_v37  ;;  %v1393_v19 = vld [vmem:[#allocation5 + $0x2780] sm:$0xff]  ;;  %v14728_v36 = vcombine.high %v14722_v21, %v14724_v22 }
 0x2d4   :  { %9910 = vmatprep.subr.bf16.mxu0 %v13554_v6  ;;  %10426 = vmatprep.subr.bf16.mxu1 %v13556_v45  ;;  %v1397_v6 = vld [vmem:[#allocation5 + $0x27a0] sm:$0xff]  ;;  %v1394_v45 = vld [vmem:[#allocation5 + $0x2788] sm:$0xff] }
 0x2d5   :  { %v13602_v51 = vcombine.high %v1393_v19, %v1397_v6  ;;  %v13601_v57 = vcombine.low %v1393_v19, %v1397_v6  ;;  %v13603_v58 = vcombine.low %v1394_v45, %v1398_v48  ;;  %v1437_v19 = vld [vmem:[#allocation5 + $0x28e0] sm:$0xff]  ;;  %v1434_v6 = vld [vmem:[#allocation5 + $0x28c8] sm:$0xff] }
 0x2d7   :  { %9911 = vmatpush1.bf16.msra.mxu0 %v13553_v52  ;;  %10427 = vmatpush1.bf16.msra.mxu1 %v13555_v2  ;;  %v13604_v52 = vcombine.high %v1394_v45, %v1398_v48  ;;  %v1401_v2 = vld [vmem:[#allocation5 + $0x27c0] sm:$0xff]  ;;  %v1438_v45 = vld [vmem:[#allocation5 + $0x28e8] sm:$0xff]  ;;  %v13633_v48 = vcombine.low %v1425_v26, %v1429_v55 }
 0x2d8   :  { %9912 = vmatprep.subr.bf16.mxu0 %v13562_v4  ;;  %10428 = vmatprep.subr.bf16.mxu1 %v13564_v28  ;;  %v1405_v4 = vld [vmem:[#allocation5 + $0x27e0] sm:$0xff]  ;;  %v1402_v28 = vld [vmem:[#allocation5 + $0x27c8] sm:$0xff] }
 0x2d9   :  { %v13610_v60 = vcombine.high %v1401_v2, %v1405_v4  ;;  %v13609_v8 = vcombine.low %v1401_v2, %v1405_v4  ;;  %v13611_v9 = vcombine.low %v1402_v28, %v1406_v30  ;;  %v1445_v2 = vld [vmem:[#allocation5 + $0x2920] sm:$0xff]  ;;  %v1442_v4 = vld [vmem:[#allocation5 + $0x2908] sm:$0xff] }
 0x2db   :  { %9913 = vmatpush1.bf16.msra.mxu0 %v13561_v61  ;;  %10429 = vmatpush1.bf16.msra.mxu1 %v13563_v62  ;;  %v13612_v61 = vcombine.high %v1402_v28, %v1406_v30  ;;  %v1409_v62 = vld [vmem:[#allocation5 + $0x2800] sm:$0xff]  ;;  %v1446_v28 = vld [vmem:[#allocation5 + $0x2928] sm:$0xff] }
 0x2dc   :  { %9914 = vmatprep.subr.bf16.mxu0 %v13570_v63  ;;  %10430 = vmatprep.subr.bf16.mxu1 %v13572_v1  ;;  %v1413_v63 = vld [vmem:[#allocation5 + $0x2820] sm:$0xff]  ;;  %v1410_v1 = vld [vmem:[#allocation5 + $0x2808] sm:$0xff] }
 0x2dd   :  { %v13618_v10 = vcombine.high %v1409_v62, %v1413_v63 }
 0x2df   :  { %9915 = vmatpush1.bf16.msra.mxu0 %v13569_v11  ;;  %10431 = vmatpush1.bf16.msra.mxu1 %v13571_v12  ;;  %v13620_v11 = vcombine.high %v1410_v1, %v1414_v7  ;;  %v1417_v12 = vld [vmem:[#allocation5 + $0x2840] sm:$0xff] }
 0x2e0   :  { %9916 = vmatprep.subr.bf16.mxu0 %v13578_v34  ;;  %10432 = vmatprep.subr.bf16.mxu1 %v13580_v35  ;;  %v1421_v34 = vld [vmem:[#allocation5 + $0x2860] sm:$0xff]  ;;  %v1418_v35 = vld [vmem:[#allocation5 + $0x2848] sm:$0xff] }
 0x2e1   :  { %v13625_v37 = vcombine.low %v1417_v12, %v1421_v34 }
 0x2e3   :  { %9917 = vmatpush1.bf16.msra.mxu0 %v13577_v23  ;;  %10433 = vmatpush1.bf16.msra.mxu1 %v13579_v25  ;;  %v13617_v23 = vcombine.low %v1409_v62, %v1413_v63  ;;  %v13619_v25 = vcombine.low %v1410_v1, %v1414_v7  ;;  %v1453_v62 = vld [vmem:[#allocation5 + $0x2960] sm:$0xff]  ;;  %v1450_v63 = vld [vmem:[#allocation5 + $0x2948] sm:$0xff] }
 0x2e4   :  { %9918 = vmatprep.subr.bf16.mxu0 %v13586_v27  ;;  %10434 = vmatprep.subr.bf16.mxu1 %v13588_v29  ;;  %v13626_v27 = vcombine.high %v1417_v12, %v1421_v34  ;;  %v13628_v29 = vcombine.high %v1418_v35, %v1422_v15  ;;  %v1454_v1 = vld [vmem:[#allocation5 + $0x2968] sm:$0xff]  ;;  %v1461_v12 = vld [vmem:[#allocation5 + $0x29a0] sm:$0xff] }
 0x2e5   :  { %v1458_v34 = vld [vmem:[#allocation5 + $0x2988] sm:$0xff] }
 0x2e7   :  { %9919 = vmatpush1.bf16.msra.mxu0 %v13585_v38  ;;  %10435 = vmatpush1.bf16.msra.mxu1 %v13587_v42  ;;  %v13627_v38 = vcombine.low %v1418_v35, %v1422_v15  ;;  %v13634_v42 = vcombine.high %v1425_v26, %v1429_v55  ;;  %v1462_v35 = vld [vmem:[#allocation5 + $0x29a8] sm:$0xff]  ;;  %v1469_v26 = vld [vmem:[#allocation5 + $0x29e0] sm:$0xff] }
 0x2e8   :  { %9920 = vmatprep.subr.bf16.mxu0 %v13594_v43  ;;  %10436 = vmatprep.subr.bf16.mxu1 %v13596_v18  ;;  %v13636_v43 = vcombine.high %v1426_v17, %v1430_v20  ;;  %v1433_v18 = vld [vmem:[#allocation5 + $0x28c0] sm:$0xff]  ;;  %v1466_v55 = vld [vmem:[#allocation5 + $0x29c8] sm:$0xff] }
 0x2e9   :  { %v13641_v30 = vcombine.low %v1433_v18, %v1437_v19 }
 0x2eb   :  { %9921 = vmatpush1.bf16.msra.mxu0 %v13593_v49  ;;  %10437 = vmatpush1.bf16.msra.mxu1 %v13595_v50  ;;  %v13635_v49 = vcombine.low %v1426_v17, %v1430_v20  ;;  %v13642_v50 = vcombine.high %v1433_v18, %v1437_v19  ;;  %v1470_v17 = vld [vmem:[#allocation5 + $0x29e8] sm:$0xff]  ;;  %v1477_v18 = vld [vmem:[#allocation5 + $0x2a20] sm:$0xff] }
 0x2ec   :  { %9922 = vmatprep.subr.bf16.mxu0 %v13602_v51  ;;  %10438 = vmatprep.subr.bf16.mxu1 %v13604_v52  ;;  %v13644_v51 = vcombine.high %v1434_v6, %v1438_v45  ;;  %v1441_v52 = vld [vmem:[#allocation5 + $0x2900] sm:$0xff]  ;;  %v1474_v19 = vld [vmem:[#allocation5 + $0x2a08] sm:$0xff] }
 0x2ed   :  { %v13649_v7 = vcombine.low %v1441_v52, %v1445_v2 }
 0x2ef   :  { %9923 = vmatpush1.bf16.msra.mxu0 %v13601_v57  ;;  %10439 = vmatpush1.bf16.msra.mxu1 %v13603_v58  ;;  %v13643_v57 = vcombine.low %v1434_v6, %v1438_v45  ;;  %v13650_v58 = vcombine.high %v1441_v52, %v1445_v2  ;;  %v1478_v6 = vld [vmem:[#allocation5 + $0x2a28] sm:$0xff]  ;;  %v1485_v52 = vld [vmem:[#allocation5 + $0x2a60] sm:$0xff] }
 0x2f0   :  { %9924 = vmatprep.subr.bf16.mxu0 %v13610_v60  ;;  %10440 = vmatprep.subr.bf16.mxu1 %v13612_v61  ;;  %v13652_v60 = vcombine.high %v1442_v4, %v1446_v28  ;;  %v1449_v61 = vld [vmem:[#allocation5 + $0x2940] sm:$0xff]  ;;  %v1482_v2 = vld [vmem:[#allocation5 + $0x2a48] sm:$0xff] }
 0x2f1   :  { %v13657_v15 = vcombine.low %v1449_v61, %v1453_v62 }
 0x2f3   :  { %9925 = vmatpush1.bf16.msra.mxu0 %v13609_v8  ;;  %10441 = vmatpush1.bf16.msra.mxu1 %v13611_v9  ;;  %v13651_v8 = vcombine.low %v1442_v4, %v1446_v28  ;;  %v13658_v9 = vcombine.high %v1449_v61, %v1453_v62  ;;  %v1486_v4 = vld [vmem:[#allocation5 + $0x2a68] sm:$0xff]  ;;  %v1493_v61 = vld [vmem:[#allocation5 + $0x2aa0] sm:$0xff] }
 0x2f4   :  { %9937 = vmatprep.subr.bf16.mxu0 %v13618_v10  ;;  %10453 = vmatprep.subr.bf16.mxu1 %v13620_v11  ;;  %v13660_v10 = vcombine.high %v1450_v63, %v1454_v1  ;;  %v1457_v11 = vld [vmem:[#allocation5 + $0x2980] sm:$0xff]  ;;  %v1490_v62 = vld [vmem:[#allocation5 + $0x2a88] sm:$0xff] }
 0x2f5   :  { %v13665_v20 = vcombine.low %v1457_v11, %v1461_v12 }
 0x2f6   :  { %9927 = vmatmul.mubr.bf16.vlgmr.msra.gmra.mrb[0].mxu0 %v14720_v47  ;;  %10443 = vmatmul.mubr.bf16.vlgmr.msra.gmra.mrb[0].mxu1 %v14720_v47 }
 0x2f7   :  { %9938 = vmatpush1.bf16.msra.mxu0 %v13617_v23  ;;  %10454 = vmatpush1.bf16.msra.mxu1 %v13619_v25  ;;  %v13659_v23 = vcombine.low %v1450_v63, %v1454_v1  ;;  %v13666_v25 = vcombine.high %v1457_v11, %v1461_v12  ;;  %v1494_v63 = vld [vmem:[#allocation5 + $0x2aa8] sm:$0xff]  ;;  %v1501_v11 = vld [vmem:[#allocation5 + $0x2ae0] sm:$0xff] }
 0x2f8   :  { %9939 = vmatprep.subr.bf16.mxu0 %v13626_v27  ;;  %10455 = vmatprep.subr.bf16.mxu1 %v13628_v29  ;;  %v13668_v27 = vcombine.high %v1458_v34, %v1462_v35  ;;  %v1465_v29 = vld [vmem:[#allocation5 + $0x29c0] sm:$0xff]  ;;  %v1498_v12 = vld [vmem:[#allocation5 + $0x2ac8] sm:$0xff] }
 0x2f9   :  { %9969 = vmatprep.mubr.bf16.mxu0 %v14728_v36  ;;  %10485 = vmatprep.mubr.bf16.mxu1 %v14728_v36  ;;  %v13673_v45 = vcombine.low %v1465_v29, %v1469_v26 }
 0x2fb   :  { %9940 = vmatpush1.bf16.msra.mxu0 %v13625_v37  ;;  %10456 = vmatpush1.bf16.msra.mxu1 %v13627_v38  ;;  %v13667_v37 = vcombine.low %v1458_v34, %v1462_v35  ;;  %v13674_v38 = vcombine.high %v1465_v29, %v1469_v26  ;;  %v1502_v34 = vld [vmem:[#allocation5 + $0x2ae8] sm:$0xff]  ;;  %v1509_v29 = vld [vmem:[#allocation5 + $0x2b20] sm:$0xff] }
 0x2fc   :  { %9941 = vmatprep.subr.bf16.mxu0 %v13634_v42  ;;  %10457 = vmatprep.subr.bf16.mxu1 %v13636_v43  ;;  %v13676_v42 = vcombine.high %v1466_v55, %v1470_v17  ;;  %v1473_v43 = vld [vmem:[#allocation5 + $0x2a00] sm:$0xff]  ;;  %v1506_v26 = vld [vmem:[#allocation5 + $0x2b08] sm:$0xff] }
 0x2fd   :  { %v13681_v28 = vcombine.low %v1473_v43, %v1477_v18 }
 0x2ff   :  { %9942 = vmatpush1.bf16.msra.mxu0 %v13633_v48  ;;  %10458 = vmatpush1.bf16.msra.mxu1 %v13635_v49  ;;  %v13675_v48 = vcombine.low %v1466_v55, %v1470_v17  ;;  %v13682_v49 = vcombine.high %v1473_v43, %v1477_v18  ;;  %v1510_v55 = vld [vmem:[#allocation5 + $0x2b28] sm:$0xff]  ;;  %v1517_v43 = vld [vmem:[#allocation5 + $0x2b60] sm:$0xff] }
 0x300   :  { %9943 = vmatprep.subr.bf16.mxu0 %v13642_v50  ;;  %10459 = vmatprep.subr.bf16.mxu1 %v13644_v51  ;;  %v13684_v50 = vcombine.high %v1474_v19, %v1478_v6  ;;  %v1481_v51 = vld [vmem:[#allocation5 + $0x2a40] sm:$0xff]  ;;  %v1514_v18 = vld [vmem:[#allocation5 + $0x2b48] sm:$0xff] }
 0x301   :  { %v13689_v1 = vcombine.low %v1481_v51, %v1485_v52 }
 0x303   :  { %9944 = vmatpush1.bf16.msra.mxu0 %v13641_v30  ;;  %10460 = vmatpush1.bf16.msra.mxu1 %v13643_v57  ;;  %v13683_v30 = vcombine.low %v1474_v19, %v1478_v6  ;;  %v13690_v57 = vcombine.high %v1481_v51, %v1485_v52  ;;  %v1518_v19 = vld [vmem:[#allocation5 + $0x2b68] sm:$0xff]  ;;  %v1525_v51 = vld [vmem:[#allocation5 + $0x2ba0] sm:$0xff] }
 0x304   :  { %9945 = vmatprep.subr.bf16.mxu0 %v13650_v58  ;;  %10461 = vmatprep.subr.bf16.mxu1 %v13652_v60  ;;  %v13692_v58 = vcombine.high %v1482_v2, %v1486_v4  ;;  %v1489_v60 = vld [vmem:[#allocation5 + $0x2a80] sm:$0xff]  ;;  %v1522_v52 = vld [vmem:[#allocation5 + $0x2b88] sm:$0xff] }
 0x305   :  { %v13697_v35 = vcombine.low %v1489_v60, %v1493_v61 }
 0x307   :  { %9946 = vmatpush1.bf16.msra.mxu0 %v13649_v7  ;;  %10462 = vmatpush1.bf16.msra.mxu1 %v13651_v8  ;;  %v13691_v7 = vcombine.low %v1482_v2, %v1486_v4  ;;  %v13698_v8 = vcombine.high %v1489_v60, %v1493_v61  ;;  %v1526_v2 = vld [vmem:[#allocation5 + $0x2ba8] sm:$0xff]  ;;  %v1533_v60 = vld [vmem:[#allocation5 + $0x2be0] sm:$0xff] }
 0x308   :  { %9947 = vmatprep.subr.bf16.mxu0 %v13658_v9  ;;  %10463 = vmatprep.subr.bf16.mxu1 %v13660_v10  ;;  %v13700_v9 = vcombine.high %v1490_v62, %v1494_v63  ;;  %v1497_v10 = vld [vmem:[#allocation5 + $0x2ac0] sm:$0xff]  ;;  %v1530_v61 = vld [vmem:[#allocation5 + $0x2bc8] sm:$0xff] }
 0x309   :  { %v13705_v17 = vcombine.low %v1497_v10, %v1501_v11 }
 0x30b   :  { %9948 = vmatpush1.bf16.msra.mxu0 %v13657_v15  ;;  %10464 = vmatpush1.bf16.msra.mxu1 %v13659_v23  ;;  %v13699_v15 = vcombine.low %v1490_v62, %v1494_v63  ;;  %v13706_v23 = vcombine.high %v1497_v10, %v1501_v11  ;;  %v1534_v62 = vld [vmem:[#allocation5 + $0x2be8] sm:$0xff]  ;;  %v1541_v10 = vld [vmem:[#allocation5 + $0x2c20] sm:$0xff] }
 0x30c   :  { %9949 = vmatprep.subr.bf16.mxu0 %v13666_v25  ;;  %10465 = vmatprep.subr.bf16.mxu1 %v13668_v27  ;;  %v13708_v25 = vcombine.high %v1498_v12, %v1502_v34  ;;  %v1505_v27 = vld [vmem:[#allocation5 + $0x2b00] sm:$0xff]  ;;  %v1538_v11 = vld [vmem:[#allocation5 + $0x2c08] sm:$0xff] }
 0x30d   :  { %v13713_v6 = vcombine.low %v1505_v27, %v1509_v29 }
 0x30f   :  { %9950 = vmatpush1.bf16.msra.mxu0 %v13665_v20  ;;  %10466 = vmatpush1.bf16.msra.mxu1 %v13667_v37  ;;  %v13707_v20 = vcombine.low %v1498_v12, %v1502_v34  ;;  %v13714_v37 = vcombine.high %v1505_v27, %v1509_v29  ;;  %v1542_v12 = vld [vmem:[#allocation5 + $0x2c28] sm:$0xff]  ;;  %v1549_v27 = vld [vmem:[#allocation5 + $0x2c60] sm:$0xff] }
 0x310   :  { %9951 = vmatprep.subr.bf16.mxu0 %v13674_v38  ;;  %10467 = vmatprep.subr.bf16.mxu1 %v13676_v42  ;;  %v13716_v38 = vcombine.high %v1506_v26, %v1510_v55  ;;  %v1513_v42 = vld [vmem:[#allocation5 + $0x2b40] sm:$0xff]  ;;  %v1546_v29 = vld [vmem:[#allocation5 + $0x2c48] sm:$0xff] }
 0x311   :  { %v13721_v4 = vcombine.low %v1513_v42, %v1517_v43 }
 0x313   :  { %9952 = vmatpush1.bf16.msra.mxu0 %v13673_v45  ;;  %10468 = vmatpush1.bf16.msra.mxu1 %v13675_v48  ;;  %v13715_v45 = vcombine.low %v1506_v26, %v1510_v55  ;;  %v13722_v48 = vcombine.high %v1513_v42, %v1517_v43  ;;  %v14736_v26 = vcombine.low %v14722_v21, %v14724_v22  ;;  %v1550_v55 = vld [vmem:[#allocation5 + $0x2c68] sm:$0xff] }
 0x314   :  { %9953 = vmatprep.subr.bf16.mxu0 %v13682_v49  ;;  %10469 = vmatprep.subr.bf16.mxu1 %v13684_v50  ;;  %v13724_v49 = vcombine.high %v1514_v18, %v1518_v19  ;;  %v1521_v50 = vld [vmem:[#allocation5 + $0x2b80] sm:$0xff]  ;;  %v13756_v43 = vcombine.high %v1546_v29, %v1550_v55  ;;  %v1554_v21 = vld [vmem:[#allocation5 + $0x2c88] sm:$0xff] }
 0x315   :  { %v13729_v63 = vcombine.low %v1521_v50, %v1525_v51  ;;  %v1558_v22 = vld [vmem:[#allocation5 + $0x2ca8] sm:$0xff] }
 0x317   :  { %9954 = vmatpush1.bf16.msra.mxu0 %v13681_v28  ;;  %10470 = vmatpush1.bf16.msra.mxu1 %v13683_v30  ;;  %v13723_v28 = vcombine.low %v1514_v18, %v1518_v19  ;;  %v13730_v30 = vcombine.high %v1521_v50, %v1525_v51  ;;  %v1553_v18 = vld [vmem:[#allocation5 + $0x2c80] sm:$0xff]  ;;  %v13764_v50 = vcombine.high %v1554_v21, %v1558_v22 }
 0x318   :  { %9955 = vmatprep.subr.bf16.mxu0 %v13690_v57  ;;  %10471 = vmatprep.subr.bf16.mxu1 %v13692_v58  ;;  %v13732_v57 = vcombine.high %v1522_v52, %v1526_v2  ;;  %v1529_v58 = vld [vmem:[#allocation5 + $0x2bc0] sm:$0xff] }
 0x319   :  { %v13737_v34 = vcombine.low %v1529_v58, %v1533_v60  ;;  %v1557_v19 = vld [vmem:[#allocation5 + $0x2ca0] sm:$0xff] }
 0x31a   :  { %v1561_v51 = vld [vmem:[#allocation5 + $0x2cc0] sm:$0xff] }
 0x31b   :  { %9956 = vmatpush1.bf16.msra.mxu0 %v13689_v1  ;;  %10472 = vmatpush1.bf16.msra.mxu1 %v13691_v7  ;;  %v13731_v1 = vcombine.low %v1522_v52, %v1526_v2  ;;  %v13738_v7 = vcombine.high %v1529_v58, %v1533_v60  ;;  %v1565_v52 = vld [vmem:[#allocation5 + $0x2ce0] sm:$0xff]  ;;  %v1562_v2 = vld [vmem:[#allocation5 + $0x2cc8] sm:$0xff] }
 0x31c   :  { %9957 = vmatprep.subr.bf16.mxu0 %v13698_v8  ;;  %10473 = vmatprep.subr.bf16.mxu1 %v13700_v9  ;;  %v13740_v8 = vcombine.high %v1530_v61, %v1534_v62  ;;  %v1537_v9 = vld [vmem:[#allocation5 + $0x2c00] sm:$0xff] }
 0x31d   :  { %v1569_v60 = vld [vmem:[#allocation5 + $0x2d00] sm:$0xff] }
 0x31f   :  { %9958 = vmatpush1.bf16.msra.mxu0 %v13697_v35  ;;  %10474 = vmatpush1.bf16.msra.mxu1 %v13699_v15  ;;  %v13739_v35 = vcombine.low %v1530_v61, %v1534_v62  ;;  %v13746_v15 = vcombine.high %v1537_v9, %v1541_v10  ;;  %v1573_v61 = vld [vmem:[#allocation5 + $0x2d20] sm:$0xff]  ;;  %v1570_v62 = vld [vmem:[#allocation5 + $0x2d08] sm:$0xff] }
 0x320   :  { %9959 = vmatprep.subr.bf16.mxu0 %v13706_v23  ;;  %10475 = vmatprep.subr.bf16.mxu1 %v13708_v25  ;;  %v13748_v23 = vcombine.high %v1538_v11, %v1542_v12  ;;  %v1545_v25 = vld [vmem:[#allocation5 + $0x2c40] sm:$0xff] }
 0x321   :  { %v13754_v42 = vcombine.high %v1545_v25, %v1549_v27 }
 0x323   :  { %9960 = vmatpush1.bf16.msra.mxu0 %v13705_v17  ;;  %10476 = vmatpush1.bf16.msra.mxu1 %v13707_v20  ;;  %v14738_v17 = vld [vmem:[#allocation3 + $0x58] sm:$0xff] }
 0x324   :  { %9961 = vmatprep.subr.bf16.mxu0 %v13714_v37  ;;  %10477 = vmatprep.subr.bf16.mxu1 %v13716_v38  ;;  %v14740_v20 = vld [vmem:[#allocation3 + $0xb8] sm:$0xff]  ;;  %v13745_v37 = vcombine.low %v1537_v9, %v1541_v10  ;;  %v13747_v38 = vcombine.low %v1538_v11, %v1542_v12  ;;  %v1577_v10 = vld [vmem:[#allocation5 + $0x2d40] sm:$0xff]  ;;  %v1578_v12 = vld [vmem:[#allocation5 + $0x2d48] sm:$0xff] }
 0x325   :  { %v1581_v11 = vld [vmem:[#allocation5 + $0x2d60] sm:$0xff] }
 0x327   :  { %9962 = vmatpush1.bf16.msra.mxu0 %v13713_v6  ;;  %10478 = vmatpush1.bf16.msra.mxu1 %v13715_v45  ;;  %v14744_v6 = vcombine.high %v14738_v17, %v14740_v20  ;;  %v13753_v45 = vcombine.low %v1545_v25, %v1549_v27  ;;  %v1585_v27 = vld [vmem:[#allocation5 + $0x2d80] sm:$0xff] }
 0x328   :  { %9963 = vmatprep.subr.bf16.mxu0 %v13722_v48  ;;  %10479 = vmatprep.subr.bf16.mxu1 %v13724_v49  ;;  %v13755_v48 = vcombine.low %v1546_v29, %v1550_v55  ;;  %v13762_v49 = vcombine.high %v1553_v18, %v1557_v19  ;;  %v1589_v29 = vld [vmem:[#allocation5 + $0x2da0] sm:$0xff]  ;;  %v1586_v55 = vld [vmem:[#allocation5 + $0x2d88] sm:$0xff] }
 0x32b   :  { %9964 = vmatpush1.bf16.msra.mxu0 %v13721_v4  ;;  %10480 = vmatpush1.bf16.msra.mxu1 %v13723_v28  ;;  %v1566_v4 = vld [vmem:[#allocation5 + $0x2ce8] sm:$0xff]  ;;  %v13761_v28 = vcombine.low %v1553_v18, %v1557_v19  ;;  %v1593_v19 = vld [vmem:[#allocation5 + $0x2dc0] sm:$0xff] }
 0x32c   :  { %9965 = vmatprep.subr.bf16.mxu0 %v13730_v30  ;;  %10481 = vmatprep.subr.bf16.mxu1 %v13732_v57  ;;  %v13763_v30 = vcombine.low %v1554_v21, %v1558_v22  ;;  %v13770_v57 = vcombine.high %v1561_v51, %v1565_v52  ;;  %v13772_v58 = vcombine.high %v1562_v2, %v1566_v4  ;;  %v1597_v21 = vld [vmem:[#allocation5 + $0x2de0] sm:$0xff]  ;;  %v1594_v22 = vld [vmem:[#allocation5 + $0x2dc8] sm:$0xff] }
 0x32f   :  { %9966 = vmatpush1.bf16.msra.mxu0 %v13729_v63  ;;  %10482 = vmatpush1.bf16.msra.mxu1 %v13731_v1  ;;  %v1574_v63 = vld [vmem:[#allocation5 + $0x2d28] sm:$0xff]  ;;  %v13769_v1 = vcombine.low %v1561_v51, %v1565_v52  ;;  %v1601_v52 = vld [vmem:[#allocation5 + $0x2e00] sm:$0xff] }
 0x330   :  { %9967 = vmatprep.subr.bf16.mxu0 %v13738_v7  ;;  %10483 = vmatprep.subr.bf16.mxu1 %v13740_v8  ;;  %v13771_v7 = vcombine.low %v1562_v2, %v1566_v4  ;;  %v13778_v8 = vcombine.high %v1569_v60, %v1573_v61  ;;  %v13780_v9 = vcombine.high %v1570_v62, %v1574_v63  ;;  %v1605_v2 = vld [vmem:[#allocation5 + $0x2e20] sm:$0xff]  ;;  %v1602_v4 = vld [vmem:[#allocation5 + $0x2e08] sm:$0xff] }
 0x333   :  { %9968 = vmatpush1.bf16.msra.mxu0 %v13737_v34  ;;  %10484 = vmatpush1.bf16.msra.mxu1 %v13739_v35  ;;  %v1582_v34 = vld [vmem:[#allocation5 + $0x2d68] sm:$0xff]  ;;  %v13777_v35 = vcombine.low %v1569_v60, %v1573_v61  ;;  %v1609_v61 = vld [vmem:[#allocation5 + $0x2e40] sm:$0xff] }
 0x334   :  { %9980 = vmatprep.subr.bf16.mxu0 %v13746_v15  ;;  %10496 = vmatprep.subr.bf16.mxu1 %v13748_v23  ;;  %v13779_v15 = vcombine.low %v1570_v62, %v1574_v63  ;;  %v13786_v23 = vcombine.high %v1577_v10, %v1581_v11  ;;  %v13788_v25 = vcombine.high %v1578_v12, %v1582_v34  ;;  %v1613_v62 = vld [vmem:[#allocation5 + $0x2e60] sm:$0xff]  ;;  %v1610_v63 = vld [vmem:[#allocation5 + $0x2e48] sm:$0xff] }
 0x336   :  { %9970 = vmatmul.mubr.bf16.vlgmr.msra.gmra.mrb[0].mxu0 %v14736_v26  ;;  %10486 = vmatmul.mubr.bf16.vlgmr.msra.gmra.mrb[0].mxu1 %v14736_v26 }
 0x337   :  { %9981 = vmatpush1.bf16.msra.mxu0 %v13745_v37  ;;  %10497 = vmatpush1.bf16.msra.mxu1 %v13747_v38  ;;  %v1590_v37 = vld [vmem:[#allocation5 + $0x2da8] sm:$0xff]  ;;  %v13785_v38 = vcombine.low %v1577_v10, %v1581_v11  ;;  %v1617_v11 = vld [vmem:[#allocation5 + $0x2e80] sm:$0xff] }
 0x338   :  { %9982 = vmatprep.subr.bf16.mxu0 %v13754_v42  ;;  %10498 = vmatprep.subr.bf16.mxu1 %v13756_v43  ;;  %v13787_v42 = vcombine.low %v1578_v12, %v1582_v34  ;;  %v13794_v43 = vcombine.high %v1585_v27, %v1589_v29  ;;  %v13796_v18 = vcombine.high %v1586_v55, %v1590_v37  ;;  %v1621_v12 = vld [vmem:[#allocation5 + $0x2ea0] sm:$0xff]  ;;  %v1618_v34 = vld [vmem:[#allocation5 + $0x2e88] sm:$0xff] }
 0x339   :  { %10012 = vmatprep.mubr.bf16.mxu0 %v14744_v6  ;;  %10528 = vmatprep.mubr.bf16.mxu1 %v14744_v6 }
 0x33b   :  { %9983 = vmatpush1.bf16.msra.mxu0 %v13753_v45  ;;  %10499 = vmatpush1.bf16.msra.mxu1 %v13755_v48  ;;  %v1598_v45 = vld [vmem:[#allocation5 + $0x2de8] sm:$0xff]  ;;  %v13793_v48 = vcombine.low %v1585_v27, %v1589_v29  ;;  %v1625_v29 = vld [vmem:[#allocation5 + $0x2ec0] sm:$0xff] }
 0x33c   :  { %9984 = vmatprep.subr.bf16.mxu0 %v13762_v49  ;;  %10500 = vmatprep.subr.bf16.mxu1 %v13764_v50  ;;  %v13795_v49 = vcombine.low %v1586_v55, %v1590_v37  ;;  %v13802_v50 = vcombine.high %v1593_v19, %v1597_v21  ;;  %v13804_v51 = vcombine.high %v1594_v22, %v1598_v45  ;;  %v1629_v55 = vld [vmem:[#allocation5 + $0x2ee0] sm:$0xff]  ;;  %v1626_v37 = vld [vmem:[#allocation5 + $0x2ec8] sm:$0xff] }
 0x33f   :  { %9985 = vmatpush1.bf16.msra.mxu0 %v13761_v28  ;;  %10501 = vmatpush1.bf16.msra.mxu1 %v13763_v30  ;;  %v1606_v28 = vld [vmem:[#allocation5 + $0x2e28] sm:$0xff]  ;;  %v13801_v30 = vcombine.low %v1593_v19, %v1597_v21  ;;  %v1633_v21 = vld [vmem:[#allocation5 + $0x2f00] sm:$0xff] }
 0x340   :  { %9986 = vmatprep.subr.bf16.mxu0 %v13770_v57  ;;  %10502 = vmatprep.subr.bf16.mxu1 %v13772_v58  ;;  %v13803_v57 = vcombine.low %v1594_v22, %v1598_v45  ;;  %v13810_v58 = vcombine.high %v1601_v52, %v1605_v2  ;;  %v13812_v60 = vcombine.high %v1602_v4, %v1606_v28  ;;  %v1637_v22 = vld [vmem:[#allocation5 + $0x2f20] sm:$0xff]  ;;  %v1634_v45 = vld [vmem:[#allocation5 + $0x2f08] sm:$0xff] }
 0x343   :  { %9987 = vmatpush1.bf16.msra.mxu0 %v13769_v1  ;;  %10503 = vmatpush1.bf16.msra.mxu1 %v13771_v7  ;;  %v1614_v1 = vld [vmem:[#allocation5 + $0x2e68] sm:$0xff]  ;;  %v13809_v7 = vcombine.low %v1601_v52, %v1605_v2  ;;  %v1641_v2 = vld [vmem:[#allocation5 + $0x2f40] sm:$0xff] }
 0x344   :  { %9988 = vmatprep.subr.bf16.mxu0 %v13778_v8  ;;  %10504 = vmatprep.subr.bf16.mxu1 %v13780_v9  ;;  %v13811_v8 = vcombine.low %v1602_v4, %v1606_v28  ;;  %v13818_v9 = vcombine.high %v1609_v61, %v1613_v62  ;;  %v13820_v10 = vcombine.high %v1610_v63, %v1614_v1  ;;  %v1645_v4 = vld [vmem:[#allocation5 + $0x2f60] sm:$0xff]  ;;  %v1642_v28 = vld [vmem:[#allocation5 + $0x2f48] sm:$0xff] }
 0x347   :  { %9989 = vmatpush1.bf16.msra.mxu0 %v13777_v35  ;;  %10505 = vmatpush1.bf16.msra.mxu1 %v13779_v15  ;;  %v1622_v35 = vld [vmem:[#allocation5 + $0x2ea8] sm:$0xff]  ;;  %v13817_v15 = vcombine.low %v1609_v61, %v1613_v62  ;;  %v1649_v62 = vld [vmem:[#allocation5 + $0x2f80] sm:$0xff] }
 0x348   :  { %9990 = vmatprep.subr.bf16.mxu0 %v13786_v23  ;;  %10506 = vmatprep.subr.bf16.mxu1 %v13788_v25  ;;  %v13819_v23 = vcombine.low %v1610_v63, %v1614_v1  ;;  %v13826_v25 = vcombine.high %v1617_v11, %v1621_v12  ;;  %v13828_v27 = vcombine.high %v1618_v34, %v1622_v35  ;;  %v1653_v63 = vld [vmem:[#allocation5 + $0x2fa0] sm:$0xff]  ;;  %v1650_v1 = vld [vmem:[#allocation5 + $0x2f88] sm:$0xff] }
 0x34b   :  { %9991 = vmatpush1.bf16.msra.mxu0 %v13785_v38  ;;  %10507 = vmatpush1.bf16.msra.mxu1 %v13787_v42  ;;  %v1630_v38 = vld [vmem:[#allocation5 + $0x2ee8] sm:$0xff]  ;;  %v13825_v42 = vcombine.low %v1617_v11, %v1621_v12  ;;  %v1657_v12 = vld [vmem:[#allocation5 + $0x2fc0] sm:$0xff] }
 0x34c   :  { %9992 = vmatprep.subr.bf16.mxu0 %v13794_v43  ;;  %10508 = vmatprep.subr.bf16.mxu1 %v13796_v18  ;;  %v13827_v43 = vcombine.low %v1618_v34, %v1622_v35  ;;  %v13834_v18 = vcombine.high %v1625_v29, %v1629_v55  ;;  %v13836_v19 = vcombine.high %v1626_v37, %v1630_v38  ;;  %v1661_v34 = vld [vmem:[#allocation5 + $0x2fe0] sm:$0xff]  ;;  %v1658_v35 = vld [vmem:[#allocation5 + $0x2fc8] sm:$0xff] }
 0x34f   :  { %9993 = vmatpush1.bf16.msra.mxu0 %v13793_v48  ;;  %10509 = vmatpush1.bf16.msra.mxu1 %v13795_v49  ;;  %v1638_v48 = vld [vmem:[#allocation5 + $0x2f28] sm:$0xff]  ;;  %v13833_v49 = vcombine.low %v1625_v29, %v1629_v55  ;;  %v131_v55 = vld [vmem:[#allocation5 + $0x10] sm:$0xff] }
 0x350   :  { %9994 = vmatprep.subr.bf16.mxu0 %v13802_v50  ;;  %10510 = vmatprep.subr.bf16.mxu1 %v13804_v51  ;;  %v13835_v50 = vcombine.low %v1626_v37, %v1630_v38  ;;  %v13842_v51 = vcombine.high %v1633_v21, %v1637_v22  ;;  %v13844_v52 = vcombine.high %v1634_v45, %v1638_v48  ;;  %v135_v37 = vld [vmem:[#allocation5 + $0x30] sm:$0xff]  ;;  %v132_v38 = vld [vmem:[#allocation5 + $0x18] sm:$0xff] }
 0x353   :  { %9995 = vmatpush1.bf16.msra.mxu0 %v13801_v30  ;;  %10511 = vmatpush1.bf16.msra.mxu1 %v13803_v57  ;;  %v1646_v30 = vld [vmem:[#allocation5 + $0x2f68] sm:$0xff]  ;;  %v13841_v57 = vcombine.low %v1633_v21, %v1637_v22  ;;  %v139_v22 = vld [vmem:[#allocation5 + $0x50] sm:$0xff] }
 0x354   :  { %9996 = vmatprep.subr.bf16.mxu0 %v13810_v58  ;;  %10512 = vmatprep.subr.bf16.mxu1 %v13812_v60  ;;  %v13843_v58 = vcombine.low %v1634_v45, %v1638_v48  ;;  %v13850_v60 = vcombine.high %v1641_v2, %v1645_v4  ;;  %v13852_v61 = vcombine.high %v1642_v28, %v1646_v30  ;;  %v143_v45 = vld [vmem:[#allocation5 + $0x70] sm:$0xff] }
 0x355   :  { %v14752_v48 = vcombine.low %v14738_v17, %v14740_v20  ;;  %v12349_v17 = vcombine.low %v139_v22, %v143_v45 }
 0x357   :  { %9997 = vmatpush1.bf16.msra.mxu0 %v13809_v7  ;;  %10513 = vmatpush1.bf16.msra.mxu1 %v13811_v8  ;;  %v1654_v7 = vld [vmem:[#allocation5 + $0x2fa8] sm:$0xff]  ;;  %v13849_v8 = vcombine.low %v1641_v2, %v1645_v4  ;;  %v12350_v2 = vcombine.high %v139_v22, %v143_v45  ;;  %v183_v22 = vld [vmem:[#allocation5 + $0x1b0] sm:$0xff]  ;;  %v180_v45 = vld [vmem:[#allocation5 + $0x198] sm:$0xff] }
 0x358   :  { %9998 = vmatprep.subr.bf16.mxu0 %v13818_v9  ;;  %10514 = vmatprep.subr.bf16.mxu1 %v13820_v10  ;;  %v13851_v9 = vcombine.low %v1642_v28, %v1646_v30  ;;  %v13858_v10 = vcombine.high %v1649_v62, %v1653_v63  ;;  %v13860_v11 = vcombine.high %v1650_v1, %v1654_v7  ;;  %v147_v28 = vld [vmem:[#allocation5 + $0x90] sm:$0xff] }
 0x359   :  { %v151_v30 = vld [vmem:[#allocation5 + $0xb0] sm:$0xff] }
 0x35b   :  { %9999 = vmatpush1.bf16.msra.mxu0 %v13817_v15  ;;  %10515 = vmatpush1.bf16.msra.mxu1 %v13819_v23  ;;  %v1662_v15 = vld [vmem:[#allocation5 + $0x2fe8] sm:$0xff]  ;;  %v13857_v23 = vcombine.low %v1649_v62, %v1653_v63  ;;  %v155_v62 = vld [vmem:[#allocation5 + $0xd0] sm:$0xff] }
 0x35c   :  { %10000 = vmatprep.subr.bf16.mxu0 %v13826_v25  ;;  %10516 = vmatprep.subr.bf16.mxu1 %v13828_v27  ;;  %v13859_v25 = vcombine.low %v1650_v1, %v1654_v7  ;;  %v13866_v27 = vcombine.high %v1657_v12, %v1661_v34  ;;  %v13868_v29 = vcombine.high %v1658_v35, %v1662_v15  ;;  %v159_v63 = vld [vmem:[#allocation5 + $0xf0] sm:$0xff]  ;;  %v156_v1 = vld [vmem:[#allocation5 + $0xd8] sm:$0xff] }
 0x35d   :  { %v160_v7 = vld [vmem:[#allocation5 + $0xf8] sm:$0xff] }
 0x35f   :  { %10001 = vmatpush1.bf16.msra.mxu0 %v13825_v42  ;;  %10517 = vmatpush1.bf16.msra.mxu1 %v13827_v43  ;;  %v136_v42 = vld [vmem:[#allocation5 + $0x38] sm:$0xff]  ;;  %v13865_v43 = vcombine.low %v1657_v12, %v1661_v34  ;;  %v163_v12 = vld [vmem:[#allocation5 + $0x110] sm:$0xff] }
 0x360   :  { %10002 = vmatprep.subr.bf16.mxu0 %v13834_v18  ;;  %10518 = vmatprep.subr.bf16.mxu1 %v13836_v19  ;;  %v13867_v18 = vcombine.low %v1658_v35, %v1662_v15  ;;  %v12342_v19 = vcombine.high %v131_v55, %v135_v37  ;;  %v12344_v21 = vcombine.high %v132_v38, %v136_v42  ;;  %v167_v34 = vld [vmem:[#allocation5 + $0x130] sm:$0xff]  ;;  %v164_v35 = vld [vmem:[#allocation5 + $0x118] sm:$0xff] }
 0x361   :  { %v168_v15 = vld [vmem:[#allocation5 + $0x138] sm:$0xff] }
 0x363   :  { %10003 = vmatpush1.bf16.msra.mxu0 %v13833_v49  ;;  %10519 = vmatpush1.bf16.msra.mxu1 %v13835_v50  ;;  %v140_v49 = vld [vmem:[#allocation5 + $0x58] sm:$0xff] }
 0x364   :  { %10004 = vmatprep.subr.bf16.mxu0 %v13842_v51  ;;  %10520 = vmatprep.subr.bf16.mxu1 %v13844_v52  ;;  %v144_v50 = vld [vmem:[#allocation5 + $0x78] sm:$0xff]  ;;  %v12341_v51 = vcombine.low %v131_v55, %v135_v37  ;;  %v12343_v52 = vcombine.low %v132_v38, %v136_v42  ;;  %v175_v55 = vld [vmem:[#allocation5 + $0x170] sm:$0xff]  ;;  %v12373_v42 = vcombine.low %v163_v12, %v167_v34 }
 0x365   :  { %v12352_v4 = vcombine.high %v140_v49, %v144_v50  ;;  %v12351_v20 = vcombine.low %v140_v49, %v144_v50  ;;  %v172_v37 = vld [vmem:[#allocation5 + $0x158] sm:$0xff] }
 0x366   :  { %v176_v38 = vld [vmem:[#allocation5 + $0x178] sm:$0xff] }
 0x367   :  { %10005 = vmatpush1.bf16.msra.mxu0 %v13841_v57  ;;  %10521 = vmatpush1.bf16.msra.mxu1 %v13843_v58  ;;  %v148_v57 = vld [vmem:[#allocation5 + $0x98] sm:$0xff] }
 0x368   :  { %10006 = vmatprep.subr.bf16.mxu0 %v13850_v60  ;;  %10522 = vmatprep.subr.bf16.mxu1 %v13852_v61  ;;  %v152_v58 = vld [vmem:[#allocation5 + $0xb8] sm:$0xff]  ;;  %v12358_v60 = vcombine.high %v147_v28, %v151_v30 }
 0x369   :  { %v12360_v61 = vcombine.high %v148_v57, %v152_v58  ;;  %v184_v49 = vld [vmem:[#allocation5 + $0x1b8] sm:$0xff] }
 0x36b   :  { %10007 = vmatpush1.bf16.msra.mxu0 %v13849_v8  ;;  %10523 = vmatpush1.bf16.msra.mxu1 %v13851_v9  ;;  %v12357_v8 = vcombine.low %v147_v28, %v151_v30  ;;  %v12359_v9 = vcombine.low %v148_v57, %v152_v58  ;;  %v191_v28 = vld [vmem:[#allocation5 + $0x1f0] sm:$0xff]  ;;  %v188_v30 = vld [vmem:[#allocation5 + $0x1d8] sm:$0xff] }
 0x36c   :  { %10008 = vmatprep.subr.bf16.mxu0 %v13858_v10  ;;  %10524 = vmatprep.subr.bf16.mxu1 %v13860_v11  ;;  %v12366_v10 = vcombine.high %v155_v62, %v159_v63  ;;  %v12368_v11 = vcombine.high %v156_v1, %v160_v7  ;;  %v192_v57 = vld [vmem:[#allocation5 + $0x1f8] sm:$0xff] }
 0x36f   :  { %10009 = vmatpush1.bf16.msra.mxu0 %v13857_v23  ;;  %10525 = vmatpush1.bf16.msra.mxu1 %v13859_v25  ;;  %v12365_v23 = vcombine.low %v155_v62, %v159_v63  ;;  %v12367_v25 = vcombine.low %v156_v1, %v160_v7  ;;  %v199_v62 = vld [vmem:[#allocation5 + $0x230] sm:$0xff]  ;;  %v196_v63 = vld [vmem:[#allocation5 + $0x218] sm:$0xff] }
 0x370   :  { %10010 = vmatprep.subr.bf16.mxu0 %v13866_v27  ;;  %10526 = vmatprep.subr.bf16.mxu1 %v13868_v29  ;;  %v12374_v27 = vcombine.high %v163_v12, %v167_v34  ;;  %v171_v29 = vld [vmem:[#allocation5 + $0x150] sm:$0xff]  ;;  %v200_v1 = vld [vmem:[#allocation5 + $0x238] sm:$0xff] }
 0x371   :  { %v12381_v50 = vcombine.low %v171_v29, %v175_v55  ;;  %v207_v12 = vld [vmem:[#allocation5 + $0x270] sm:$0xff]  ;;  %v204_v34 = vld [vmem:[#allocation5 + $0x258] sm:$0xff] }
 0x373   :  { %10011 = vmatpush1.bf16.msra.mxu0 %v13865_v43  ;;  %10527 = vmatpush1.bf16.msra.mxu1 %v13867_v18  ;;  %v12375_v43 = vcombine.low %v164_v35, %v168_v15  ;;  %v12382_v18 = vcombine.high %v171_v29, %v175_v55  ;;  %v215_v29 = vld [vmem:[#allocation5 + $0x2b0] sm:$0xff]  ;;  %v212_v55 = vld [vmem:[#allocation5 + $0x298] sm:$0xff] }
 0x374   :  { %10539 = vmatprep.subr.bf16.mxu0 %v12342_v19  ;;  %11055 = vmatprep.subr.bf16.mxu1 %v12344_v21  ;;  %v12384_v19 = vcombine.high %v172_v37, %v176_v38  ;;  %v179_v21 = vld [vmem:[#allocation5 + $0x190] sm:$0xff] }
 0x375   :  { %v12389_v58 = vcombine.low %v179_v21, %v183_v22 }
 0x376   :  { %10013 = vmatmul.mubr.bf16.vlgmr.msra.gmra.mrb[0].mxu0 %v14752_v48  ;;  %10529 = vmatmul.mubr.bf16.vlgmr.msra.gmra.mrb[0].mxu1 %v14752_v48 }
 0x377   :  { %10540 = vmatpush1.bf16.msra.mxu0 %v12341_v51  ;;  %11056 = vmatpush1.bf16.msra.mxu1 %v12343_v52  ;;  %v12383_v51 = vcombine.low %v172_v37, %v176_v38  ;;  %v12390_v52 = vcombine.high %v179_v21, %v183_v22  ;;  %v216_v37 = vld [vmem:[#allocation5 + $0x2b8] sm:$0xff]  ;;  %v223_v21 = vld [vmem:[#allocation5 + $0x2f0] sm:$0xff] }
 0x378   :  { %10541 = vmatprep.subr.bf16.mxu0 %v12350_v2  ;;  %11057 = vmatprep.subr.bf16.mxu1 %v12352_v4  ;;  %v12392_v2 = vcombine.high %v180_v45, %v184_v49  ;;  %v187_v4 = vld [vmem:[#allocation5 + $0x1d0] sm:$0xff]  ;;  %v220_v22 = vld [vmem:[#allocation5 + $0x2d8] sm:$0xff] }
 0x379   :  { %10571 = vmatprep.mubr.bf16.mxu0 %v14570_v59  ;;  %11087 = vmatprep.mubr.bf16.mxu1 %v14570_v59  ;;  %v12376_v59 = vcombine.high %v164_v35, %v168_v15  ;;  %v12397_v7 = vcombine.low %v187_v4, %v191_v28  ;;  %v208_v35 = vld [vmem:[#allocation5 + $0x278] sm:$0xff] }
 0x37b   :  { %10542 = vmatpush1.bf16.msra.mxu0 %v12349_v17  ;;  %11058 = vmatpush1.bf16.msra.mxu1 %v12351_v20  ;;  %v12391_v17 = vcombine.low %v180_v45, %v184_v49  ;;  %v12398_v20 = vcombine.high %v187_v4, %v191_v28  ;;  %v224_v45 = vld [vmem:[#allocation5 + $0x2f8] sm:$0xff]  ;;  %v231_v4 = vld [vmem:[#allocation5 + $0x330] sm:$0xff] }
 0x37c   :  { %10543 = vmatprep.subr.bf16.mxu0 %v12358_v60  ;;  %11059 = vmatprep.subr.bf16.mxu1 %v12360_v61  ;;  %v12400_v60 = vcombine.high %v188_v30, %v192_v57  ;;  %v195_v61 = vld [vmem:[#allocation5 + $0x210] sm:$0xff]  ;;  %v228_v28 = vld [vmem:[#allocation5 + $0x318] sm:$0xff] }
 0x37d   :  { %v12405_v15 = vcombine.low %v195_v61, %v199_v62 }
 0x37f   :  { %10544 = vmatpush1.bf16.msra.mxu0 %v12357_v8  ;;  %11060 = vmatpush1.bf16.msra.mxu1 %v12359_v9  ;;  %v12399_v8 = vcombine.low %v188_v30, %v192_v57  ;;  %v12406_v9 = vcombine.high %v195_v61, %v199_v62  ;;  %v232_v30 = vld [vmem:[#allocation5 + $0x338] sm:$0xff]  ;;  %v239_v61 = vld [vmem:[#allocation5 + $0x370] sm:$0xff] }
 0x380   :  { %10545 = vmatprep.subr.bf16.mxu0 %v12366_v10  ;;  %11061 = vmatprep.subr.bf16.mxu1 %v12368_v11  ;;  %v12408_v10 = vcombine.high %v196_v63, %v200_v1  ;;  %v203_v11 = vld [vmem:[#allocation5 + $0x250] sm:$0xff]  ;;  %v236_v62 = vld [vmem:[#allocation5 + $0x358] sm:$0xff] }
 0x381   :  { %v12413_v38 = vcombine.low %v203_v11, %v207_v12 }
 0x383   :  { %10546 = vmatpush1.bf16.msra.mxu0 %v12365_v23  ;;  %11062 = vmatpush1.bf16.msra.mxu1 %v12367_v25  ;;  %v12407_v23 = vcombine.low %v196_v63, %v200_v1  ;;  %v12414_v25 = vcombine.high %v203_v11, %v207_v12  ;;  %v240_v63 = vld [vmem:[#allocation5 + $0x378] sm:$0xff]  ;;  %v247_v11 = vld [vmem:[#allocation5 + $0x3b0] sm:$0xff] }
 0x384   :  { %10547 = vmatprep.subr.bf16.mxu0 %v12374_v27  ;;  %11063 = vmatprep.subr.bf16.mxu1 %v12376_v59  ;;  %v12416_v27 = vcombine.high %v204_v34, %v208_v35  ;;  %v211_v59 = vld [vmem:[#allocation5 + $0x290] sm:$0xff]  ;;  %v244_v12 = vld [vmem:[#allocation5 + $0x398] sm:$0xff] }
 0x385   :  { %v12421_v49 = vcombine.low %v211_v59, %v215_v29 }
 0x387   :  { %10548 = vmatpush1.bf16.msra.mxu0 %v12373_v42  ;;  %11064 = vmatpush1.bf16.msra.mxu1 %v12375_v43  ;;  %v12415_v42 = vcombine.low %v204_v34, %v208_v35  ;;  %v12422_v43 = vcombine.high %v211_v59, %v215_v29  ;;  %v248_v34 = vld [vmem:[#allocation5 + $0x3b8] sm:$0xff]  ;;  %v255_v59 = vld [vmem:[#allocation5 + $0x3f0] sm:$0xff] }
 0x388   :  { %10549 = vmatprep.subr.bf16.mxu0 %v12382_v18  ;;  %11065 = vmatprep.subr.bf16.mxu1 %v12384_v19  ;;  %v12424_v18 = vcombine.high %v212_v55, %v216_v37  ;;  %v219_v19 = vld [vmem:[#allocation5 + $0x2d0] sm:$0xff]  ;;  %v252_v29 = vld [vmem:[#allocation5 + $0x3d8] sm:$0xff] }
 0x389   :  { %v12429_v57 = vcombine.low %v219_v19, %v223_v21 }
 0x38b   :  { %10550 = vmatpush1.bf16.msra.mxu0 %v12381_v50  ;;  %11066 = vmatpush1.bf16.msra.mxu1 %v12383_v51  ;;  %v12423_v50 = vcombine.low %v212_v55, %v216_v37  ;;  %v12430_v51 = vcombine.high %v219_v19, %v223_v21  ;;  %v256_v55 = vld [vmem:[#allocation5 + $0x3f8] sm:$0xff]  ;;  %v263_v19 = vld [vmem:[#allocation5 + $0x430] sm:$0xff] }
 0x38c   :  { %10551 = vmatprep.subr.bf16.mxu0 %v12390_v52  ;;  %11067 = vmatprep.subr.bf16.mxu1 %v12392_v2  ;;  %v12432_v52 = vcombine.high %v220_v22, %v224_v45  ;;  %v227_v2 = vld [vmem:[#allocation5 + $0x310] sm:$0xff]  ;;  %v260_v21 = vld [vmem:[#allocation5 + $0x418] sm:$0xff] }
 0x38d   :  { %v12437_v1 = vcombine.low %v227_v2, %v231_v4 }
 0x38f   :  { %10552 = vmatpush1.bf16.msra.mxu0 %v12389_v58  ;;  %11068 = vmatpush1.bf16.msra.mxu1 %v12391_v17  ;;  %v12431_v58 = vcombine.low %v220_v22, %v224_v45  ;;  %v12438_v17 = vcombine.high %v227_v2, %v231_v4  ;;  %v264_v22 = vld [vmem:[#allocation5 + $0x438] sm:$0xff]  ;;  %v271_v2 = vld [vmem:[#allocation5 + $0x470] sm:$0xff] }
 0x390   :  { %10553 = vmatprep.subr.bf16.mxu0 %v12398_v20  ;;  %11069 = vmatprep.subr.bf16.mxu1 %v12400_v60  ;;  %v12440_v20 = vcombine.high %v228_v28, %v232_v30  ;;  %v235_v60 = vld [vmem:[#allocation5 + $0x350] sm:$0xff]  ;;  %v268_v4 = vld [vmem:[#allocation5 + $0x458] sm:$0xff] }
 0x391   :  { %v12445_v35 = vcombine.low %v235_v60, %v239_v61 }
 0x393   :  { %10554 = vmatpush1.bf16.msra.mxu0 %v12397_v7  ;;  %11070 = vmatpush1.bf16.msra.mxu1 %v12399_v8  ;;  %v12439_v7 = vcombine.low %v228_v28, %v232_v30  ;;  %v12446_v8 = vcombine.high %v235_v60, %v239_v61  ;;  %v272_v28 = vld [vmem:[#allocation5 + $0x478] sm:$0xff]  ;;  %v279_v60 = vld [vmem:[#allocation5 + $0x4b0] sm:$0xff] }
 0x394   :  { %10555 = vmatprep.subr.bf16.mxu0 %v12406_v9  ;;  %11071 = vmatprep.subr.bf16.mxu1 %v12408_v10  ;;  %v12448_v9 = vcombine.high %v236_v62, %v240_v63  ;;  %v243_v10 = vld [vmem:[#allocation5 + $0x390] sm:$0xff]  ;;  %v276_v61 = vld [vmem:[#allocation5 + $0x498] sm:$0xff] }
 0x395   :  { %v12453_v37 = vcombine.low %v243_v10, %v247_v11 }
 0x397   :  { %10556 = vmatpush1.bf16.msra.mxu0 %v12405_v15  ;;  %11072 = vmatpush1.bf16.msra.mxu1 %v12407_v23  ;;  %v12447_v15 = vcombine.low %v236_v62, %v240_v63  ;;  %v12454_v23 = vcombine.high %v243_v10, %v247_v11  ;;  %v280_v62 = vld [vmem:[#allocation5 + $0x4b8] sm:$0xff]  ;;  %v287_v10 = vld [vmem:[#allocation5 + $0x4f0] sm:$0xff] }
 0x398   :  { %10557 = vmatprep.subr.bf16.mxu0 %v12414_v25  ;;  %11073 = vmatprep.subr.bf16.mxu1 %v12416_v27  ;;  %v12456_v25 = vcombine.high %v244_v12, %v248_v34  ;;  %v251_v27 = vld [vmem:[#allocation5 + $0x3d0] sm:$0xff]  ;;  %v284_v11 = vld [vmem:[#allocation5 + $0x4d8] sm:$0xff] }
 0x399   :  { %v12461_v45 = vcombine.low %v251_v27, %v255_v59 }
 0x39b   :  { %10558 = vmatpush1.bf16.msra.mxu0 %v12413_v38  ;;  %11074 = vmatpush1.bf16.msra.mxu1 %v12415_v42  ;;  %v12455_v38 = vcombine.low %v244_v12, %v248_v34  ;;  %v12462_v42 = vcombine.high %v251_v27, %v255_v59  ;;  %v288_v12 = vld [vmem:[#allocation5 + $0x4f8] sm:$0xff] }
 0x39c   :  { %10559 = vmatprep.subr.bf16.mxu0 %v12422_v43  ;;  %11075 = vmatprep.subr.bf16.mxu1 %v12424_v18  ;;  %v12464_v43 = vcombine.high %v252_v29, %v256_v55  ;;  %v259_v18 = vld [vmem:[#allocation5 + $0x410] sm:$0xff]  ;;  %v292_v27 = vld [vmem:[#allocation5 + $0x518] sm:$0xff] }
 0x39d   :  { %v12469_v30 = vcombine.low %v259_v18, %v263_v19  ;;  %v296_v59 = vld [vmem:[#allocation5 + $0x538] sm:$0xff] }
 0x39f   :  { %10560 = vmatpush1.bf16.msra.mxu0 %v12421_v49  ;;  %11076 = vmatpush1.bf16.msra.mxu1 %v12423_v50  ;;  %v12463_v49 = vcombine.low %v252_v29, %v256_v55  ;;  %v12470_v50 = vcombine.high %v259_v18, %v263_v19  ;;  %v12495_v55 = vcombine.low %v284_v11, %v288_v12  ;;  %v304_v18 = vld [vmem:[#allocation5 + $0x578] sm:$0xff] }
 0x3a0   :  { %10561 = vmatprep.subr.bf16.mxu0 %v12430_v51  ;;  %11077 = vmatprep.subr.bf16.mxu1 %v12432_v52  ;;  %v12472_v51 = vcombine.high %v260_v21, %v264_v22  ;;  %v267_v52 = vld [vmem:[#allocation5 + $0x450] sm:$0xff] }
 0x3a1   :  { %v12477_v63 = vcombine.low %v267_v52, %v271_v2 }
 0x3a3   :  { %10562 = vmatpush1.bf16.msra.mxu0 %v12429_v57  ;;  %11078 = vmatpush1.bf16.msra.mxu1 %v12431_v58  ;;  %v12471_v57 = vcombine.low %v260_v21, %v264_v22  ;;  %v12478_v58 = vcombine.high %v267_v52, %v271_v2  ;;  %v12503_v21 = vcombine.low %v292_v27, %v296_v59  ;;  %v312_v52 = vld [vmem:[#allocation5 + $0x5b8] sm:$0xff] }
 0x3a4   :  { %10563 = vmatprep.subr.bf16.mxu0 %v12438_v17  ;;  %11079 = vmatprep.subr.bf16.mxu1 %v12440_v20  ;;  %v12480_v17 = vcombine.high %v268_v4, %v272_v28  ;;  %v275_v20 = vld [vmem:[#allocation5 + $0x490] sm:$0xff] }
 0x3a5   :  { %v12485_v34 = vcombine.low %v275_v20, %v279_v60 }
 0x3a7   :  { %10564 = vmatpush1.bf16.msra.mxu0 %v12437_v1  ;;  %11080 = vmatpush1.bf16.msra.mxu1 %v12439_v7  ;;  %v12479_v1 = vcombine.low %v268_v4, %v272_v28  ;;  %v12486_v7 = vcombine.high %v275_v20, %v279_v60  ;;  %v320_v20 = vld [vmem:[#allocation5 + $0x5f8] sm:$0xff] }
 0x3a8   :  { %10565 = vmatprep.subr.bf16.mxu0 %v12446_v8  ;;  %11081 = vmatprep.subr.bf16.mxu1 %v12448_v9  ;;  %v12488_v8 = vcombine.high %v276_v61, %v280_v62  ;;  %v283_v9 = vld [vmem:[#allocation5 + $0x4d0] sm:$0xff] }
 0x3a9   :  { %v12493_v29 = vcombine.low %v283_v9, %v287_v10 }
 0x3ab   :  { %10566 = vmatpush1.bf16.msra.mxu0 %v12445_v35  ;;  %11082 = vmatpush1.bf16.msra.mxu1 %v12447_v15  ;;  %v12494_v35 = vcombine.high %v283_v9, %v287_v10  ;;  %v12496_v15 = vcombine.high %v284_v11, %v288_v12  ;;  %v328_v9 = vld [vmem:[#allocation5 + $0x638] sm:$0xff] }
 0x3ac   :  { %10567 = vmatprep.subr.bf16.mxu0 %v12454_v23  ;;  %11083 = vmatprep.subr.bf16.mxu1 %v12456_v25  ;;  %v291_v23 = vld [vmem:[#allocation5 + $0x510] sm:$0xff] }
 0x3ad   :  { %v295_v25 = vld [vmem:[#allocation5 + $0x530] sm:$0xff] }
 0x3ae   :  { %v12501_v19 = vcombine.low %v291_v23, %v295_v25 }
 0x3af   :  { %10568 = vmatpush1.bf16.msra.mxu0 %v12453_v37  ;;  %11084 = vmatpush1.bf16.msra.mxu1 %v12455_v38  ;;  %v12502_v37 = vcombine.high %v291_v23, %v295_v25  ;;  %v299_v38 = vld [vmem:[#allocation5 + $0x550] sm:$0xff]  ;;  %v336_v23 = vld [vmem:[#allocation5 + $0x678] sm:$0xff] }
 0x3b0   :  { %10569 = vmatprep.subr.bf16.mxu0 %v12462_v42  ;;  %11085 = vmatprep.subr.bf16.mxu1 %v12464_v43  ;;  %v303_v42 = vld [vmem:[#allocation5 + $0x570] sm:$0xff]  ;;  %v300_v43 = vld [vmem:[#allocation5 + $0x558] sm:$0xff] }
 0x3b1   :  { %v12510_v22 = vcombine.high %v299_v38, %v303_v42  ;;  %v12509_v2 = vcombine.low %v299_v38, %v303_v42  ;;  %v12511_v4 = vcombine.low %v300_v43, %v304_v18  ;;  %v344_v38 = vld [vmem:[#allocation5 + $0x6b8] sm:$0xff] }
 0x3b3   :  { %10570 = vmatpush1.bf16.msra.mxu0 %v12461_v45  ;;  %11086 = vmatpush1.bf16.msra.mxu1 %v12463_v49  ;;  %v12512_v45 = vcombine.high %v300_v43, %v304_v18  ;;  %v307_v49 = vld [vmem:[#allocation5 + $0x590] sm:$0xff] }
 0x3b4   :  { %10582 = vmatprep.subr.bf16.mxu0 %v12470_v50  ;;  %11098 = vmatprep.subr.bf16.mxu1 %v12472_v51  ;;  %v311_v50 = vld [vmem:[#allocation5 + $0x5b0] sm:$0xff]  ;;  %v308_v51 = vld [vmem:[#allocation5 + $0x598] sm:$0xff] }
 0x3b5   :  { %v12518_v28 = vcombine.high %v307_v49, %v311_v50  ;;  %v12517_v60 = vcombine.low %v307_v49, %v311_v50  ;;  %v352_v49 = vld [vmem:[#allocation5 + $0x6f8] sm:$0xff] }
 0x3b6   :  { %10572 = vmatmul.mubr.bf16.vlgmr.msra.gmra.mrb[4].mxu0 %v14576_v16  ;;  %11088 = vmatmul.mubr.bf16.vlgmr.msra.gmra.mrb[4].mxu1 %v14576_v16  ;;  %v12487_v16 = vcombine.low %v276_v61, %v280_v62  ;;  %v12519_v61 = vcombine.low %v308_v51, %v312_v52 }
 0x3b7   :  { %10583 = vmatpush1.bf16.msra.mxu0 %v12469_v30  ;;  %11099 = vmatpush1.bf16.msra.mxu1 %v12471_v57  ;;  %v12520_v30 = vcombine.high %v308_v51, %v312_v52  ;;  %v315_v57 = vld [vmem:[#allocation5 + $0x5d0] sm:$0xff] }
 0x3b8   :  { %10584 = vmatprep.subr.bf16.mxu0 %v12478_v58  ;;  %11100 = vmatprep.subr.bf16.mxu1 %v12480_v17  ;;  %v319_v58 = vld [vmem:[#allocation5 + $0x5f0] sm:$0xff]  ;;  %v316_v17 = vld [vmem:[#allocation5 + $0x5d8] sm:$0xff] }
 0x3b9   :  { %10614 = vmatprep.mubr.bf16.mxu0 %v14584_v54  ;;  %11130 = vmatprep.mubr.bf16.mxu1 %v14584_v54  ;;  %v12504_v54 = vcombine.high %v292_v27, %v296_v59  ;;  %v12526_v62 = vcombine.high %v315_v57, %v319_v58  ;;  %v12525_v10 = vcombine.low %v315_v57, %v319_v58  ;;  %v360_v57 = vld [vmem:[#allocation5 + $0x738] sm:$0xff] }
 0x3ba   :  { %v12527_v11 = vcombine.low %v316_v17, %v320_v20 }
 0x3bb   :  { %10585 = vmatpush1.bf16.msra.mxu0 %v12477_v63  ;;  %11101 = vmatpush1.bf16.msra.mxu1 %v12479_v1  ;;  %v12528_v63 = vcombine.high %v316_v17, %v320_v20  ;;  %v323_v1 = vld [vmem:[#allocation5 + $0x610] sm:$0xff] }
 0x3bc   :  { %10586 = vmatprep.subr.bf16.mxu0 %v12486_v7  ;;  %11102 = vmatprep.subr.bf16.mxu1 %v12488_v8  ;;  %v327_v7 = vld [vmem:[#allocation5 + $0x630] sm:$0xff]  ;;  %v324_v8 = vld [vmem:[#allocation5 + $0x618] sm:$0xff] }
 0x3bd   :  { %v12534_v12 = vcombine.high %v323_v1, %v327_v7  ;;  %v12533_v25 = vcombine.low %v323_v1, %v327_v7  ;;  %v12535_v27 = vcombine.low %v324_v8, %v328_v9  ;;  %v368_v1 = vld [vmem:[#allocation5 + $0x778] sm:$0xff] }
 0x3bf   :  { %10587 = vmatpush1.bf16.msra.mxu0 %v12485_v34  ;;  %11103 = vmatpush1.bf16.msra.mxu1 %v12487_v16  ;;  %v12536_v34 = vcombine.high %v324_v8, %v328_v9  ;;  %v331_v16 = vld [vmem:[#allocation5 + $0x650] sm:$0xff] }
 0x3c0   :  { %10588 = vmatprep.subr.bf16.mxu0 %v12494_v35  ;;  %11104 = vmatprep.subr.bf16.mxu1 %v12496_v15  ;;  %v335_v35 = vld [vmem:[#allocation5 + $0x670] sm:$0xff]  ;;  %v332_v15 = vld [vmem:[#allocation5 + $0x658] sm:$0xff] }
 0x3c1   :  { %v12542_v59 = vcombine.high %v331_v16, %v335_v35  ;;  %v12541_v42 = vcombine.low %v331_v16, %v335_v35  ;;  %v12543_v43 = vcombine.low %v332_v15, %v336_v23  ;;  %v376_v16 = vld [vmem:[#allocation5 + $0x7b8] sm:$0xff] }
 0x3c3   :  { %10589 = vmatpush1.bf16.msra.mxu0 %v12493_v29  ;;  %11105 = vmatpush1.bf16.msra.mxu1 %v12495_v55  ;;  %v12544_v29 = vcombine.high %v332_v15, %v336_v23  ;;  %v339_v55 = vld [vmem:[#allocation5 + $0x690] sm:$0xff] }
 0x3c4   :  { %10590 = vmatprep.subr.bf16.mxu0 %v12502_v37  ;;  %11106 = vmatprep.subr.bf16.mxu1 %v12504_v54  ;;  %v343_v37 = vld [vmem:[#allocation5 + $0x6b0] sm:$0xff]  ;;  %v340_v54 = vld [vmem:[#allocation5 + $0x698] sm:$0xff] }
 0x3c5   :  { %v12550_v18 = vcombine.high %v339_v55, %v343_v37  ;;  %v12549_v50 = vcombine.low %v339_v55, %v343_v37  ;;  %v12551_v51 = vcombine.low %v340_v54, %v344_v38  ;;  %v384_v55 = vld [vmem:[#allocation5 + $0x7f8] sm:$0xff] }
 0x3c7   :  { %10591 = vmatpush1.bf16.msra.mxu0 %v12501_v19  ;;  %11107 = vmatpush1.bf16.msra.mxu1 %v12503_v21  ;;  %v12552_v19 = vcombine.high %v340_v54, %v344_v38  ;;  %v347_v21 = vld [vmem:[#allocation5 + $0x6d0] sm:$0xff] }
 0x3c8   :  { %10592 = vmatprep.subr.bf16.mxu0 %v12510_v22  ;;  %11108 = vmatprep.subr.bf16.mxu1 %v12512_v45  ;;  %v351_v22 = vld [vmem:[#allocation5 + $0x6f0] sm:$0xff]  ;;  %v348_v45 = vld [vmem:[#allocation5 + $0x6d8] sm:$0xff] }
 0x3c9   :  { %v12558_v52 = vcombine.high %v347_v21, %v351_v22  ;;  %v12557_v58 = vcombine.low %v347_v21, %v351_v22  ;;  %v12559_v17 = vcombine.low %v348_v45, %v352_v49  ;;  %v392_v21 = vld [vmem:[#allocation5 + $0x838] sm:$0xff] }
 0x3cb   :  { %10593 = vmatpush1.bf16.msra.mxu0 %v12509_v2  ;;  %11109 = vmatpush1.bf16.msra.mxu1 %v12511_v4  ;;  %v12560_v2 = vcombine.high %v348_v45, %v352_v49  ;;  %v355_v4 = vld [vmem:[#allocation5 + $0x710] sm:$0xff] }
 0x3cc   :  { %10594 = vmatprep.subr.bf16.mxu0 %v12518_v28  ;;  %11110 = vmatprep.subr.bf16.mxu1 %v12520_v30  ;;  %v359_v28 = vld [vmem:[#allocation5 + $0x730] sm:$0xff]  ;;  %v356_v30 = vld [vmem:[#allocation5 + $0x718] sm:$0xff] }
 0x3cd   :  { %v12566_v20 = vcombine.high %v355_v4, %v359_v28  ;;  %v12565_v7 = vcombine.low %v355_v4, %v359_v28  ;;  %v12567_v8 = vcombine.low %v356_v30, %v360_v57  ;;  %v400_v4 = vld [vmem:[#allocation5 + $0x878] sm:$0xff] }
 0x3cf   :  { %10595 = vmatpush1.bf16.msra.mxu0 %v12517_v60  ;;  %11111 = vmatpush1.bf16.msra.mxu1 %v12519_v61  ;;  %v12568_v60 = vcombine.high %v356_v30, %v360_v57  ;;  %v363_v61 = vld [vmem:[#allocation5 + $0x750] sm:$0xff] }
 0x3d0   :  { %10596 = vmatprep.subr.bf16.mxu0 %v12526_v62  ;;  %11112 = vmatprep.subr.bf16.mxu1 %v12528_v63  ;;  %v367_v62 = vld [vmem:[#allocation5 + $0x770] sm:$0xff]  ;;  %v364_v63 = vld [vmem:[#allocation5 + $0x758] sm:$0xff] }
 0x3d1   :  { %v12574_v9 = vcombine.high %v363_v61, %v367_v62  ;;  %v12573_v35 = vcombine.low %v363_v61, %v367_v62  ;;  %v12575_v15 = vcombine.low %v364_v63, %v368_v1  ;;  %v408_v61 = vld [vmem:[#allocation5 + $0x8b8] sm:$0xff] }
 0x3d3   :  { %10597 = vmatpush1.bf16.msra.mxu0 %v12525_v10  ;;  %11113 = vmatpush1.bf16.msra.mxu1 %v12527_v11  ;;  %v12576_v10 = vcombine.high %v364_v63, %v368_v1  ;;  %v371_v11 = vld [vmem:[#allocation5 + $0x790] sm:$0xff] }
 0x3d4   :  { %10598 = vmatprep.subr.bf16.mxu0 %v12534_v12  ;;  %11114 = vmatprep.subr.bf16.mxu1 %v12536_v34  ;;  %v375_v12 = vld [vmem:[#allocation5 + $0x7b0] sm:$0xff]  ;;  %v372_v34 = vld [vmem:[#allocation5 + $0x798] sm:$0xff] }
 0x3d5   :  { %v12582_v23 = vcombine.high %v371_v11, %v375_v12  ;;  %v12581_v37 = vcombine.low %v371_v11, %v375_v12  ;;  %v12583_v54 = vcombine.low %v372_v34, %v376_v16  ;;  %v416_v11 = vld [vmem:[#allocation5 + $0x8f8] sm:$0xff] }
 0x3d7   :  { %10599 = vmatpush1.bf16.msra.mxu0 %v12533_v25  ;;  %11115 = vmatpush1.bf16.msra.mxu1 %v12535_v27  ;;  %v12584_v25 = vcombine.high %v372_v34, %v376_v16  ;;  %v379_v27 = vld [vmem:[#allocation5 + $0x7d0] sm:$0xff] }
 0x3d8   :  { %10600 = vmatprep.subr.bf16.mxu0 %v12542_v59  ;;  %11116 = vmatprep.subr.bf16.mxu1 %v12544_v29  ;;  %v383_v59 = vld [vmem:[#allocation5 + $0x7f0] sm:$0xff]  ;;  %v380_v29 = vld [vmem:[#allocation5 + $0x7d8] sm:$0xff] }
 0x3d9   :  { %v12590_v38 = vcombine.high %v379_v27, %v383_v59  ;;  %v12589_v22 = vcombine.low %v379_v27, %v383_v59  ;;  %v12591_v45 = vcombine.low %v380_v29, %v384_v55 }
 0x3db   :  { %10601 = vmatpush1.bf16.msra.mxu0 %v12541_v42  ;;  %11117 = vmatpush1.bf16.msra.mxu1 %v12543_v43  ;;  %v12592_v42 = vcombine.high %v380_v29, %v384_v55  ;;  %v387_v43 = vld [vmem:[#allocation5 + $0x810] sm:$0xff] }
 0x3dc   :  { %10602 = vmatprep.subr.bf16.mxu0 %v12550_v18  ;;  %11118 = vmatprep.subr.bf16.mxu1 %v12552_v19  ;;  %v391_v18 = vld [vmem:[#allocation5 + $0x830] sm:$0xff]  ;;  %v388_v19 = vld [vmem:[#allocation5 + $0x818] sm:$0xff] }
 0x3dd   :  { %v12598_v49 = vcombine.high %v387_v43, %v391_v18  ;;  %v12597_v28 = vcombine.low %v387_v43, %v391_v18  ;;  %v12599_v30 = vcombine.low %v388_v19, %v392_v21  ;;  %v427_v55 = vld [vmem:[#allocation5 + $0x950] sm:$0xff] }
 0x3df   :  { %10603 = vmatpush1.bf16.msra.mxu0 %v12549_v50  ;;  %11119 = vmatpush1.bf16.msra.mxu1 %v12551_v51  ;;  %v12600_v50 = vcombine.high %v388_v19, %v392_v21  ;;  %v395_v51 = vld [vmem:[#allocation5 + $0x850] sm:$0xff] }
 0x3e0   :  { %10604 = vmatprep.subr.bf16.mxu0 %v12558_v52  ;;  %11120 = vmatprep.subr.bf16.mxu1 %v12560_v2  ;;  %v399_v52 = vld [vmem:[#allocation5 + $0x870] sm:$0xff]  ;;  %v396_v2 = vld [vmem:[#allocation5 + $0x858] sm:$0xff] }
 0x3e1   :  { %v12606_v57 = vcombine.high %v395_v51, %v399_v52  ;;  %v12605_v62 = vcombine.low %v395_v51, %v399_v52  ;;  %v12607_v63 = vcombine.low %v396_v2, %v400_v4  ;;  %v435_v21 = vld [vmem:[#allocation5 + $0x990] sm:$0xff] }
 0x3e3   :  { %10605 = vmatpush1.bf16.msra.mxu0 %v12557_v58  ;;  %11121 = vmatpush1.bf16.msra.mxu1 %v12559_v17  ;;  %v12608_v58 = vcombine.high %v396_v2, %v400_v4  ;;  %v403_v17 = vld [vmem:[#allocation5 + $0x890] sm:$0xff] }
 0x3e4   :  { %10606 = vmatprep.subr.bf16.mxu0 %v12566_v20  ;;  %11122 = vmatprep.subr.bf16.mxu1 %v12568_v60  ;;  %v407_v20 = vld [vmem:[#allocation5 + $0x8b0] sm:$0xff]  ;;  %v404_v60 = vld [vmem:[#allocation5 + $0x898] sm:$0xff] }
 0x3e5   :  { %v12614_v1 = vcombine.high %v403_v17, %v407_v20  ;;  %v12613_v12 = vcombine.low %v403_v17, %v407_v20  ;;  %v443_v4 = vld [vmem:[#allocation5 + $0x9d0] sm:$0xff] }
 0x3e7   :  { %10607 = vmatpush1.bf16.msra.mxu0 %v12565_v7  ;;  %11123 = vmatpush1.bf16.msra.mxu1 %v12567_v8  ;;  %v12616_v7 = vcombine.high %v404_v60, %v408_v61  ;;  %v411_v8 = vld [vmem:[#allocation5 + $0x8d0] sm:$0xff] }
 0x3e8   :  { %10608 = vmatprep.subr.bf16.mxu0 %v12574_v9  ;;  %11124 = vmatprep.subr.bf16.mxu1 %v12576_v10  ;;  %v415_v9 = vld [vmem:[#allocation5 + $0x8f0] sm:$0xff]  ;;  %v412_v10 = vld [vmem:[#allocation5 + $0x8d8] sm:$0xff] }
 0x3e9   :  { %v12622_v34 = vcombine.high %v411_v8, %v415_v9  ;;  %v12624_v16 = vcombine.high %v412_v10, %v416_v11  ;;  %v12621_v27 = vcombine.low %v411_v8, %v415_v9  ;;  %v12623_v59 = vcombine.low %v412_v10, %v416_v11  ;;  %v459_v11 = vld [vmem:[#allocation5 + $0xa50] sm:$0xff] }
 0x3eb   :  { %10609 = vmatpush1.bf16.msra.mxu0 %v12573_v35  ;;  %11125 = vmatpush1.bf16.msra.mxu1 %v12575_v15  ;;  %v419_v35 = vld [vmem:[#allocation5 + $0x910] sm:$0xff] }
 0x3ec   :  { %10610 = vmatprep.subr.bf16.mxu0 %v12582_v23  ;;  %11126 = vmatprep.subr.bf16.mxu1 %v12584_v25  ;;  %v423_v15 = vld [vmem:[#allocation5 + $0x930] sm:$0xff]  ;;  %v420_v23 = vld [vmem:[#allocation5 + $0x918] sm:$0xff] }
 0x3ed   :  { %v424_v25 = vld [vmem:[#allocation5 + $0x938] sm:$0xff]  ;;  %v12630_v29 = vcombine.high %v419_v35, %v423_v15 }
 0x3ee   :  { %v12631_v43 = vcombine.low %v420_v23, %v424_v25 }
 0x3ef   :  { %10611 = vmatpush1.bf16.msra.mxu0 %v12581_v37  ;;  %11127 = vmatpush1.bf16.msra.mxu1 %v12583_v54  ;;  %v431_v37 = vld [vmem:[#allocation5 + $0x970] sm:$0xff]  ;;  %v428_v54 = vld [vmem:[#allocation5 + $0x958] sm:$0xff] }
 0x3f0   :  { %10612 = vmatprep.subr.bf16.mxu0 %v12590_v38  ;;  %11128 = vmatprep.subr.bf16.mxu1 %v12592_v42  ;;  %v432_v38 = vld [vmem:[#allocation5 + $0x978] sm:$0xff]  ;;  %v12629_v42 = vcombine.low %v419_v35, %v423_v15  ;;  %v12638_v18 = vcombine.high %v427_v55, %v431_v37 }
 0x3f1   :  { %v12640_v19 = vcombine.high %v428_v54, %v432_v38  ;;  %v12639_v51 = vcombine.low %v428_v54, %v432_v38  ;;  %v475_v38 = vld [vmem:[#allocation5 + $0xad0] sm:$0xff] }
 0x3f3   :  { %10613 = vmatpush1.bf16.msra.mxu0 %v12589_v22  ;;  %11129 = vmatpush1.bf16.msra.mxu1 %v12591_v45  ;;  %v439_v22 = vld [vmem:[#allocation5 + $0x9b0] sm:$0xff]  ;;  %v436_v45 = vld [vmem:[#allocation5 + $0x998] sm:$0xff] }
 0x3f4   :  { %10625 = vmatprep.subr.bf16.mxu0 %v12598_v49  ;;  %11141 = vmatprep.subr.bf16.mxu1 %v12600_v50  ;;  %v440_v49 = vld [vmem:[#allocation5 + $0x9b8] sm:$0xff]  ;;  %v12637_v50 = vcombine.low %v427_v55, %v431_v37  ;;  %v12646_v52 = vcombine.high %v435_v21, %v439_v22 }
 0x3f5   :  { %v12648_v2 = vcombine.high %v436_v45, %v440_v49  ;;  %v12647_v17 = vcombine.low %v436_v45, %v440_v49  ;;  %v483_v49 = vld [vmem:[#allocation5 + $0xb10] sm:$0xff] }
 0x3f6   :  { %10615 = vmatmul.mubr.bf16.vlgmr.msra.gmra.mrb[4].mxu0 %v14596_v31  ;;  %11131 = vmatmul.mubr.bf16.vlgmr.msra.gmra.mrb[4].mxu1 %v14596_v31  ;;  %v12615_v31 = vcombine.low %v404_v60, %v408_v61  ;;  %v451_v61 = vld [vmem:[#allocation5 + $0xa10] sm:$0xff] }
 0x3f7   :  { %10626 = vmatpush1.bf16.msra.mxu0 %v12597_v28  ;;  %11142 = vmatpush1.bf16.msra.mxu1 %v12599_v30  ;;  %v447_v28 = vld [vmem:[#allocation5 + $0x9f0] sm:$0xff]  ;;  %v444_v30 = vld [vmem:[#allocation5 + $0x9d8] sm:$0xff] }
 0x3f8   :  { %10627 = vmatprep.subr.bf16.mxu0 %v12606_v57  ;;  %11143 = vmatprep.subr.bf16.mxu1 %v12608_v58  ;;  %v448_v57 = vld [vmem:[#allocation5 + $0x9f8] sm:$0xff]  ;;  %v12645_v58 = vcombine.low %v435_v21, %v439_v22  ;;  %v12654_v20 = vcombine.high %v443_v4, %v447_v28 }
 0x3f9   :  { %10657 = vmatprep.mubr.bf16.mxu0 %v14600_v40  ;;  %11173 = vmatprep.mubr.bf16.mxu1 %v14600_v40  ;;  %v12632_v40 = vcombine.high %v420_v23, %v424_v25  ;;  %v12656_v60 = vcombine.high %v444_v30, %v448_v57  ;;  %v12655_v8 = vcombine.low %v444_v30, %v448_v57  ;;  %v467_v25 = vld [vmem:[#allocation5 + $0xa90] sm:$0xff] }
 0x3fa   :  { %v491_v57 = vld [vmem:[#allocation5 + $0xb50] sm:$0xff] }
 0x3fb   :  { %10628 = vmatpush1.bf16.msra.mxu0 %v12605_v62  ;;  %11144 = vmatpush1.bf16.msra.mxu1 %v12607_v63  ;;  %v455_v62 = vld [vmem:[#allocation5 + $0xa30] sm:$0xff]  ;;  %v452_v63 = vld [vmem:[#allocation5 + $0xa18] sm:$0xff] }
 0x3fc   :  { %10629 = vmatprep.subr.bf16.mxu0 %v12614_v1  ;;  %11145 = vmatprep.subr.bf16.mxu1 %v12616_v7  ;;  %v456_v1 = vld [vmem:[#allocation5 + $0xa38] sm:$0xff]  ;;  %v12653_v7 = vcombine.low %v443_v4, %v447_v28  ;;  %v12662_v9 = vcombine.high %v451_v61, %v455_v62 }
 0x3fd   :  { %v12664_v10 = vcombine.high %v452_v63, %v456_v1  ;;  %v12663_v35 = vcombine.low %v452_v63, %v456_v1  ;;  %v499_v1 = vld [vmem:[#allocation5 + $0xb90] sm:$0xff] }
 0x3ff   :  { %10630 = vmatpush1.bf16.msra.mxu0 %v12613_v12  ;;  %11146 = vmatpush1.bf16.msra.mxu1 %v12615_v31  ;;  %v463_v12 = vld [vmem:[#allocation5 + $0xa70] sm:$0xff]  ;;  %v460_v31 = vld [vmem:[#allocation5 + $0xa58] sm:$0xff] }
 0x400   :  { %10631 = vmatprep.subr.bf16.mxu0 %v12622_v34  ;;  %11147 = vmatprep.subr.bf16.mxu1 %v12624_v16  ;;  %v464_v34 = vld [vmem:[#allocation5 + $0xa78] sm:$0xff]  ;;  %v12661_v16 = vcombine.low %v451_v61, %v455_v62  ;;  %v12670_v15 = vcombine.high %v459_v11, %v463_v12 }
 0x401   :  { %v12672_v23 = vcombine.high %v460_v31, %v464_v34  ;;  %v12671_v55 = vcombine.low %v460_v31, %v464_v34  ;;  %v507_v34 = vld [vmem:[#allocation5 + $0xbd0] sm:$0xff] }
 0x403   :  { %10632 = vmatpush1.bf16.msra.mxu0 %v12621_v27  ;;  %11148 = vmatpush1.bf16.msra.mxu1 %v12623_v59  ;;  %v471_v27 = vld [vmem:[#allocation5 + $0xab0] sm:$0xff]  ;;  %v468_v59 = vld [vmem:[#allocation5 + $0xa98] sm:$0xff] }
 0x404   :  { %10633 = vmatprep.subr.bf16.mxu0 %v12630_v29  ;;  %11149 = vmatprep.subr.bf16.mxu1 %v12632_v40  ;;  %v472_v29 = vld [vmem:[#allocation5 + $0xab8] sm:$0xff]  ;;  %v12669_v40 = vcombine.low %v459_v11, %v463_v12  ;;  %v12678_v37 = vcombine.high %v467_v25, %v471_v27 }
 0x405   :  { %v12680_v54 = vcombine.high %v468_v59, %v472_v29  ;;  %v12679_v21 = vcombine.low %v468_v59, %v472_v29  ;;  %v515_v29 = vld [vmem:[#allocation5 + $0xc10] sm:$0xff] }
 0x407   :  { %10634 = vmatpush1.bf16.msra.mxu0 %v12629_v42  ;;  %11150 = vmatpush1.bf16.msra.mxu1 %v12631_v43  ;;  %v479_v42 = vld [vmem:[#allocation5 + $0xaf0] sm:$0xff]  ;;  %v476_v43 = vld [vmem:[#allocation5 + $0xad8] sm:$0xff] }
 0x408   :  { %10635 = vmatprep.subr.bf16.mxu0 %v12638_v18  ;;  %11151 = vmatprep.subr.bf16.mxu1 %v12640_v19  ;;  %v480_v18 = vld [vmem:[#allocation5 + $0xaf8] sm:$0xff]  ;;  %v12677_v19 = vcombine.low %v467_v25, %v471_v27  ;;  %v12686_v22 = vcombine.high %v475_v38, %v479_v42 }
 0x409   :  { %v12688_v45 = vcombine.high %v476_v43, %v480_v18  ;;  %v12687_v4 = vcombine.low %v476_v43, %v480_v18  ;;  %v523_v18 = vld [vmem:[#allocation5 + $0xc50] sm:$0xff] }
 0x40b   :  { %10636 = vmatpush1.bf16.msra.mxu0 %v12637_v50  ;;  %11152 = vmatpush1.bf16.msra.mxu1 %v12639_v51  ;;  %v487_v50 = vld [vmem:[#allocation5 + $0xb30] sm:$0xff]  ;;  %v484_v51 = vld [vmem:[#allocation5 + $0xb18] sm:$0xff] }
 0x40c   :  { %10637 = vmatprep.subr.bf16.mxu0 %v12646_v52  ;;  %11153 = vmatprep.subr.bf16.mxu1 %v12648_v2  ;;  %v488_v52 = vld [vmem:[#allocation5 + $0xb38] sm:$0xff]  ;;  %v12685_v2 = vcombine.low %v475_v38, %v479_v42  ;;  %v12694_v28 = vcombine.high %v483_v49, %v487_v50 }
 0x40d   :  { %v12696_v30 = vcombine.high %v484_v51, %v488_v52  ;;  %v12695_v61 = vcombine.low %v484_v51, %v488_v52  ;;  %v531_v52 = vld [vmem:[#allocation5 + $0xc90] sm:$0xff] }
 0x40f   :  { %10638 = vmatpush1.bf16.msra.mxu0 %v12645_v58  ;;  %11154 = vmatpush1.bf16.msra.mxu1 %v12647_v17  ;;  %v495_v58 = vld [vmem:[#allocation5 + $0xb70] sm:$0xff]  ;;  %v492_v17 = vld [vmem:[#allocation5 + $0xb58] sm:$0xff] }
 0x410   :  { %10639 = vmatprep.subr.bf16.mxu0 %v12654_v20  ;;  %11155 = vmatprep.subr.bf16.mxu1 %v12656_v60  ;;  %v496_v20 = vld [vmem:[#allocation5 + $0xb78] sm:$0xff]  ;;  %v12693_v60 = vcombine.low %v483_v49, %v487_v50  ;;  %v12702_v62 = vcombine.high %v491_v57, %v495_v58 }
 0x411   :  { %v12704_v63 = vcombine.high %v492_v17, %v496_v20  ;;  %v12703_v11 = vcombine.low %v492_v17, %v496_v20  ;;  %v539_v20 = vld [vmem:[#allocation5 + $0xcd0] sm:$0xff] }
 0x413   :  { %10640 = vmatpush1.bf16.msra.mxu0 %v12653_v7  ;;  %11156 = vmatpush1.bf16.msra.mxu1 %v12655_v8  ;;  %v503_v7 = vld [vmem:[#allocation5 + $0xbb0] sm:$0xff]  ;;  %v500_v8 = vld [vmem:[#allocation5 + $0xb98] sm:$0xff] }
 0x414   :  { %10641 = vmatprep.subr.bf16.mxu0 %v12662_v9  ;;  %11157 = vmatprep.subr.bf16.mxu1 %v12664_v10  ;;  %v504_v9 = vld [vmem:[#allocation5 + $0xbb8] sm:$0xff]  ;;  %v12701_v10 = vcombine.low %v491_v57, %v495_v58  ;;  %v12710_v12 = vcombine.high %v499_v1, %v503_v7 }
 0x415   :  { %v12712_v31 = vcombine.high %v500_v8, %v504_v9  ;;  %v12711_v25 = vcombine.low %v500_v8, %v504_v9  ;;  %v547_v9 = vld [vmem:[#allocation5 + $0xd10] sm:$0xff] }
 0x417   :  { %10642 = vmatpush1.bf16.msra.mxu0 %v12661_v16  ;;  %11158 = vmatpush1.bf16.msra.mxu1 %v12663_v35  ;;  %v511_v16 = vld [vmem:[#allocation5 + $0xbf0] sm:$0xff]  ;;  %v508_v35 = vld [vmem:[#allocation5 + $0xbd8] sm:$0xff] }
 0x418   :  { %10643 = vmatprep.subr.bf16.mxu0 %v12670_v15  ;;  %11159 = vmatprep.subr.bf16.mxu1 %v12672_v23  ;;  %v512_v15 = vld [vmem:[#allocation5 + $0xbf8] sm:$0xff]  ;;  %v12709_v23 = vcombine.low %v499_v1, %v503_v7  ;;  %v12718_v27 = vcombine.high %v507_v34, %v511_v16 }
 0x419   :  { %v12720_v59 = vcombine.high %v508_v35, %v512_v15  ;;  %v12719_v38 = vcombine.low %v508_v35, %v512_v15  ;;  %v555_v15 = vld [vmem:[#allocation5 + $0xd50] sm:$0xff] }
 0x41b   :  { %10644 = vmatpush1.bf16.msra.mxu0 %v12669_v40  ;;  %11160 = vmatpush1.bf16.msra.mxu1 %v12671_v55  ;;  %v519_v40 = vld [vmem:[#allocation5 + $0xc30] sm:$0xff]  ;;  %v516_v55 = vld [vmem:[#allocation5 + $0xc18] sm:$0xff] }
 0x41c   :  { %10645 = vmatprep.subr.bf16.mxu0 %v12678_v37  ;;  %11161 = vmatprep.subr.bf16.mxu1 %v12680_v54  ;;  %v520_v37 = vld [vmem:[#allocation5 + $0xc38] sm:$0xff]  ;;  %v12717_v54 = vcombine.low %v507_v34, %v511_v16  ;;  %v12726_v42 = vcombine.high %v515_v29, %v519_v40 }
 0x41d   :  { %v12728_v43 = vcombine.high %v516_v55, %v520_v37  ;;  %v12727_v49 = vcombine.low %v516_v55, %v520_v37 }
 0x41f   :  { %10646 = vmatpush1.bf16.msra.mxu0 %v12677_v19  ;;  %11162 = vmatpush1.bf16.msra.mxu1 %v12679_v21  ;;  %v527_v19 = vld [vmem:[#allocation5 + $0xc70] sm:$0xff]  ;;  %v524_v21 = vld [vmem:[#allocation5 + $0xc58] sm:$0xff] }
 0x420   :  { %10647 = vmatprep.subr.bf16.mxu0 %v12686_v22  ;;  %11163 = vmatprep.subr.bf16.mxu1 %v12688_v45  ;;  %v528_v22 = vld [vmem:[#allocation5 + $0xc78] sm:$0xff]  ;;  %v12725_v45 = vcombine.low %v515_v29, %v519_v40  ;;  %v12734_v50 = vcombine.high %v523_v18, %v527_v19  ;;  %v1665_v40 = vld [vmem:[#allocation7] sm:$0xff] }
 0x421   :  { %v12736_v51 = vcombine.high %v524_v21, %v528_v22  ;;  %v12735_v57 = vcombine.low %v524_v21, %v528_v22  ;;  %v564_v22 = vld [vmem:[#allocation5 + $0xd98] sm:$0xff] }
 0x423   :  { %10648 = vmatpush1.bf16.msra.mxu0 %v12685_v2  ;;  %11164 = vmatpush1.bf16.msra.mxu1 %v12687_v4  ;;  %v535_v2 = vld [vmem:[#allocation5 + $0xcb0] sm:$0xff]  ;;  %v532_v4 = vld [vmem:[#allocation5 + $0xc98] sm:$0xff] }
 0x424   :  { %10649 = vmatprep.subr.bf16.mxu0 %v12694_v28  ;;  %11165 = vmatprep.subr.bf16.mxu1 %v12696_v30  ;;  %v536_v28 = vld [vmem:[#allocation5 + $0xcb8] sm:$0xff]  ;;  %v12733_v30 = vcombine.low %v523_v18, %v527_v19  ;;  %v12742_v58 = vcombine.high %v531_v52, %v535_v2  ;;  %v12741_v1 = vcombine.low %v531_v52, %v535_v2  ;;  %v563_v18 = vld [vmem:[#allocation5 + $0xd90] sm:$0xff] }
 0x425   :  { %v12744_v17 = vcombine.high %v532_v4, %v536_v28  ;;  %v567_v19 = vld [vmem:[#allocation5 + $0xdb0] sm:$0xff] }
 0x427   :  { %10650 = vmatpush1.bf16.msra.mxu0 %v12693_v60  ;;  %11166 = vmatpush1.bf16.msra.mxu1 %v12695_v61  ;;  %v543_v60 = vld [vmem:[#allocation5 + $0xcf0] sm:$0xff]  ;;  %v540_v61 = vld [vmem:[#allocation5 + $0xcd8] sm:$0xff] }
 0x428   :  { %10651 = vmatprep.subr.bf16.mxu0 %v12702_v62  ;;  %11167 = vmatprep.subr.bf16.mxu1 %v12704_v63  ;;  %v544_v62 = vld [vmem:[#allocation5 + $0xcf8] sm:$0xff]  ;;  %v1667_v63 = vlaneseq  ;;  %v12750_v7 = vcombine.high %v539_v20, %v543_v60  ;;  %v12749_v34 = vcombine.low %v539_v20, %v543_v60 }
 0x429   :  { %v12752_v8 = vcombine.high %v540_v61, %v544_v62  ;;  %v12751_v16 = vcombine.low %v540_v61, %v544_v62  ;;  %v572_v61 = vld [vmem:[#allocation5 + $0xdd8] sm:$0xff] }
 0x42a   :  { %v576_v62 = vld [vmem:[#allocation5 + $0xdf8] sm:$0xff] }
 0x42b   :  { %10652 = vmatpush1.bf16.msra.mxu0 %v12701_v10  ;;  %11168 = vmatpush1.bf16.msra.mxu1 %v12703_v11  ;;  %v551_v10 = vld [vmem:[#allocation5 + $0xd30] sm:$0xff]  ;;  %v548_v11 = vld [vmem:[#allocation5 + $0xd18] sm:$0xff] }
 0x42c   :  { %10653 = vmatprep.subr.bf16.mxu0 %v12710_v12  ;;  %11169 = vmatprep.subr.bf16.mxu1 %v12712_v31  ;;  %v552_v12 = vld [vmem:[#allocation5 + $0xd38] sm:$0xff]  ;;  %v14770_v31 = vshrl.u32 %v1667_v63, 7  ;;  %v12757_v29 = vcombine.low %v547_v9, %v551_v10 }
 0x42d   :  { %v12760_v35 = vcombine.high %v548_v11, %v552_v12 }
 0x42e   :  { %v1677_v55 = vsub.s32 2, %v14770_v31  ;;  %v1673_v37 = vsub.s32 1, %v14770_v31 }
 0x42f   :  { %10654 = vmatpush1.bf16.msra.mxu0 %v12709_v23  ;;  %11170 = vmatpush1.bf16.msra.mxu1 %v12711_v25  ;;  %v559_v23 = vld [vmem:[#allocation5 + $0xd70] sm:$0xff]  ;;  %v1669_v25 = vsub.s32 0, %v14770_v31 }
 0x430   :  { %10655 = vmatprep.subr.bf16.mxu0 %v12718_v27  ;;  %11171 = vmatprep.subr.bf16.mxu1 %v12720_v59  ;;  %v556_v27 = vld [vmem:[#allocation5 + $0xd58] sm:$0xff] }
 0x431   :  { %v560_v59 = vld [vmem:[#allocation5 + $0xd78] sm:$0xff]  ;;  %v1670_v21 = vrot.slane %v1665_v40, %v1669_v25  ;;  %v12784_v25 = vcombine.high %v572_v61, %v576_v62 }
 0x432   :  { %v12767_v2 = vcombine.low %v556_v27, %v560_v59 }
 0x433   :  { %10656 = vmatpush1.bf16.msra.mxu0 %v12717_v54  ;;  %11172 = vmatpush1.bf16.msra.mxu1 %v12719_v38  ;;  %v12759_v54 = vcombine.low %v548_v11, %v552_v12  ;;  %v1681_v38 = vsub.s32 3, %v14770_v31 }
 0x434   :  { %10668 = vmatprep.subr.bf16.mxu0 %v12726_v42  ;;  %11184 = vmatprep.subr.bf16.mxu1 %v12728_v43  ;;  %v12766_v42 = vcombine.high %v555_v15, %v559_v23  ;;  %v12768_v43 = vcombine.high %v556_v27, %v560_v59  ;;  %v579_v27 = vld [vmem:[#allocation5 + $0xe10] sm:$0xff] }
 0x435   :  { %v1682_v52 = vrot.slane %v1665_v40, %v1681_v38  ;;  %v583_v59 = vld [vmem:[#allocation5 + $0xe30] sm:$0xff]  ;;  %v584_v38 = vld [vmem:[#allocation5 + $0xe38] sm:$0xff] }
 0x436   :  { %10658 = vmatmul.mubr.bf16.vlgmr.msra.gmra.mrb[4].mxu0 %v14608_v44  ;;  %11174 = vmatmul.mubr.bf16.vlgmr.msra.gmra.mrb[4].mxu1 %v14608_v44  ;;  %v12743_v44 = vcombine.low %v532_v4, %v536_v28  ;;  %v12774_v4 = vcombine.high %v563_v18, %v567_v19 }
 0x437   :  { %10669 = vmatpush1.bf16.msra.mxu0 %v12725_v45  ;;  %11185 = vmatpush1.bf16.msra.mxu1 %v12727_v49  ;;  %v568_v45 = vld [vmem:[#allocation5 + $0xdb8] sm:$0xff]  ;;  %v1678_v49 = vrot.slane %v1665_v40, %v1677_v55 }
 0x438   :  { %10670 = vmatprep.subr.bf16.mxu0 %v12734_v50  ;;  %11186 = vmatprep.subr.bf16.mxu1 %v12736_v51  ;;  %v1674_v50 = vrot.slane %v1665_v40, %v1673_v37  ;;  %v12765_v51 = vcombine.low %v555_v15, %v559_v23  ;;  %v12783_v37 = vcombine.low %v572_v61, %v576_v62  ;;  %v595_v61 = vld [vmem:[#allocation5 + $0xe90] sm:$0xff] }
 0x439   :  { %10700 = vmatprep.mubr.bf16.mxu0 %v14616_v56  ;;  %11216 = vmatprep.mubr.bf16.mxu1 %v14616_v56  ;;  %v12758_v56 = vcombine.high %v547_v9, %v551_v10  ;;  %v12775_v9 = vcombine.low %v564_v22, %v568_v45  ;;  %v599_v62 = vld [vmem:[#allocation5 + $0xeb0] sm:$0xff] }
 0x43b   :  { %10671 = vmatpush1.bf16.msra.mxu0 %v12733_v30  ;;  %11187 = vmatpush1.bf16.msra.mxu1 %v12735_v57  ;;  %v12776_v30 = vcombine.high %v564_v22, %v568_v45  ;;  %v571_v57 = vld [vmem:[#allocation5 + $0xdd0] sm:$0xff] }
 0x43c   :  { %10672 = vmatprep.subr.bf16.mxu0 %v12742_v58  ;;  %11188 = vmatprep.subr.bf16.mxu1 %v12744_v17  ;;  %v575_v58 = vld [vmem:[#allocation5 + $0xdf0] sm:$0xff] }
 0x43d   :  { %v12781_v23 = vcombine.low %v571_v57, %v575_v58 }
 0x43f   :  { %10673 = vmatpush1.bf16.msra.mxu0 %v12741_v1  ;;  %11189 = vmatpush1.bf16.msra.mxu1 %v12743_v44 }
 0x440   :  { %10674 = vmatprep.subr.bf16.mxu0 %v12750_v7  ;;  %11190 = vmatprep.subr.bf16.mxu1 %v12752_v8  ;;  %v12773_v8 = vcombine.low %v563_v18, %v567_v19 }
 0x443   :  { %10675 = vmatpush1.bf16.msra.mxu0 %v12749_v34  ;;  %11191 = vmatpush1.bf16.msra.mxu1 %v12751_v16  ;;  %v12782_v16 = vcombine.high %v571_v57, %v575_v58  ;;  %v592_v57 = vld [vmem:[#allocation5 + $0xe78] sm:$0xff]  ;;  %v12789_v58 = vcombine.low %v579_v27, %v583_v59 }
 0x444   :  { %10676 = vmatprep.subr.bf16.mxu0 %v12758_v56  ;;  %11192 = vmatprep.subr.bf16.mxu1 %v12760_v35 }
 0x447   :  { %10677 = vmatpush1.bf16.msra.mxu0 %v12757_v29  ;;  %11193 = vmatpush1.bf16.msra.mxu1 %v12759_v54  ;;  %v580_v54 = vld [vmem:[#allocation5 + $0xe18] sm:$0xff] }
 0x448   :  { %10678 = vmatprep.subr.bf16.mxu0 %v12766_v42  ;;  %11194 = vmatprep.subr.bf16.mxu1 %v12768_v43 }
 0x449   :  { %v10014_v28 = vpop.f32.mrb[0].mxu0  ;;  %v10530_v20 = vpop.f32.mrb[0].mxu1 }
 0x44a   :  { %v14028_v17 = vadd.f32 %v10014_v28, %v1670_v21  ;;  %v10016_v60 = vpop.f32.mrb[1].mxu0  ;;  %v14032_v63 = vadd.f32 %v10530_v20, %v1678_v49  ;;  %v10532_v44 = vpop.f32.mrb[1].mxu1 }
 0x44b   :  { %v14029_v1 = vadd.f32 %v10016_v60, %v1674_v50  ;;  %v10018_v7 = vpop.f32.mrb[2].mxu0  ;;  %10679 = vmatpush1.bf16.msra.mxu0 %v12765_v51  ;;  %v14033_v10 = vadd.f32 %v10532_v44, %v1682_v52  ;;  %v10534_v12 = vpop.f32.mrb[2].mxu1  ;;  %11195 = vmatpush1.bf16.msra.mxu1 %v12767_v2  ;;  %v587_v2 = vld [vmem:[#allocation5 + $0xe50] sm:$0xff] }
 0x44c   :  { %v14030_v11 = vadd.f32 %v10018_v7, %v1670_v21  ;;  %v10020_v34 = vpop.f32.mrb[3].mxu0  ;;  %10680 = vmatprep.subr.bf16.mxu0 %v12774_v4  ;;  %v14034_v56 = vadd.f32 %v10534_v12, %v1678_v49  ;;  %v10536_v15 = vpop.f32.mrb[3].mxu1  ;;  %11196 = vmatprep.subr.bf16.mxu1 %v12776_v30  ;;  %v11571_v29 = vmax.f32 %v14028_v17, 0.0  ;;  %v11573_v42 = vmax.f32 %v14032_v63, 0.0  ;;  %v591_v4 = vld [vmem:[#allocation5 + $0xe70] sm:$0xff]  ;;  %v588_v30 = vld [vmem:[#allocation5 + $0xe58] sm:$0xff] }
 0x44d   :  { %v14031_v35 = vadd.f32 %v10020_v34, %v1674_v50  ;;  %v14035_v55 = vadd.f32 %v10536_v15, %v1682_v52  ;;  %v11572_v43 = vmax.f32 %v14029_v1, 0.0  ;;  %v11574_v21 = vmax.f32 %v14033_v10, 0.0  ;;  %v596_v63 = vld [vmem:[#allocation5 + $0xe98] sm:$0xff]  ;;  %v603_v10 = vld [vmem:[#allocation5 + $0xed0] sm:$0xff] }
 0x44e   :  { %v11579_v40 = vmax.f32 %v14030_v11, 0.0  ;;  %v11581_v18 = vmax.f32 %v14034_v56, 0.0  ;;  %v12790_v49 = vcombine.high %v579_v27, %v583_v59  ;;  %v12792_v52 = vcombine.high %v580_v54, %v584_v38  ;;  %v600_v1 = vld [vmem:[#allocation5 + $0xeb8] sm:$0xff]  ;;  %v607_v11 = vld [vmem:[#allocation5 + $0xef0] sm:$0xff] }
 0x44f   :  { %v11580_v19 = vmax.f32 %v14031_v35, 0.0  ;;  %10681 = vmatpush1.bf16.msra.mxu0 %v12773_v8  ;;  %v11582_v45 = vmax.f32 %v14035_v55, 0.0  ;;  %11197 = vmatpush1.bf16.msra.mxu1 %v12775_v9  ;;  %v12791_v17 = vcombine.low %v580_v54, %v584_v38  ;;  %v12798_v20 = vcombine.high %v587_v2, %v591_v4  ;;  %v604_v12 = vld [vmem:[#allocation5 + $0xed8] sm:$0xff]  ;;  %v619_v54 = vld [vmem:[#allocation5 + $0xf50] sm:$0xff] }
 0x450   :  { %v14776_v22 = vpack.c.bf16 %v11579_v40, %v11571_v29  ;;  %10682 = vmatprep.subr.bf16.mxu0 %v12782_v16  ;;  %v14778_v50 = vpack.c.bf16 %v11581_v18, %v11573_v42  ;;  %11198 = vmatprep.subr.bf16.mxu1 %v12784_v25  ;;  %v12800_v60 = vcombine.high %v588_v30, %v592_v57  ;;  %v608_v34 = vld [vmem:[#allocation5 + $0xef8] sm:$0xff]  ;;  %v615_v25 = vld [vmem:[#allocation5 + $0xf30] sm:$0xff] }
 0x451   :  { %v14780_v51 = vpack.c.bf16 %v11580_v19, %v11572_v43  ;;  %v14782_v28 = vpack.c.bf16 %v11582_v45, %v11574_v21  ;;  %v12797_v44 = vcombine.low %v587_v2, %v591_v4  ;;  %v12799_v7 = vcombine.low %v588_v30, %v592_v57  ;;  %v612_v27 = vld [vmem:[#allocation5 + $0xf18] sm:$0xff]  ;;  %v623_v38 = vld [vmem:[#allocation5 + $0xf70] sm:$0xff] }
 0x452   :  { %v12806_v8 = vcombine.high %v595_v61, %v599_v62  ;;  %v12808_v9 = vcombine.high %v596_v63, %v600_v1  ;;  %v12805_v16 = vcombine.low %v595_v61, %v599_v62  ;;  %v12807_v56 = vcombine.low %v596_v63, %v600_v1  ;;  %v616_v59 = vld [vmem:[#allocation5 + $0xf38] sm:$0xff] }
 0x453   :  { %10683 = vmatpush1.bf16.msra.mxu0 %v12781_v23  ;;  %11199 = vmatpush1.bf16.msra.mxu1 %v12783_v37  ;;  %v12814_v35 = vcombine.high %v603_v10, %v607_v11  ;;  %v12816_v15 = vcombine.high %v604_v12, %v608_v34  ;;  %v611_v23 = vld [vmem:[#allocation5 + $0xf10] sm:$0xff]  ;;  %v12813_v29 = vcombine.low %v603_v10, %v607_v11  ;;  %v620_v42 = vld [vmem:[#allocation5 + $0xf58] sm:$0xff] }
 0x454   :  { %10684 = vmatprep.subr.bf16.mxu0 %v12790_v49  ;;  %11200 = vmatprep.subr.bf16.mxu1 %v12792_v52  ;;  %v12815_v40 = vcombine.low %v604_v12, %v608_v34  ;;  %v12822_v55 = vcombine.high %v611_v23, %v615_v25  ;;  %v12824_v37 = vcombine.high %v612_v27, %v616_v59  ;;  %v624_v43 = vld [vmem:[#allocation5 + $0xf78] sm:$0xff]  ;;  %v627_v49 = vld [vmem:[#allocation5 + $0xf90] sm:$0xff] }
 0x455   :  { %v12821_v18 = vcombine.low %v611_v23, %v615_v25  ;;  %v12823_v19 = vcombine.low %v612_v27, %v616_v59  ;;  %v12830_v21 = vcombine.high %v619_v54, %v623_v38  ;;  %v12832_v45 = vcombine.high %v620_v42, %v624_v43  ;;  %v631_v52 = vld [vmem:[#allocation5 + $0xfb0] sm:$0xff]  ;;  %v628_v2 = vld [vmem:[#allocation5 + $0xf98] sm:$0xff] }
 0x456   :  { %v632_v4 = vld [vmem:[#allocation5 + $0xfb8] sm:$0xff]  ;;  %v12829_v30 = vcombine.low %v619_v54, %v623_v38  ;;  %v12831_v57 = vcombine.low %v620_v42, %v624_v43  ;;  %v12837_v63 = vcombine.low %v627_v49, %v631_v52 }
 0x457   :  { %10685 = vmatpush1.bf16.msra.mxu0 %v12789_v58  ;;  %11201 = vmatpush1.bf16.msra.mxu1 %v12791_v17  ;;  %v12838_v58 = vcombine.high %v627_v49, %v631_v52  ;;  %v12840_v17 = vcombine.high %v628_v2, %v632_v4  ;;  %v636_v61 = vld [vmem:[#allocation5 + $0xfd8] sm:$0xff]  ;;  %v12839_v1 = vcombine.low %v628_v2, %v632_v4 }
 0x458   :  { %10686 = vmatprep.subr.bf16.mxu0 %v12798_v20  ;;  %11202 = vmatprep.subr.bf16.mxu1 %v12800_v60  ;;  %v635_v20 = vld [vmem:[#allocation5 + $0xfd0] sm:$0xff]  ;;  %v640_v62 = vld [vmem:[#allocation5 + $0xff8] sm:$0xff] }
 0x459   :  { %v639_v60 = vld [vmem:[#allocation5 + $0xff0] sm:$0xff]  ;;  %v644_v10 = vld [vmem:[#allocation5 + $0x1018] sm:$0xff]  ;;  %v12847_v34 = vcombine.low %v636_v61, %v640_v62 }
 0x45a   :  { %v648_v11 = vld [vmem:[#allocation5 + $0x1038] sm:$0xff]  ;;  %v12845_v12 = vcombine.low %v635_v20, %v639_v60 }
 0x45b   :  { %10687 = vmatpush1.bf16.msra.mxu0 %v12797_v44  ;;  %11203 = vmatpush1.bf16.msra.mxu1 %v12799_v7  ;;  %v12846_v44 = vcombine.high %v635_v20, %v639_v60  ;;  %v12848_v7 = vcombine.high %v636_v61, %v640_v62  ;;  %v652_v23 = vld [vmem:[#allocation5 + $0x1058] sm:$0xff]  ;;  %v12855_v59 = vcombine.low %v644_v10, %v648_v11 }
 0x45c   :  { %10688 = vmatprep.subr.bf16.mxu0 %v12806_v8  ;;  %11204 = vmatprep.subr.bf16.mxu1 %v12808_v9  ;;  %v643_v8 = vld [vmem:[#allocation5 + $0x1010] sm:$0xff]  ;;  %v656_v25 = vld [vmem:[#allocation5 + $0x1078] sm:$0xff] }
 0x45d   :  { %v647_v9 = vld [vmem:[#allocation5 + $0x1030] sm:$0xff]  ;;  %v660_v54 = vld [vmem:[#allocation5 + $0x1098] sm:$0xff]  ;;  %v12863_v43 = vcombine.low %v652_v23, %v656_v25 }
 0x45e   :  { %v12853_v27 = vcombine.low %v643_v8, %v647_v9  ;;  %v664_v38 = vld [vmem:[#allocation5 + $0x10b8] sm:$0xff] }
 0x45f   :  { %10689 = vmatpush1.bf16.msra.mxu0 %v12805_v16  ;;  %11205 = vmatpush1.bf16.msra.mxu1 %v12807_v56  ;;  %v12854_v16 = vcombine.high %v643_v8, %v647_v9  ;;  %v12856_v56 = vcombine.high %v644_v10, %v648_v11  ;;  %v668_v49 = vld [vmem:[#allocation5 + $0x10d8] sm:$0xff] }
 0x460   :  { %10690 = vmatprep.subr.bf16.mxu0 %v12814_v35  ;;  %11206 = vmatprep.subr.bf16.mxu1 %v12816_v15  ;;  %v651_v35 = vld [vmem:[#allocation5 + $0x1050] sm:$0xff]  ;;  %v672_v52 = vld [vmem:[#allocation5 + $0x10f8] sm:$0xff] }
 0x461   :  { %v655_v15 = vld [vmem:[#allocation5 + $0x1070] sm:$0xff]  ;;  %v680_v20 = vld [vmem:[#allocation5 + $0x1138] sm:$0xff]  ;;  %v12879_v61 = vcombine.low %v668_v49, %v672_v52 }
 0x462   :  { %v12861_v42 = vcombine.low %v651_v35, %v655_v15 }
 0x463   :  { %10691 = vmatpush1.bf16.msra.mxu0 %v12813_v29  ;;  %11207 = vmatpush1.bf16.msra.mxu1 %v12815_v40  ;;  %v12862_v29 = vcombine.high %v651_v35, %v655_v15  ;;  %v12864_v40 = vcombine.high %v652_v23, %v656_v25 }
 0x464   :  { %10692 = vmatprep.subr.bf16.mxu0 %v12822_v55  ;;  %11208 = vmatprep.subr.bf16.mxu1 %v12824_v37  ;;  %v659_v55 = vld [vmem:[#allocation5 + $0x1090] sm:$0xff] }
 0x465   :  { %v663_v37 = vld [vmem:[#allocation5 + $0x10b0] sm:$0xff] }
 0x466   :  { %v12869_v2 = vcombine.low %v659_v55, %v663_v37 }
 0x467   :  { %10693 = vmatpush1.bf16.msra.mxu0 %v12821_v18  ;;  %11209 = vmatpush1.bf16.msra.mxu1 %v12823_v19  ;;  %v12870_v18 = vcombine.high %v659_v55, %v663_v37  ;;  %v12872_v19 = vcombine.high %v660_v54, %v664_v38 }
 0x468   :  { %10694 = vmatprep.subr.bf16.mxu0 %v12830_v21  ;;  %11210 = vmatprep.subr.bf16.mxu1 %v12832_v45  ;;  %v667_v21 = vld [vmem:[#allocation5 + $0x10d0] sm:$0xff] }
 0x469   :  { %v671_v45 = vld [vmem:[#allocation5 + $0x10f0] sm:$0xff] }
 0x46a   :  { %v12878_v4 = vcombine.high %v667_v21, %v671_v45  ;;  %v12877_v60 = vcombine.low %v667_v21, %v671_v45 }
 0x46b   :  { %10695 = vmatpush1.bf16.msra.mxu0 %v12829_v30  ;;  %11211 = vmatpush1.bf16.msra.mxu1 %v12831_v57  ;;  %v12880_v30 = vcombine.high %v668_v49, %v672_v52  ;;  %v675_v57 = vld [vmem:[#allocation5 + $0x1110] sm:$0xff] }
 0x46c   :  { %10696 = vmatprep.subr.bf16.mxu0 %v12838_v58  ;;  %11212 = vmatprep.subr.bf16.mxu1 %v12840_v17  ;;  %v679_v58 = vld [vmem:[#allocation5 + $0x1130] sm:$0xff]  ;;  %v676_v17 = vld [vmem:[#allocation5 + $0x1118] sm:$0xff] }
 0x46d   :  { %v12886_v62 = vcombine.high %v675_v57, %v679_v58  ;;  %v12885_v8 = vcombine.low %v675_v57, %v679_v58  ;;  %v12887_v9 = vcombine.low %v676_v17, %v680_v20 }
 0x46f   :  { %10697 = vmatpush1.bf16.msra.mxu0 %v12837_v63  ;;  %11213 = vmatpush1.bf16.msra.mxu1 %v12839_v1  ;;  %v683_v63 = vld [vmem:[#allocation5 + $0x1150] sm:$0xff] }
 0x470   :  { %10698 = vmatprep.subr.bf16.mxu0 %v12846_v44  ;;  %11214 = vmatprep.subr.bf16.mxu1 %v12848_v7  ;;  %v687_v1 = vld [vmem:[#allocation5 + $0x1170] sm:$0xff]  ;;  %v684_v44 = vld [vmem:[#allocation5 + $0x1158] sm:$0xff] }
 0x471   :  { %v688_v7 = vld [vmem:[#allocation5 + $0x1178] sm:$0xff]  ;;  %v12894_v10 = vcombine.high %v683_v63, %v687_v1  ;;  %v12893_v35 = vcombine.low %v683_v63, %v687_v1 }
 0x472   :  { %v12896_v11 = vcombine.high %v684_v44, %v688_v7  ;;  %v12895_v15 = vcombine.low %v684_v44, %v688_v7 }
 0x473   :  { %10699 = vmatpush1.bf16.msra.mxu0 %v12845_v12  ;;  %11215 = vmatpush1.bf16.msra.mxu1 %v12847_v34  ;;  %v691_v12 = vld [vmem:[#allocation5 + $0x1190] sm:$0xff] }
 0x474   :  { %10711 = vmatprep.subr.bf16.mxu0 %v12854_v16  ;;  %11227 = vmatprep.subr.bf16.mxu1 %v12856_v56  ;;  %v695_v34 = vld [vmem:[#allocation5 + $0x11b0] sm:$0xff]  ;;  %v692_v16 = vld [vmem:[#allocation5 + $0x1198] sm:$0xff] }
 0x475   :  { %v696_v56 = vld [vmem:[#allocation5 + $0x11b8] sm:$0xff]  ;;  %v12902_v23 = vcombine.high %v691_v12, %v695_v34  ;;  %v12901_v55 = vcombine.low %v691_v12, %v695_v34 }
 0x476   :  { %10701 = vmatmul.mubr.bf16.vlgmr.msra.gmra.mrb[4].mxu0 %v14624_v3  ;;  %11217 = vmatmul.mubr.bf16.vlgmr.msra.gmra.mrb[4].mxu1 %v14624_v3  ;;  %v12871_v3 = vcombine.low %v660_v54, %v664_v38  ;;  %v12904_v25 = vcombine.high %v692_v16, %v696_v56  ;;  %v12903_v37 = vcombine.low %v692_v16, %v696_v56 }
 0x477   :  { %10712 = vmatpush1.bf16.msra.mxu0 %v12853_v27  ;;  %11228 = vmatpush1.bf16.msra.mxu1 %v12855_v59  ;;  %v699_v27 = vld [vmem:[#allocation5 + $0x11d0] sm:$0xff] }
 0x478   :  { %10713 = vmatprep.subr.bf16.mxu0 %v12862_v29  ;;  %11229 = vmatprep.subr.bf16.mxu1 %v12864_v40  ;;  %v703_v59 = vld [vmem:[#allocation5 + $0x11f0] sm:$0xff]  ;;  %v700_v29 = vld [vmem:[#allocation5 + $0x11d8] sm:$0xff] }
 0x479   :  { %10743 = vmatprep.mubr.bf16.mxu0 %v14632_v13  ;;  %11259 = vmatprep.mubr.bf16.mxu1 %v14632_v13  ;;  %v12888_v13 = vcombine.high %v676_v17, %v680_v20  ;;  %v704_v40 = vld [vmem:[#allocation5 + $0x11f8] sm:$0xff]  ;;  %v12910_v54 = vcombine.high %v699_v27, %v703_v59  ;;  %v12909_v21 = vcombine.low %v699_v27, %v703_v59 }
 0x47a   :  { %v12912_v38 = vcombine.high %v700_v29, %v704_v40  ;;  %v12911_v45 = vcombine.low %v700_v29, %v704_v40 }
 0x47b   :  { %10714 = vmatpush1.bf16.msra.mxu0 %v12861_v42  ;;  %11230 = vmatpush1.bf16.msra.mxu1 %v12863_v43  ;;  %v707_v42 = vld [vmem:[#allocation5 + $0x1210] sm:$0xff] }
 0x47c   :  { %10715 = vmatprep.subr.bf16.mxu0 %v12870_v18  ;;  %11231 = vmatprep.subr.bf16.mxu1 %v12872_v19  ;;  %v711_v43 = vld [vmem:[#allocation5 + $0x1230] sm:$0xff]  ;;  %v708_v18 = vld [vmem:[#allocation5 + $0x1218] sm:$0xff] }
 0x47d   :  { %v712_v19 = vld [vmem:[#allocation5 + $0x1238] sm:$0xff]  ;;  %v12918_v49 = vcombine.high %v707_v42, %v711_v43  ;;  %v12917_v57 = vcombine.low %v707_v42, %v711_v43 }
 0x47e   :  { %v12920_v52 = vcombine.high %v708_v18, %v712_v19  ;;  %v12919_v58 = vcombine.low %v708_v18, %v712_v19 }
 0x47f   :  { %10716 = vmatpush1.bf16.msra.mxu0 %v12869_v2  ;;  %11232 = vmatpush1.bf16.msra.mxu1 %v12871_v3  ;;  %v715_v2 = vld [vmem:[#allocation5 + $0x1250] sm:$0xff] }
 0x480   :  { %10717 = vmatprep.subr.bf16.mxu0 %v12878_v4  ;;  %11233 = vmatprep.subr.bf16.mxu1 %v12880_v30  ;;  %v719_v3 = vld [vmem:[#allocation5 + $0x1270] sm:$0xff]  ;;  %v716_v4 = vld [vmem:[#allocation5 + $0x1258] sm:$0xff] }
 0x481   :  { %v720_v30 = vld [vmem:[#allocation5 + $0x1278] sm:$0xff]  ;;  %v12926_v17 = vcombine.high %v715_v2, %v719_v3  ;;  %v12925_v63 = vcombine.low %v715_v2, %v719_v3 }
 0x482   :  { %v12928_v20 = vcombine.high %v716_v4, %v720_v30  ;;  %v12927_v1 = vcombine.low %v716_v4, %v720_v30 }
 0x483   :  { %10718 = vmatpush1.bf16.msra.mxu0 %v12877_v60  ;;  %11234 = vmatpush1.bf16.msra.mxu1 %v12879_v61  ;;  %v723_v60 = vld [vmem:[#allocation5 + $0x1290] sm:$0xff] }
 0x484   :  { %10719 = vmatprep.subr.bf16.mxu0 %v12886_v62  ;;  %11235 = vmatprep.subr.bf16.mxu1 %v12888_v13  ;;  %v727_v61 = vld [vmem:[#allocation5 + $0x12b0] sm:$0xff]  ;;  %v724_v62 = vld [vmem:[#allocation5 + $0x1298] sm:$0xff] }
 0x485   :  { %v728_v13 = vld [vmem:[#allocation5 + $0x12b8] sm:$0xff]  ;;  %v12934_v44 = vcombine.high %v723_v60, %v727_v61  ;;  %v12933_v12 = vcombine.low %v723_v60, %v727_v61 }
 0x486   :  { %v12936_v7 = vcombine.high %v724_v62, %v728_v13  ;;  %v12935_v34 = vcombine.low %v724_v62, %v728_v13 }
 0x487   :  { %10720 = vmatpush1.bf16.msra.mxu0 %v12885_v8  ;;  %11236 = vmatpush1.bf16.msra.mxu1 %v12887_v9  ;;  %v731_v8 = vld [vmem:[#allocation5 + $0x12d0] sm:$0xff] }
 0x488   :  { %10721 = vmatprep.subr.bf16.mxu0 %v12894_v10  ;;  %11237 = vmatprep.subr.bf16.mxu1 %v12896_v11  ;;  %v735_v9 = vld [vmem:[#allocation5 + $0x12f0] sm:$0xff]  ;;  %v732_v10 = vld [vmem:[#allocation5 + $0x12d8] sm:$0xff] }
 0x489   :  { %v736_v11 = vld [vmem:[#allocation5 + $0x12f8] sm:$0xff]  ;;  %v12942_v16 = vcombine.high %v731_v8, %v735_v9  ;;  %v12941_v27 = vcombine.low %v731_v8, %v735_v9 }
 0x48a   :  { %v12944_v56 = vcombine.high %v732_v10, %v736_v11  ;;  %v12943_v59 = vcombine.low %v732_v10, %v736_v11 }
 0x48b   :  { %10722 = vmatpush1.bf16.msra.mxu0 %v12893_v35  ;;  %11238 = vmatpush1.bf16.msra.mxu1 %v12895_v15  ;;  %v739_v35 = vld [vmem:[#allocation5 + $0x1310] sm:$0xff] }
 0x48c   :  { %10723 = vmatprep.subr.bf16.mxu0 %v12902_v23  ;;  %11239 = vmatprep.subr.bf16.mxu1 %v12904_v25  ;;  %v743_v15 = vld [vmem:[#allocation5 + $0x1330] sm:$0xff]  ;;  %v740_v23 = vld [vmem:[#allocation5 + $0x1318] sm:$0xff] }
 0x48d   :  { %v744_v25 = vld [vmem:[#allocation5 + $0x1338] sm:$0xff]  ;;  %v12950_v29 = vcombine.high %v739_v35, %v743_v15  ;;  %v12949_v42 = vcombine.low %v739_v35, %v743_v15 }
 0x48e   :  { %v12952_v40 = vcombine.high %v740_v23, %v744_v25  ;;  %v12951_v43 = vcombine.low %v740_v23, %v744_v25 }
 0x48f   :  { %10724 = vmatpush1.bf16.msra.mxu0 %v12901_v55  ;;  %11240 = vmatpush1.bf16.msra.mxu1 %v12903_v37  ;;  %v747_v55 = vld [vmem:[#allocation5 + $0x1350] sm:$0xff] }
 0x490   :  { %10725 = vmatprep.subr.bf16.mxu0 %v12910_v54  ;;  %11241 = vmatprep.subr.bf16.mxu1 %v12912_v38  ;;  %v751_v37 = vld [vmem:[#allocation5 + $0x1370] sm:$0xff]  ;;  %v748_v54 = vld [vmem:[#allocation5 + $0x1358] sm:$0xff] }
 0x491   :  { %v752_v38 = vld [vmem:[#allocation5 + $0x1378] sm:$0xff]  ;;  %v12958_v18 = vcombine.high %v747_v55, %v751_v37  ;;  %v12957_v2 = vcombine.low %v747_v55, %v751_v37 }
 0x492   :  { %v12960_v19 = vcombine.high %v748_v54, %v752_v38  ;;  %v12959_v3 = vcombine.low %v748_v54, %v752_v38 }
 0x493   :  { %10726 = vmatpush1.bf16.msra.mxu0 %v12909_v21  ;;  %11242 = vmatpush1.bf16.msra.mxu1 %v12911_v45  ;;  %v755_v21 = vld [vmem:[#allocation5 + $0x1390] sm:$0xff] }
 0x494   :  { %10727 = vmatprep.subr.bf16.mxu0 %v12918_v49  ;;  %11243 = vmatprep.subr.bf16.mxu1 %v12920_v52  ;;  %v759_v45 = vld [vmem:[#allocation5 + $0x13b0] sm:$0xff]  ;;  %v756_v49 = vld [vmem:[#allocation5 + $0x1398] sm:$0xff] }
 0x495   :  { %v760_v52 = vld [vmem:[#allocation5 + $0x13b8] sm:$0xff]  ;;  %v12966_v4 = vcombine.high %v755_v21, %v759_v45  ;;  %v12965_v60 = vcombine.low %v755_v21, %v759_v45 }
 0x496   :  { %v12968_v30 = vcombine.high %v756_v49, %v760_v52  ;;  %v12967_v61 = vcombine.low %v756_v49, %v760_v52  ;;  %v803_v52 = vld [vmem:[#allocation5 + $0x1510] sm:$0xff] }
 0x497   :  { %10728 = vmatpush1.bf16.msra.mxu0 %v12917_v57  ;;  %11244 = vmatpush1.bf16.msra.mxu1 %v12919_v58  ;;  %v763_v57 = vld [vmem:[#allocation5 + $0x13d0] sm:$0xff] }
 0x498   :  { %10729 = vmatprep.subr.bf16.mxu0 %v12926_v17  ;;  %11245 = vmatprep.subr.bf16.mxu1 %v12928_v20  ;;  %v767_v58 = vld [vmem:[#allocation5 + $0x13f0] sm:$0xff]  ;;  %v764_v17 = vld [vmem:[#allocation5 + $0x13d8] sm:$0xff] }
 0x499   :  { %v768_v20 = vld [vmem:[#allocation5 + $0x13f8] sm:$0xff]  ;;  %v12974_v62 = vcombine.high %v763_v57, %v767_v58  ;;  %v12973_v8 = vcombine.low %v763_v57, %v767_v58 }
 0x49a   :  { %v12976_v13 = vcombine.high %v764_v17, %v768_v20  ;;  %v12975_v9 = vcombine.low %v764_v17, %v768_v20  ;;  %v811_v17 = vld [vmem:[#allocation5 + $0x1550] sm:$0xff] }
 0x49b   :  { %10730 = vmatpush1.bf16.msra.mxu0 %v12925_v63  ;;  %11246 = vmatpush1.bf16.msra.mxu1 %v12927_v1  ;;  %v771_v63 = vld [vmem:[#allocation5 + $0x1410] sm:$0xff] }
 0x49c   :  { %10731 = vmatprep.subr.bf16.mxu0 %v12934_v44  ;;  %11247 = vmatprep.subr.bf16.mxu1 %v12936_v7  ;;  %v775_v1 = vld [vmem:[#allocation5 + $0x1430] sm:$0xff]  ;;  %v772_v44 = vld [vmem:[#allocation5 + $0x1418] sm:$0xff] }
 0x49d   :  { %v776_v7 = vld [vmem:[#allocation5 + $0x1438] sm:$0xff]  ;;  %v12982_v10 = vcombine.high %v771_v63, %v775_v1  ;;  %v12981_v35 = vcombine.low %v771_v63, %v775_v1  ;;  %v815_v20 = vld [vmem:[#allocation5 + $0x1570] sm:$0xff] }
 0x49e   :  { %v12984_v11 = vcombine.high %v772_v44, %v776_v7  ;;  %v12983_v15 = vcombine.low %v772_v44, %v776_v7  ;;  %v13022_v63 = vcombine.high %v811_v17, %v815_v20  ;;  %v819_v44 = vld [vmem:[#allocation5 + $0x1590] sm:$0xff] }
 0x49f   :  { %10732 = vmatpush1.bf16.msra.mxu0 %v12933_v12  ;;  %11248 = vmatpush1.bf16.msra.mxu1 %v12935_v34  ;;  %v779_v12 = vld [vmem:[#allocation5 + $0x1450] sm:$0xff] }
 0x4a0   :  { %10733 = vmatprep.subr.bf16.mxu0 %v12942_v16  ;;  %11249 = vmatprep.subr.bf16.mxu1 %v12944_v56  ;;  %v783_v34 = vld [vmem:[#allocation5 + $0x1470] sm:$0xff]  ;;  %v780_v16 = vld [vmem:[#allocation5 + $0x1458] sm:$0xff] }
 0x4a1   :  { %v784_v56 = vld [vmem:[#allocation5 + $0x1478] sm:$0xff]  ;;  %v12990_v23 = vcombine.high %v779_v12, %v783_v34  ;;  %v12989_v55 = vcombine.low %v779_v12, %v783_v34  ;;  %v823_v7 = vld [vmem:[#allocation5 + $0x15b0] sm:$0xff] }
 0x4a2   :  { %v12992_v25 = vcombine.high %v780_v16, %v784_v56  ;;  %v12991_v37 = vcombine.low %v780_v16, %v784_v56  ;;  %v13030_v12 = vcombine.high %v819_v44, %v823_v7  ;;  %v827_v16 = vld [vmem:[#allocation5 + $0x15d0] sm:$0xff] }
 0x4a3   :  { %10734 = vmatpush1.bf16.msra.mxu0 %v12941_v27  ;;  %11250 = vmatpush1.bf16.msra.mxu1 %v12943_v59  ;;  %v787_v27 = vld [vmem:[#allocation5 + $0x1490] sm:$0xff] }
 0x4a4   :  { %10735 = vmatprep.subr.bf16.mxu0 %v12950_v29  ;;  %11251 = vmatprep.subr.bf16.mxu1 %v12952_v40  ;;  %v791_v59 = vld [vmem:[#allocation5 + $0x14b0] sm:$0xff]  ;;  %v788_v29 = vld [vmem:[#allocation5 + $0x1498] sm:$0xff] }
 0x4a5   :  { %v792_v40 = vld [vmem:[#allocation5 + $0x14b8] sm:$0xff]  ;;  %v12998_v54 = vcombine.high %v787_v27, %v791_v59  ;;  %v12997_v21 = vcombine.low %v787_v27, %v791_v59  ;;  %v831_v56 = vld [vmem:[#allocation5 + $0x15f0] sm:$0xff] }
 0x4a6   :  { %v13000_v38 = vcombine.high %v788_v29, %v792_v40  ;;  %v13038_v27 = vcombine.high %v827_v16, %v831_v56 }
 0x4a7   :  { %10736 = vmatpush1.bf16.msra.mxu0 %v12949_v42  ;;  %11252 = vmatpush1.bf16.msra.mxu1 %v12951_v43  ;;  %v795_v42 = vld [vmem:[#allocation5 + $0x14d0] sm:$0xff] }
 0x4a8   :  { %10737 = vmatprep.subr.bf16.mxu0 %v12958_v18  ;;  %11253 = vmatprep.subr.bf16.mxu1 %v12960_v19  ;;  %v799_v43 = vld [vmem:[#allocation5 + $0x14f0] sm:$0xff]  ;;  %v796_v18 = vld [vmem:[#allocation5 + $0x14d8] sm:$0xff] }
 0x4a9   :  { %v800_v19 = vld [vmem:[#allocation5 + $0x14f8] sm:$0xff]  ;;  %v13006_v45 = vcombine.high %v795_v42, %v799_v43 }
 0x4aa   :  { %v13008_v49 = vcombine.high %v796_v18, %v800_v19  ;;  %v13007_v57 = vcombine.low %v796_v18, %v800_v19  ;;  %v843_v18 = vld [vmem:[#allocation5 + $0x1650] sm:$0xff] }
 0x4ab   :  { %10738 = vmatpush1.bf16.msra.mxu0 %v12957_v2  ;;  %11254 = vmatpush1.bf16.msra.mxu1 %v12959_v3  ;;  %v807_v2 = vld [vmem:[#allocation5 + $0x1530] sm:$0xff]  ;;  %v804_v3 = vld [vmem:[#allocation5 + $0x1518] sm:$0xff] }
 0x4ac   :  { %10739 = vmatprep.subr.bf16.mxu0 %v12966_v4  ;;  %11255 = vmatprep.subr.bf16.mxu1 %v12968_v30  ;;  %v808_v4 = vld [vmem:[#allocation5 + $0x1538] sm:$0xff]  ;;  %v13005_v30 = vcombine.low %v795_v42, %v799_v43  ;;  %v13014_v58 = vcombine.high %v803_v52, %v807_v2  ;;  %v847_v19 = vld [vmem:[#allocation5 + $0x1670] sm:$0xff] }
 0x4af   :  { %10740 = vmatpush1.bf16.msra.mxu0 %v12965_v60  ;;  %11256 = vmatpush1.bf16.msra.mxu1 %v12967_v61  ;;  %v812_v60 = vld [vmem:[#allocation5 + $0x1558] sm:$0xff] }
 0x4b0   :  { %10741 = vmatprep.subr.bf16.mxu0 %v12974_v62  ;;  %11257 = vmatprep.subr.bf16.mxu1 %v12976_v13  ;;  %v816_v61 = vld [vmem:[#allocation5 + $0x1578] sm:$0xff]  ;;  %v13013_v62 = vcombine.low %v803_v52, %v807_v2  ;;  %v13015_v13 = vcombine.low %v804_v3, %v808_v4  ;;  %v13054_v52 = vcombine.high %v843_v18, %v847_v19 }
 0x4b1   :  { %v13024_v1 = vcombine.high %v812_v60, %v816_v61 }
 0x4b3   :  { %10742 = vmatpush1.bf16.msra.mxu0 %v12973_v8  ;;  %11258 = vmatpush1.bf16.msra.mxu1 %v12975_v9  ;;  %v820_v8 = vld [vmem:[#allocation5 + $0x1598] sm:$0xff] }
 0x4b4   :  { %10754 = vmatprep.subr.bf16.mxu0 %v12982_v10  ;;  %11270 = vmatprep.subr.bf16.mxu1 %v12984_v11  ;;  %v824_v9 = vld [vmem:[#allocation5 + $0x15b8] sm:$0xff]  ;;  %v13021_v10 = vcombine.low %v811_v17, %v815_v20  ;;  %v13023_v11 = vcombine.low %v812_v60, %v816_v61  ;;  %v859_v60 = vld [vmem:[#allocation5 + $0x16d0] sm:$0xff] }
 0x4b5   :  { %v13032_v34 = vcombine.high %v820_v8, %v824_v9  ;;  %v863_v61 = vld [vmem:[#allocation5 + $0x16f0] sm:$0xff] }
 0x4b6   :  { %10744 = vmatmul.mubr.bf16.vlgmr.msra.gmra.mrb[4].mxu0 %v14640_v32  ;;  %11260 = vmatmul.mubr.bf16.vlgmr.msra.gmra.mrb[4].mxu1 %v14640_v32  ;;  %v12999_v32 = vcombine.low %v788_v29, %v792_v40  ;;  %v835_v29 = vld [vmem:[#allocation5 + $0x1610] sm:$0xff] }
 0x4b7   :  { %10755 = vmatpush1.bf16.msra.mxu0 %v12981_v35  ;;  %11271 = vmatpush1.bf16.msra.mxu1 %v12983_v15  ;;  %v828_v35 = vld [vmem:[#allocation5 + $0x15d8] sm:$0xff]  ;;  %v839_v40 = vld [vmem:[#allocation5 + $0x1630] sm:$0xff] }
 0x4b8   :  { %10756 = vmatprep.subr.bf16.mxu0 %v12990_v23  ;;  %11272 = vmatprep.subr.bf16.mxu1 %v12992_v25  ;;  %v832_v15 = vld [vmem:[#allocation5 + $0x15f8] sm:$0xff]  ;;  %v13029_v23 = vcombine.low %v819_v44, %v823_v7  ;;  %v13031_v25 = vcombine.low %v820_v8, %v824_v9  ;;  %v13046_v42 = vcombine.high %v835_v29, %v839_v40  ;;  %v867_v8 = vld [vmem:[#allocation5 + $0x1710] sm:$0xff] }
 0x4b9   :  { %10786 = vmatprep.mubr.bf16.mxu0 %v14648_v41  ;;  %11302 = vmatprep.mubr.bf16.mxu1 %v14648_v41  ;;  %v13016_v41 = vcombine.high %v804_v3, %v808_v4  ;;  %v13040_v59 = vcombine.high %v828_v35, %v832_v15  ;;  %v851_v3 = vld [vmem:[#allocation5 + $0x1690] sm:$0xff]  ;;  %v13070_v44 = vcombine.high %v859_v60, %v863_v61 }
 0x4ba   :  { %v855_v4 = vld [vmem:[#allocation5 + $0x16b0] sm:$0xff] }
 0x4bb   :  { %10757 = vmatpush1.bf16.msra.mxu0 %v12989_v55  ;;  %11273 = vmatpush1.bf16.msra.mxu1 %v12991_v37  ;;  %v836_v55 = vld [vmem:[#allocation5 + $0x1618] sm:$0xff]  ;;  %v13062_v17 = vcombine.high %v851_v3, %v855_v4  ;;  %v871_v9 = vld [vmem:[#allocation5 + $0x1730] sm:$0xff] }
 0x4bc   :  { %10758 = vmatprep.subr.bf16.mxu0 %v12998_v54  ;;  %11274 = vmatprep.subr.bf16.mxu1 %v13000_v38  ;;  %v840_v37 = vld [vmem:[#allocation5 + $0x1638] sm:$0xff]  ;;  %v13037_v54 = vcombine.low %v827_v16, %v831_v56  ;;  %v13039_v38 = vcombine.low %v828_v35, %v832_v15  ;;  %v13078_v16 = vcombine.high %v867_v8, %v871_v9  ;;  %v875_v35 = vld [vmem:[#allocation5 + $0x1750] sm:$0xff] }
 0x4bd   :  { %v13048_v43 = vcombine.high %v836_v55, %v840_v37  ;;  %v879_v15 = vld [vmem:[#allocation5 + $0x1770] sm:$0xff] }
 0x4bf   :  { %10759 = vmatpush1.bf16.msra.mxu0 %v12997_v21  ;;  %11275 = vmatpush1.bf16.msra.mxu1 %v12999_v32  ;;  %v844_v21 = vld [vmem:[#allocation5 + $0x1658] sm:$0xff] }
 0x4c0   :  { %10760 = vmatprep.subr.bf16.mxu0 %v13006_v45  ;;  %11276 = vmatprep.subr.bf16.mxu1 %v13008_v49  ;;  %v848_v32 = vld [vmem:[#allocation5 + $0x1678] sm:$0xff]  ;;  %v13045_v45 = vcombine.low %v835_v29, %v839_v40  ;;  %v13047_v49 = vcombine.low %v836_v55, %v840_v37  ;;  %v13086_v29 = vcombine.high %v875_v35, %v879_v15  ;;  %v883_v55 = vld [vmem:[#allocation5 + $0x1790] sm:$0xff] }
 0x4c1   :  { %v13056_v2 = vcombine.high %v844_v21, %v848_v32  ;;  %v887_v37 = vld [vmem:[#allocation5 + $0x17b0] sm:$0xff] }
 0x4c3   :  { %10761 = vmatpush1.bf16.msra.mxu0 %v13005_v30  ;;  %11277 = vmatpush1.bf16.msra.mxu1 %v13007_v57  ;;  %v852_v30 = vld [vmem:[#allocation5 + $0x1698] sm:$0xff] }
 0x4c4   :  { %10762 = vmatprep.subr.bf16.mxu0 %v13014_v58  ;;  %11278 = vmatprep.subr.bf16.mxu1 %v13016_v41  ;;  %v856_v57 = vld [vmem:[#allocation5 + $0x16b8] sm:$0xff]  ;;  %v13053_v58 = vcombine.low %v843_v18, %v847_v19  ;;  %v13055_v41 = vcombine.low %v844_v21, %v848_v32  ;;  %v13094_v18 = vcombine.high %v883_v55, %v887_v37  ;;  %v891_v21 = vld [vmem:[#allocation5 + $0x17d0] sm:$0xff] }
 0x4c5   :  { %v13064_v20 = vcombine.high %v852_v30, %v856_v57  ;;  %v895_v32 = vld [vmem:[#allocation5 + $0x17f0] sm:$0xff] }
 0x4c7   :  { %10763 = vmatpush1.bf16.msra.mxu0 %v13013_v62  ;;  %11279 = vmatpush1.bf16.msra.mxu1 %v13015_v13  ;;  %v860_v62 = vld [vmem:[#allocation5 + $0x16d8] sm:$0xff] }
 0x4c8   :  { %10764 = vmatprep.subr.bf16.mxu0 %v13022_v63  ;;  %11280 = vmatprep.subr.bf16.mxu1 %v13024_v1  ;;  %v864_v13 = vld [vmem:[#allocation5 + $0x16f8] sm:$0xff]  ;;  %v13061_v63 = vcombine.low %v851_v3, %v855_v4  ;;  %v13063_v1 = vcombine.low %v852_v30, %v856_v57  ;;  %v13102_v3 = vcombine.high %v891_v21, %v895_v32  ;;  %v899_v30 = vld [vmem:[#allocation5 + $0x1810] sm:$0xff] }
 0x4c9   :  { %v13072_v7 = vcombine.high %v860_v62, %v864_v13  ;;  %v903_v57 = vld [vmem:[#allocation5 + $0x1830] sm:$0xff] }
 0x4cb   :  { %10765 = vmatpush1.bf16.msra.mxu0 %v13021_v10  ;;  %11281 = vmatpush1.bf16.msra.mxu1 %v13023_v11  ;;  %v868_v10 = vld [vmem:[#allocation5 + $0x1718] sm:$0xff] }
 0x4cc   :  { %10766 = vmatprep.subr.bf16.mxu0 %v13030_v12  ;;  %11282 = vmatprep.subr.bf16.mxu1 %v13032_v34  ;;  %v872_v11 = vld [vmem:[#allocation5 + $0x1738] sm:$0xff]  ;;  %v13069_v12 = vcombine.low %v859_v60, %v863_v61  ;;  %v13071_v34 = vcombine.low %v860_v62, %v864_v13  ;;  %v13110_v60 = vcombine.high %v899_v30, %v903_v57  ;;  %v907_v62 = vld [vmem:[#allocation5 + $0x1850] sm:$0xff] }
 0x4cd   :  { %v13080_v56 = vcombine.high %v868_v10, %v872_v11  ;;  %v911_v13 = vld [vmem:[#allocation5 + $0x1870] sm:$0xff] }
 0x4cf   :  { %10767 = vmatpush1.bf16.msra.mxu0 %v13029_v23  ;;  %11283 = vmatpush1.bf16.msra.mxu1 %v13031_v25  ;;  %v876_v23 = vld [vmem:[#allocation5 + $0x1758] sm:$0xff] }
 0x4d0   :  { %10768 = vmatprep.subr.bf16.mxu0 %v13038_v27  ;;  %11284 = vmatprep.subr.bf16.mxu1 %v13040_v59  ;;  %v880_v25 = vld [vmem:[#allocation5 + $0x1778] sm:$0xff]  ;;  %v13077_v27 = vcombine.low %v867_v8, %v871_v9  ;;  %v13079_v59 = vcombine.low %v868_v10, %v872_v11  ;;  %v13118_v8 = vcombine.high %v907_v62, %v911_v13  ;;  %v915_v10 = vld [vmem:[#allocation5 + $0x1890] sm:$0xff] }
 0x4d1   :  { %v13088_v40 = vcombine.high %v876_v23, %v880_v25  ;;  %v919_v11 = vld [vmem:[#allocation5 + $0x18b0] sm:$0xff] }
 0x4d3   :  { %10769 = vmatpush1.bf16.msra.mxu0 %v13037_v54  ;;  %11285 = vmatpush1.bf16.msra.mxu1 %v13039_v38  ;;  %v884_v54 = vld [vmem:[#allocation5 + $0x1798] sm:$0xff] }
 0x4d4   :  { %10770 = vmatprep.subr.bf16.mxu0 %v13046_v42  ;;  %11286 = vmatprep.subr.bf16.mxu1 %v13048_v43  ;;  %v888_v38 = vld [vmem:[#allocation5 + $0x17b8] sm:$0xff]  ;;  %v13085_v42 = vcombine.low %v875_v35, %v879_v15  ;;  %v13087_v43 = vcombine.low %v876_v23, %v880_v25  ;;  %v13126_v35 = vcombine.high %v915_v10, %v919_v11  ;;  %v923_v23 = vld [vmem:[#allocation5 + $0x18d0] sm:$0xff] }
 0x4d5   :  { %v13096_v19 = vcombine.high %v884_v54, %v888_v38  ;;  %v927_v25 = vld [vmem:[#allocation5 + $0x18f0] sm:$0xff] }
 0x4d7   :  { %10771 = vmatpush1.bf16.msra.mxu0 %v13045_v45  ;;  %11287 = vmatpush1.bf16.msra.mxu1 %v13047_v49  ;;  %v892_v45 = vld [vmem:[#allocation5 + $0x17d8] sm:$0xff] }
 0x4d8   :  { %10772 = vmatprep.subr.bf16.mxu0 %v13054_v52  ;;  %11288 = vmatprep.subr.bf16.mxu1 %v13056_v2  ;;  %v896_v49 = vld [vmem:[#allocation5 + $0x17f8] sm:$0xff]  ;;  %v13093_v52 = vcombine.low %v883_v55, %v887_v37  ;;  %v13095_v2 = vcombine.low %v884_v54, %v888_v38  ;;  %v931_v37 = vld [vmem:[#allocation5 + $0x1910] sm:$0xff] }
 0x4d9   :  { %v13104_v4 = vcombine.high %v892_v45, %v896_v49  ;;  %v935_v54 = vld [vmem:[#allocation5 + $0x1930] sm:$0xff]  ;;  %v932_v38 = vld [vmem:[#allocation5 + $0x1918] sm:$0xff] }
 0x4db   :  { %10773 = vmatpush1.bf16.msra.mxu0 %v13053_v58  ;;  %11289 = vmatpush1.bf16.msra.mxu1 %v13055_v41  ;;  %v900_v58 = vld [vmem:[#allocation5 + $0x1818] sm:$0xff] }
 0x4dc   :  { %10774 = vmatprep.subr.bf16.mxu0 %v13062_v17  ;;  %11290 = vmatprep.subr.bf16.mxu1 %v13064_v20  ;;  %v904_v41 = vld [vmem:[#allocation5 + $0x1838] sm:$0xff]  ;;  %v13101_v17 = vcombine.low %v891_v21, %v895_v32  ;;  %v13103_v20 = vcombine.low %v892_v45, %v896_v49  ;;  %v939_v21 = vld [vmem:[#allocation5 + $0x1950] sm:$0xff] }
 0x4dd   :  { %v13112_v61 = vcombine.high %v900_v58, %v904_v41  ;;  %v943_v32 = vld [vmem:[#allocation5 + $0x1970] sm:$0xff]  ;;  %v940_v45 = vld [vmem:[#allocation5 + $0x1958] sm:$0xff] }
 0x4de   :  { %v944_v49 = vld [vmem:[#allocation5 + $0x1978] sm:$0xff] }
 0x4df   :  { %10775 = vmatpush1.bf16.msra.mxu0 %v13061_v63  ;;  %11291 = vmatpush1.bf16.msra.mxu1 %v13063_v1  ;;  %v908_v63 = vld [vmem:[#allocation5 + $0x1858] sm:$0xff] }
 0x4e0   :  { %10776 = vmatprep.subr.bf16.mxu0 %v13070_v44  ;;  %11292 = vmatprep.subr.bf16.mxu1 %v13072_v7  ;;  %v912_v1 = vld [vmem:[#allocation5 + $0x1878] sm:$0xff]  ;;  %v13109_v44 = vcombine.low %v899_v30, %v903_v57  ;;  %v13111_v7 = vcombine.low %v900_v58, %v904_v41  ;;  %v947_v30 = vld [vmem:[#allocation5 + $0x1990] sm:$0xff] }
 0x4e1   :  { %v13120_v9 = vcombine.high %v908_v63, %v912_v1  ;;  %v951_v57 = vld [vmem:[#allocation5 + $0x19b0] sm:$0xff]  ;;  %v948_v58 = vld [vmem:[#allocation5 + $0x1998] sm:$0xff] }
 0x4e2   :  { %v952_v41 = vld [vmem:[#allocation5 + $0x19b8] sm:$0xff] }
 0x4e3   :  { %10777 = vmatpush1.bf16.msra.mxu0 %v13069_v12  ;;  %11293 = vmatpush1.bf16.msra.mxu1 %v13071_v34  ;;  %v916_v12 = vld [vmem:[#allocation5 + $0x1898] sm:$0xff] }
 0x4e4   :  { %10778 = vmatprep.subr.bf16.mxu0 %v13078_v16  ;;  %11294 = vmatprep.subr.bf16.mxu1 %v13080_v56  ;;  %v920_v34 = vld [vmem:[#allocation5 + $0x18b8] sm:$0xff]  ;;  %v13117_v16 = vcombine.low %v907_v62, %v911_v13  ;;  %v13119_v56 = vcombine.low %v908_v63, %v912_v1  ;;  %v955_v62 = vld [vmem:[#allocation5 + $0x19d0] sm:$0xff] }
 0x4e5   :  { %v13128_v15 = vcombine.high %v916_v12, %v920_v34  ;;  %v959_v13 = vld [vmem:[#allocation5 + $0x19f0] sm:$0xff]  ;;  %v956_v63 = vld [vmem:[#allocation5 + $0x19d8] sm:$0xff] }
 0x4e6   :  { %v960_v1 = vld [vmem:[#allocation5 + $0x19f8] sm:$0xff] }
 0x4e7   :  { %10779 = vmatpush1.bf16.msra.mxu0 %v13077_v27  ;;  %11295 = vmatpush1.bf16.msra.mxu1 %v13079_v59  ;;  %v924_v27 = vld [vmem:[#allocation5 + $0x18d8] sm:$0xff] }
 0x4e8   :  { %10780 = vmatprep.subr.bf16.mxu0 %v13086_v29  ;;  %11296 = vmatprep.subr.bf16.mxu1 %v13088_v40  ;;  %v928_v59 = vld [vmem:[#allocation5 + $0x18f8] sm:$0xff]  ;;  %v13125_v29 = vcombine.low %v915_v10, %v919_v11  ;;  %v13134_v40 = vcombine.high %v923_v23, %v927_v25  ;;  %v963_v10 = vld [vmem:[#allocation5 + $0x1a10] sm:$0xff] }
 0x4e9   :  { %v13136_v55 = vcombine.high %v924_v27, %v928_v59  ;;  %v967_v11 = vld [vmem:[#allocation5 + $0x1a30] sm:$0xff] }
 0x4eb   :  { %10781 = vmatpush1.bf16.msra.mxu0 %v13085_v42  ;;  %11297 = vmatpush1.bf16.msra.mxu1 %v13087_v43  ;;  %v936_v42 = vld [vmem:[#allocation5 + $0x1938] sm:$0xff]  ;;  %v13133_v43 = vcombine.low %v923_v23, %v927_v25  ;;  %v971_v23 = vld [vmem:[#allocation5 + $0x1a50] sm:$0xff] }
 0x4ec   :  { %10782 = vmatprep.subr.bf16.mxu0 %v13094_v18  ;;  %11298 = vmatprep.subr.bf16.mxu1 %v13096_v19  ;;  %v13135_v18 = vcombine.low %v924_v27, %v928_v59  ;;  %v13142_v19 = vcombine.high %v931_v37, %v935_v54  ;;  %v975_v25 = vld [vmem:[#allocation5 + $0x1a70] sm:$0xff]  ;;  %v972_v27 = vld [vmem:[#allocation5 + $0x1a58] sm:$0xff] }
 0x4ed   :  { %v976_v59 = vld [vmem:[#allocation5 + $0x1a78] sm:$0xff] }
 0x4ef   :  { %10783 = vmatpush1.bf16.msra.mxu0 %v13093_v52  ;;  %11299 = vmatpush1.bf16.msra.mxu1 %v13095_v2  ;;  %v13141_v52 = vcombine.low %v931_v37, %v935_v54  ;;  %v13143_v2 = vcombine.low %v932_v38, %v936_v42  ;;  %v979_v37 = vld [vmem:[#allocation5 + $0x1a90] sm:$0xff] }
 0x4f0   :  { %10784 = vmatprep.subr.bf16.mxu0 %v13102_v3  ;;  %11300 = vmatprep.subr.bf16.mxu1 %v13104_v4  ;;  %v13150_v3 = vcombine.high %v939_v21, %v943_v32  ;;  %v13152_v4 = vcombine.high %v940_v45, %v944_v49  ;;  %v983_v54 = vld [vmem:[#allocation5 + $0x1ab0] sm:$0xff] }
 0x4f3   :  { %10785 = vmatpush1.bf16.msra.mxu0 %v13101_v17  ;;  %11301 = vmatpush1.bf16.msra.mxu1 %v13103_v20  ;;  %v13149_v17 = vcombine.low %v939_v21, %v943_v32  ;;  %v13151_v20 = vcombine.low %v940_v45, %v944_v49  ;;  %v987_v21 = vld [vmem:[#allocation5 + $0x1ad0] sm:$0xff]  ;;  %v988_v45 = vld [vmem:[#allocation5 + $0x1ad8] sm:$0xff] }
 0x4f4   :  { %10797 = vmatprep.subr.bf16.mxu0 %v13110_v60  ;;  %11313 = vmatprep.subr.bf16.mxu1 %v13112_v61  ;;  %v13158_v60 = vcombine.high %v947_v30, %v951_v57  ;;  %v13160_v61 = vcombine.high %v948_v58, %v952_v41  ;;  %v991_v32 = vld [vmem:[#allocation5 + $0x1af0] sm:$0xff]  ;;  %v992_v49 = vld [vmem:[#allocation5 + $0x1af8] sm:$0xff] }
 0x4f6   :  { %10787 = vmatmul.mubr.bf16.vlgmr.msra.gmra.mrb[4].mxu0 %v14656_v0  ;;  %11303 = vmatmul.mubr.bf16.vlgmr.msra.gmra.mrb[4].mxu1 %v14656_v0  ;;  %v13127_v0 = vcombine.low %v916_v12, %v920_v34  ;;  %v964_v12 = vld [vmem:[#allocation5 + $0x1a18] sm:$0xff] }
 0x4f7   :  { %10798 = vmatpush1.bf16.msra.mxu0 %v13109_v44  ;;  %11314 = vmatpush1.bf16.msra.mxu1 %v13111_v7  ;;  %v13157_v44 = vcombine.low %v947_v30, %v951_v57  ;;  %v13159_v7 = vcombine.low %v948_v58, %v952_v41  ;;  %v968_v34 = vld [vmem:[#allocation5 + $0x1a38] sm:$0xff]  ;;  %v995_v30 = vld [vmem:[#allocation5 + $0x1b10] sm:$0xff] }
 0x4f8   :  { %10799 = vmatprep.subr.bf16.mxu0 %v13118_v8  ;;  %11315 = vmatprep.subr.bf16.mxu1 %v13120_v9  ;;  %v13166_v8 = vcombine.high %v955_v62, %v959_v13  ;;  %v13168_v9 = vcombine.high %v956_v63, %v960_v1  ;;  %v999_v57 = vld [vmem:[#allocation5 + $0x1b30] sm:$0xff]  ;;  %v996_v58 = vld [vmem:[#allocation5 + $0x1b18] sm:$0xff] }
 0x4f9   :  { %10829 = vmatprep.mubr.bf16.mxu0 %v14664_v46  ;;  %11345 = vmatprep.mubr.bf16.mxu1 %v14664_v46  ;;  %v13144_v46 = vcombine.high %v932_v38, %v936_v42  ;;  %v980_v38 = vld [vmem:[#allocation5 + $0x1a98] sm:$0xff] }
 0x4fa   :  { %v984_v42 = vld [vmem:[#allocation5 + $0x1ab8] sm:$0xff] }
 0x4fb   :  { %10800 = vmatpush1.bf16.msra.mxu0 %v13117_v16  ;;  %11316 = vmatpush1.bf16.msra.mxu1 %v13119_v56  ;;  %v13165_v16 = vcombine.low %v955_v62, %v959_v13  ;;  %v13167_v56 = vcombine.low %v956_v63, %v960_v1  ;;  %v1000_v41 = vld [vmem:[#allocation5 + $0x1b38] sm:$0xff]  ;;  %v1003_v62 = vld [vmem:[#allocation5 + $0x1b50] sm:$0xff] }
 0x4fc   :  { %10801 = vmatprep.subr.bf16.mxu0 %v13126_v35  ;;  %11317 = vmatprep.subr.bf16.mxu1 %v13128_v15  ;;  %v13174_v35 = vcombine.high %v963_v10, %v967_v11  ;;  %v13176_v15 = vcombine.high %v964_v12, %v968_v34  ;;  %v1007_v13 = vld [vmem:[#allocation5 + $0x1b70] sm:$0xff]  ;;  %v1004_v63 = vld [vmem:[#allocation5 + $0x1b58] sm:$0xff] }
 0x4fd   :  { %v1008_v1 = vld [vmem:[#allocation5 + $0x1b78] sm:$0xff] }
 0x4ff   :  { %10802 = vmatpush1.bf16.msra.mxu0 %v13125_v29  ;;  %11318 = vmatpush1.bf16.msra.mxu1 %v13127_v0  ;;  %v13173_v29 = vcombine.low %v963_v10, %v967_v11  ;;  %v13175_v0 = vcombine.low %v964_v12, %v968_v34  ;;  %v1011_v10 = vld [vmem:[#allocation5 + $0x1b90] sm:$0xff]  ;;  %v1012_v12 = vld [vmem:[#allocation5 + $0x1b98] sm:$0xff] }
 0x500   :  { %10803 = vmatprep.subr.bf16.mxu0 %v13134_v40  ;;  %11319 = vmatprep.subr.bf16.mxu1 %v13136_v55  ;;  %v13182_v40 = vcombine.high %v971_v23, %v975_v25  ;;  %v13184_v55 = vcombine.high %v972_v27, %v976_v59  ;;  %v1015_v11 = vld [vmem:[#allocation5 + $0x1bb0] sm:$0xff]  ;;  %v1016_v34 = vld [vmem:[#allocation5 + $0x1bb8] sm:$0xff] }
 0x503   :  { %10804 = vmatpush1.bf16.msra.mxu0 %v13133_v43  ;;  %11320 = vmatpush1.bf16.msra.mxu1 %v13135_v18  ;;  %v13181_v43 = vcombine.low %v971_v23, %v975_v25  ;;  %v13183_v18 = vcombine.low %v972_v27, %v976_v59  ;;  %v1019_v23 = vld [vmem:[#allocation5 + $0x1bd0] sm:$0xff]  ;;  %v1020_v27 = vld [vmem:[#allocation5 + $0x1bd8] sm:$0xff] }
 0x504   :  { %10805 = vmatprep.subr.bf16.mxu0 %v13142_v19  ;;  %11321 = vmatprep.subr.bf16.mxu1 %v13144_v46  ;;  %v13190_v19 = vcombine.high %v979_v37, %v983_v54  ;;  %v13192_v46 = vcombine.high %v980_v38, %v984_v42  ;;  %v1023_v25 = vld [vmem:[#allocation5 + $0x1bf0] sm:$0xff]  ;;  %v1024_v59 = vld [vmem:[#allocation5 + $0x1bf8] sm:$0xff] }
 0x507   :  { %10806 = vmatpush1.bf16.msra.mxu0 %v13141_v52  ;;  %11322 = vmatpush1.bf16.msra.mxu1 %v13143_v2  ;;  %v13189_v52 = vcombine.low %v979_v37, %v983_v54  ;;  %v13191_v2 = vcombine.low %v980_v38, %v984_v42  ;;  %v1027_v37 = vld [vmem:[#allocation5 + $0x1c10] sm:$0xff]  ;;  %v1028_v38 = vld [vmem:[#allocation5 + $0x1c18] sm:$0xff] }
 0x508   :  { %10807 = vmatprep.subr.bf16.mxu0 %v13150_v3  ;;  %11323 = vmatprep.subr.bf16.mxu1 %v13152_v4  ;;  %v13198_v3 = vcombine.high %v987_v21, %v991_v32  ;;  %v13200_v4 = vcombine.high %v988_v45, %v992_v49  ;;  %v1031_v54 = vld [vmem:[#allocation5 + $0x1c30] sm:$0xff]  ;;  %v1032_v42 = vld [vmem:[#allocation5 + $0x1c38] sm:$0xff] }
 0x50b   :  { %10808 = vmatpush1.bf16.msra.mxu0 %v13149_v17  ;;  %11324 = vmatpush1.bf16.msra.mxu1 %v13151_v20  ;;  %v13197_v17 = vcombine.low %v987_v21, %v991_v32  ;;  %v13199_v20 = vcombine.low %v988_v45, %v992_v49  ;;  %v1035_v21 = vld [vmem:[#allocation5 + $0x1c50] sm:$0xff]  ;;  %v1036_v45 = vld [vmem:[#allocation5 + $0x1c58] sm:$0xff] }
 0x50c   :  { %10809 = vmatprep.subr.bf16.mxu0 %v13158_v60  ;;  %11325 = vmatprep.subr.bf16.mxu1 %v13160_v61  ;;  %v13206_v60 = vcombine.high %v995_v30, %v999_v57  ;;  %v13208_v61 = vcombine.high %v996_v58, %v1000_v41  ;;  %v1039_v32 = vld [vmem:[#allocation5 + $0x1c70] sm:$0xff]  ;;  %v1040_v49 = vld [vmem:[#allocation5 + $0x1c78] sm:$0xff] }
 0x50f   :  { %10810 = vmatpush1.bf16.msra.mxu0 %v13157_v44  ;;  %11326 = vmatpush1.bf16.msra.mxu1 %v13159_v7  ;;  %v13205_v44 = vcombine.low %v995_v30, %v999_v57  ;;  %v13207_v7 = vcombine.low %v996_v58, %v1000_v41  ;;  %v1043_v30 = vld [vmem:[#allocation5 + $0x1c90] sm:$0xff]  ;;  %v1044_v58 = vld [vmem:[#allocation5 + $0x1c98] sm:$0xff] }
 0x510   :  { %10811 = vmatprep.subr.bf16.mxu0 %v13166_v8  ;;  %11327 = vmatprep.subr.bf16.mxu1 %v13168_v9  ;;  %v13214_v8 = vcombine.high %v1003_v62, %v1007_v13  ;;  %v13216_v9 = vcombine.high %v1004_v63, %v1008_v1  ;;  %v1047_v57 = vld [vmem:[#allocation5 + $0x1cb0] sm:$0xff]  ;;  %v1048_v41 = vld [vmem:[#allocation5 + $0x1cb8] sm:$0xff] }
 0x513   :  { %10812 = vmatpush1.bf16.msra.mxu0 %v13165_v16  ;;  %11328 = vmatpush1.bf16.msra.mxu1 %v13167_v56  ;;  %v13213_v16 = vcombine.low %v1003_v62, %v1007_v13  ;;  %v13215_v56 = vcombine.low %v1004_v63, %v1008_v1  ;;  %v1051_v62 = vld [vmem:[#allocation5 + $0x1cd0] sm:$0xff]  ;;  %v1052_v63 = vld [vmem:[#allocation5 + $0x1cd8] sm:$0xff] }
 0x514   :  { %10813 = vmatprep.subr.bf16.mxu0 %v13174_v35  ;;  %11329 = vmatprep.subr.bf16.mxu1 %v13176_v15  ;;  %v13222_v35 = vcombine.high %v1011_v10, %v1015_v11  ;;  %v13224_v15 = vcombine.high %v1012_v12, %v1016_v34  ;;  %v1055_v13 = vld [vmem:[#allocation5 + $0x1cf0] sm:$0xff]  ;;  %v1056_v1 = vld [vmem:[#allocation5 + $0x1cf8] sm:$0xff] }
 0x517   :  { %10814 = vmatpush1.bf16.msra.mxu0 %v13173_v29  ;;  %11330 = vmatpush1.bf16.msra.mxu1 %v13175_v0  ;;  %v13221_v29 = vcombine.low %v1011_v10, %v1015_v11  ;;  %v13223_v0 = vcombine.low %v1012_v12, %v1016_v34  ;;  %v1063_v10 = vld [vmem:[#allocation5 + $0x1d30] sm:$0xff]  ;;  %v1060_v11 = vld [vmem:[#allocation5 + $0x1d18] sm:$0xff]  ;;  %v13261_v34 = vcombine.low %v1051_v62, %v1055_v13 }
 0x518   :  { %10815 = vmatprep.subr.bf16.mxu0 %v13182_v40  ;;  %11331 = vmatprep.subr.bf16.mxu1 %v13184_v55  ;;  %v13230_v40 = vcombine.high %v1019_v23, %v1023_v25  ;;  %v13232_v55 = vcombine.high %v1020_v27, %v1024_v59  ;;  %v1064_v12 = vld [vmem:[#allocation5 + $0x1d38] sm:$0xff] }
 0x51b   :  { %10816 = vmatpush1.bf16.msra.mxu0 %v13181_v43  ;;  %11332 = vmatpush1.bf16.msra.mxu1 %v13183_v18  ;;  %v13229_v43 = vcombine.low %v1019_v23, %v1023_v25  ;;  %v13231_v18 = vcombine.low %v1020_v27, %v1024_v59  ;;  %v1068_v23 = vld [vmem:[#allocation5 + $0x1d58] sm:$0xff]  ;;  %v13271_v59 = vcombine.low %v1060_v11, %v1064_v12 }
 0x51c   :  { %10817 = vmatprep.subr.bf16.mxu0 %v13190_v19  ;;  %11333 = vmatprep.subr.bf16.mxu1 %v13192_v46  ;;  %v13238_v19 = vcombine.high %v1027_v37, %v1031_v54  ;;  %v13240_v46 = vcombine.high %v1028_v38, %v1032_v42  ;;  %v1072_v25 = vld [vmem:[#allocation5 + $0x1d78] sm:$0xff] }
 0x51f   :  { %10818 = vmatpush1.bf16.msra.mxu0 %v13189_v52  ;;  %11334 = vmatpush1.bf16.msra.mxu1 %v13191_v2  ;;  %v13237_v52 = vcombine.low %v1027_v37, %v1031_v54  ;;  %v13239_v2 = vcombine.low %v1028_v38, %v1032_v42  ;;  %v1076_v37 = vld [vmem:[#allocation5 + $0x1d98] sm:$0xff]  ;;  %v13279_v42 = vcombine.low %v1068_v23, %v1072_v25 }
 0x520   :  { %10819 = vmatprep.subr.bf16.mxu0 %v13198_v3  ;;  %11335 = vmatprep.subr.bf16.mxu1 %v13200_v4  ;;  %v13246_v3 = vcombine.high %v1035_v21, %v1039_v32  ;;  %v13248_v4 = vcombine.high %v1036_v45, %v1040_v49  ;;  %v1080_v54 = vld [vmem:[#allocation5 + $0x1db8] sm:$0xff] }
 0x523   :  { %10820 = vmatpush1.bf16.msra.mxu0 %v13197_v17  ;;  %11336 = vmatpush1.bf16.msra.mxu1 %v13199_v20  ;;  %v13245_v17 = vcombine.low %v1035_v21, %v1039_v32  ;;  %v13247_v20 = vcombine.low %v1036_v45, %v1040_v49  ;;  %v1084_v21 = vld [vmem:[#allocation5 + $0x1dd8] sm:$0xff]  ;;  %v13287_v49 = vcombine.low %v1076_v37, %v1080_v54 }
 0x524   :  { %10821 = vmatprep.subr.bf16.mxu0 %v13206_v60  ;;  %11337 = vmatprep.subr.bf16.mxu1 %v13208_v61  ;;  %v13254_v60 = vcombine.high %v1043_v30, %v1047_v57  ;;  %v13256_v61 = vcombine.high %v1044_v58, %v1048_v41  ;;  %v1088_v32 = vld [vmem:[#allocation5 + $0x1df8] sm:$0xff] }
 0x527   :  { %10822 = vmatpush1.bf16.msra.mxu0 %v13205_v44  ;;  %11338 = vmatpush1.bf16.msra.mxu1 %v13207_v7  ;;  %v13253_v44 = vcombine.low %v1043_v30, %v1047_v57  ;;  %v13262_v7 = vcombine.high %v1051_v62, %v1055_v13  ;;  %v1092_v30 = vld [vmem:[#allocation5 + $0x1e18] sm:$0xff] }
 0x528   :  { %10823 = vmatprep.subr.bf16.mxu0 %v13214_v8  ;;  %11339 = vmatprep.subr.bf16.mxu1 %v13216_v9  ;;  %v13264_v8 = vcombine.high %v1052_v63, %v1056_v1  ;;  %v1059_v9 = vld [vmem:[#allocation5 + $0x1d10] sm:$0xff]  ;;  %v1096_v57 = vld [vmem:[#allocation5 + $0x1e38] sm:$0xff] }
 0x529   :  { %v13269_v27 = vcombine.low %v1059_v9, %v1063_v10  ;;  %v1100_v62 = vld [vmem:[#allocation5 + $0x1e58] sm:$0xff] }
 0x52a   :  { %v1104_v13 = vld [vmem:[#allocation5 + $0x1e78] sm:$0xff] }
 0x52b   :  { %10824 = vmatpush1.bf16.msra.mxu0 %v13213_v16  ;;  %11340 = vmatpush1.bf16.msra.mxu1 %v13215_v56  ;;  %v13263_v16 = vcombine.low %v1052_v63, %v1056_v1  ;;  %v13270_v56 = vcombine.high %v1059_v9, %v1063_v10  ;;  %v13303_v1 = vcombine.low %v1092_v30, %v1096_v57  ;;  %v1108_v9 = vld [vmem:[#allocation5 + $0x1e98] sm:$0xff] }
 0x52c   :  { %10825 = vmatprep.subr.bf16.mxu0 %v13222_v35  ;;  %11341 = vmatprep.subr.bf16.mxu1 %v13224_v15  ;;  %v1067_v35 = vld [vmem:[#allocation5 + $0x1d50] sm:$0xff]  ;;  %v1112_v10 = vld [vmem:[#allocation5 + $0x1eb8] sm:$0xff] }
 0x52d   :  { %v1071_v15 = vld [vmem:[#allocation5 + $0x1d70] sm:$0xff] }
 0x52e   :  { %v13277_v38 = vcombine.low %v1067_v35, %v1071_v15 }
 0x52f   :  { %10826 = vmatpush1.bf16.msra.mxu0 %v13221_v29  ;;  %11342 = vmatpush1.bf16.msra.mxu1 %v13223_v0  ;;  %v13278_v29 = vcombine.high %v1067_v35, %v1071_v15  ;;  %v13280_v0 = vcombine.high %v1068_v23, %v1072_v25  ;;  %v1116_v35 = vld [vmem:[#allocation5 + $0x1ed8] sm:$0xff]  ;;  %v13319_v25 = vcombine.low %v1108_v9, %v1112_v10 }
 0x530   :  { %10827 = vmatprep.subr.bf16.mxu0 %v13230_v40  ;;  %11343 = vmatprep.subr.bf16.mxu1 %v13232_v55  ;;  %v1075_v40 = vld [vmem:[#allocation5 + $0x1d90] sm:$0xff]  ;;  %v1120_v15 = vld [vmem:[#allocation5 + $0x1ef8] sm:$0xff] }
 0x531   :  { %v1079_v55 = vld [vmem:[#allocation5 + $0x1db0] sm:$0xff] }
 0x532   :  { %v13285_v45 = vcombine.low %v1075_v40, %v1079_v55 }
 0x533   :  { %10828 = vmatpush1.bf16.msra.mxu0 %v13229_v43  ;;  %11344 = vmatpush1.bf16.msra.mxu1 %v13231_v18  ;;  %v13286_v43 = vcombine.high %v1075_v40, %v1079_v55  ;;  %v13288_v18 = vcombine.high %v1076_v37, %v1080_v54  ;;  %v1124_v40 = vld [vmem:[#allocation5 + $0x1f18] sm:$0xff]  ;;  %v13327_v54 = vcombine.low %v1116_v35, %v1120_v15 }
 0x534   :  { %10840 = vmatprep.subr.bf16.mxu0 %v13238_v19  ;;  %11356 = vmatprep.subr.bf16.mxu1 %v13240_v46  ;;  %v1083_v19 = vld [vmem:[#allocation5 + $0x1dd0] sm:$0xff]  ;;  %v1128_v55 = vld [vmem:[#allocation5 + $0x1f38] sm:$0xff] }
 0x535   :  { %v1087_v46 = vld [vmem:[#allocation5 + $0x1df0] sm:$0xff] }
 0x536   :  { %10830 = vmatmul.mubr.bf16.vlgmr.msra.gmra.mrb[4].mxu0 %v14672_v5  ;;  %11346 = vmatmul.mubr.bf16.vlgmr.msra.gmra.mrb[4].mxu1 %v14672_v5  ;;  %v13255_v5 = vcombine.low %v1044_v58, %v1048_v41  ;;  %v13293_v58 = vcombine.low %v1083_v19, %v1087_v46  ;;  %v13295_v41 = vcombine.low %v1084_v21, %v1088_v32 }
 0x537   :  { %10841 = vmatpush1.bf16.msra.mxu0 %v13237_v52  ;;  %11357 = vmatpush1.bf16.msra.mxu1 %v13239_v2  ;;  %v13294_v52 = vcombine.high %v1083_v19, %v1087_v46  ;;  %v13296_v2 = vcombine.high %v1084_v21, %v1088_v32  ;;  %v1132_v19 = vld [vmem:[#allocation5 + $0x1f58] sm:$0xff]  ;;  %v13335_v32 = vcombine.low %v1124_v40, %v1128_v55 }
 0x538   :  { %10842 = vmatprep.subr.bf16.mxu0 %v13246_v3  ;;  %11358 = vmatprep.subr.bf16.mxu1 %v13248_v4  ;;  %v1091_v3 = vld [vmem:[#allocation5 + $0x1e10] sm:$0xff]  ;;  %v1136_v46 = vld [vmem:[#allocation5 + $0x1f78] sm:$0xff] }
 0x539   :  { %10872 = vmatprep.mubr.bf16.mxu0 %v14680_v53  ;;  %11388 = vmatprep.mubr.bf16.mxu1 %v14680_v53  ;;  %v13272_v53 = vcombine.high %v1060_v11, %v1064_v12  ;;  %v1095_v4 = vld [vmem:[#allocation5 + $0x1e30] sm:$0xff]  ;;  %v13311_v12 = vcombine.low %v1100_v62, %v1104_v13 }
 0x53a   :  { %v13301_v63 = vcombine.low %v1091_v3, %v1095_v4 }
 0x53b   :  { %10843 = vmatpush1.bf16.msra.mxu0 %v13245_v17  ;;  %11359 = vmatpush1.bf16.msra.mxu1 %v13247_v20  ;;  %v13302_v17 = vcombine.high %v1091_v3, %v1095_v4  ;;  %v13304_v20 = vcombine.high %v1092_v30, %v1096_v57  ;;  %v1140_v3 = vld [vmem:[#allocation5 + $0x1f98] sm:$0xff]  ;;  %v13343_v57 = vcombine.low %v1132_v19, %v1136_v46 }
 0x53c   :  { %10844 = vmatprep.subr.bf16.mxu0 %v13254_v60  ;;  %11360 = vmatprep.subr.bf16.mxu1 %v13256_v61  ;;  %v1099_v60 = vld [vmem:[#allocation5 + $0x1e50] sm:$0xff]  ;;  %v1144_v4 = vld [vmem:[#allocation5 + $0x1fb8] sm:$0xff] }
 0x53d   :  { %v1103_v61 = vld [vmem:[#allocation5 + $0x1e70] sm:$0xff] }
 0x53e   :  { %v13309_v11 = vcombine.low %v1099_v60, %v1103_v61 }
 0x53f   :  { %10845 = vmatpush1.bf16.msra.mxu0 %v13253_v44  ;;  %11361 = vmatpush1.bf16.msra.mxu1 %v13255_v5  ;;  %v13310_v44 = vcombine.high %v1099_v60, %v1103_v61  ;;  %v13312_v5 = vcombine.high %v1100_v62, %v1104_v13  ;;  %v1148_v60 = vld [vmem:[#allocation5 + $0x1fd8] sm:$0xff]  ;;  %v13351_v13 = vcombine.low %v1140_v3, %v1144_v4 }
 0x540   :  { %10846 = vmatprep.subr.bf16.mxu0 %v13262_v7  ;;  %11362 = vmatprep.subr.bf16.mxu1 %v13264_v8  ;;  %v1107_v7 = vld [vmem:[#allocation5 + $0x1e90] sm:$0xff]  ;;  %v1152_v61 = vld [vmem:[#allocation5 + $0x1ff8] sm:$0xff] }
 0x541   :  { %v1111_v8 = vld [vmem:[#allocation5 + $0x1eb0] sm:$0xff] }
 0x542   :  { %v13317_v23 = vcombine.low %v1107_v7, %v1111_v8 }
 0x543   :  { %10847 = vmatpush1.bf16.msra.mxu0 %v13261_v34  ;;  %11363 = vmatpush1.bf16.msra.mxu1 %v13263_v16  ;;  %v13318_v34 = vcombine.high %v1107_v7, %v1111_v8  ;;  %v13320_v16 = vcombine.high %v1108_v9, %v1112_v10  ;;  %v1156_v7 = vld [vmem:[#allocation5 + $0x2018] sm:$0xff]  ;;  %v13359_v10 = vcombine.low %v1148_v60, %v1152_v61 }
 0x544   :  { %10848 = vmatprep.subr.bf16.mxu0 %v13270_v56  ;;  %11364 = vmatprep.subr.bf16.mxu1 %v13272_v53  ;;  %v1115_v56 = vld [vmem:[#allocation5 + $0x1ed0] sm:$0xff]  ;;  %v1160_v8 = vld [vmem:[#allocation5 + $0x2038] sm:$0xff] }
 0x545   :  { %v1119_v53 = vld [vmem:[#allocation5 + $0x1ef0] sm:$0xff] }
 0x546   :  { %v13325_v37 = vcombine.low %v1115_v56, %v1119_v53 }
 0x547   :  { %10849 = vmatpush1.bf16.msra.mxu0 %v13269_v27  ;;  %11365 = vmatpush1.bf16.msra.mxu1 %v13271_v59  ;;  %v13326_v27 = vcombine.high %v1115_v56, %v1119_v53  ;;  %v13328_v59 = vcombine.high %v1116_v35, %v1120_v15  ;;  %v1164_v56 = vld [vmem:[#allocation5 + $0x2058] sm:$0xff]  ;;  %v13367_v15 = vcombine.low %v1156_v7, %v1160_v8 }
 0x548   :  { %10850 = vmatprep.subr.bf16.mxu0 %v13278_v29  ;;  %11366 = vmatprep.subr.bf16.mxu1 %v13280_v0  ;;  %v1123_v29 = vld [vmem:[#allocation5 + $0x1f10] sm:$0xff]  ;;  %v1168_v53 = vld [vmem:[#allocation5 + $0x2078] sm:$0xff] }
 0x549   :  { %v1127_v0 = vld [vmem:[#allocation5 + $0x1f30] sm:$0xff] }
 0x54a   :  { %v13333_v21 = vcombine.low %v1123_v29, %v1127_v0 }
 0x54b   :  { %10851 = vmatpush1.bf16.msra.mxu0 %v13277_v38  ;;  %11367 = vmatpush1.bf16.msra.mxu1 %v13279_v42  ;;  %v13334_v38 = vcombine.high %v1123_v29, %v1127_v0  ;;  %v13336_v42 = vcombine.high %v1124_v40, %v1128_v55  ;;  %v1172_v29 = vld [vmem:[#allocation5 + $0x2098] sm:$0xff]  ;;  %v13375_v55 = vcombine.low %v1164_v56, %v1168_v53 }
 0x54c   :  { %10852 = vmatprep.subr.bf16.mxu0 %v13286_v43  ;;  %11368 = vmatprep.subr.bf16.mxu1 %v13288_v18  ;;  %v1131_v43 = vld [vmem:[#allocation5 + $0x1f50] sm:$0xff]  ;;  %v1176_v0 = vld [vmem:[#allocation5 + $0x20b8] sm:$0xff] }
 0x54d   :  { %v1135_v18 = vld [vmem:[#allocation5 + $0x1f70] sm:$0xff] }
 0x54e   :  { %v13341_v30 = vcombine.low %v1131_v43, %v1135_v18 }
 0x54f   :  { %10853 = vmatpush1.bf16.msra.mxu0 %v13285_v45  ;;  %11369 = vmatpush1.bf16.msra.mxu1 %v13287_v49  ;;  %v13342_v45 = vcombine.high %v1131_v43, %v1135_v18  ;;  %v13344_v49 = vcombine.high %v1132_v19, %v1136_v46  ;;  %v1180_v43 = vld [vmem:[#allocation5 + $0x20d8] sm:$0xff] }
 0x550   :  { %10854 = vmatprep.subr.bf16.mxu0 %v13294_v52  ;;  %11370 = vmatprep.subr.bf16.mxu1 %v13296_v2  ;;  %v1139_v52 = vld [vmem:[#allocation5 + $0x1f90] sm:$0xff]  ;;  %v1184_v18 = vld [vmem:[#allocation5 + $0x20f8] sm:$0xff] }
 0x551   :  { %v1143_v2 = vld [vmem:[#allocation5 + $0x1fb0] sm:$0xff] }
 0x552   :  { %v13349_v62 = vcombine.low %v1139_v52, %v1143_v2 }
 0x553   :  { %10855 = vmatpush1.bf16.msra.mxu0 %v13293_v58  ;;  %11371 = vmatpush1.bf16.msra.mxu1 %v13295_v41  ;;  %v13350_v58 = vcombine.high %v1139_v52, %v1143_v2  ;;  %v13352_v41 = vcombine.high %v1140_v3, %v1144_v4  ;;  %v1192_v52 = vld [vmem:[#allocation5 + $0x2138] sm:$0xff]  ;;  %v13391_v3 = vcombine.low %v1180_v43, %v1184_v18 }
 0x554   :  { %10856 = vmatprep.subr.bf16.mxu0 %v13302_v17  ;;  %11372 = vmatprep.subr.bf16.mxu1 %v13304_v20  ;;  %v1147_v17 = vld [vmem:[#allocation5 + $0x1fd0] sm:$0xff] }
 0x555   :  { %v1151_v20 = vld [vmem:[#allocation5 + $0x1ff0] sm:$0xff] }
 0x556   :  { %v13357_v9 = vcombine.low %v1147_v17, %v1151_v20 }
 0x557   :  { %10857 = vmatpush1.bf16.msra.mxu0 %v13301_v63  ;;  %11373 = vmatpush1.bf16.msra.mxu1 %v13303_v1  ;;  %v13358_v63 = vcombine.high %v1147_v17, %v1151_v20  ;;  %v13360_v1 = vcombine.high %v1148_v60, %v1152_v61 }
 0x558   :  { %10858 = vmatprep.subr.bf16.mxu0 %v13310_v44  ;;  %11374 = vmatprep.subr.bf16.mxu1 %v13312_v5  ;;  %v1155_v44 = vld [vmem:[#allocation5 + $0x2010] sm:$0xff] }
 0x559   :  { %v1159_v5 = vld [vmem:[#allocation5 + $0x2030] sm:$0xff] }
 0x55a   :  { %v13365_v35 = vcombine.low %v1155_v44, %v1159_v5 }
 0x55b   :  { %10859 = vmatpush1.bf16.msra.mxu0 %v13309_v11  ;;  %11375 = vmatpush1.bf16.msra.mxu1 %v13311_v12  ;;  %v13366_v11 = vcombine.high %v1155_v44, %v1159_v5  ;;  %v13368_v12 = vcombine.high %v1156_v7, %v1160_v8 }
 0x55c   :  { %10860 = vmatprep.subr.bf16.mxu0 %v13318_v34  ;;  %11376 = vmatprep.subr.bf16.mxu1 %v13320_v16  ;;  %v1163_v34 = vld [vmem:[#allocation5 + $0x2050] sm:$0xff] }
 0x55d   :  { %v1167_v16 = vld [vmem:[#allocation5 + $0x2070] sm:$0xff] }
 0x55e   :  { %v13373_v40 = vcombine.low %v1163_v34, %v1167_v16 }
 0x55f   :  { %10861 = vmatpush1.bf16.msra.mxu0 %v13317_v23  ;;  %11377 = vmatpush1.bf16.msra.mxu1 %v13319_v25  ;;  %v13374_v23 = vcombine.high %v1163_v34, %v1167_v16  ;;  %v13376_v25 = vcombine.high %v1164_v56, %v1168_v53 }
 0x560   :  { %10862 = vmatprep.subr.bf16.mxu0 %v13326_v27  ;;  %11378 = vmatprep.subr.bf16.mxu1 %v13328_v59  ;;  %v1171_v27 = vld [vmem:[#allocation5 + $0x2090] sm:$0xff] }
 0x561   :  { %v1175_v59 = vld [vmem:[#allocation5 + $0x20b0] sm:$0xff] }
 0x562   :  { %v13381_v19 = vcombine.low %v1171_v27, %v1175_v59 }
 0x563   :  { %10863 = vmatpush1.bf16.msra.mxu0 %v13325_v37  ;;  %11379 = vmatpush1.bf16.msra.mxu1 %v13327_v54  ;;  %v13382_v37 = vcombine.high %v1171_v27, %v1175_v59  ;;  %v13384_v54 = vcombine.high %v1172_v29, %v1176_v0 }
 0x564   :  { %10864 = vmatprep.subr.bf16.mxu0 %v13334_v38  ;;  %11380 = vmatprep.subr.bf16.mxu1 %v13336_v42  ;;  %v1179_v38 = vld [vmem:[#allocation5 + $0x20d0] sm:$0xff] }
 0x565   :  { %v1183_v42 = vld [vmem:[#allocation5 + $0x20f0] sm:$0xff] }
 0x566   :  { %v13390_v46 = vcombine.high %v1179_v38, %v1183_v42  ;;  %v13389_v2 = vcombine.low %v1179_v38, %v1183_v42 }
 0x567   :  { %10865 = vmatpush1.bf16.msra.mxu0 %v13333_v21  ;;  %11381 = vmatpush1.bf16.msra.mxu1 %v13335_v32  ;;  %v13392_v21 = vcombine.high %v1180_v43, %v1184_v18  ;;  %v1187_v32 = vld [vmem:[#allocation5 + $0x2110] sm:$0xff] }
 0x568   :  { %10866 = vmatprep.subr.bf16.mxu0 %v13342_v45  ;;  %11382 = vmatprep.subr.bf16.mxu1 %v13344_v49  ;;  %v1191_v45 = vld [vmem:[#allocation5 + $0x2130] sm:$0xff]  ;;  %v1188_v49 = vld [vmem:[#allocation5 + $0x2118] sm:$0xff] }
 0x569   :  { %v13398_v4 = vcombine.high %v1187_v32, %v1191_v45  ;;  %v13397_v17 = vcombine.low %v1187_v32, %v1191_v45  ;;  %v13399_v20 = vcombine.low %v1188_v49, %v1192_v52 }
 0x56b   :  { %10867 = vmatpush1.bf16.msra.mxu0 %v13341_v30  ;;  %11383 = vmatpush1.bf16.msra.mxu1 %v13343_v57  ;;  %v1195_v30 = vld [vmem:[#allocation5 + $0x2150] sm:$0xff] }
 0x56c   :  { %10868 = vmatprep.subr.bf16.mxu0 %v13350_v58  ;;  %11384 = vmatprep.subr.bf16.mxu1 %v13352_v41  ;;  %v1199_v57 = vld [vmem:[#allocation5 + $0x2170] sm:$0xff]  ;;  %v1196_v58 = vld [vmem:[#allocation5 + $0x2158] sm:$0xff] }
 0x56d   :  { %v1200_v41 = vld [vmem:[#allocation5 + $0x2178] sm:$0xff]  ;;  %v13406_v60 = vcombine.high %v1195_v30, %v1199_v57  ;;  %v13405_v44 = vcombine.low %v1195_v30, %v1199_v57 }
 0x56e   :  { %v13408_v61 = vcombine.high %v1196_v58, %v1200_v41  ;;  %v13407_v5 = vcombine.low %v1196_v58, %v1200_v41 }
 0x56f   :  { %10869 = vmatpush1.bf16.msra.mxu0 %v13349_v62  ;;  %11385 = vmatpush1.bf16.msra.mxu1 %v13351_v13  ;;  %v1203_v62 = vld [vmem:[#allocation5 + $0x2190] sm:$0xff] }
 0x570   :  { %10870 = vmatprep.subr.bf16.mxu0 %v13358_v63  ;;  %11386 = vmatprep.subr.bf16.mxu1 %v13360_v1  ;;  %v1207_v13 = vld [vmem:[#allocation5 + $0x21b0] sm:$0xff]  ;;  %v1204_v63 = vld [vmem:[#allocation5 + $0x2198] sm:$0xff] }
 0x571   :  { %v1208_v1 = vld [vmem:[#allocation5 + $0x21b8] sm:$0xff]  ;;  %v13414_v7 = vcombine.high %v1203_v62, %v1207_v13  ;;  %v13413_v34 = vcombine.low %v1203_v62, %v1207_v13 }
 0x572   :  { %v13416_v8 = vcombine.high %v1204_v63, %v1208_v1  ;;  %v13415_v16 = vcombine.low %v1204_v63, %v1208_v1 }
 0x573   :  { %10871 = vmatpush1.bf16.msra.mxu0 %v13357_v9  ;;  %11387 = vmatpush1.bf16.msra.mxu1 %v13359_v10  ;;  %v1211_v9 = vld [vmem:[#allocation5 + $0x21d0] sm:$0xff] }
 0x574   :  { %10883 = vmatprep.subr.bf16.mxu0 %v13366_v11  ;;  %11399 = vmatprep.subr.bf16.mxu1 %v13368_v12  ;;  %v1215_v10 = vld [vmem:[#allocation5 + $0x21f0] sm:$0xff]  ;;  %v1212_v11 = vld [vmem:[#allocation5 + $0x21d8] sm:$0xff] }
 0x575   :  { %v1216_v12 = vld [vmem:[#allocation5 + $0x21f8] sm:$0xff]  ;;  %v13422_v56 = vcombine.high %v1211_v9, %v1215_v10  ;;  %v13421_v27 = vcombine.low %v1211_v9, %v1215_v10 }
 0x576   :  { %10873 = vmatmul.mubr.bf16.vlgmr.msra.gmra.mrb[4].mxu0 %v14688_v24  ;;  %11389 = vmatmul.mubr.bf16.vlgmr.msra.gmra.mrb[4].mxu1 %v14688_v24  ;;  %v13383_v24 = vcombine.low %v1172_v29, %v1176_v0  ;;  %v13424_v53 = vcombine.high %v1212_v11, %v1216_v12  ;;  %v13423_v59 = vcombine.low %v1212_v11, %v1216_v12 }
 0x577   :  { %10884 = vmatpush1.bf16.msra.mxu0 %v13365_v35  ;;  %11400 = vmatpush1.bf16.msra.mxu1 %v13367_v15  ;;  %v1219_v35 = vld [vmem:[#allocation5 + $0x2210] sm:$0xff] }
 0x578   :  { %10885 = vmatprep.subr.bf16.mxu0 %v13374_v23  ;;  %11401 = vmatprep.subr.bf16.mxu1 %v13376_v25  ;;  %v1223_v15 = vld [vmem:[#allocation5 + $0x2230] sm:$0xff]  ;;  %v1220_v23 = vld [vmem:[#allocation5 + $0x2218] sm:$0xff] }
 0x579   :  { %10915 = vmatprep.mubr.bf16.mxu0 %v14696_v39  ;;  %11431 = vmatprep.mubr.bf16.mxu1 %v14696_v39  ;;  %v13400_v39 = vcombine.high %v1188_v49, %v1192_v52  ;;  %v1224_v25 = vld [vmem:[#allocation5 + $0x2238] sm:$0xff]  ;;  %v13430_v29 = vcombine.high %v1219_v35, %v1223_v15  ;;  %v13429_v38 = vcombine.low %v1219_v35, %v1223_v15 }
 0x57a   :  { %v13432_v0 = vcombine.high %v1220_v23, %v1224_v25  ;;  %v13431_v42 = vcombine.low %v1220_v23, %v1224_v25 }
 0x57b   :  { %10886 = vmatpush1.bf16.msra.mxu0 %v13373_v40  ;;  %11402 = vmatpush1.bf16.msra.mxu1 %v13375_v55  ;;  %v1227_v40 = vld [vmem:[#allocation5 + $0x2250] sm:$0xff] }
 0x57c   :  { %10887 = vmatprep.subr.bf16.mxu0 %v13382_v37  ;;  %11403 = vmatprep.subr.bf16.mxu1 %v13384_v54  ;;  %v1231_v55 = vld [vmem:[#allocation5 + $0x2270] sm:$0xff]  ;;  %v1228_v37 = vld [vmem:[#allocation5 + $0x2258] sm:$0xff] }
 0x57d   :  { %v1232_v54 = vld [vmem:[#allocation5 + $0x2278] sm:$0xff]  ;;  %v13438_v43 = vcombine.high %v1227_v40, %v1231_v55  ;;  %v13437_v32 = vcombine.low %v1227_v40, %v1231_v55 }
 0x57e   :  { %v13440_v18 = vcombine.high %v1228_v37, %v1232_v54  ;;  %v13439_v45 = vcombine.low %v1228_v37, %v1232_v54 }
 0x57f   :  { %10888 = vmatpush1.bf16.msra.mxu0 %v13381_v19  ;;  %11404 = vmatpush1.bf16.msra.mxu1 %v13383_v24  ;;  %v1235_v19 = vld [vmem:[#allocation5 + $0x2290] sm:$0xff] }
 0x580   :  { %10889 = vmatprep.subr.bf16.mxu0 %v13390_v46  ;;  %11405 = vmatprep.subr.bf16.mxu1 %v13392_v21  ;;  %v1239_v24 = vld [vmem:[#allocation5 + $0x22b0] sm:$0xff]  ;;  %v1236_v46 = vld [vmem:[#allocation5 + $0x2298] sm:$0xff] }
 0x581   :  { %v1240_v21 = vld [vmem:[#allocation5 + $0x22b8] sm:$0xff]  ;;  %v13446_v49 = vcombine.high %v1235_v19, %v1239_v24  ;;  %v13445_v30 = vcombine.low %v1235_v19, %v1239_v24 }
 0x582   :  { %v13448_v52 = vcombine.high %v1236_v46, %v1240_v21  ;;  %v13447_v57 = vcombine.low %v1236_v46, %v1240_v21 }
 0x583   :  { %10890 = vmatpush1.bf16.msra.mxu0 %v13389_v2  ;;  %11406 = vmatpush1.bf16.msra.mxu1 %v13391_v3  ;;  %v1243_v2 = vld [vmem:[#allocation5 + $0x22d0] sm:$0xff] }
 0x584   :  { %10891 = vmatprep.subr.bf16.mxu0 %v13398_v4  ;;  %11407 = vmatprep.subr.bf16.mxu1 %v13400_v39  ;;  %v1247_v3 = vld [vmem:[#allocation5 + $0x22f0] sm:$0xff]  ;;  %v1244_v4 = vld [vmem:[#allocation5 + $0x22d8] sm:$0xff] }
 0x585   :  { %v1248_v39 = vld [vmem:[#allocation5 + $0x22f8] sm:$0xff]  ;;  %v13454_v58 = vcombine.high %v1243_v2, %v1247_v3  ;;  %v13453_v62 = vcombine.low %v1243_v2, %v1247_v3 }
 0x586   :  { %v13456_v41 = vcombine.high %v1244_v4, %v1248_v39  ;;  %v13455_v13 = vcombine.low %v1244_v4, %v1248_v39 }
 0x587   :  { %10892 = vmatpush1.bf16.msra.mxu0 %v13397_v17  ;;  %11408 = vmatpush1.bf16.msra.mxu1 %v13399_v20  ;;  %v1251_v17 = vld [vmem:[#allocation5 + $0x2310] sm:$0xff] }
 0x588   :  { %10893 = vmatprep.subr.bf16.mxu0 %v13406_v60  ;;  %11409 = vmatprep.subr.bf16.mxu1 %v13408_v61  ;;  %v1255_v20 = vld [vmem:[#allocation5 + $0x2330] sm:$0xff]  ;;  %v1252_v60 = vld [vmem:[#allocation5 + $0x2318] sm:$0xff] }
 0x589   :  { %v1256_v61 = vld [vmem:[#allocation5 + $0x2338] sm:$0xff]  ;;  %v13462_v63 = vcombine.high %v1251_v17, %v1255_v20  ;;  %v13461_v9 = vcombine.low %v1251_v17, %v1255_v20 }
 0x58a   :  { %v13464_v1 = vcombine.high %v1252_v60, %v1256_v61  ;;  %v13463_v10 = vcombine.low %v1252_v60, %v1256_v61 }
 0x58b   :  { %10894 = vmatpush1.bf16.msra.mxu0 %v13405_v44  ;;  %11410 = vmatpush1.bf16.msra.mxu1 %v13407_v5  ;;  %v1259_v44 = vld [vmem:[#allocation5 + $0x2350] sm:$0xff] }
 0x58c   :  { %10895 = vmatprep.subr.bf16.mxu0 %v13414_v7  ;;  %11411 = vmatprep.subr.bf16.mxu1 %v13416_v8  ;;  %v1263_v5 = vld [vmem:[#allocation5 + $0x2370] sm:$0xff]  ;;  %v1260_v7 = vld [vmem:[#allocation5 + $0x2358] sm:$0xff] }
 0x58d   :  { %v1264_v8 = vld [vmem:[#allocation5 + $0x2378] sm:$0xff]  ;;  %v13470_v11 = vcombine.high %v1259_v44, %v1263_v5  ;;  %v13469_v35 = vcombine.low %v1259_v44, %v1263_v5 }
 0x58e   :  { %v13472_v12 = vcombine.high %v1260_v7, %v1264_v8  ;;  %v13471_v15 = vcombine.low %v1260_v7, %v1264_v8  ;;  %v1315_v8 = vld [vmem:[#allocation5 + $0x2510] sm:$0xff] }
 0x58f   :  { %10896 = vmatpush1.bf16.msra.mxu0 %v13413_v34  ;;  %11412 = vmatpush1.bf16.msra.mxu1 %v13415_v16  ;;  %v1267_v34 = vld [vmem:[#allocation5 + $0x2390] sm:$0xff] }
 0x590   :  { %10897 = vmatprep.subr.bf16.mxu0 %v13422_v56  ;;  %11413 = vmatprep.subr.bf16.mxu1 %v13424_v53  ;;  %v1271_v16 = vld [vmem:[#allocation5 + $0x23b0] sm:$0xff]  ;;  %v1268_v56 = vld [vmem:[#allocation5 + $0x2398] sm:$0xff] }
 0x591   :  { %v1272_v53 = vld [vmem:[#allocation5 + $0x23b8] sm:$0xff]  ;;  %v13478_v23 = vcombine.high %v1267_v34, %v1271_v16  ;;  %v13477_v40 = vcombine.low %v1267_v34, %v1271_v16 }
 0x592   :  { %v13480_v25 = vcombine.high %v1268_v56, %v1272_v53  ;;  %v13479_v55 = vcombine.low %v1268_v56, %v1272_v53  ;;  %v1323_v56 = vld [vmem:[#allocation5 + $0x2550] sm:$0xff] }
 0x593   :  { %10898 = vmatpush1.bf16.msra.mxu0 %v13421_v27  ;;  %11414 = vmatpush1.bf16.msra.mxu1 %v13423_v59  ;;  %v1275_v27 = vld [vmem:[#allocation5 + $0x23d0] sm:$0xff] }
 0x594   :  { %10899 = vmatprep.subr.bf16.mxu0 %v13430_v29  ;;  %11415 = vmatprep.subr.bf16.mxu1 %v13432_v0  ;;  %v1279_v59 = vld [vmem:[#allocation5 + $0x23f0] sm:$0xff]  ;;  %v1276_v29 = vld [vmem:[#allocation5 + $0x23d8] sm:$0xff] }
 0x595   :  { %v1280_v0 = vld [vmem:[#allocation5 + $0x23f8] sm:$0xff]  ;;  %v13486_v37 = vcombine.high %v1275_v27, %v1279_v59  ;;  %v13485_v19 = vcombine.low %v1275_v27, %v1279_v59  ;;  %v1327_v53 = vld [vmem:[#allocation5 + $0x2570] sm:$0xff] }
 0x596   :  { %v13488_v54 = vcombine.high %v1276_v29, %v1280_v0  ;;  %v13487_v24 = vcombine.low %v1276_v29, %v1280_v0  ;;  %v13534_v27 = vcombine.high %v1323_v56, %v1327_v53  ;;  %v1331_v29 = vld [vmem:[#allocation5 + $0x2590] sm:$0xff] }
 0x597   :  { %10900 = vmatpush1.bf16.msra.mxu0 %v13429_v38  ;;  %11416 = vmatpush1.bf16.msra.mxu1 %v13431_v42  ;;  %v1283_v38 = vld [vmem:[#allocation5 + $0x2410] sm:$0xff] }
 0x598   :  { %10901 = vmatprep.subr.bf16.mxu0 %v13438_v43  ;;  %11417 = vmatprep.subr.bf16.mxu1 %v13440_v18  ;;  %v1287_v42 = vld [vmem:[#allocation5 + $0x2430] sm:$0xff]  ;;  %v1284_v43 = vld [vmem:[#allocation5 + $0x2418] sm:$0xff] }
 0x599   :  { %v1288_v18 = vld [vmem:[#allocation5 + $0x2438] sm:$0xff]  ;;  %v13494_v46 = vcombine.high %v1283_v38, %v1287_v42  ;;  %v13493_v2 = vcombine.low %v1283_v38, %v1287_v42  ;;  %v1335_v0 = vld [vmem:[#allocation5 + $0x25b0] sm:$0xff] }
 0x59a   :  { %v13496_v21 = vcombine.high %v1284_v43, %v1288_v18  ;;  %v13495_v3 = vcombine.low %v1284_v43, %v1288_v18  ;;  %v13542_v38 = vcombine.high %v1331_v29, %v1335_v0  ;;  %v1339_v43 = vld [vmem:[#allocation5 + $0x25d0] sm:$0xff] }
 0x59b   :  { %10902 = vmatpush1.bf16.msra.mxu0 %v13437_v32  ;;  %11418 = vmatpush1.bf16.msra.mxu1 %v13439_v45  ;;  %v1291_v32 = vld [vmem:[#allocation5 + $0x2450] sm:$0xff] }
 0x59c   :  { %10903 = vmatprep.subr.bf16.mxu0 %v13446_v49  ;;  %11419 = vmatprep.subr.bf16.mxu1 %v13448_v52  ;;  %v1295_v45 = vld [vmem:[#allocation5 + $0x2470] sm:$0xff]  ;;  %v1292_v49 = vld [vmem:[#allocation5 + $0x2458] sm:$0xff] }
 0x59d   :  { %v1296_v52 = vld [vmem:[#allocation5 + $0x2478] sm:$0xff]  ;;  %v13502_v4 = vcombine.high %v1291_v32, %v1295_v45  ;;  %v13501_v17 = vcombine.low %v1291_v32, %v1295_v45  ;;  %v1343_v18 = vld [vmem:[#allocation5 + $0x25f0] sm:$0xff] }
 0x59e   :  { %v13504_v39 = vcombine.high %v1292_v49, %v1296_v52  ;;  %v13503_v20 = vcombine.low %v1292_v49, %v1296_v52  ;;  %v13550_v32 = vcombine.high %v1339_v43, %v1343_v18  ;;  %v1347_v49 = vld [vmem:[#allocation5 + $0x2610] sm:$0xff] }
 0x59f   :  { %10904 = vmatpush1.bf16.msra.mxu0 %v13445_v30  ;;  %11420 = vmatpush1.bf16.msra.mxu1 %v13447_v57  ;;  %v1299_v30 = vld [vmem:[#allocation5 + $0x2490] sm:$0xff] }
 0x5a0   :  { %10905 = vmatprep.subr.bf16.mxu0 %v13454_v58  ;;  %11421 = vmatprep.subr.bf16.mxu1 %v13456_v41  ;;  %v1303_v57 = vld [vmem:[#allocation5 + $0x24b0] sm:$0xff]  ;;  %v1300_v58 = vld [vmem:[#allocation5 + $0x2498] sm:$0xff] }
 0x5a1   :  { %v1304_v41 = vld [vmem:[#allocation5 + $0x24b8] sm:$0xff]  ;;  %v13510_v60 = vcombine.high %v1299_v30, %v1303_v57  ;;  %v13509_v44 = vcombine.low %v1299_v30, %v1303_v57  ;;  %v1351_v52 = vld [vmem:[#allocation5 + $0x2630] sm:$0xff] }
 0x5a2   :  { %v13512_v61 = vcombine.high %v1300_v58, %v1304_v41  ;;  %v13558_v30 = vcombine.high %v1347_v49, %v1351_v52 }
 0x5a3   :  { %10906 = vmatpush1.bf16.msra.mxu0 %v13453_v62  ;;  %11422 = vmatpush1.bf16.msra.mxu1 %v13455_v13  ;;  %v1307_v62 = vld [vmem:[#allocation5 + $0x24d0] sm:$0xff] }
 0x5a4   :  { %10907 = vmatprep.subr.bf16.mxu0 %v13462_v63  ;;  %11423 = vmatprep.subr.bf16.mxu1 %v13464_v1  ;;  %v1311_v13 = vld [vmem:[#allocation5 + $0x24f0] sm:$0xff]  ;;  %v1308_v63 = vld [vmem:[#allocation5 + $0x24d8] sm:$0xff] }
 0x5a5   :  { %v1312_v1 = vld [vmem:[#allocation5 + $0x24f8] sm:$0xff]  ;;  %v13518_v5 = vcombine.high %v1307_v62, %v1311_v13 }
 0x5a6   :  { %v13520_v7 = vcombine.high %v1308_v63, %v1312_v1  ;;  %v13519_v34 = vcombine.low %v1308_v63, %v1312_v1  ;;  %v1363_v63 = vld [vmem:[#allocation5 + $0x2690] sm:$0xff] }
 0x5a7   :  { %10908 = vmatpush1.bf16.msra.mxu0 %v13461_v9  ;;  %11424 = vmatpush1.bf16.msra.mxu1 %v13463_v10  ;;  %v1319_v9 = vld [vmem:[#allocation5 + $0x2530] sm:$0xff]  ;;  %v1316_v10 = vld [vmem:[#allocation5 + $0x2518] sm:$0xff] }
 0x5a8   :  { %10909 = vmatprep.subr.bf16.mxu0 %v13470_v11  ;;  %11425 = vmatprep.subr.bf16.mxu1 %v13472_v12  ;;  %v1320_v11 = vld [vmem:[#allocation5 + $0x2538] sm:$0xff]  ;;  %v13517_v12 = vcombine.low %v1307_v62, %v1311_v13  ;;  %v13526_v16 = vcombine.high %v1315_v8, %v1319_v9  ;;  %v1367_v1 = vld [vmem:[#allocation5 + $0x26b0] sm:$0xff] }
 0x5ab   :  { %10910 = vmatpush1.bf16.msra.mxu0 %v13469_v35  ;;  %11426 = vmatpush1.bf16.msra.mxu1 %v13471_v15  ;;  %v1324_v35 = vld [vmem:[#allocation5 + $0x2558] sm:$0xff] }
 0x5ac   :  { %10911 = vmatprep.subr.bf16.mxu0 %v13478_v23  ;;  %11427 = vmatprep.subr.bf16.mxu1 %v13480_v25  ;;  %v1328_v15 = vld [vmem:[#allocation5 + $0x2578] sm:$0xff]  ;;  %v13525_v23 = vcombine.low %v1315_v8, %v1319_v9  ;;  %v13527_v25 = vcombine.low %v1316_v10, %v1320_v11  ;;  %v13574_v8 = vcombine.high %v1363_v63, %v1367_v1 }
 0x5ad   :  { %v13536_v59 = vcombine.high %v1324_v35, %v1328_v15 }
 0x5af   :  { %10912 = vmatpush1.bf16.msra.mxu0 %v13477_v40  ;;  %11428 = vmatpush1.bf16.msra.mxu1 %v13479_v55  ;;  %v1332_v40 = vld [vmem:[#allocation5 + $0x2598] sm:$0xff] }
 0x5b0   :  { %10913 = vmatprep.subr.bf16.mxu0 %v13486_v37  ;;  %11429 = vmatprep.subr.bf16.mxu1 %v13488_v54  ;;  %v1336_v55 = vld [vmem:[#allocation5 + $0x25b8] sm:$0xff]  ;;  %v13533_v37 = vcombine.low %v1323_v56, %v1327_v53  ;;  %v13535_v54 = vcombine.low %v1324_v35, %v1328_v15  ;;  %v1379_v35 = vld [vmem:[#allocation5 + $0x2710] sm:$0xff] }
 0x5b1   :  { %v13544_v42 = vcombine.high %v1332_v40, %v1336_v55  ;;  %v1383_v15 = vld [vmem:[#allocation5 + $0x2730] sm:$0xff] }
 0x5b3   :  { %10914 = vmatpush1.bf16.msra.mxu0 %v13485_v19  ;;  %11430 = vmatpush1.bf16.msra.mxu1 %v13487_v24  ;;  %v1340_v19 = vld [vmem:[#allocation5 + $0x25d8] sm:$0xff] }
 0x5b4   :  { %10926 = vmatprep.subr.bf16.mxu0 %v13494_v46  ;;  %11442 = vmatprep.subr.bf16.mxu1 %v13496_v21  ;;  %v1344_v24 = vld [vmem:[#allocation5 + $0x25f8] sm:$0xff]  ;;  %v13541_v46 = vcombine.low %v1331_v29, %v1335_v0  ;;  %v13543_v21 = vcombine.low %v1332_v40, %v1336_v55  ;;  %v13590_v29 = vcombine.high %v1379_v35, %v1383_v15  ;;  %v1387_v40 = vld [vmem:[#allocation5 + $0x2750] sm:$0xff] }
 0x5b5   :  { %v13552_v45 = vcombine.high %v1340_v19, %v1344_v24  ;;  %v1391_v55 = vld [vmem:[#allocation5 + $0x2770] sm:$0xff] }
 0x5b6   :  { %10916 = vmatmul.mubr.bf16.vlgmr.msra.gmra.mrb[4].mxu0 %v14704_v14  ;;  %11432 = vmatmul.mubr.bf16.vlgmr.msra.gmra.mrb[4].mxu1 %v14704_v14  ;;  %v13511_v14 = vcombine.low %v1300_v58, %v1304_v41  ;;  %v1355_v58 = vld [vmem:[#allocation5 + $0x2650] sm:$0xff] }
 0x5b7   :  { %10927 = vmatpush1.bf16.msra.mxu0 %v13493_v2  ;;  %11443 = vmatpush1.bf16.msra.mxu1 %v13495_v3  ;;  %v1348_v2 = vld [vmem:[#allocation5 + $0x2618] sm:$0xff]  ;;  %v1359_v41 = vld [vmem:[#allocation5 + $0x2670] sm:$0xff] }
 0x5b8   :  { %10928 = vmatprep.subr.bf16.mxu0 %v13502_v4  ;;  %11444 = vmatprep.subr.bf16.mxu1 %v13504_v39  ;;  %v1352_v3 = vld [vmem:[#allocation5 + $0x2638] sm:$0xff]  ;;  %v13549_v4 = vcombine.low %v1339_v43, %v1343_v18  ;;  %v13551_v39 = vcombine.low %v1340_v19, %v1344_v24  ;;  %v13566_v62 = vcombine.high %v1355_v58, %v1359_v41  ;;  %v1395_v19 = vld [vmem:[#allocation5 + $0x2790] sm:$0xff] }
 0x5b9   :  { %10958 = vmatprep.mubr.bf16.mxu0 %v14712_v33  ;;  %11474 = vmatprep.mubr.bf16.mxu1 %v14712_v33  ;;  %v13528_v33 = vcombine.high %v1316_v10, %v1320_v11  ;;  %v13560_v57 = vcombine.high %v1348_v2, %v1352_v3  ;;  %v1371_v10 = vld [vmem:[#allocation5 + $0x26d0] sm:$0xff]  ;;  %v13598_v43 = vcombine.high %v1387_v40, %v1391_v55 }
 0x5ba   :  { %v1375_v11 = vld [vmem:[#allocation5 + $0x26f0] sm:$0xff] }
 0x5bb   :  { %10929 = vmatpush1.bf16.msra.mxu0 %v13501_v17  ;;  %11445 = vmatpush1.bf16.msra.mxu1 %v13503_v20  ;;  %v1356_v17 = vld [vmem:[#allocation5 + $0x2658] sm:$0xff]  ;;  %v13582_v56 = vcombine.high %v1371_v10, %v1375_v11  ;;  %v1399_v24 = vld [vmem:[#allocation5 + $0x27b0] sm:$0xff] }
 0x5bc   :  { %10930 = vmatprep.subr.bf16.mxu0 %v13510_v60  ;;  %11446 = vmatprep.subr.bf16.mxu1 %v13512_v61  ;;  %v1360_v20 = vld [vmem:[#allocation5 + $0x2678] sm:$0xff]  ;;  %v13557_v60 = vcombine.low %v1347_v49, %v1351_v52  ;;  %v13559_v61 = vcombine.low %v1348_v2, %v1352_v3  ;;  %v13606_v49 = vcombine.high %v1395_v19, %v1399_v24  ;;  %v1403_v2 = vld [vmem:[#allocation5 + $0x27d0] sm:$0xff] }
 0x5bd   :  { %v13568_v13 = vcombine.high %v1356_v17, %v1360_v20  ;;  %v1407_v3 = vld [vmem:[#allocation5 + $0x27f0] sm:$0xff] }
 0x5bf   :  { %10931 = vmatpush1.bf16.msra.mxu0 %v13509_v44  ;;  %11447 = vmatpush1.bf16.msra.mxu1 %v13511_v14  ;;  %v1364_v44 = vld [vmem:[#allocation5 + $0x2698] sm:$0xff] }
 0x5c0   :  { %10932 = vmatprep.subr.bf16.mxu0 %v13518_v5  ;;  %11448 = vmatprep.subr.bf16.mxu1 %v13520_v7  ;;  %v1368_v14 = vld [vmem:[#allocation5 + $0x26b8] sm:$0xff]  ;;  %v13565_v5 = vcombine.low %v1355_v58, %v1359_v41  ;;  %v13567_v7 = vcombine.low %v1356_v17, %v1360_v20  ;;  %v13614_v58 = vcombine.high %v1403_v2, %v1407_v3  ;;  %v1411_v17 = vld [vmem:[#allocation5 + $0x2810] sm:$0xff] }
 0x5c1   :  { %v13576_v9 = vcombine.high %v1364_v44, %v1368_v14  ;;  %v1415_v20 = vld [vmem:[#allocation5 + $0x2830] sm:$0xff] }
 0x5c3   :  { %10933 = vmatpush1.bf16.msra.mxu0 %v13517_v12  ;;  %11449 = vmatpush1.bf16.msra.mxu1 %v13519_v34  ;;  %v1372_v12 = vld [vmem:[#allocation5 + $0x26d8] sm:$0xff] }
 0x5c4   :  { %10934 = vmatprep.subr.bf16.mxu0 %v13526_v16  ;;  %11450 = vmatprep.subr.bf16.mxu1 %v13528_v33  ;;  %v1376_v34 = vld [vmem:[#allocation5 + $0x26f8] sm:$0xff]  ;;  %v13573_v16 = vcombine.low %v1363_v63, %v1367_v1  ;;  %v13575_v33 = vcombine.low %v1364_v44, %v1368_v14  ;;  %v13622_v63 = vcombine.high %v1411_v17, %v1415_v20  ;;  %v1419_v44 = vld [vmem:[#allocation5 + $0x2850] sm:$0xff] }
 0x5c5   :  { %v13584_v53 = vcombine.high %v1372_v12, %v1376_v34  ;;  %v1423_v14 = vld [vmem:[#allocation5 + $0x2870] sm:$0xff] }
 0x5c7   :  { %10935 = vmatpush1.bf16.msra.mxu0 %v13525_v23  ;;  %11451 = vmatpush1.bf16.msra.mxu1 %v13527_v25  ;;  %v1380_v23 = vld [vmem:[#allocation5 + $0x2718] sm:$0xff] }
 0x5c8   :  { %10936 = vmatprep.subr.bf16.mxu0 %v13534_v27  ;;  %11452 = vmatprep.subr.bf16.mxu1 %v13536_v59  ;;  %v1384_v25 = vld [vmem:[#allocation5 + $0x2738] sm:$0xff]  ;;  %v13581_v27 = vcombine.low %v1371_v10, %v1375_v11  ;;  %v13583_v59 = vcombine.low %v1372_v12, %v1376_v34  ;;  %v13630_v10 = vcombine.high %v1419_v44, %v1423_v14  ;;  %v1427_v12 = vld [vmem:[#allocation5 + $0x2890] sm:$0xff] }
 0x5c9   :  { %v13592_v0 = vcombine.high %v1380_v23, %v1384_v25  ;;  %v1431_v34 = vld [vmem:[#allocation5 + $0x28b0] sm:$0xff] }
 0x5cb   :  { %10937 = vmatpush1.bf16.msra.mxu0 %v13533_v37  ;;  %11453 = vmatpush1.bf16.msra.mxu1 %v13535_v54  ;;  %v1388_v37 = vld [vmem:[#allocation5 + $0x2758] sm:$0xff] }
 0x5cc   :  { %10938 = vmatprep.subr.bf16.mxu0 %v13542_v38  ;;  %11454 = vmatprep.subr.bf16.mxu1 %v13544_v42  ;;  %v1392_v54 = vld [vmem:[#allocation5 + $0x2778] sm:$0xff]  ;;  %v13589_v38 = vcombine.low %v1379_v35, %v1383_v15  ;;  %v13591_v42 = vcombine.low %v1380_v23, %v1384_v25  ;;  %v13638_v35 = vcombine.high %v1427_v12, %v1431_v34  ;;  %v1435_v23 = vld [vmem:[#allocation5 + $0x28d0] sm:$0xff] }
 0x5cd   :  { %v13600_v18 = vcombine.high %v1388_v37, %v1392_v54  ;;  %v1439_v25 = vld [vmem:[#allocation5 + $0x28f0] sm:$0xff] }
 0x5cf   :  { %10939 = vmatpush1.bf16.msra.mxu0 %v13541_v46  ;;  %11455 = vmatpush1.bf16.msra.mxu1 %v13543_v21  ;;  %v1396_v46 = vld [vmem:[#allocation5 + $0x2798] sm:$0xff] }
 0x5d0   :  { %10940 = vmatprep.subr.bf16.mxu0 %v13550_v32  ;;  %11456 = vmatprep.subr.bf16.mxu1 %v13552_v45  ;;  %v1400_v21 = vld [vmem:[#allocation5 + $0x27b8] sm:$0xff]  ;;  %v13597_v32 = vcombine.low %v1387_v40, %v1391_v55  ;;  %v13599_v45 = vcombine.low %v1388_v37, %v1392_v54  ;;  %v1443_v55 = vld [vmem:[#allocation5 + $0x2910] sm:$0xff] }
 0x5d1   :  { %v13608_v52 = vcombine.high %v1396_v46, %v1400_v21  ;;  %v1447_v37 = vld [vmem:[#allocation5 + $0x2930] sm:$0xff]  ;;  %v1444_v54 = vld [vmem:[#allocation5 + $0x2918] sm:$0xff] }
 0x5d3   :  { %10941 = vmatpush1.bf16.msra.mxu0 %v13549_v4  ;;  %11457 = vmatpush1.bf16.msra.mxu1 %v13551_v39  ;;  %v1404_v4 = vld [vmem:[#allocation5 + $0x27d8] sm:$0xff] }
 0x5d4   :  { %10942 = vmatprep.subr.bf16.mxu0 %v13558_v30  ;;  %11458 = vmatprep.subr.bf16.mxu1 %v13560_v57  ;;  %v1408_v39 = vld [vmem:[#allocation5 + $0x27f8] sm:$0xff]  ;;  %v13605_v30 = vcombine.low %v1395_v19, %v1399_v24  ;;  %v13607_v57 = vcombine.low %v1396_v46, %v1400_v21  ;;  %v1451_v19 = vld [vmem:[#allocation5 + $0x2950] sm:$0xff] }
 0x5d5   :  { %v13616_v41 = vcombine.high %v1404_v4, %v1408_v39  ;;  %v1455_v24 = vld [vmem:[#allocation5 + $0x2970] sm:$0xff]  ;;  %v1452_v46 = vld [vmem:[#allocation5 + $0x2958] sm:$0xff] }
 0x5d6   :  { %v1456_v21 = vld [vmem:[#allocation5 + $0x2978] sm:$0xff] }
 0x5d7   :  { %10943 = vmatpush1.bf16.msra.mxu0 %v13557_v60  ;;  %11459 = vmatpush1.bf16.msra.mxu1 %v13559_v61  ;;  %v1412_v60 = vld [vmem:[#allocation5 + $0x2818] sm:$0xff] }
 0x5d8   :  { %10944 = vmatprep.subr.bf16.mxu0 %v13566_v62  ;;  %11460 = vmatprep.subr.bf16.mxu1 %v13568_v13  ;;  %v1416_v61 = vld [vmem:[#allocation5 + $0x2838] sm:$0xff]  ;;  %v13613_v62 = vcombine.low %v1403_v2, %v1407_v3  ;;  %v13615_v13 = vcombine.low %v1404_v4, %v1408_v39  ;;  %v1459_v2 = vld [vmem:[#allocation5 + $0x2990] sm:$0xff] }
 0x5d9   :  { %v13624_v1 = vcombine.high %v1412_v60, %v1416_v61  ;;  %v1463_v3 = vld [vmem:[#allocation5 + $0x29b0] sm:$0xff]  ;;  %v1460_v4 = vld [vmem:[#allocation5 + $0x2998] sm:$0xff] }
 0x5da   :  { %v1464_v39 = vld [vmem:[#allocation5 + $0x29b8] sm:$0xff] }
 0x5db   :  { %10945 = vmatpush1.bf16.msra.mxu0 %v13565_v5  ;;  %11461 = vmatpush1.bf16.msra.mxu1 %v13567_v7  ;;  %v1420_v5 = vld [vmem:[#allocation5 + $0x2858] sm:$0xff] }
 0x5dc   :  { %10946 = vmatprep.subr.bf16.mxu0 %v13574_v8  ;;  %11462 = vmatprep.subr.bf16.mxu1 %v13576_v9  ;;  %v1424_v7 = vld [vmem:[#allocation5 + $0x2878] sm:$0xff]  ;;  %v13621_v8 = vcombine.low %v1411_v17, %v1415_v20  ;;  %v13623_v9 = vcombine.low %v1412_v60, %v1416_v61  ;;  %v1467_v17 = vld [vmem:[#allocation5 + $0x29d0] sm:$0xff] }
 0x5dd   :  { %v13632_v11 = vcombine.high %v1420_v5, %v1424_v7  ;;  %v1471_v20 = vld [vmem:[#allocation5 + $0x29f0] sm:$0xff]  ;;  %v1468_v60 = vld [vmem:[#allocation5 + $0x29d8] sm:$0xff] }
 0x5de   :  { %v1472_v61 = vld [vmem:[#allocation5 + $0x29f8] sm:$0xff] }
 0x5df   :  { %10947 = vmatpush1.bf16.msra.mxu0 %v13573_v16  ;;  %11463 = vmatpush1.bf16.msra.mxu1 %v13575_v33  ;;  %v1428_v16 = vld [vmem:[#allocation5 + $0x2898] sm:$0xff] }
 0x5e0   :  { %10948 = vmatprep.subr.bf16.mxu0 %v13582_v56  ;;  %11464 = vmatprep.subr.bf16.mxu1 %v13584_v53  ;;  %v1432_v33 = vld [vmem:[#allocation5 + $0x28b8] sm:$0xff]  ;;  %v13629_v56 = vcombine.low %v1419_v44, %v1423_v14  ;;  %v13631_v53 = vcombine.low %v1420_v5, %v1424_v7  ;;  %v1475_v44 = vld [vmem:[#allocation5 + $0x2a10] sm:$0xff] }
 0x5e1   :  { %v13640_v15 = vcombine.high %v1428_v16, %v1432_v33  ;;  %v1479_v14 = vld [vmem:[#allocation5 + $0x2a30] sm:$0xff]  ;;  %v1476_v5 = vld [vmem:[#allocation5 + $0x2a18] sm:$0xff] }
 0x5e2   :  { %v1480_v7 = vld [vmem:[#allocation5 + $0x2a38] sm:$0xff] }
 0x5e3   :  { %10949 = vmatpush1.bf16.msra.mxu0 %v13581_v27  ;;  %11465 = vmatpush1.bf16.msra.mxu1 %v13583_v59  ;;  %v1436_v27 = vld [vmem:[#allocation5 + $0x28d8] sm:$0xff] }
 0x5e4   :  { %10950 = vmatprep.subr.bf16.mxu0 %v13590_v29  ;;  %11466 = vmatprep.subr.bf16.mxu1 %v13592_v0  ;;  %v1440_v59 = vld [vmem:[#allocation5 + $0x28f8] sm:$0xff]  ;;  %v13637_v29 = vcombine.low %v1427_v12, %v1431_v34  ;;  %v13646_v0 = vcombine.high %v1435_v23, %v1439_v25  ;;  %v1483_v12 = vld [vmem:[#allocation5 + $0x2a50] sm:$0xff] }
 0x5e5   :  { %v13648_v40 = vcombine.high %v1436_v27, %v1440_v59  ;;  %v1487_v34 = vld [vmem:[#allocation5 + $0x2a70] sm:$0xff] }
 0x5e7   :  { %10951 = vmatpush1.bf16.msra.mxu0 %v13589_v38  ;;  %11467 = vmatpush1.bf16.msra.mxu1 %v13591_v42  ;;  %v1448_v38 = vld [vmem:[#allocation5 + $0x2938] sm:$0xff]  ;;  %v13645_v42 = vcombine.low %v1435_v23, %v1439_v25  ;;  %v1491_v23 = vld [vmem:[#allocation5 + $0x2a90] sm:$0xff] }
 0x5e8   :  { %10952 = vmatprep.subr.bf16.mxu0 %v13598_v43  ;;  %11468 = vmatprep.subr.bf16.mxu1 %v13600_v18  ;;  %v13647_v43 = vcombine.low %v1436_v27, %v1440_v59  ;;  %v13654_v18 = vcombine.high %v1443_v55, %v1447_v37  ;;  %v1495_v25 = vld [vmem:[#allocation5 + $0x2ab0] sm:$0xff]  ;;  %v1492_v27 = vld [vmem:[#allocation5 + $0x2a98] sm:$0xff] }
 0x5e9   :  { %v1496_v59 = vld [vmem:[#allocation5 + $0x2ab8] sm:$0xff] }
 0x5eb   :  { %10953 = vmatpush1.bf16.msra.mxu0 %v13597_v32  ;;  %11469 = vmatpush1.bf16.msra.mxu1 %v13599_v45  ;;  %v13653_v32 = vcombine.low %v1443_v55, %v1447_v37  ;;  %v13655_v45 = vcombine.low %v1444_v54, %v1448_v38  ;;  %v1499_v55 = vld [vmem:[#allocation5 + $0x2ad0] sm:$0xff] }
 0x5ec   :  { %10954 = vmatprep.subr.bf16.mxu0 %v13606_v49  ;;  %11470 = vmatprep.subr.bf16.mxu1 %v13608_v52  ;;  %v13662_v49 = vcombine.high %v1451_v19, %v1455_v24  ;;  %v13664_v52 = vcombine.high %v1452_v46, %v1456_v21  ;;  %v1503_v37 = vld [vmem:[#allocation5 + $0x2af0] sm:$0xff] }
 0x5ef   :  { %10955 = vmatpush1.bf16.msra.mxu0 %v13605_v30  ;;  %11471 = vmatpush1.bf16.msra.mxu1 %v13607_v57  ;;  %v13661_v30 = vcombine.low %v1451_v19, %v1455_v24  ;;  %v13663_v57 = vcombine.low %v1452_v46, %v1456_v21  ;;  %v1507_v19 = vld [vmem:[#allocation5 + $0x2b10] sm:$0xff]  ;;  %v1508_v46 = vld [vmem:[#allocation5 + $0x2b18] sm:$0xff] }
 0x5f0   :  { %10956 = vmatprep.subr.bf16.mxu0 %v13614_v58  ;;  %11472 = vmatprep.subr.bf16.mxu1 %v13616_v41  ;;  %v13670_v58 = vcombine.high %v1459_v2, %v1463_v3  ;;  %v13672_v41 = vcombine.high %v1460_v4, %v1464_v39  ;;  %v1511_v24 = vld [vmem:[#allocation5 + $0x2b30] sm:$0xff]  ;;  %v1512_v21 = vld [vmem:[#allocation5 + $0x2b38] sm:$0xff] }
 0x5f3   :  { %10957 = vmatpush1.bf16.msra.mxu0 %v13613_v62  ;;  %11473 = vmatpush1.bf16.msra.mxu1 %v13615_v13  ;;  %v13669_v62 = vcombine.low %v1459_v2, %v1463_v3  ;;  %v13671_v13 = vcombine.low %v1460_v4, %v1464_v39  ;;  %v1515_v2 = vld [vmem:[#allocation5 + $0x2b50] sm:$0xff]  ;;  %v1516_v4 = vld [vmem:[#allocation5 + $0x2b58] sm:$0xff] }
 0x5f4   :  { %10969 = vmatprep.subr.bf16.mxu0 %v13622_v63  ;;  %11485 = vmatprep.subr.bf16.mxu1 %v13624_v1  ;;  %v13678_v63 = vcombine.high %v1467_v17, %v1471_v20  ;;  %v13680_v1 = vcombine.high %v1468_v60, %v1472_v61  ;;  %v1519_v3 = vld [vmem:[#allocation5 + $0x2b70] sm:$0xff]  ;;  %v1520_v39 = vld [vmem:[#allocation5 + $0x2b78] sm:$0xff] }
 0x5f6   :  { %10959 = vmatmul.mubr.bf16.vlgmr.msra.gmra.mrb[4].mxu0 %v14720_v47  ;;  %11475 = vmatmul.mubr.bf16.vlgmr.msra.gmra.mrb[4].mxu1 %v14720_v47  ;;  %v13639_v47 = vcombine.low %v1428_v16, %v1432_v33  ;;  %v1484_v16 = vld [vmem:[#allocation5 + $0x2a58] sm:$0xff] }
 0x5f7   :  { %10970 = vmatpush1.bf16.msra.mxu0 %v13621_v8  ;;  %11486 = vmatpush1.bf16.msra.mxu1 %v13623_v9  ;;  %v13677_v8 = vcombine.low %v1467_v17, %v1471_v20  ;;  %v13679_v9 = vcombine.low %v1468_v60, %v1472_v61  ;;  %v1488_v33 = vld [vmem:[#allocation5 + $0x2a78] sm:$0xff]  ;;  %v1523_v17 = vld [vmem:[#allocation5 + $0x2b90] sm:$0xff] }
 0x5f8   :  { %10971 = vmatprep.subr.bf16.mxu0 %v13630_v10  ;;  %11487 = vmatprep.subr.bf16.mxu1 %v13632_v11  ;;  %v13686_v10 = vcombine.high %v1475_v44, %v1479_v14  ;;  %v13688_v11 = vcombine.high %v1476_v5, %v1480_v7  ;;  %v1527_v20 = vld [vmem:[#allocation5 + $0x2bb0] sm:$0xff]  ;;  %v1524_v60 = vld [vmem:[#allocation5 + $0x2b98] sm:$0xff] }
 0x5f9   :  { %11001 = vmatprep.mubr.bf16.mxu0 %v14728_v36  ;;  %11517 = vmatprep.mubr.bf16.mxu1 %v14728_v36  ;;  %v13656_v36 = vcombine.high %v1444_v54, %v1448_v38  ;;  %v1500_v54 = vld [vmem:[#allocation5 + $0x2ad8] sm:$0xff] }
 0x5fa   :  { %v1504_v38 = vld [vmem:[#allocation5 + $0x2af8] sm:$0xff] }
 0x5fb   :  { %10972 = vmatpush1.bf16.msra.mxu0 %v13629_v56  ;;  %11488 = vmatpush1.bf16.msra.mxu1 %v13631_v53  ;;  %v13685_v56 = vcombine.low %v1475_v44, %v1479_v14  ;;  %v13687_v53 = vcombine.low %v1476_v5, %v1480_v7  ;;  %v1528_v61 = vld [vmem:[#allocation5 + $0x2bb8] sm:$0xff]  ;;  %v1531_v44 = vld [vmem:[#allocation5 + $0x2bd0] sm:$0xff] }
 0x5fc   :  { %10973 = vmatprep.subr.bf16.mxu0 %v13638_v35  ;;  %11489 = vmatprep.subr.bf16.mxu1 %v13640_v15  ;;  %v13694_v35 = vcombine.high %v1483_v12, %v1487_v34  ;;  %v13696_v15 = vcombine.high %v1484_v16, %v1488_v33  ;;  %v1535_v14 = vld [vmem:[#allocation5 + $0x2bf0] sm:$0xff]  ;;  %v1532_v5 = vld [vmem:[#allocation5 + $0x2bd8] sm:$0xff] }
 0x5fd   :  { %v1536_v7 = vld [vmem:[#allocation5 + $0x2bf8] sm:$0xff] }
 0x5ff   :  { %10974 = vmatpush1.bf16.msra.mxu0 %v13637_v29  ;;  %11490 = vmatpush1.bf16.msra.mxu1 %v13639_v47  ;;  %v13693_v29 = vcombine.low %v1483_v12, %v1487_v34  ;;  %v13695_v47 = vcombine.low %v1484_v16, %v1488_v33  ;;  %v1539_v12 = vld [vmem:[#allocation5 + $0x2c10] sm:$0xff]  ;;  %v1540_v16 = vld [vmem:[#allocation5 + $0x2c18] sm:$0xff] }
 0x600   :  { %10975 = vmatprep.subr.bf16.mxu0 %v13646_v0  ;;  %11491 = vmatprep.subr.bf16.mxu1 %v13648_v40  ;;  %v13702_v0 = vcombine.high %v1491_v23, %v1495_v25  ;;  %v13704_v40 = vcombine.high %v1492_v27, %v1496_v59  ;;  %v1543_v34 = vld [vmem:[#allocation5 + $0x2c30] sm:$0xff]  ;;  %v1544_v33 = vld [vmem:[#allocation5 + $0x2c38] sm:$0xff] }
 0x603   :  { %10976 = vmatpush1.bf16.msra.mxu0 %v13645_v42  ;;  %11492 = vmatpush1.bf16.msra.mxu1 %v13647_v43  ;;  %v13701_v42 = vcombine.low %v1491_v23, %v1495_v25  ;;  %v13703_v43 = vcombine.low %v1492_v27, %v1496_v59  ;;  %v1547_v23 = vld [vmem:[#allocation5 + $0x2c50] sm:$0xff]  ;;  %v1548_v27 = vld [vmem:[#allocation5 + $0x2c58] sm:$0xff] }
 0x604   :  { %10977 = vmatprep.subr.bf16.mxu0 %v13654_v18  ;;  %11493 = vmatprep.subr.bf16.mxu1 %v13656_v36  ;;  %v13710_v18 = vcombine.high %v1499_v55, %v1503_v37  ;;  %v13712_v36 = vcombine.high %v1500_v54, %v1504_v38  ;;  %v1551_v25 = vld [vmem:[#allocation5 + $0x2c70] sm:$0xff]  ;;  %v1552_v59 = vld [vmem:[#allocation5 + $0x2c78] sm:$0xff] }
 0x607   :  { %10978 = vmatpush1.bf16.msra.mxu0 %v13653_v32  ;;  %11494 = vmatpush1.bf16.msra.mxu1 %v13655_v45  ;;  %v13709_v32 = vcombine.low %v1499_v55, %v1503_v37  ;;  %v13711_v45 = vcombine.low %v1500_v54, %v1504_v38  ;;  %v1555_v55 = vld [vmem:[#allocation5 + $0x2c90] sm:$0xff]  ;;  %v1556_v54 = vld [vmem:[#allocation5 + $0x2c98] sm:$0xff] }
 0x608   :  { %10979 = vmatprep.subr.bf16.mxu0 %v13662_v49  ;;  %11495 = vmatprep.subr.bf16.mxu1 %v13664_v52  ;;  %v13718_v49 = vcombine.high %v1507_v19, %v1511_v24  ;;  %v13720_v52 = vcombine.high %v1508_v46, %v1512_v21  ;;  %v1559_v37 = vld [vmem:[#allocation5 + $0x2cb0] sm:$0xff]  ;;  %v1560_v38 = vld [vmem:[#allocation5 + $0x2cb8] sm:$0xff] }
 0x60b   :  { %10980 = vmatpush1.bf16.msra.mxu0 %v13661_v30  ;;  %11496 = vmatpush1.bf16.msra.mxu1 %v13663_v57  ;;  %v13717_v30 = vcombine.low %v1507_v19, %v1511_v24  ;;  %v13719_v57 = vcombine.low %v1508_v46, %v1512_v21  ;;  %v1563_v19 = vld [vmem:[#allocation5 + $0x2cd0] sm:$0xff]  ;;  %v1564_v46 = vld [vmem:[#allocation5 + $0x2cd8] sm:$0xff] }
 0x60c   :  { %10981 = vmatprep.subr.bf16.mxu0 %v13670_v58  ;;  %11497 = vmatprep.subr.bf16.mxu1 %v13672_v41  ;;  %v13726_v58 = vcombine.high %v1515_v2, %v1519_v3  ;;  %v13728_v41 = vcombine.high %v1516_v4, %v1520_v39  ;;  %v1567_v24 = vld [vmem:[#allocation5 + $0x2cf0] sm:$0xff]  ;;  %v1568_v21 = vld [vmem:[#allocation5 + $0x2cf8] sm:$0xff] }
 0x60f   :  { %10982 = vmatpush1.bf16.msra.mxu0 %v13669_v62  ;;  %11498 = vmatpush1.bf16.msra.mxu1 %v13671_v13  ;;  %v13725_v62 = vcombine.low %v1515_v2, %v1519_v3  ;;  %v13727_v13 = vcombine.low %v1516_v4, %v1520_v39  ;;  %v1575_v2 = vld [vmem:[#allocation5 + $0x2d30] sm:$0xff]  ;;  %v1572_v3 = vld [vmem:[#allocation5 + $0x2d18] sm:$0xff]  ;;  %v13773_v39 = vcombine.low %v1563_v19, %v1567_v24 }
 0x610   :  { %10983 = vmatprep.subr.bf16.mxu0 %v13678_v63  ;;  %11499 = vmatprep.subr.bf16.mxu1 %v13680_v1  ;;  %v13734_v63 = vcombine.high %v1523_v17, %v1527_v20  ;;  %v13736_v1 = vcombine.high %v1524_v60, %v1528_v61  ;;  %v1576_v4 = vld [vmem:[#allocation5 + $0x2d38] sm:$0xff] }
 0x613   :  { %10984 = vmatpush1.bf16.msra.mxu0 %v13677_v8  ;;  %11500 = vmatpush1.bf16.msra.mxu1 %v13679_v9  ;;  %v13733_v8 = vcombine.low %v1523_v17, %v1527_v20  ;;  %v13735_v9 = vcombine.low %v1524_v60, %v1528_v61  ;;  %v1580_v17 = vld [vmem:[#allocation5 + $0x2d58] sm:$0xff]  ;;  %v13783_v61 = vcombine.low %v1572_v3, %v1576_v4 }
 0x614   :  { %10985 = vmatprep.subr.bf16.mxu0 %v13686_v10  ;;  %11501 = vmatprep.subr.bf16.mxu1 %v13688_v11  ;;  %v13742_v10 = vcombine.high %v1531_v44, %v1535_v14  ;;  %v13744_v11 = vcombine.high %v1532_v5, %v1536_v7  ;;  %v1584_v20 = vld [vmem:[#allocation5 + $0x2d78] sm:$0xff] }
 0x617   :  { %10986 = vmatpush1.bf16.msra.mxu0 %v13685_v56  ;;  %11502 = vmatpush1.bf16.msra.mxu1 %v13687_v53  ;;  %v13741_v56 = vcombine.low %v1531_v44, %v1535_v14  ;;  %v13743_v53 = vcombine.low %v1532_v5, %v1536_v7  ;;  %v1588_v44 = vld [vmem:[#allocation5 + $0x2d98] sm:$0xff]  ;;  %v13791_v7 = vcombine.low %v1580_v17, %v1584_v20 }
 0x618   :  { %10987 = vmatprep.subr.bf16.mxu0 %v13694_v35  ;;  %11503 = vmatprep.subr.bf16.mxu1 %v13696_v15  ;;  %v13750_v35 = vcombine.high %v1539_v12, %v1543_v34  ;;  %v13752_v15 = vcombine.high %v1540_v16, %v1544_v33  ;;  %v1592_v14 = vld [vmem:[#allocation5 + $0x2db8] sm:$0xff] }
 0x61b   :  { %10988 = vmatpush1.bf16.msra.mxu0 %v13693_v29  ;;  %11504 = vmatpush1.bf16.msra.mxu1 %v13695_v47  ;;  %v13749_v29 = vcombine.low %v1539_v12, %v1543_v34  ;;  %v13751_v47 = vcombine.low %v1540_v16, %v1544_v33  ;;  %v1596_v12 = vld [vmem:[#allocation5 + $0x2dd8] sm:$0xff]  ;;  %v13799_v33 = vcombine.low %v1588_v44, %v1592_v14 }
 0x61c   :  { %10989 = vmatprep.subr.bf16.mxu0 %v13702_v0  ;;  %11505 = vmatprep.subr.bf16.mxu1 %v13704_v40  ;;  %v13758_v0 = vcombine.high %v1547_v23, %v1551_v25  ;;  %v13760_v40 = vcombine.high %v1548_v27, %v1552_v59  ;;  %v1600_v34 = vld [vmem:[#allocation5 + $0x2df8] sm:$0xff] }
 0x61f   :  { %10990 = vmatpush1.bf16.msra.mxu0 %v13701_v42  ;;  %11506 = vmatpush1.bf16.msra.mxu1 %v13703_v43  ;;  %v13757_v42 = vcombine.low %v1547_v23, %v1551_v25  ;;  %v13759_v43 = vcombine.low %v1548_v27, %v1552_v59  ;;  %v1604_v23 = vld [vmem:[#allocation5 + $0x2e18] sm:$0xff]  ;;  %v13807_v59 = vcombine.low %v1596_v12, %v1600_v34 }
 0x620   :  { %10991 = vmatprep.subr.bf16.mxu0 %v13710_v18  ;;  %11507 = vmatprep.subr.bf16.mxu1 %v13712_v36  ;;  %v13766_v18 = vcombine.high %v1555_v55, %v1559_v37  ;;  %v13768_v36 = vcombine.high %v1556_v54, %v1560_v38  ;;  %v1608_v25 = vld [vmem:[#allocation5 + $0x2e38] sm:$0xff] }
 0x623   :  { %10992 = vmatpush1.bf16.msra.mxu0 %v13709_v32  ;;  %11508 = vmatpush1.bf16.msra.mxu1 %v13711_v45  ;;  %v13765_v32 = vcombine.low %v1555_v55, %v1559_v37  ;;  %v13774_v45 = vcombine.high %v1563_v19, %v1567_v24  ;;  %v1612_v55 = vld [vmem:[#allocation5 + $0x2e58] sm:$0xff] }
 0x624   :  { %10993 = vmatprep.subr.bf16.mxu0 %v13718_v49  ;;  %11509 = vmatprep.subr.bf16.mxu1 %v13720_v52  ;;  %v13776_v49 = vcombine.high %v1564_v46, %v1568_v21  ;;  %v1571_v52 = vld [vmem:[#allocation5 + $0x2d10] sm:$0xff]  ;;  %v1616_v37 = vld [vmem:[#allocation5 + $0x2e78] sm:$0xff] }
 0x625   :  { %v13781_v60 = vcombine.low %v1571_v52, %v1575_v2  ;;  %v1620_v19 = vld [vmem:[#allocation5 + $0x2e98] sm:$0xff] }
 0x626   :  { %v1624_v24 = vld [vmem:[#allocation5 + $0x2eb8] sm:$0xff] }
 0x627   :  { %10994 = vmatpush1.bf16.msra.mxu0 %v13717_v30  ;;  %11510 = vmatpush1.bf16.msra.mxu1 %v13719_v57  ;;  %v13775_v30 = vcombine.low %v1564_v46, %v1568_v21  ;;  %v13782_v57 = vcombine.high %v1571_v52, %v1575_v2  ;;  %v13823_v21 = vcombine.low %v1612_v55, %v1616_v37  ;;  %v1628_v52 = vld [vmem:[#allocation5 + $0x2ed8] sm:$0xff] }
 0x628   :  { %10995 = vmatprep.subr.bf16.mxu0 %v13726_v58  ;;  %11511 = vmatprep.subr.bf16.mxu1 %v13728_v41  ;;  %v1579_v58 = vld [vmem:[#allocation5 + $0x2d50] sm:$0xff]  ;;  %v1632_v2 = vld [vmem:[#allocation5 + $0x2ef8] sm:$0xff] }
 0x629   :  { %v1583_v41 = vld [vmem:[#allocation5 + $0x2d70] sm:$0xff] }
 0x62a   :  { %v13789_v5 = vcombine.low %v1579_v58, %v1583_v41 }
 0x62b   :  { %10996 = vmatpush1.bf16.msra.mxu0 %v13725_v62  ;;  %11512 = vmatpush1.bf16.msra.mxu1 %v13727_v13  ;;  %v13790_v62 = vcombine.high %v1579_v58, %v1583_v41  ;;  %v13792_v13 = vcombine.high %v1580_v17, %v1584_v20  ;;  %v1636_v58 = vld [vmem:[#allocation5 + $0x2f18] sm:$0xff]  ;;  %v13839_v20 = vcombine.low %v1628_v52, %v1632_v2 }
 0x62c   :  { %10997 = vmatprep.subr.bf16.mxu0 %v13734_v63  ;;  %11513 = vmatprep.subr.bf16.mxu1 %v13736_v1  ;;  %v1587_v63 = vld [vmem:[#allocation5 + $0x2d90] sm:$0xff]  ;;  %v1640_v41 = vld [vmem:[#allocation5 + $0x2f38] sm:$0xff] }
 0x62d   :  { %v1591_v1 = vld [vmem:[#allocation5 + $0x2db0] sm:$0xff] }
 0x62e   :  { %v13797_v16 = vcombine.low %v1587_v63, %v1591_v1 }
 0x62f   :  { %10998 = vmatpush1.bf16.msra.mxu0 %v13733_v8  ;;  %11514 = vmatpush1.bf16.msra.mxu1 %v13735_v9  ;;  %v13798_v8 = vcombine.high %v1587_v63, %v1591_v1  ;;  %v13800_v9 = vcombine.high %v1588_v44, %v1592_v14  ;;  %v1644_v63 = vld [vmem:[#allocation5 + $0x2f58] sm:$0xff]  ;;  %v13847_v14 = vcombine.low %v1636_v58, %v1640_v41 }
 0x630   :  { %10999 = vmatprep.subr.bf16.mxu0 %v13742_v10  ;;  %11515 = vmatprep.subr.bf16.mxu1 %v13744_v11  ;;  %v1595_v10 = vld [vmem:[#allocation5 + $0x2dd0] sm:$0xff]  ;;  %v1648_v1 = vld [vmem:[#allocation5 + $0x2f78] sm:$0xff] }
 0x631   :  { %v1599_v11 = vld [vmem:[#allocation5 + $0x2df0] sm:$0xff] }
 0x632   :  { %v13805_v27 = vcombine.low %v1595_v10, %v1599_v11 }
 0x633   :  { %11000 = vmatpush1.bf16.msra.mxu0 %v13741_v56  ;;  %11516 = vmatpush1.bf16.msra.mxu1 %v13743_v53  ;;  %v13806_v56 = vcombine.high %v1595_v10, %v1599_v11  ;;  %v13808_v53 = vcombine.high %v1596_v12, %v1600_v34  ;;  %v1652_v10 = vld [vmem:[#allocation5 + $0x2f98] sm:$0xff]  ;;  %v13855_v34 = vcombine.low %v1644_v63, %v1648_v1 }
 0x634   :  { %11012 = vmatprep.subr.bf16.mxu0 %v13750_v35  ;;  %11528 = vmatprep.subr.bf16.mxu1 %v13752_v15  ;;  %v1603_v35 = vld [vmem:[#allocation5 + $0x2e10] sm:$0xff]  ;;  %v1656_v11 = vld [vmem:[#allocation5 + $0x2fb8] sm:$0xff] }
 0x635   :  { %v1607_v15 = vld [vmem:[#allocation5 + $0x2e30] sm:$0xff] }
 0x636   :  { %11002 = vmatmul.mubr.bf16.vlgmr.msra.gmra.mrb[4].mxu0 %v14736_v26  ;;  %11518 = vmatmul.mubr.bf16.vlgmr.msra.gmra.mrb[4].mxu1 %v14736_v26  ;;  %v13767_v26 = vcombine.low %v1556_v54, %v1560_v38  ;;  %v13813_v54 = vcombine.low %v1603_v35, %v1607_v15  ;;  %v13815_v38 = vcombine.low %v1604_v23, %v1608_v25 }
 0x637   :  { %11013 = vmatpush1.bf16.msra.mxu0 %v13749_v29  ;;  %11529 = vmatpush1.bf16.msra.mxu1 %v13751_v47  ;;  %v13814_v29 = vcombine.high %v1603_v35, %v1607_v15  ;;  %v13816_v47 = vcombine.high %v1604_v23, %v1608_v25  ;;  %v1660_v35 = vld [vmem:[#allocation5 + $0x2fd8] sm:$0xff]  ;;  %v13863_v25 = vcombine.low %v1652_v10, %v1656_v11 }
 0x638   :  { %11014 = vmatprep.subr.bf16.mxu0 %v13758_v0  ;;  %11530 = vmatprep.subr.bf16.mxu1 %v13760_v40  ;;  %v1611_v0 = vld [vmem:[#allocation5 + $0x2e50] sm:$0xff]  ;;  %v1664_v15 = vld [vmem:[#allocation5 + $0x2ff8] sm:$0xff] }
 0x639   :  { %11044 = vmatprep.mubr.bf16.mxu0 %v14744_v6  ;;  %11560 = vmatprep.mubr.bf16.mxu1 %v14744_v6  ;;  %v13784_v6 = vcombine.high %v1572_v3, %v1576_v4  ;;  %v1615_v40 = vld [vmem:[#allocation5 + $0x2e70] sm:$0xff]  ;;  %v13831_v4 = vcombine.low %v1620_v19, %v1624_v24 }
 0x63a   :  { %v13821_v46 = vcombine.low %v1611_v0, %v1615_v40 }
 0x63b   :  { %11015 = vmatpush1.bf16.msra.mxu0 %v13757_v42  ;;  %11531 = vmatpush1.bf16.msra.mxu1 %v13759_v43  ;;  %v13822_v42 = vcombine.high %v1611_v0, %v1615_v40  ;;  %v13824_v43 = vcombine.high %v1612_v55, %v1616_v37  ;;  %v14232_v0 = vld [vmem:[#allocation8 + $0x40] sm:$0xff]  }
 0x63c   :  { %11016 = vmatprep.subr.bf16.mxu0 %v13766_v18  ;;  %11532 = vmatprep.subr.bf16.mxu1 %v13768_v36  ;;  %v1619_v18 = vld [vmem:[#allocation5 + $0x2e90] sm:$0xff]  ;;  %v14233_v40 = vld [vmem:[#allocation8 + $0xc0] sm:$0xff]  }
 0x63d   :  { %v1623_v36 = vld [vmem:[#allocation5 + $0x2eb0] sm:$0xff]  ;;  %v14234_v55 = vld [vmem:[#allocation8] sm:$0xff]  }
 0x63e   :  { %v13829_v3 = vcombine.low %v1619_v18, %v1623_v36  ;;  %v14235_v37 = vld [vmem:[#allocation8 + $0x80] sm:$0xff]  }
 0x63f   :  { %11017 = vmatpush1.bf16.msra.mxu0 %v13765_v32  ;;  %11533 = vmatpush1.bf16.msra.mxu1 %v13767_v26  ;;  %v13830_v32 = vcombine.high %v1619_v18, %v1623_v36  ;;  %v13832_v26 = vcombine.high %v1620_v19, %v1624_v24  ;;  %v14240_v18 = vld [vmem:[#allocation8 + $0x50] sm:$0xff]  }
 0x640   :  { %11018 = vmatprep.subr.bf16.mxu0 %v13774_v45  ;;  %11534 = vmatprep.subr.bf16.mxu1 %v13776_v49  ;;  %v1627_v45 = vld [vmem:[#allocation5 + $0x2ed0] sm:$0xff]  ;;  %v14241_v36 = vld [vmem:[#allocation8 + $0xd0] sm:$0xff]  }
 0x641   :  { %v1631_v49 = vld [vmem:[#allocation5 + $0x2ef0] sm:$0xff]  ;;  %v14242_v19 = vld [vmem:[#allocation8 + $0x10] sm:$0xff]  }
 0x642   :  { %v13837_v17 = vcombine.low %v1627_v45, %v1631_v49  ;;  %v14243_v24 = vld [vmem:[#allocation8 + $0x90] sm:$0xff]  }
 0x643   :  { %11019 = vmatpush1.bf16.msra.mxu0 %v13773_v39  ;;  %11535 = vmatpush1.bf16.msra.mxu1 %v13775_v30  ;;  %v13838_v39 = vcombine.high %v1627_v45, %v1631_v49  ;;  %v13840_v30 = vcombine.high %v1628_v52, %v1632_v2  ;;  %v14251_v45 = vld [vmem:[#allocation8 + $0xa0] sm:$0xff]   ;;  %v14252_v49 = vld [vmem:[#allocation8 + $0x68] sm:$0xff]  }
 0x644   :  { %11020 = vmatprep.subr.bf16.mxu0 %v13782_v57  ;;  %11536 = vmatprep.subr.bf16.mxu1 %v13784_v6  ;;  %v1635_v57 = vld [vmem:[#allocation5 + $0x2f10] sm:$0xff] }
 0x645   :  { %v1639_v6 = vld [vmem:[#allocation5 + $0x2f30] sm:$0xff] }
 0x646   :  { %v13845_v44 = vcombine.low %v1635_v57, %v1639_v6  ;;  %v14253_v52 = vld [vmem:[#allocation8 + $0xe8] sm:$0xff]  }
 0x647   :  { %11021 = vmatpush1.bf16.msra.mxu0 %v13781_v60  ;;  %11537 = vmatpush1.bf16.msra.mxu1 %v13783_v61  ;;  %v13846_v60 = vcombine.high %v1635_v57, %v1639_v6  ;;  %v13848_v61 = vcombine.high %v1636_v58, %v1640_v41  ;;  %v14254_v2 = vld [vmem:[#allocation8 + $0x28] sm:$0xff]   ;;  %v14259_v57 = vld [vmem:[#allocation8 + $0xb0] sm:$0xff]   ;;  %v14260_v6 = vld [vmem:[#allocation8 + $0x78] sm:$0xff]  }
 0x648   :  { %11022 = vmatprep.subr.bf16.mxu0 %v13790_v62  ;;  %11538 = vmatprep.subr.bf16.mxu1 %v13792_v13  ;;  %v1643_v62 = vld [vmem:[#allocation5 + $0x2f50] sm:$0xff]  ;;  %v14261_v58 = vld [vmem:[#allocation8 + $0xf8] sm:$0xff]  }
 0x649   :  { %v1647_v13 = vld [vmem:[#allocation5 + $0x2f70] sm:$0xff]  ;;  %v14262_v41 = vld [vmem:[#allocation8 + $0x38] sm:$0xff]  }
 0x64a   :  { %v13853_v12 = vcombine.low %v1643_v62, %v1647_v13 }
 0x64b   :  { %11023 = vmatpush1.bf16.msra.mxu0 %v13789_v5  ;;  %11539 = vmatpush1.bf16.msra.mxu1 %v13791_v7  ;;  %v13854_v5 = vcombine.high %v1643_v62, %v1647_v13  ;;  %v13856_v7 = vcombine.high %v1644_v63, %v1648_v1  ;;  %v14267_v62 = vld [vmem:[#allocation8 + $0x180] sm:$0xff]   ;;  %v14268_v13 = vld [vmem:[#allocation8 + $0x148] sm:$0xff]  }
 0x64c   :  { %11024 = vmatprep.subr.bf16.mxu0 %v13798_v8  ;;  %11540 = vmatprep.subr.bf16.mxu1 %v13800_v9  ;;  %v1651_v8 = vld [vmem:[#allocation5 + $0x2f90] sm:$0xff] }
 0x64d   :  { %v1655_v9 = vld [vmem:[#allocation5 + $0x2fb0] sm:$0xff] }
 0x64e   :  { %v13861_v23 = vcombine.low %v1651_v8, %v1655_v9  ;;  %v14269_v63 = vld [vmem:[#allocation8 + $0x1c8] sm:$0xff]  }
 0x64f   :  { %11025 = vmatpush1.bf16.msra.mxu0 %v13797_v16  ;;  %11541 = vmatpush1.bf16.msra.mxu1 %v13799_v33  ;;  %v13862_v16 = vcombine.high %v1651_v8, %v1655_v9  ;;  %v13864_v33 = vcombine.high %v1652_v10, %v1656_v11  ;;  %v14270_v1 = vld [vmem:[#allocation8 + $0x108] sm:$0xff]   ;;  %v14275_v8 = vld [vmem:[#allocation8 + $0x190] sm:$0xff]   ;;  %v14276_v9 = vld [vmem:[#allocation8 + $0x158] sm:$0xff]  }
 0x650   :  { %11026 = vmatprep.subr.bf16.mxu0 %v13806_v56  ;;  %11542 = vmatprep.subr.bf16.mxu1 %v13808_v53  ;;  %v1659_v56 = vld [vmem:[#allocation5 + $0x2fd0] sm:$0xff]  ;;  %v14277_v10 = vld [vmem:[#allocation8 + $0x1d8] sm:$0xff]   ;;  %v14280_v11 = vld [vmem:[#allocation8 + $0x160] sm:$0xff]  }
 0x651   :  { %v1663_v53 = vld [vmem:[#allocation5 + $0x2ff0] sm:$0xff] }
 0x653   :  { %11027 = vmatpush1.bf16.msra.mxu0 %v13805_v27  ;;  %11543 = vmatpush1.bf16.msra.mxu1 %v13807_v59  ;;  %v13870_v27 = vcombine.high %v1659_v56, %v1663_v53  ;;  %v13872_v59 = vcombine.high %v1660_v35, %v1664_v15 }
 0x654   :  { %11028 = vmatprep.subr.bf16.mxu0 %v13814_v29  ;;  %11544 = vmatprep.subr.bf16.mxu1 %v13816_v47  ;;  %v13869_v29 = vcombine.low %v1659_v56, %v1663_v53  ;;  %v13871_v47 = vcombine.low %v1660_v35, %v1664_v15  ;;  %v14285_v56 = vld [vmem:[#allocation8 + $0x1e8] sm:$0xff]   ;;  %v14288_v15 = vld [vmem:[#allocation8 + $0x170] sm:$0xff]  }
 0x655   :  { %v14286_v53 = vld [vmem:[#allocation8 + $0x128] sm:$0xff]  }
 0x656   :  { %v14287_v35 = vld [vmem:[#allocation8 + $0x1a8] sm:$0xff]  }
 0x657   :  { %11029 = vmatpush1.bf16.msra.mxu0 %v13813_v54  ;;  %11545 = vmatpush1.bf16.msra.mxu1 %v13815_v38  ;;  %v14236_v54 = vld [vmem:[#allocation8 + $0x48] sm:$0xff]  }
 0x658   :  { %11030 = vmatprep.subr.bf16.mxu0 %v13822_v42  ;;  %11546 = vmatprep.subr.bf16.mxu1 %v13824_v43  ;;  %v14237_v38 = vld [vmem:[#allocation8 + $0xc8] sm:$0xff]  }
 0x659   :  { %v14238_v42 = vld [vmem:[#allocation8 + $0x8] sm:$0xff]  }
 0x65a   :  { %v14239_v43 = vld [vmem:[#allocation8 + $0x88] sm:$0xff]  }
 0x65b   :  { %11031 = vmatpush1.bf16.msra.mxu0 %v13821_v46  ;;  %11547 = vmatpush1.bf16.msra.mxu1 %v13823_v21  ;;  %v14244_v46 = vld [vmem:[#allocation8 + $0x58] sm:$0xff]  }
 0x65c   :  { %11032 = vmatprep.subr.bf16.mxu0 %v13830_v32  ;;  %11548 = vmatprep.subr.bf16.mxu1 %v13832_v26  ;;  %v14246_v21 = vld [vmem:[#allocation8 + $0x18] sm:$0xff]   ;;  %v14248_v32 = vld [vmem:[#allocation8 + $0x60] sm:$0xff]  }
 0x65d   :  { %v14249_v26 = vld [vmem:[#allocation8 + $0xe0] sm:$0xff]  }
 0x65f   :  { %11033 = vmatpush1.bf16.msra.mxu0 %v13829_v3  ;;  %11549 = vmatpush1.bf16.msra.mxu1 %v13831_v4  ;;  %v14255_v3 = vld [vmem:[#allocation8 + $0xa8] sm:$0xff]   ;;  %v14256_v4 = vld [vmem:[#allocation8 + $0x70] sm:$0xff]  }
 0x660   :  { %11034 = vmatprep.subr.bf16.mxu0 %v13838_v39  ;;  %11550 = vmatprep.subr.bf16.mxu1 %v13840_v30  ;;  %v14257_v39 = vld [vmem:[#allocation8 + $0xf0] sm:$0xff]  }
 0x661   :  { %v14258_v30 = vld [vmem:[#allocation8 + $0x30] sm:$0xff]  }
 0x663   :  { %11035 = vmatpush1.bf16.msra.mxu0 %v13837_v17  ;;  %11551 = vmatpush1.bf16.msra.mxu1 %v13839_v20  ;;  %v14263_v17 = vld [vmem:[#allocation8 + $0xb8] sm:$0xff]   ;;  %v14264_v20 = vld [vmem:[#allocation8 + $0x140] sm:$0xff]  }
 0x664   :  { %11036 = vmatprep.subr.bf16.mxu0 %v13846_v60  ;;  %11552 = vmatprep.subr.bf16.mxu1 %v13848_v61  ;;  %v14265_v60 = vld [vmem:[#allocation8 + $0x1c0] sm:$0xff]  }
 0x665   :  { %v14266_v61 = vld [vmem:[#allocation8 + $0x100] sm:$0xff]  }
 0x667   :  { %11037 = vmatpush1.bf16.msra.mxu0 %v13845_v44  ;;  %11553 = vmatpush1.bf16.msra.mxu1 %v13847_v14  ;;  %v14271_v44 = vld [vmem:[#allocation8 + $0x188] sm:$0xff]   ;;  %v14272_v14 = vld [vmem:[#allocation8 + $0x150] sm:$0xff]  }
 0x668   :  { %11038 = vmatprep.subr.bf16.mxu0 %v13854_v5  ;;  %11554 = vmatprep.subr.bf16.mxu1 %v13856_v7  ;;  %v14273_v5 = vld [vmem:[#allocation8 + $0x1d0] sm:$0xff]  }
 0x669   :  { %v14274_v7 = vld [vmem:[#allocation8 + $0x110] sm:$0xff]  }
 0x66b   :  { %11039 = vmatpush1.bf16.msra.mxu0 %v13853_v12  ;;  %11555 = vmatpush1.bf16.msra.mxu1 %v13855_v34  ;;  %v14281_v12 = vld [vmem:[#allocation8 + $0x1e0] sm:$0xff]  }
 0x66c   :  { %11040 = vmatprep.subr.bf16.mxu0 %v13862_v16  ;;  %11556 = vmatprep.subr.bf16.mxu1 %v13864_v33  ;;  %v14282_v34 = vld [vmem:[#allocation8 + $0x120] sm:$0xff]   ;;  %v14284_v33 = vld [vmem:[#allocation8 + $0x168] sm:$0xff]  }
 0x66d   :  { %v14283_v16 = vld [vmem:[#allocation8 + $0x1a0] sm:$0xff]  }
 0x66f   :  { %11041 = vmatpush1.bf16.msra.mxu0 %v13861_v23  ;;  %11557 = vmatpush1.bf16.msra.mxu1 %v13863_v25  ;;  %v14289_v23 = vld [vmem:[#allocation8 + $0x1f0] sm:$0xff]  }
 0x670   :  { %11042 = vmatprep.subr.bf16.mxu0 %v13870_v27  ;;  %11558 = vmatprep.subr.bf16.mxu1 %v13872_v59  ;;  %v14290_v25 = vld [vmem:[#allocation8 + $0x130] sm:$0xff]   ;;  %v14292_v59 = vld [vmem:[#allocation8 + $0x178] sm:$0xff]  }
 0x671   :  { %v14291_v27 = vld [vmem:[#allocation8 + $0x1b0] sm:$0xff]  }
 0x673   :  { %11043 = vmatpush1.bf16.msra.mxu0 %v13869_v29  ;;  %11559 = vmatpush1.bf16.msra.mxu1 %v13871_v47  ;;  %v14293_v29 = vld [vmem:[#allocation8 + $0x1f8] sm:$0xff]  }
 0x674   :  { %13940 = vmatprep.subr.bf16.mxu0 %v14232_v0  ;;  %13962 = vmatprep.subr.bf16.mxu1 %v14233_v40  ;;  %v14294_v47 = vld [vmem:[#allocation8 + $0x138] sm:$0xff]   ;;  %v1685_v40 = vsub.s32 4, %v14770_v31 }
 0x675   :  { %v14295_v0 = vld [vmem:[#allocation8 + $0x1b8] sm:$0xff]  }
 0x676   :  { %11045 = vmatmul.mubr.bf16.vlgmr.msra.gmra.mrb[4].mxu0 %v14752_v48  ;;  %11561 = vmatmul.mubr.bf16.vlgmr.msra.gmra.mrb[4].mxu1 %v14752_v48  ;;  %v14245_v48 = vld [vmem:[#allocation8 + $0xd8] sm:$0xff]  }
 0x677   :  { %13941 = vmatpush3.bf16.msra.mxu0 %v14234_v55  ;;  %12146 = vmatprep.mubr.bf16.mxu0 %v14780_v51  ;;  %v14247_v51 = vld [vmem:[#allocation8 + $0x98] sm:$0xff]   ;;  %v1693_v55 = vsub.s32 6, %v14770_v31 }
 0x678   :  { %13963 = vmatpush3.bf16.msra.mxu1 %v14235_v37  ;;  %12187 = vmatprep.mubr.bf16.mxu1 %v14782_v28  ;;  %v14250_v28 = vld [vmem:[#allocation8 + $0x20] sm:$0xff]   ;;  %v1689_v37 = vsub.s32 5, %v14770_v31 }
 0x679   :  { %13942 = vmatprep.subr.bf16.mxu0 %v14236_v54  ;;  %13964 = vmatprep.subr.bf16.mxu1 %v14237_v38  ;;  %v1697_v54 = vsub.s32 7, %v14770_v31  ;;  %v14296_v38 = vld [vmem:[#allocation7] sm:$0xff] }
 0x67b   :  { %13943 = vmatpush3.bf16.msra.mxu0 %v14238_v42  ;;  %v1686_v42 = vrot.slane %v14296_v38, %v1685_v40 }
 0x67c   :  { %13965 = vmatpush3.bf16.msra.mxu1 %v14239_v43  ;;  %13944 = vmatprep.subr.bf16.mxu0 %v14240_v18  ;;  %v1694_v43 = vrot.slane %v14296_v38, %v1693_v55  ;;  %v1690_v18 = vrot.slane %v14296_v38, %v1689_v37 }
 0x67d   :  { %13966 = vmatprep.subr.bf16.mxu1 %v14241_v36  ;;  %v1698_v36 = vrot.slane %v14296_v38, %v1697_v54 }
 0x67f   :  { %13945 = vmatpush3.bf16.msra.mxu0 %v14242_v19 }
 0x680   :  { %13967 = vmatpush3.bf16.msra.mxu1 %v14243_v24  ;;  %13946 = vmatprep.subr.bf16.mxu0 %v14244_v46 }
 0x681   :  { %13968 = vmatprep.subr.bf16.mxu1 %v14245_v48 }
 0x683   :  { %13947 = vmatpush3.bf16.msra.mxu0 %v14246_v21 }
 0x684   :  { %13969 = vmatpush3.bf16.msra.mxu1 %v14247_v51  ;;  %13948 = vmatprep.subr.bf16.mxu0 %v14248_v32 }
 0x685   :  { %13970 = vmatprep.subr.bf16.mxu1 %v14249_v26 }
 0x687   :  { %13949 = vmatpush3.bf16.msra.mxu0 %v14250_v28 }
 0x688   :  { %13971 = vmatpush3.bf16.msra.mxu1 %v14251_v45  ;;  %13950 = vmatprep.subr.bf16.mxu0 %v14252_v49 }
 0x689   :  { %13972 = vmatprep.subr.bf16.mxu1 %v14253_v52 }
 0x68b   :  { %13951 = vmatpush3.bf16.msra.mxu0 %v14254_v2 }
 0x68c   :  { %13973 = vmatpush3.bf16.msra.mxu1 %v14255_v3  ;;  %13952 = vmatprep.subr.bf16.mxu0 %v14256_v4 }
 0x68d   :  { %13974 = vmatprep.subr.bf16.mxu1 %v14257_v39 }
 0x68f   :  { %13953 = vmatpush3.bf16.msra.mxu0 %v14258_v30 }
 0x690   :  { %13975 = vmatpush3.bf16.msra.mxu1 %v14259_v57  ;;  %13954 = vmatprep.subr.bf16.mxu0 %v14260_v6 }
 0x691   :  { %13976 = vmatprep.subr.bf16.mxu1 %v14261_v58 }
 0x693   :  { %13955 = vmatpush3.bf16.msra.mxu0 %v14262_v41 }
 0x694   :  { %13977 = vmatpush3.bf16.msra.mxu1 %v14263_v17  ;;  %13984 = vmatprep.subr.bf16.mxu0 %v14264_v20 }
 0x695   :  { %14006 = vmatprep.subr.bf16.mxu1 %v14265_v60 }
 0x696   :  { %12147 = vmatmul.mubr.bf16.vlgmr.msra.gmra.mrb[8].mxu0 %v14776_v22  ;;  %v14278_v22 = vld [vmem:[#allocation8 + $0x118] sm:$0xff]  }
 0x697   :  { %12188 = vmatmul.mubr.bf16.vlgmr.msra.gmra.mrb[8].mxu1 %v14778_v50  ;;  %13985 = vmatpush3.bf16.msra.mxu0 %v14266_v61  ;;  %v14279_v50 = vld [vmem:[#allocation8 + $0x198] sm:$0xff]  }
 0x698   :  { %14007 = vmatpush3.bf16.msra.mxu1 %v14267_v62  ;;  %13986 = vmatprep.subr.bf16.mxu0 %v14268_v13 }
 0x699   :  { %14008 = vmatprep.subr.bf16.mxu1 %v14269_v63 }
 0x69b   :  { %13987 = vmatpush3.bf16.msra.mxu0 %v14270_v1 }
 0x69c   :  { %14009 = vmatpush3.bf16.msra.mxu1 %v14271_v44  ;;  %13988 = vmatprep.subr.bf16.mxu0 %v14272_v14  ;;  %v13873_v44 = vld [vmem:[#allocation10] ss:$0 sm:$0xff] }
 0x69d   :  { %14010 = vmatprep.subr.bf16.mxu1 %v14273_v5 }
 0x69f   :  { %13989 = vmatpush3.bf16.msra.mxu0 %v14274_v7 }
 0x6a0   :  { %14011 = vmatpush3.bf16.msra.mxu1 %v14275_v8  ;;  %13990 = vmatprep.subr.bf16.mxu0 %v14276_v9 }
 0x6a1   :  { %14012 = vmatprep.subr.bf16.mxu1 %v14277_v10 }
 0x6a3   :  { %13991 = vmatpush3.bf16.msra.mxu0 %v14278_v22 }
 0x6a4   :  { %14013 = vmatpush3.bf16.msra.mxu1 %v14279_v50  ;;  %13992 = vmatprep.subr.bf16.mxu0 %v14280_v11 }
 0x6a5   :  { %14014 = vmatprep.subr.bf16.mxu1 %v14281_v12 }
 0x6a7   :  { %13993 = vmatpush3.bf16.msra.mxu0 %v14282_v34 }
 0x6a8   :  { %14015 = vmatpush3.bf16.msra.mxu1 %v14283_v16  ;;  %13994 = vmatprep.subr.bf16.mxu0 %v14284_v33 }
 0x6a9   :  { %14016 = vmatprep.subr.bf16.mxu1 %v14285_v56 }
 0x6ab   :  { %13995 = vmatpush3.bf16.msra.mxu0 %v14286_v53 }
 0x6ac   :  { %14017 = vmatpush3.bf16.msra.mxu1 %v14287_v35  ;;  %13996 = vmatprep.subr.bf16.mxu0 %v14288_v15 }
 0x6ad   :  { %14018 = vmatprep.subr.bf16.mxu1 %v14289_v23 }
 0x6af   :  { %13997 = vmatpush3.bf16.msra.mxu0 %v14290_v25 }
 0x6b0   :  { %14019 = vmatpush3.bf16.msra.mxu1 %v14291_v27  ;;  %13998 = vmatprep.subr.bf16.mxu0 %v14292_v59 }
 0x6b1   :  { %14020 = vmatprep.subr.bf16.mxu1 %v14293_v29 }
 0x6b3   :  { %13999 = vmatpush3.bf16.msra.mxu0 %v14294_v47 }
 0x6b4   :  { %14021 = vmatpush3.bf16.msra.mxu1 %v14295_v0 }
 0x749   :  { %v11046_v19 = vpop.f32.mrb[4].mxu0  ;;  %v11562_v46 = vpop.f32.mrb[4].mxu1 }
 0x74a   :  { %v14036_v24 = vadd.f32 %v11046_v19, %v1686_v42  ;;  %v11048_v48 = vpop.f32.mrb[5].mxu0  ;;  %v14040_v21 = vadd.f32 %v11562_v46, %v1694_v43  ;;  %v11564_v32 = vpop.f32.mrb[5].mxu1  ;;  %v13939_v46 = vld [vmem:[#allocation2] ss:$0 sm:$0xff] }
 0x74b   :  { %v14037_v51 = vadd.f32 %v11048_v48, %v1690_v18  ;;  %v11050_v26 = vpop.f32.mrb[6].mxu0  ;;  %v14041_v28 = vadd.f32 %v11564_v32, %v1698_v36  ;;  %v11566_v49 = vpop.f32.mrb[6].mxu1 }
 0x74c   :  { %v14038_v45 = vadd.f32 %v11050_v26, %v1686_v42  ;;  %v11052_v52 = vpop.f32.mrb[7].mxu0  ;;  %v14042_v2 = vadd.f32 %v11566_v49, %v1694_v43  ;;  %v11568_v31 = vpop.f32.mrb[7].mxu1  ;;  %v11575_v4 = vmax.f32 %v14036_v24, 0.0  ;;  %v11577_v57 = vmax.f32 %v14040_v21, 0.0  ;;  %v13938_v42 = vld [vmem:[#allocation11] ss:$0 sm:$0xff] }
 0x74d   :  { %v14039_v3 = vadd.f32 %v11052_v52, %v1690_v18  ;;  %v14043_v30 = vadd.f32 %v11568_v31, %v1698_v36  ;;  %v11576_v6 = vmax.f32 %v14037_v51, 0.0  ;;  %v11578_v17 = vmax.f32 %v14041_v28, 0.0 }
 0x74e   :  { %v11583_v39 = vmax.f32 %v14038_v45, 0.0  ;;  %v11585_v58 = vmax.f32 %v14042_v2, 0.0 }
 0x74f   :  { %v11584_v41 = vmax.f32 %v14039_v3, 0.0  ;;  %v11586_v60 = vmax.f32 %v14043_v30, 0.0 }
 0x750   :  { %v11591_v20 = vpack.c.bf16 %v11583_v39, %v11575_v4  ;;  %v11593_v61 = vpack.c.bf16 %v11585_v58, %v11577_v57 }
 0x751   :  { %v11592_v62 = vpack.c.bf16 %v11584_v41, %v11576_v6  ;;  %v11594_v13 = vpack.c.bf16 %v11586_v60, %v11578_v17 }
 0x753   :  { %12228 = vmatprep.mubr.bf16.mxu0 %v11592_v62  ;;  %12269 = vmatprep.mubr.bf16.mxu1 %v11594_v13 }
 0x754   :  { %12229 = vmatmul.mubr.bf16.vlgmr.msra.gmra.mrb[12].mxu0 %v11591_v20  ;;  %12270 = vmatmul.mubr.bf16.vlgmr.msra.gmra.mrb[12].mxu1 %v11593_v61 }
 0x769   :  { %v13956_v63 = vpop.f32.mrb[8].mxu0 }
 0x76a   :  { %v13978_v1 = vpop.f32.mrb[8].mxu1  ;;  %v13957_v14 = vpop.f32.mrb[9].mxu0 }
 0x76b   :  { %v13958_v5 = vadd.f32 %v13957_v14, %v13956_v63  ;;  %v13979_v7 = vpop.f32.mrb[9].mxu1  ;;  %v13959_v8 = vpop.f32.mrb[10].mxu0 }
 0x76c   :  { %v13980_v9 = vadd.f32 %v13979_v7, %v13978_v1  ;;  %v13981_v10 = vpop.f32.mrb[10].mxu1  ;;  %v13960_v22 = vpop.f32.mrb[11].mxu0 }
 0x76d   :  { %v12149_v50 = vadd.f32 %v13958_v5, %v13873_v44  ;;  %v13961_v11 = vadd.f32 %v13960_v22, %v13959_v8  ;;  %v13982_v12 = vpop.f32.mrb[11].mxu1 }
 0x76e   :  { %v13983_v34 = vadd.f32 %v13982_v12, %v13981_v10 }
 0x76f   :  { %v12190_v16 = vadd.f32 %v13980_v9, %v12149_v50  ;;  %v12152_v33 = vadd.f32 %v13961_v11, %v13873_v44 }
 0x771   :  { %v12193_v56 = vadd.f32 %v13983_v34, %v12152_v33 }
 0x827   :  { %v14000_v53 = vpop.f32.mrb[12].mxu0  ;;  %v14022_v35 = vpop.f32.mrb[12].mxu1 }
 0x828   :  { %v14001_v15 = vpop.f32.mrb[13].mxu0  ;;  %v14023_v25 = vpop.f32.mrb[13].mxu1 }
 0x829   :  { %v14002_v23 = vadd.f32 %v14001_v15, %v14000_v53  ;;  %v14003_v27 = vpop.f32.mrb[14].mxu0  ;;  %v14024_v59 = vadd.f32 %v14023_v25, %v14022_v35  ;;  %v14025_v29 = vpop.f32.mrb[14].mxu1 }
 0x82a   :  { %v14004_v47 = vpop.f32.mrb[15].mxu0  ;;  %v14026_v55 = vpop.f32.mrb[15].mxu1 }
 0x82b   :  { %v12231_v0 = vadd.f32 %v14002_v23, %v12190_v16  ;;  %v14005_v40 = vadd.f32 %v14004_v47, %v14003_v27  ;;  %v14027_v37 = vadd.f32 %v14026_v55, %v14025_v29 }
 0x82d   :  { %v12234_v54 = vadd.f32 %v14005_v40, %v12193_v56  ;;  %v12272_v38 = vadd.f32 %v14024_v59, %v12231_v0 }
 0x82f   :  { %v12275_v43 = vadd.f32 %v14027_v37, %v12234_v54  ;;  %v12278_v18 = vmax.f32 %v12272_v38, 0.0 }
 0x831   :  { %v12279_v36 = vmax.f32 %v12275_v43, 0.0  ;;  %v12287_v19 = vmul.f32 %v13938_v42, %v12278_v18 }
 0x833   :  { %12289 = vadd.xlane.f32.xlu0 %v12287_v19  ;;  %v12288_v24 = vmul.f32 %v13938_v42, %v12279_v36 }
 0x837   :  { %12291 = vadd.xlane.f32.xlu0 %v12288_v24 }
 0x8c0   :  { %v12290_v48 = vpop.xlane.xlu0 %12289 }
 0x8c1   :  { %v12300_v21 = vadd.f32 %v13939_v46, %v12290_v48 }
 0x8c3   :  { %12303 = vst.msk [vmem:[%s14839_s7] sm:$0xff] %vm12302_vm0, %v12300_v21 }
 0x8c4   :  { %v12292_v51 = vpop.xlane.xlu0 %12291 }
 0x8c5   :  { %v12301_v32 = vadd.f32 %v13939_v46, %v12292_v51 }
 0x8c7   :  { %12304 = vst.msk [vmem:[%s14839_s7 + $0x8] sm:$0xff] %vm12302_vm0, %v12301_v32 }
 0x8c8   :  { %12309 = vsyncpa [#allocation4], 1 }
 0x8c9   :  { %12310 = vsyncpa [#allocation6], 1 }
 0x8ca   :  { %12311 = vsyncpa [#allocation9], 1 }
 0x8cb   :  { %12312 = vsyncpa [#allocation12], 1 }

</bundles_post_ra>
